<compile_context>
chip_gen: v7x
topology: tpu7x:2x2x1
jax: 0.10.0
libtpu: 0.0.40
codegen_flags: <defaults>
</compile_context>

<pallas_src>
import functools

import jax
import jax.numpy as jnp
import numpy as np
from jax import lax
from jax.experimental import pallas as pl
from jax.experimental.pallas import tpu as pltpu


# Loss weights from the PyTorch VGGLoss module.
VGG_LOSS_WEIGHTS = (1.0 / 32, 1.0 / 16, 1.0 / 8, 1.0 / 4, 1.0)

# VGG19 "features" layers 0..29 grouped into the 5 slices of Vgg19.
# Each entry: (cin, cout) for Conv3x3(pad=1)+ReLU, or None for MaxPool2d(2,2).
VGG_SLICE_CFG = (
    ((3, 64),),
    ((64, 64), None, (64, 128)),
    ((128, 128), None, (128, 256)),
    ((256, 256), (256, 256), (256, 256), None, (256, 512)),
    ((512, 512), (512, 512), (512, 512), None, (512, 512)),
)


def _pick_tile(n, candidates=(1024, 512, 256, 128, 64, 32, 16, 8)):
    """Largest row-tile that divides n (keeps (8,128) layout rules happy)."""
    for t in candidates:
        if n % t == 0:
            return t
    return n


# --------------------------------------------------------------------------
# Pallas kernels
# --------------------------------------------------------------------------
def _conv_tap_kernel(xs_ref, w_ref, b_ref, o_ref, acc_ref):
    """One 3x3-conv tap per inner grid step: acc += im2col_tap @ w_tap.

    Grid = (M_tiles, 9).  Axis 0: output row tiles (parallel).
                          Axis 1: filter taps (reduction, arbitrary).
    xs_ref : (1, tm, Cin) bf16  -- shifted activation slab for this tap/tile
    w_ref  : (1, Cin, Cout) bf16
    b_ref  : (1, Cout) bf16
    o_ref  : (tm, Cout) bf16    -- resident across the tap axis
    acc_ref: (tm, Cout) f32 VMEM scratch
    """
    k = pl.program_id(1)

    @pl.when(k == 0)
    def _():
        acc_ref[...] = jnp.zeros_like(acc_ref)

    acc_ref[...] += jnp.dot(xs_ref[0], w_ref[0],
                            preferred_element_type=jnp.float32)

    @pl.when(k == pl.num_programs(1) - 1)
    def _():
        r = acc_ref[...] + b_ref[...].astype(jnp.float32)
        o_ref[...] = jnp.maximum(r, 0.0).astype(o_ref.dtype)


def _maxpool_kernel(a_ref, b_ref, c_ref, d_ref, o_ref):
    """2x2 stride-2 max pool as an elementwise max of the 4 offset views."""
    o_ref[...] = jnp.maximum(jnp.maximum(a_ref[...], b_ref[...]),
                             jnp.maximum(c_ref[...], d_ref[...]))


def _l1_partial_kernel(scale, x_ref, y_ref, o_ref):
    """Accumulate scale * sum|x - y| over row tiles into a resident (1,1)."""
    k = pl.program_id(0)

    @pl.when(k == 0)
    def _():
        o_ref[...] = jnp.zeros_like(o_ref)

    d = jnp.abs(x_ref[...].astype(jnp.float32) - y_ref[...].astype(jnp.float32))
    o_ref[...] += scale * jnp.sum(d, axis=(0, 1), keepdims=True)


# --------------------------------------------------------------------------
# Wrappers (layout glue + pallas_call configuration)
# --------------------------------------------------------------------------
def conv3x3_relu(x, w_taps, bias):
    """3x3 conv (pad=1, stride=1) + bias + ReLU on NHWC bf16 input.

    x      : (B, H, W, Cin) bf16
    w_taps : (9, Cin, Cout) bf16   (tap k = 3*dy + dx of the HWIO kernel)
    bias   : (1, Cout) bf16
    """
    B, H, W, Cin = x.shape
    Cout = w_taps.shape[-1]
    M = B * H * W
    tm = _pick_tile(M)

    # im2col layout glue (XLA): 9 shifted views of the zero-padded input.
    xp = jnp.pad(x, ((0, 0), (1, 1), (1, 1), (0, 0)))
    taps = [xp[:, dy:dy + H, dx:dx + W, :].reshape(M, Cin)
            for dy in range(3) for dx in range(3)]
    xs = jnp.stack(taps, axis=0)                      # (9, M, Cin)

    out = pl.pallas_call(
        _conv_tap_kernel,
        out_shape=jax.ShapeDtypeStruct((M, Cout), jnp.bfloat16),
        grid=(M // tm, 9),
        in_specs=[
            pl.BlockSpec((1, tm, Cin), lambda i, k: (k, i, 0)),     # tap slab
            pl.BlockSpec((1, Cin, Cout), lambda i, k: (k, 0, 0)),   # tap weight
            pl.BlockSpec((1, Cout), lambda i, k: (0, 0)),           # bias
        ],
        out_specs=pl.BlockSpec((tm, Cout), lambda i, k: (i, 0)),    # resident over taps
        scratch_shapes=[pltpu.VMEM((tm, Cout), jnp.float32)],
        compiler_params=pltpu.CompilerParams(
            dimension_semantics=("parallel", "arbitrary"),
            vmem_limit_bytes=32 * 1024 * 1024),
    )(xs, w_taps, bias)

    return out.reshape(B, H, W, Cout)


def maxpool2x2(x):
    """MaxPool2d(kernel=2, stride=2) on NHWC bf16 input."""
    B, H, W, C = x.shape
    Ho, Wo = H // 2, W // 2
    rows = B * Ho * Wo
    tm = _pick_tile(rows)

    views = [x[:, dy::2, dx::2, :].reshape(rows, C)
             for dy in range(2) for dx in range(2)]

    spec = pl.BlockSpec((tm, C), lambda i: (i, 0))
    out = pl.pallas_call(
        _maxpool_kernel,
        out_shape=jax.ShapeDtypeStruct((rows, C), x.dtype),
        grid=(rows // tm,),
        in_specs=[spec] * 4,
        out_specs=spec,
        compiler_params=pltpu.CompilerParams(
            dimension_semantics=("parallel",)),
    )(*views)
    return out.reshape(B, Ho, Wo, C)


def weighted_l1_mean(x2d, y2d, scale):
    """scale * sum|x - y| over a (rows, C) pair via a tiled reduction kernel."""
    rows, C = x2d.shape
    tm = _pick_tile(rows)
    kernel = functools.partial(_l1_partial_kernel, scale)
    out = pl.pallas_call(
        kernel,
        out_shape=jax.ShapeDtypeStruct((1, 1), jnp.float32),
        grid=(rows // tm,),
        in_specs=[pl.BlockSpec((tm, C), lambda i: (i, 0)),
                  pl.BlockSpec((tm, C), lambda i: (i, 0))],
        out_specs=pl.BlockSpec((1, 1), lambda i: (0, 0)),
        compiler_params=pltpu.CompilerParams(
            dimension_semantics=("arbitrary",)),
    )(x2d, y2d)
    return out[0, 0]


def vgg19_features(x_nhwc, params):
    """Returns the 5 slice outputs (h_relu1..h_relu5), NHWC bf16."""
    feats = []
    h = x_nhwc
    for slice_params in params:
        for layer in slice_params:
            if layer is None:
                h = maxpool2x2(h)
            else:
                w_taps, bias = layer
                h = conv3x3_relu(h, w_taps, bias)
        feats.append(h)
    return feats


def vgg_loss(x_nchw, y_nchw, params):
    """VGGLoss.forward: weighted L1 between VGG19 features of x and y."""
    x = jnp.transpose(x_nchw, (0, 2, 3, 1)).astype(jnp.bfloat16)
    y = jnp.transpose(y_nchw, (0, 2, 3, 1)).astype(jnp.bfloat16)

    fx = vgg19_features(x, params)
    fy = vgg19_features(y, params)

    loss = jnp.zeros((), jnp.float32)
    for wgt, a, b in zip(VGG_LOSS_WEIGHTS, fx, fy):
        c = a.shape[-1]
        n = a.size
        loss = loss + weighted_l1_mean(a.reshape(n // c, c),
                                       b.reshape(n // c, c),
                                       float(wgt) / float(n))
    return loss


# --------------------------------------------------------------------------
# Parameter init (PyTorch Conv2d default init; pretrained weights unavailable)
# --------------------------------------------------------------------------
def init_vgg_params(key):
    params = []
    for slice_cfg in VGG_SLICE_CFG:
        layers = []
        for cfg in slice_cfg:
            if cfg is None:
                layers.append(None)
                continue
            cin, cout = cfg
            key, kw, kb = jax.random.split(key, 3)
            fan_in = cin * 9
            bound = 1.0 / np.sqrt(fan_in)
            w = jax.random.uniform(kw, (3, 3, cin, cout), jnp.float32,
                                   -bound, bound)         # HWIO
            b = jax.random.uniform(kb, (1, cout), jnp.float32, -bound, bound)
            layers.append((w.reshape(9, cin, cout).astype(jnp.bfloat16),
                           b.astype(jnp.bfloat16)))
        params.append(layers)
    return params


# --------------------------------------------------------------------------
# Pure-JAX reference (validates conv/pool/loss semantics, mimics bf16 storage)
# --------------------------------------------------------------------------
def _ref_vgg_loss(x_nchw, y_nchw, params):
    def features(x):
        h = jnp.transpose(x, (0, 2, 3, 1)).astype(jnp.bfloat16).astype(jnp.float32)
        feats = []
        for slice_params in params:
            for layer in slice_params:
                if layer is None:
                    h = lax.reduce_window(h, -jnp.inf, lax.max,
                                          (1, 2, 2, 1), (1, 2, 2, 1), "VALID")
                else:
                    w_taps, bias = layer
                    cin, cout = w_taps.shape[1], w_taps.shape[2]
                    w_hwio = w_taps.astype(jnp.float32).reshape(3, 3, cin, cout)
                    h = lax.conv_general_dilated(
                        h, w_hwio, (1, 1), ((1, 1), (1, 1)),
                        dimension_numbers=("NHWC", "HWIO", "NHWC"),
                        precision=lax.Precision.HIGHEST)
                    h = jnp.maximum(
                        h + bias.astype(jnp.float32).reshape(1, 1, 1, cout), 0.0)
                    h = h.astype(jnp.bfloat16).astype(jnp.float32)
            feats.append(h)
        return feats

    fx, fy = features(x_nchw), features(y_nchw)
    loss = 0.0
    for wgt, a, b in zip(VGG_LOSS_WEIGHTS, fx, fy):
        loss = loss + wgt * jnp.mean(jnp.abs(a - b))
    return loss


# --------------------------------------------------------------------------
if __name__ == "__main__":
    key = jax.random.PRNGKey(0)
    kx, ky, kp = jax.random.split(key, 3)

    B, C, H, W = 2, 3, 16, 16
    x = jax.random.normal(kx, (B, C, H, W), dtype=jnp.float32)
    y = jax.random.normal(ky, (B, C, H, W), dtype=jnp.float32)
    params = init_vgg_params(kp)

    loss_fn = jax.jit(vgg_loss)
    loss = jax.block_until_ready(loss_fn(x, y, params))

    ref = jax.block_until_ready(_ref_vgg_loss(x, y, params))
    np.testing.assert_allclose(float(loss), float(ref), rtol=5e-2, atol=1e-3)

    print("KERNEL_OK")
</pallas_src>

<mosaic_0001>
module attributes {stable_mosaic.version = 11 : i64} {
  func.func @_conv_tap_kernel(%arg0: i32, %arg1: i32, %arg2: memref<1x512x3xbf16, #tpu.memory_space<vmem>>, %arg3: memref<1x3x64xbf16, #tpu.memory_space<vmem>>, %arg4: memref<1x64xbf16, #tpu.memory_space<vmem>>, %arg5: memref<512x64xbf16, #tpu.memory_space<vmem>>, %arg6: memref<512x64xf32, #tpu.memory_space<vmem>>) attributes {dimension_semantics = [#tpu.dimension_semantics<parallel>, #tpu.dimension_semantics<arbitrary>], iteration_bounds = array<i64: 1, 9>, scalar_prefetch = 0 : i64, scratch_operands = 1 : i64, tpu.core_type = #tpu.core_type<tc>, window_params = [{transform_indices = @transform_0, window_bounds = array<i64: 1, 512, 3>}, {transform_indices = @transform_1, window_bounds = array<i64: 1, 3, 64>}, {pipeline_mode = #tpu.pipeline_mode<synchronous>, transform_indices = @transform_2, window_bounds = array<i64: 1, 64>}, {transform_indices = @transform_3, window_bounds = array<i64: 512, 64>}]} {
    %c0_i32 = arith.constant 0 : i32
    %0 = arith.cmpi eq, %arg1, %c0_i32 : i32
    %1 = arith.extui %0 : i1 to i32
    %c0_i32_0 = arith.constant 0 : i32
    %2 = arith.cmpi ne, %1, %c0_i32_0 : i32
    scf.if %2 {
      %cst_11 = arith.constant 0.000000e+00 : f32
      %14 = vector.broadcast %cst_11 : f32 to vector<512x64xf32>
      %c0_12 = arith.constant 0 : index
      %c0_13 = arith.constant 0 : index
      %15 = vector.load %arg6[%c0_12, %c0_13] : memref<512x64xf32, #tpu.memory_space<vmem>>, vector<512x64xf32>
      tpu.vector_store %arg6[%c0_12, %c0_13], %14 {strides = array<i32>} : memref<512x64xf32, #tpu.memory_space<vmem>>, vector<512x64xf32>,
    } else {
    }
    %c0 = arith.constant 0 : index
    %c0_1 = arith.constant 0 : index
    %3 = vector.load %arg6[%c0, %c0_1] : memref<512x64xf32, #tpu.memory_space<vmem>>, vector<512x64xf32>
    %c0_2 = arith.constant 0 : index
    %c0_3 = arith.constant 0 : index
    %c0_4 = arith.constant 0 : index
    %4 = vector.load %arg2[%c0_2, %c0_3, %c0_4] : memref<1x512x3xbf16, #tpu.memory_space<vmem>>, vector<1x512x3xbf16>
    %5 = vector.shape_cast %4 : vector<1x512x3xbf16> to vector<512x3xbf16>
    %c0_5 = arith.constant 0 : index
    %c0_6 = arith.constant 0 : index
    %c0_7 = arith.constant 0 : index
    %6 = vector.load %arg3[%c0_5, %c0_6, %c0_7] : memref<1x3x64xbf16, #tpu.memory_space<vmem>>, vector<1x3x64xbf16>
    %7 = vector.shape_cast %6 : vector<1x3x64xbf16> to vector<3x64xbf16>
    %cst = arith.constant dense<0.000000e+00> : vector<512x64xf32>
    %8 = tpu.matmul %5, %7, %cst {dimension_numbers = #tpu.dot_dimension_numbers<[1], [0], [0], [1], [0, 0, 1, 1], [], []>} : vector<512x3xbf16>, vector<3x64xbf16>, vector<512x64xf32> -> vector<512x64xf32>
    %9 = arith.addf %3, %8 : vector<512x64xf32>
    %c0_8 = arith.constant 0 : index
    %c0_9 = arith.constant 0 : index
    %10 = vector.load %arg6[%c0_8, %c0_9] : memref<512x64xf32, #tpu.memory_space<vmem>>, vector<512x64xf32>
    tpu.vector_store %arg6[%c0_8, %c0_9], %9 {strides = array<i32>} : memref<512x64xf32, #tpu.memory_space<vmem>>, vector<512x64xf32>,
    %c8_i32 = arith.constant 8 : i32
    %11 = arith.cmpi eq, %arg1, %c8_i32 : i32
    %12 = arith.extui %11 : i1 to i32
    %c0_i32_10 = arith.constant 0 : i32
    %13 = arith.cmpi ne, %12, %c0_i32_10 : i32
    scf.if %13 {
      %c0_11 = arith.constant 0 : index
      %c0_12 = arith.constant 0 : index
      %14 = vector.load %arg6[%c0_11, %c0_12] : memref<512x64xf32, #tpu.memory_space<vmem>>, vector<512x64xf32>
      %c0_13 = arith.constant 0 : index
      %c0_14 = arith.constant 0 : index
      %15 = vector.load %arg4[%c0_13, %c0_14] : memref<1x64xbf16, #tpu.memory_space<vmem>>, vector<1x64xbf16>
      %16 = arith.extf %15 : vector<1x64xbf16> to vector<1x64xf32>
      %17 = vector.broadcast %16 : vector<1x64xf32> to vector<512x64xf32>
      %18 = arith.addf %14, %17 : vector<512x64xf32>
      %cst_15 = arith.constant 0.000000e+00 : f32
      %19 = vector.broadcast %cst_15 : f32 to vector<512x64xf32>
      %20 = arith.maximumf %18, %19 : vector<512x64xf32>
      %21 = arith.truncf %20 : vector<512x64xf32> to vector<512x64xbf16>
      %c0_16 = arith.constant 0 : index
      %c0_17 = arith.constant 0 : index
      %22 = vector.load %arg5[%c0_16, %c0_17] : memref<512x64xbf16, #tpu.memory_space<vmem>>, vector<512x64xbf16>
      tpu.vector_store %arg5[%c0_16, %c0_17], %21 {strides = array<i32>} : memref<512x64xbf16, #tpu.memory_space<vmem>>, vector<512x64xbf16>,
    } else {
    }
    return
  }
  func.func @transform_0(%arg0: i32, %arg1: i32) -> (i32, i32, i32) {
    %c0_i32 = arith.constant 0 : i32
    %c0_i32_0 = arith.constant 0 : i32
    return %arg1, %arg0, %c0_i32 : i32, i32, i32
  }
  func.func @transform_1(%arg0: i32, %arg1: i32) -> (i32, i32, i32) {
    %c0_i32 = arith.constant 0 : i32
    %c0_i32_0 = arith.constant 0 : i32
    %c0_i32_1 = arith.constant 0 : i32
    return %arg1, %c0_i32, %c0_i32_0 : i32, i32, i32
  }
  func.func @transform_2(%arg0: i32, %arg1: i32) -> (i32, i32) {
    %c0_i32 = arith.constant 0 : i32
    %c0_i32_0 = arith.constant 0 : i32
    %c0_i32_1 = arith.constant 0 : i32
    return %c0_i32, %c0_i32_0 : i32, i32
  }
  func.func @transform_3(%arg0: i32, %arg1: i32) -> (i32, i32) {
    %c0_i32 = arith.constant 0 : i32
    %c0_i32_0 = arith.constant 0 : i32
    return %arg0, %c0_i32 : i32, i32
  }
}

module attributes {stable_mosaic.version = 11 : i64} {
  func.func @_l1_partial_kernel(%arg0: i32, %arg1: memref<512x64xbf16, #tpu.memory_space<vmem>>, %arg2: memref<512x64xbf16, #tpu.memory_space<vmem>>, %arg3: memref<1x1xf32, #tpu.memory_space<vmem>>) attributes {dimension_semantics = [#tpu.dimension_semantics<arbitrary>], iteration_bounds = array<i64: 1>, scalar_prefetch = 0 : i64, scratch_operands = 0 : i64, tpu.core_type = #tpu.core_type<tc>, window_params = [{transform_indices = @transform_0, window_bounds = array<i64: 512, 64>}, {transform_indices = @transform_1, window_bounds = array<i64: 512, 64>}, {pipeline_mode = #tpu.pipeline_mode<synchronous>, transform_indices = @transform_2, window_bounds = array<i64: 1, 1>}]} {
    %c0_i32 = arith.constant 0 : i32
    %0 = arith.cmpi eq, %arg0, %c0_i32 : i32
    %1 = arith.extui %0 : i1 to i32
    %c0_i32_0 = arith.constant 0 : i32
    %2 = arith.cmpi ne, %1, %c0_i32_0 : i32
    scf.if %2 {
      %cst_9 = arith.constant 0.000000e+00 : f32
      %19 = vector.broadcast %cst_9 : f32 to vector<1x1xf32>
      %c0_10 = arith.constant 0 : index
      %c0_11 = arith.constant 0 : index
      %20 = vector.load %arg3[%c0_10, %c0_11] : memref<1x1xf32, #tpu.memory_space<vmem>>, vector<1x1xf32>
      tpu.vector_store %arg3[%c0_10, %c0_11], %19 {strides = array<i32>} : memref<1x1xf32, #tpu.memory_space<vmem>>, vector<1x1xf32>,
    } else {
    }
    %c0 = arith.constant 0 : index
    %c0_1 = arith.constant 0 : index
    %3 = vector.load %arg1[%c0, %c0_1] : memref<512x64xbf16, #tpu.memory_space<vmem>>, vector<512x64xbf16>
    %4 = arith.extf %3 : vector<512x64xbf16> to vector<512x64xf32>
    %c0_2 = arith.constant 0 : index
    %c0_3 = arith.constant 0 : index
    %5 = vector.load %arg2[%c0_2, %c0_3] : memref<512x64xbf16, #tpu.memory_space<vmem>>, vector<512x64xbf16>
    %6 = arith.extf %5 : vector<512x64xbf16> to vector<512x64xf32>
    %7 = arith.subf %4, %6 : vector<512x64xf32>
    %8 = math.absf %7 : vector<512x64xf32>
    %c0_4 = arith.constant 0 : index
    %c0_5 = arith.constant 0 : index
    %9 = vector.load %arg3[%c0_4, %c0_5] : memref<1x1xf32, #tpu.memory_space<vmem>>, vector<1x1xf32>
    %10 = vector.shape_cast %8 : vector<512x64xf32> to vector<1x512x64xf32>
    %cst = arith.constant dense<0.000000e+00> : vector<1xf32>
    %11 = vector.multi_reduction <add>, %10, %cst [1, 2] : vector<1x512x64xf32> to vector<1xf32>
    %12 = vector.shape_cast %11 : vector<1xf32> to vector<1x1x1xf32>
    %13 = vector.extract %12[0, 0, 0] : f32 from vector<1x1x1xf32>
    %14 = vector.broadcast %13 : f32 to vector<1x1xf32>
    %cst_6 = arith.constant 9.53674316E-7 : f32
    %15 = vector.broadcast %cst_6 : f32 to vector<1x1xf32>
    %16 = arith.mulf %15, %14 : vector<1x1xf32>
    %17 = arith.addf %9, %16 : vector<1x1xf32>
    %c0_7 = arith.constant 0 : index
    %c0_8 = arith.constant 0 : index
    %18 = vector.load %arg3[%c0_7, %c0_8] : memref<1x1xf32, #tpu.memory_space<vmem>>, vector<1x1xf32>
    tpu.vector_store %arg3[%c0_7, %c0_8], %17 {strides = array<i32>} : memref<1x1xf32, #tpu.memory_space<vmem>>, vector<1x1xf32>,
    return
  }
  func.func @transform_0(%arg0: i32) -> (i32, i32) {
    %c0_i32 = arith.constant 0 : i32
    %c0_i32_0 = arith.constant 0 : i32
    return %arg0, %c0_i32 : i32, i32
  }
  func.func @transform_1(%arg0: i32) -> (i32, i32) {
    %c0_i32 = arith.constant 0 : i32
    %c0_i32_0 = arith.constant 0 : i32
    return %arg0, %c0_i32 : i32, i32
  }
  func.func @transform_2(%arg0: i32) -> (i32, i32) {
    %c0_i32 = arith.constant 0 : i32
    %c0_i32_0 = arith.constant 0 : i32
    %c0_i32_1 = arith.constant 0 : i32
    return %c0_i32, %c0_i32_0 : i32, i32
  }
}

module attributes {stable_mosaic.version = 11 : i64} {
  func.func @_conv_tap_kernel(%arg0: i32, %arg1: i32, %arg2: memref<1x512x64xbf16, #tpu.memory_space<vmem>>, %arg3: memref<1x64x64xbf16, #tpu.memory_space<vmem>>, %arg4: memref<1x64xbf16, #tpu.memory_space<vmem>>, %arg5: memref<512x64xbf16, #tpu.memory_space<vmem>>, %arg6: memref<512x64xf32, #tpu.memory_space<vmem>>) attributes {dimension_semantics = [#tpu.dimension_semantics<parallel>, #tpu.dimension_semantics<arbitrary>], iteration_bounds = array<i64: 1, 9>, scalar_prefetch = 0 : i64, scratch_operands = 1 : i64, tpu.core_type = #tpu.core_type<tc>, window_params = [{transform_indices = @transform_0, window_bounds = array<i64: 1, 512, 64>}, {transform_indices = @transform_1, window_bounds = array<i64: 1, 64, 64>}, {pipeline_mode = #tpu.pipeline_mode<synchronous>, transform_indices = @transform_2, window_bounds = array<i64: 1, 64>}, {transform_indices = @transform_3, window_bounds = array<i64: 512, 64>}]} {
    %c0_i32 = arith.constant 0 : i32
    %0 = arith.cmpi eq, %arg1, %c0_i32 : i32
    %1 = arith.extui %0 : i1 to i32
    %c0_i32_0 = arith.constant 0 : i32
    %2 = arith.cmpi ne, %1, %c0_i32_0 : i32
    scf.if %2 {
      %cst_11 = arith.constant 0.000000e+00 : f32
      %14 = vector.broadcast %cst_11 : f32 to vector<512x64xf32>
      %c0_12 = arith.constant 0 : index
      %c0_13 = arith.constant 0 : index
      %15 = vector.load %arg6[%c0_12, %c0_13] : memref<512x64xf32, #tpu.memory_space<vmem>>, vector<512x64xf32>
      tpu.vector_store %arg6[%c0_12, %c0_13], %14 {strides = array<i32>} : memref<512x64xf32, #tpu.memory_space<vmem>>, vector<512x64xf32>,
    } else {
    }
    %c0 = arith.constant 0 : index
    %c0_1 = arith.constant 0 : index
    %3 = vector.load %arg6[%c0, %c0_1] : memref<512x64xf32, #tpu.memory_space<vmem>>, vector<512x64xf32>
    %c0_2 = arith.constant 0 : index
    %c0_3 = arith.constant 0 : index
    %c0_4 = arith.constant 0 : index
    %4 = vector.load %arg2[%c0_2, %c0_3, %c0_4] : memref<1x512x64xbf16, #tpu.memory_space<vmem>>, vector<1x512x64xbf16>
    %5 = vector.shape_cast %4 : vector<1x512x64xbf16> to vector<512x64xbf16>
    %c0_5 = arith.constant 0 : index
    %c0_6 = arith.constant 0 : index
    %c0_7 = arith.constant 0 : index
    %6 = vector.load %arg3[%c0_5, %c0_6, %c0_7] : memref<1x64x64xbf16, #tpu.memory_space<vmem>>, vector<1x64x64xbf16>
    %7 = vector.shape_cast %6 : vector<1x64x64xbf16> to vector<64x64xbf16>
    %cst = arith.constant dense<0.000000e+00> : vector<512x64xf32>
    %8 = tpu.matmul %5, %7, %cst {dimension_numbers = #tpu.dot_dimension_numbers<[1], [0], [0], [1], [0, 0, 1, 1], [], []>} : vector<512x64xbf16>, vector<64x64xbf16>, vector<512x64xf32> -> vector<512x64xf32>
    %9 = arith.addf %3, %8 : vector<512x64xf32>
    %c0_8 = arith.constant 0 : index
    %c0_9 = arith.constant 0 : index
    %10 = vector.load %arg6[%c0_8, %c0_9] : memref<512x64xf32, #tpu.memory_space<vmem>>, vector<512x64xf32>
    tpu.vector_store %arg6[%c0_8, %c0_9], %9 {strides = array<i32>} : memref<512x64xf32, #tpu.memory_space<vmem>>, vector<512x64xf32>,
    %c8_i32 = arith.constant 8 : i32
    %11 = arith.cmpi eq, %arg1, %c8_i32 : i32
    %12 = arith.extui %11 : i1 to i32
    %c0_i32_10 = arith.constant 0 : i32
    %13 = arith.cmpi ne, %12, %c0_i32_10 : i32
    scf.if %13 {
      %c0_11 = arith.constant 0 : index
      %c0_12 = arith.constant 0 : index
      %14 = vector.load %arg6[%c0_11, %c0_12] : memref<512x64xf32, #tpu.memory_space<vmem>>, vector<512x64xf32>
      %c0_13 = arith.constant 0 : index
      %c0_14 = arith.constant 0 : index
      %15 = vector.load %arg4[%c0_13, %c0_14] : memref<1x64xbf16, #tpu.memory_space<vmem>>, vector<1x64xbf16>
      %16 = arith.extf %15 : vector<1x64xbf16> to vector<1x64xf32>
      %17 = vector.broadcast %16 : vector<1x64xf32> to vector<512x64xf32>
      %18 = arith.addf %14, %17 : vector<512x64xf32>
      %cst_15 = arith.constant 0.000000e+00 : f32
      %19 = vector.broadcast %cst_15 : f32 to vector<512x64xf32>
      %20 = arith.maximumf %18, %19 : vector<512x64xf32>
      %21 = arith.truncf %20 : vector<512x64xf32> to vector<512x64xbf16>
      %c0_16 = arith.constant 0 : index
      %c0_17 = arith.constant 0 : index
      %22 = vector.load %arg5[%c0_16, %c0_17] : memref<512x64xbf16, #tpu.memory_space<vmem>>, vector<512x64xbf16>
      tpu.vector_store %arg5[%c0_16, %c0_17], %21 {strides = array<i32>} : memref<512x64xbf16, #tpu.memory_space<vmem>>, vector<512x64xbf16>,
    } else {
    }
    return
  }
  func.func @transform_0(%arg0: i32, %arg1: i32) -> (i32, i32, i32) {
    %c0_i32 = arith.constant 0 : i32
    %c0_i32_0 = arith.constant 0 : i32
    return %arg1, %arg0, %c0_i32 : i32, i32, i32
  }
  func.func @transform_1(%arg0: i32, %arg1: i32) -> (i32, i32, i32) {
    %c0_i32 = arith.constant 0 : i32
    %c0_i32_0 = arith.constant 0 : i32
    %c0_i32_1 = arith.constant 0 : i32
    return %arg1, %c0_i32, %c0_i32_0 : i32, i32, i32
  }
  func.func @transform_2(%arg0: i32, %arg1: i32) -> (i32, i32) {
    %c0_i32 = arith.constant 0 : i32
    %c0_i32_0 = arith.constant 0 : i32
    %c0_i32_1 = arith.constant 0 : i32
    return %c0_i32, %c0_i32_0 : i32, i32
  }
  func.func @transform_3(%arg0: i32, %arg1: i32) -> (i32, i32) {
    %c0_i32 = arith.constant 0 : i32
    %c0_i32_0 = arith.constant 0 : i32
    return %arg0, %c0_i32 : i32, i32
  }
}

module attributes {stable_mosaic.version = 11 : i64} {
  func.func @_maxpool_kernel(%arg0: i32, %arg1: memref<128x64xbf16, #tpu.memory_space<vmem>>, %arg2: memref<128x64xbf16, #tpu.memory_space<vmem>>, %arg3: memref<128x64xbf16, #tpu.memory_space<vmem>>, %arg4: memref<128x64xbf16, #tpu.memory_space<vmem>>, %arg5: memref<128x64xbf16, #tpu.memory_space<vmem>>) attributes {dimension_semantics = [#tpu.dimension_semantics<parallel>], iteration_bounds = array<i64: 1>, scalar_prefetch = 0 : i64, scratch_operands = 0 : i64, tpu.core_type = #tpu.core_type<tc>, window_params = [{transform_indices = @transform_0, window_bounds = array<i64: 128, 64>}, {transform_indices = @transform_1, window_bounds = array<i64: 128, 64>}, {transform_indices = @transform_2, window_bounds = array<i64: 128, 64>}, {transform_indices = @transform_3, window_bounds = array<i64: 128, 64>}, {transform_indices = @transform_4, window_bounds = array<i64: 128, 64>}]} {
    %c0 = arith.constant 0 : index
    %c0_0 = arith.constant 0 : index
    %0 = vector.load %arg1[%c0, %c0_0] : memref<128x64xbf16, #tpu.memory_space<vmem>>, vector<128x64xbf16>
    %c0_1 = arith.constant 0 : index
    %c0_2 = arith.constant 0 : index
    %1 = vector.load %arg2[%c0_1, %c0_2] : memref<128x64xbf16, #tpu.memory_space<vmem>>, vector<128x64xbf16>
    %2 = arith.maximumf %0, %1 : vector<128x64xbf16>
    %c0_3 = arith.constant 0 : index
    %c0_4 = arith.constant 0 : index
    %3 = vector.load %arg3[%c0_3, %c0_4] : memref<128x64xbf16, #tpu.memory_space<vmem>>, vector<128x64xbf16>
    %c0_5 = arith.constant 0 : index
    %c0_6 = arith.constant 0 : index
    %4 = vector.load %arg4[%c0_5, %c0_6] : memref<128x64xbf16, #tpu.memory_space<vmem>>, vector<128x64xbf16>
    %5 = arith.maximumf %3, %4 : vector<128x64xbf16>
    %6 = arith.maximumf %2, %5 : vector<128x64xbf16>
    %c0_7 = arith.constant 0 : index
    %c0_8 = arith.constant 0 : index
    %7 = vector.load %arg5[%c0_7, %c0_8] : memref<128x64xbf16, #tpu.memory_space<vmem>>, vector<128x64xbf16>
    tpu.vector_store %arg5[%c0_7, %c0_8], %6 {strides = array<i32>} : memref<128x64xbf16, #tpu.memory_space<vmem>>, vector<128x64xbf16>,
    return
  }
  func.func @transform_0(%arg0: i32) -> (i32, i32) {
    %c0_i32 = arith.constant 0 : i32
    %c0_i32_0 = arith.constant 0 : i32
    return %arg0, %c0_i32 : i32, i32
  }
  func.func @transform_1(%arg0: i32) -> (i32, i32) {
    %c0_i32 = arith.constant 0 : i32
    %c0_i32_0 = arith.constant 0 : i32
    return %arg0, %c0_i32 : i32, i32
  }
  func.func @transform_2(%arg0: i32) -> (i32, i32) {
    %c0_i32 = arith.constant 0 : i32
    %c0_i32_0 = arith.constant 0 : i32
    return %arg0, %c0_i32 : i32, i32
  }
  func.func @transform_3(%arg0: i32) -> (i32, i32) {
    %c0_i32 = arith.constant 0 : i32
    %c0_i32_0 = arith.constant 0 : i32
    return %arg0, %c0_i32 : i32, i32
  }
  func.func @transform_4(%arg0: i32) -> (i32, i32) {
    %c0_i32 = arith.constant 0 : i32
    %c0_i32_0 = arith.constant 0 : i32
    return %arg0, %c0_i32 : i32, i32
  }
}

module attributes {stable_mosaic.version = 11 : i64} {
  func.func @_conv_tap_kernel(%arg0: i32, %arg1: i32, %arg2: memref<1x128x64xbf16, #tpu.memory_space<vmem>>, %arg3: memref<1x64x128xbf16, #tpu.memory_space<vmem>>, %arg4: memref<1x128xbf16, #tpu.memory_space<vmem>>, %arg5: memref<128x128xbf16, #tpu.memory_space<vmem>>, %arg6: memref<128x128xf32, #tpu.memory_space<vmem>>) attributes {dimension_semantics = [#tpu.dimension_semantics<parallel>, #tpu.dimension_semantics<arbitrary>], iteration_bounds = array<i64: 1, 9>, scalar_prefetch = 0 : i64, scratch_operands = 1 : i64, tpu.core_type = #tpu.core_type<tc>, window_params = [{transform_indices = @transform_0, window_bounds = array<i64: 1, 128, 64>}, {transform_indices = @transform_1, window_bounds = array<i64: 1, 64, 128>}, {pipeline_mode = #tpu.pipeline_mode<synchronous>, transform_indices = @transform_2, window_bounds = array<i64: 1, 128>}, {transform_indices = @transform_3, window_bounds = array<i64: 128, 128>}]} {
    %c0_i32 = arith.constant 0 : i32
    %0 = arith.cmpi eq, %arg1, %c0_i32 : i32
    %1 = arith.extui %0 : i1 to i32
    %c0_i32_0 = arith.constant 0 : i32
    %2 = arith.cmpi ne, %1, %c0_i32_0 : i32
    scf.if %2 {
      %cst_11 = arith.constant 0.000000e+00 : f32
      %14 = vector.broadcast %cst_11 : f32 to vector<128x128xf32>
      %c0_12 = arith.constant 0 : index
      %c0_13 = arith.constant 0 : index
      %15 = vector.load %arg6[%c0_12, %c0_13] : memref<128x128xf32, #tpu.memory_space<vmem>>, vector<128x128xf32>
      tpu.vector_store %arg6[%c0_12, %c0_13], %14 {strides = array<i32>} : memref<128x128xf32, #tpu.memory_space<vmem>>, vector<128x128xf32>,
    } else {
    }
    %c0 = arith.constant 0 : index
    %c0_1 = arith.constant 0 : index
    %3 = vector.load %arg6[%c0, %c0_1] : memref<128x128xf32, #tpu.memory_space<vmem>>, vector<128x128xf32>
    %c0_2 = arith.constant 0 : index
    %c0_3 = arith.constant 0 : index
    %c0_4 = arith.constant 0 : index
    %4 = vector.load %arg2[%c0_2, %c0_3, %c0_4] : memref<1x128x64xbf16, #tpu.memory_space<vmem>>, vector<1x128x64xbf16>
    %5 = vector.shape_cast %4 : vector<1x128x64xbf16> to vector<128x64xbf16>
    %c0_5 = arith.constant 0 : index
    %c0_6 = arith.constant 0 : index
    %c0_7 = arith.constant 0 : index
    %6 = vector.load %arg3[%c0_5, %c0_6, %c0_7] : memref<1x64x128xbf16, #tpu.memory_space<vmem>>, vector<1x64x128xbf16>
    %7 = vector.shape_cast %6 : vector<1x64x128xbf16> to vector<64x128xbf16>
    %cst = arith.constant dense<0.000000e+00> : vector<128x128xf32>
    %8 = tpu.matmul %5, %7, %cst {dimension_numbers = #tpu.dot_dimension_numbers<[1], [0], [0], [1], [0, 0, 1, 1], [], []>} : vector<128x64xbf16>, vector<64x128xbf16>, vector<128x128xf32> -> vector<128x128xf32>
    %9 = arith.addf %3, %8 : vector<128x128xf32>
    %c0_8 = arith.constant 0 : index
    %c0_9 = arith.constant 0 : index
    %10 = vector.load %arg6[%c0_8, %c0_9] : memref<128x128xf32, #tpu.memory_space<vmem>>, vector<128x128xf32>
    tpu.vector_store %arg6[%c0_8, %c0_9], %9 {strides = array<i32>} : memref<128x128xf32, #tpu.memory_space<vmem>>, vector<128x128xf32>,
    %c8_i32 = arith.constant 8 : i32
    %11 = arith.cmpi eq, %arg1, %c8_i32 : i32
    %12 = arith.extui %11 : i1 to i32
    %c0_i32_10 = arith.constant 0 : i32
    %13 = arith.cmpi ne, %12, %c0_i32_10 : i32
    scf.if %13 {
      %c0_11 = arith.constant 0 : index
      %c0_12 = arith.constant 0 : index
      %14 = vector.load %arg6[%c0_11, %c0_12] : memref<128x128xf32, #tpu.memory_space<vmem>>, vector<128x128xf32>
      %c0_13 = arith.constant 0 : index
      %c0_14 = arith.constant 0 : index
      %15 = vector.load %arg4[%c0_13, %c0_14] : memref<1x128xbf16, #tpu.memory_space<vmem>>, vector<1x128xbf16>
      %16 = arith.extf %15 : vector<1x128xbf16> to vector<1x128xf32>
      %17 = vector.broadcast %16 : vector<1x128xf32> to vector<128x128xf32>
      %18 = arith.addf %14, %17 : vector<128x128xf32>
      %cst_15 = arith.constant 0.000000e+00 : f32
      %19 = vector.broadcast %cst_15 : f32 to vector<128x128xf32>
      %20 = arith.maximumf %18, %19 : vector<128x128xf32>
      %21 = arith.truncf %20 : vector<128x128xf32> to vector<128x128xbf16>
      %c0_16 = arith.constant 0 : index
      %c0_17 = arith.constant 0 : index
      %22 = vector.load %arg5[%c0_16, %c0_17] : memref<128x128xbf16, #tpu.memory_space<vmem>>, vector<128x128xbf16>
      tpu.vector_store %arg5[%c0_16, %c0_17], %21 {strides = array<i32>} : memref<128x128xbf16, #tpu.memory_space<vmem>>, vector<128x128xbf16>,
    } else {
    }
    return
  }
  func.func @transform_0(%arg0: i32, %arg1: i32) -> (i32, i32, i32) {
    %c0_i32 = arith.constant 0 : i32
    %c0_i32_0 = arith.constant 0 : i32
    return %arg1, %arg0, %c0_i32 : i32, i32, i32
  }
  func.func @transform_1(%arg0: i32, %arg1: i32) -> (i32, i32, i32) {
    %c0_i32 = arith.constant 0 : i32
    %c0_i32_0 = arith.constant 0 : i32
    %c0_i32_1 = arith.constant 0 : i32
    return %arg1, %c0_i32, %c0_i32_0 : i32, i32, i32
  }
  func.func @transform_2(%arg0: i32, %arg1: i32) -> (i32, i32) {
    %c0_i32 = arith.constant 0 : i32
    %c0_i32_0 = arith.constant 0 : i32
    %c0_i32_1 = arith.constant 0 : i32
    return %c0_i32, %c0_i32_0 : i32, i32
  }
  func.func @transform_3(%arg0: i32, %arg1: i32) -> (i32, i32) {
    %c0_i32 = arith.constant 0 : i32
    %c0_i32_0 = arith.constant 0 : i32
    return %arg0, %c0_i32 : i32, i32
  }
}

module attributes {stable_mosaic.version = 11 : i64} {
  func.func @_l1_partial_kernel(%arg0: i32, %arg1: memref<128x128xbf16, #tpu.memory_space<vmem>>, %arg2: memref<128x128xbf16, #tpu.memory_space<vmem>>, %arg3: memref<1x1xf32, #tpu.memory_space<vmem>>) attributes {dimension_semantics = [#tpu.dimension_semantics<arbitrary>], iteration_bounds = array<i64: 1>, scalar_prefetch = 0 : i64, scratch_operands = 0 : i64, tpu.core_type = #tpu.core_type<tc>, window_params = [{transform_indices = @transform_0, window_bounds = array<i64: 128, 128>}, {transform_indices = @transform_1, window_bounds = array<i64: 128, 128>}, {pipeline_mode = #tpu.pipeline_mode<synchronous>, transform_indices = @transform_2, window_bounds = array<i64: 1, 1>}]} {
    %c0_i32 = arith.constant 0 : i32
    %0 = arith.cmpi eq, %arg0, %c0_i32 : i32
    %1 = arith.extui %0 : i1 to i32
    %c0_i32_0 = arith.constant 0 : i32
    %2 = arith.cmpi ne, %1, %c0_i32_0 : i32
    scf.if %2 {
      %cst_9 = arith.constant 0.000000e+00 : f32
      %19 = vector.broadcast %cst_9 : f32 to vector<1x1xf32>
      %c0_10 = arith.constant 0 : index
      %c0_11 = arith.constant 0 : index
      %20 = vector.load %arg3[%c0_10, %c0_11] : memref<1x1xf32, #tpu.memory_space<vmem>>, vector<1x1xf32>
      tpu.vector_store %arg3[%c0_10, %c0_11], %19 {strides = array<i32>} : memref<1x1xf32, #tpu.memory_space<vmem>>, vector<1x1xf32>,
    } else {
    }
    %c0 = arith.constant 0 : index
    %c0_1 = arith.constant 0 : index
    %3 = vector.load %arg1[%c0, %c0_1] : memref<128x128xbf16, #tpu.memory_space<vmem>>, vector<128x128xbf16>
    %4 = arith.extf %3 : vector<128x128xbf16> to vector<128x128xf32>
    %c0_2 = arith.constant 0 : index
    %c0_3 = arith.constant 0 : index
    %5 = vector.load %arg2[%c0_2, %c0_3] : memref<128x128xbf16, #tpu.memory_space<vmem>>, vector<128x128xbf16>
    %6 = arith.extf %5 : vector<128x128xbf16> to vector<128x128xf32>
    %7 = arith.subf %4, %6 : vector<128x128xf32>
    %8 = math.absf %7 : vector<128x128xf32>
    %c0_4 = arith.constant 0 : index
    %c0_5 = arith.constant 0 : index
    %9 = vector.load %arg3[%c0_4, %c0_5] : memref<1x1xf32, #tpu.memory_space<vmem>>, vector<1x1xf32>
    %10 = vector.shape_cast %8 : vector<128x128xf32> to vector<1x128x128xf32>
    %cst = arith.constant dense<0.000000e+00> : vector<1xf32>
    %11 = vector.multi_reduction <add>, %10, %cst [1, 2] : vector<1x128x128xf32> to vector<1xf32>
    %12 = vector.shape_cast %11 : vector<1xf32> to vector<1x1x1xf32>
    %13 = vector.extract %12[0, 0, 0] : f32 from vector<1x1x1xf32>
    %14 = vector.broadcast %13 : f32 to vector<1x1xf32>
    %cst_6 = arith.constant 3.81469727E-6 : f32
    %15 = vector.broadcast %cst_6 : f32 to vector<1x1xf32>
    %16 = arith.mulf %15, %14 : vector<1x1xf32>
    %17 = arith.addf %9, %16 : vector<1x1xf32>
    %c0_7 = arith.constant 0 : index
    %c0_8 = arith.constant 0 : index
    %18 = vector.load %arg3[%c0_7, %c0_8] : memref<1x1xf32, #tpu.memory_space<vmem>>, vector<1x1xf32>
    tpu.vector_store %arg3[%c0_7, %c0_8], %17 {strides = array<i32>} : memref<1x1xf32, #tpu.memory_space<vmem>>, vector<1x1xf32>,
    return
  }
  func.func @transform_0(%arg0: i32) -> (i32, i32) {
    %c0_i32 = arith.constant 0 : i32
    %c0_i32_0 = arith.constant 0 : i32
    return %arg0, %c0_i32 : i32, i32
  }
  func.func @transform_1(%arg0: i32) -> (i32, i32) {
    %c0_i32 = arith.constant 0 : i32
    %c0_i32_0 = arith.constant 0 : i32
    return %arg0, %c0_i32 : i32, i32
  }
  func.func @transform_2(%arg0: i32) -> (i32, i32) {
    %c0_i32 = arith.constant 0 : i32
    %c0_i32_0 = arith.constant 0 : i32
    %c0_i32_1 = arith.constant 0 : i32
    return %c0_i32, %c0_i32_0 : i32, i32
  }
}

module attributes {stable_mosaic.version = 11 : i64} {
  func.func @_conv_tap_kernel(%arg0: i32, %arg1: i32, %arg2: memref<1x128x128xbf16, #tpu.memory_space<vmem>>, %arg3: memref<1x128x128xbf16, #tpu.memory_space<vmem>>, %arg4: memref<1x128xbf16, #tpu.memory_space<vmem>>, %arg5: memref<128x128xbf16, #tpu.memory_space<vmem>>, %arg6: memref<128x128xf32, #tpu.memory_space<vmem>>) attributes {dimension_semantics = [#tpu.dimension_semantics<parallel>, #tpu.dimension_semantics<arbitrary>], iteration_bounds = array<i64: 1, 9>, scalar_prefetch = 0 : i64, scratch_operands = 1 : i64, tpu.core_type = #tpu.core_type<tc>, window_params = [{transform_indices = @transform_0, window_bounds = array<i64: 1, 128, 128>}, {transform_indices = @transform_1, window_bounds = array<i64: 1, 128, 128>}, {pipeline_mode = #tpu.pipeline_mode<synchronous>, transform_indices = @transform_2, window_bounds = array<i64: 1, 128>}, {transform_indices = @transform_3, window_bounds = array<i64: 128, 128>}]} {
    %c0_i32 = arith.constant 0 : i32
    %0 = arith.cmpi eq, %arg1, %c0_i32 : i32
    %1 = arith.extui %0 : i1 to i32
    %c0_i32_0 = arith.constant 0 : i32
    %2 = arith.cmpi ne, %1, %c0_i32_0 : i32
    scf.if %2 {
      %cst_11 = arith.constant 0.000000e+00 : f32
      %14 = vector.broadcast %cst_11 : f32 to vector<128x128xf32>
      %c0_12 = arith.constant 0 : index
      %c0_13 = arith.constant 0 : index
      %15 = vector.load %arg6[%c0_12, %c0_13] : memref<128x128xf32, #tpu.memory_space<vmem>>, vector<128x128xf32>
      tpu.vector_store %arg6[%c0_12, %c0_13], %14 {strides = array<i32>} : memref<128x128xf32, #tpu.memory_space<vmem>>, vector<128x128xf32>,
    } else {
    }
    %c0 = arith.constant 0 : index
    %c0_1 = arith.constant 0 : index
    %3 = vector.load %arg6[%c0, %c0_1] : memref<128x128xf32, #tpu.memory_space<vmem>>, vector<128x128xf32>
    %c0_2 = arith.constant 0 : index
    %c0_3 = arith.constant 0 : index
    %c0_4 = arith.constant 0 : index
    %4 = vector.load %arg2[%c0_2, %c0_3, %c0_4] : memref<1x128x128xbf16, #tpu.memory_space<vmem>>, vector<1x128x128xbf16>
    %5 = vector.shape_cast %4 : vector<1x128x128xbf16> to vector<128x128xbf16>
    %c0_5 = arith.constant 0 : index
    %c0_6 = arith.constant 0 : index
    %c0_7 = arith.constant 0 : index
    %6 = vector.load %arg3[%c0_5, %c0_6, %c0_7] : memref<1x128x128xbf16, #tpu.memory_space<vmem>>, vector<1x128x128xbf16>
    %7 = vector.shape_cast %6 : vector<1x128x128xbf16> to vector<128x128xbf16>
    %cst = arith.constant dense<0.000000e+00> : vector<128x128xf32>
    %8 = tpu.matmul %5, %7, %cst {dimension_numbers = #tpu.dot_dimension_numbers<[1], [0], [0], [1], [0, 0, 1, 1], [], []>} : vector<128x128xbf16>, vector<128x128xbf16>, vector<128x128xf32> -> vector<128x128xf32>
    %9 = arith.addf %3, %8 : vector<128x128xf32>
    %c0_8 = arith.constant 0 : index
    %c0_9 = arith.constant 0 : index
    %10 = vector.load %arg6[%c0_8, %c0_9] : memref<128x128xf32, #tpu.memory_space<vmem>>, vector<128x128xf32>
    tpu.vector_store %arg6[%c0_8, %c0_9], %9 {strides = array<i32>} : memref<128x128xf32, #tpu.memory_space<vmem>>, vector<128x128xf32>,
    %c8_i32 = arith.constant 8 : i32
    %11 = arith.cmpi eq, %arg1, %c8_i32 : i32
    %12 = arith.extui %11 : i1 to i32
    %c0_i32_10 = arith.constant 0 : i32
    %13 = arith.cmpi ne, %12, %c0_i32_10 : i32
    scf.if %13 {
      %c0_11 = arith.constant 0 : index
      %c0_12 = arith.constant 0 : index
      %14 = vector.load %arg6[%c0_11, %c0_12] : memref<128x128xf32, #tpu.memory_space<vmem>>, vector<128x128xf32>
      %c0_13 = arith.constant 0 : index
      %c0_14 = arith.constant 0 : index
      %15 = vector.load %arg4[%c0_13, %c0_14] : memref<1x128xbf16, #tpu.memory_space<vmem>>, vector<1x128xbf16>
      %16 = arith.extf %15 : vector<1x128xbf16> to vector<1x128xf32>
      %17 = vector.broadcast %16 : vector<1x128xf32> to vector<128x128xf32>
      %18 = arith.addf %14, %17 : vector<128x128xf32>
      %cst_15 = arith.constant 0.000000e+00 : f32
      %19 = vector.broadcast %cst_15 : f32 to vector<128x128xf32>
      %20 = arith.maximumf %18, %19 : vector<128x128xf32>
      %21 = arith.truncf %20 : vector<128x128xf32> to vector<128x128xbf16>
      %c0_16 = arith.constant 0 : index
      %c0_17 = arith.constant 0 : index
      %22 = vector.load %arg5[%c0_16, %c0_17] : memref<128x128xbf16, #tpu.memory_space<vmem>>, vector<128x128xbf16>
      tpu.vector_store %arg5[%c0_16, %c0_17], %21 {strides = array<i32>} : memref<128x128xbf16, #tpu.memory_space<vmem>>, vector<128x128xbf16>,
    } else {
    }
    return
  }
  func.func @transform_0(%arg0: i32, %arg1: i32) -> (i32, i32, i32) {
    %c0_i32 = arith.constant 0 : i32
    %c0_i32_0 = arith.constant 0 : i32
    return %arg1, %arg0, %c0_i32 : i32, i32, i32
  }
  func.func @transform_1(%arg0: i32, %arg1: i32) -> (i32, i32, i32) {
    %c0_i32 = arith.constant 0 : i32
    %c0_i32_0 = arith.constant 0 : i32
    %c0_i32_1 = arith.constant 0 : i32
    return %arg1, %c0_i32, %c0_i32_0 : i32, i32, i32
  }
  func.func @transform_2(%arg0: i32, %arg1: i32) -> (i32, i32) {
    %c0_i32 = arith.constant 0 : i32
    %c0_i32_0 = arith.constant 0 : i32
    %c0_i32_1 = arith.constant 0 : i32
    return %c0_i32, %c0_i32_0 : i32, i32
  }
  func.func @transform_3(%arg0: i32, %arg1: i32) -> (i32, i32) {
    %c0_i32 = arith.constant 0 : i32
    %c0_i32_0 = arith.constant 0 : i32
    return %arg0, %c0_i32 : i32, i32
  }
}

module attributes {stable_mosaic.version = 11 : i64} {
  func.func @_conv_tap_kernel(%arg0: i32, %arg1: i32, %arg2: memref<1x32x128xbf16, #tpu.memory_space<vmem>>, %arg3: memref<1x128x256xbf16, #tpu.memory_space<vmem>>, %arg4: memref<1x256xbf16, #tpu.memory_space<vmem>>, %arg5: memref<32x256xbf16, #tpu.memory_space<vmem>>, %arg6: memref<32x256xf32, #tpu.memory_space<vmem>>) attributes {dimension_semantics = [#tpu.dimension_semantics<parallel>, #tpu.dimension_semantics<arbitrary>], iteration_bounds = array<i64: 1, 9>, scalar_prefetch = 0 : i64, scratch_operands = 1 : i64, tpu.core_type = #tpu.core_type<tc>, window_params = [{transform_indices = @transform_0, window_bounds = array<i64: 1, 32, 128>}, {transform_indices = @transform_1, window_bounds = array<i64: 1, 128, 256>}, {pipeline_mode = #tpu.pipeline_mode<synchronous>, transform_indices = @transform_2, window_bounds = array<i64: 1, 256>}, {transform_indices = @transform_3, window_bounds = array<i64: 32, 256>}]} {
    %c0_i32 = arith.constant 0 : i32
    %0 = arith.cmpi eq, %arg1, %c0_i32 : i32
    %1 = arith.extui %0 : i1 to i32
    %c0_i32_0 = arith.constant 0 : i32
    %2 = arith.cmpi ne, %1, %c0_i32_0 : i32
    scf.if %2 {
      %cst_11 = arith.constant 0.000000e+00 : f32
      %14 = vector.broadcast %cst_11 : f32 to vector<32x256xf32>
      %c0_12 = arith.constant 0 : index
      %c0_13 = arith.constant 0 : index
      %15 = vector.load %arg6[%c0_12, %c0_13] : memref<32x256xf32, #tpu.memory_space<vmem>>, vector<32x256xf32>
      tpu.vector_store %arg6[%c0_12, %c0_13], %14 {strides = array<i32>} : memref<32x256xf32, #tpu.memory_space<vmem>>, vector<32x256xf32>,
    } else {
    }
    %c0 = arith.constant 0 : index
    %c0_1 = arith.constant 0 : index
    %3 = vector.load %arg6[%c0, %c0_1] : memref<32x256xf32, #tpu.memory_space<vmem>>, vector<32x256xf32>
    %c0_2 = arith.constant 0 : index
    %c0_3 = arith.constant 0 : index
    %c0_4 = arith.constant 0 : index
    %4 = vector.load %arg2[%c0_2, %c0_3, %c0_4] : memref<1x32x128xbf16, #tpu.memory_space<vmem>>, vector<1x32x128xbf16>
    %5 = vector.shape_cast %4 : vector<1x32x128xbf16> to vector<32x128xbf16>
    %c0_5 = arith.constant 0 : index
    %c0_6 = arith.constant 0 : index
    %c0_7 = arith.constant 0 : index
    %6 = vector.load %arg3[%c0_5, %c0_6, %c0_7] : memref<1x128x256xbf16, #tpu.memory_space<vmem>>, vector<1x128x256xbf16>
    %7 = vector.shape_cast %6 : vector<1x128x256xbf16> to vector<128x256xbf16>
    %cst = arith.constant dense<0.000000e+00> : vector<32x256xf32>
    %8 = tpu.matmul %5, %7, %cst {dimension_numbers = #tpu.dot_dimension_numbers<[1], [0], [0], [1], [0, 0, 1, 1], [], []>} : vector<32x128xbf16>, vector<128x256xbf16>, vector<32x256xf32> -> vector<32x256xf32>
    %9 = arith.addf %3, %8 : vector<32x256xf32>
    %c0_8 = arith.constant 0 : index
    %c0_9 = arith.constant 0 : index
    %10 = vector.load %arg6[%c0_8, %c0_9] : memref<32x256xf32, #tpu.memory_space<vmem>>, vector<32x256xf32>
    tpu.vector_store %arg6[%c0_8, %c0_9], %9 {strides = array<i32>} : memref<32x256xf32, #tpu.memory_space<vmem>>, vector<32x256xf32>,
    %c8_i32 = arith.constant 8 : i32
    %11 = arith.cmpi eq, %arg1, %c8_i32 : i32
    %12 = arith.extui %11 : i1 to i32
    %c0_i32_10 = arith.constant 0 : i32
    %13 = arith.cmpi ne, %12, %c0_i32_10 : i32
    scf.if %13 {
      %c0_11 = arith.constant 0 : index
      %c0_12 = arith.constant 0 : index
      %14 = vector.load %arg6[%c0_11, %c0_12] : memref<32x256xf32, #tpu.memory_space<vmem>>, vector<32x256xf32>
      %c0_13 = arith.constant 0 : index
      %c0_14 = arith.constant 0 : index
      %15 = vector.load %arg4[%c0_13, %c0_14] : memref<1x256xbf16, #tpu.memory_space<vmem>>, vector<1x256xbf16>
      %16 = arith.extf %15 : vector<1x256xbf16> to vector<1x256xf32>
      %17 = vector.broadcast %16 : vector<1x256xf32> to vector<32x256xf32>
      %18 = arith.addf %14, %17 : vector<32x256xf32>
      %cst_15 = arith.constant 0.000000e+00 : f32
      %19 = vector.broadcast %cst_15 : f32 to vector<32x256xf32>
      %20 = arith.maximumf %18, %19 : vector<32x256xf32>
      %21 = arith.truncf %20 : vector<32x256xf32> to vector<32x256xbf16>
      %c0_16 = arith.constant 0 : index
      %c0_17 = arith.constant 0 : index
      %22 = vector.load %arg5[%c0_16, %c0_17] : memref<32x256xbf16, #tpu.memory_space<vmem>>, vector<32x256xbf16>
      tpu.vector_store %arg5[%c0_16, %c0_17], %21 {strides = array<i32>} : memref<32x256xbf16, #tpu.memory_space<vmem>>, vector<32x256xbf16>,
    } else {
    }
    return
  }
  func.func @transform_0(%arg0: i32, %arg1: i32) -> (i32, i32, i32) {
    %c0_i32 = arith.constant 0 : i32
    %c0_i32_0 = arith.constant 0 : i32
    return %arg1, %arg0, %c0_i32 : i32, i32, i32
  }
  func.func @transform_1(%arg0: i32, %arg1: i32) -> (i32, i32, i32) {
    %c0_i32 = arith.constant 0 : i32
    %c0_i32_0 = arith.constant 0 : i32
    %c0_i32_1 = arith.constant 0 : i32
    return %arg1, %c0_i32, %c0_i32_0 : i32, i32, i32
  }
  func.func @transform_2(%arg0: i32, %arg1: i32) -> (i32, i32) {
    %c0_i32 = arith.constant 0 : i32
    %c0_i32_0 = arith.constant 0 : i32
    %c0_i32_1 = arith.constant 0 : i32
    return %c0_i32, %c0_i32_0 : i32, i32
  }
  func.func @transform_3(%arg0: i32, %arg1: i32) -> (i32, i32) {
    %c0_i32 = arith.constant 0 : i32
    %c0_i32_0 = arith.constant 0 : i32
    return %arg0, %c0_i32 : i32, i32
  }
}

module attributes {stable_mosaic.version = 11 : i64} {
  func.func @_maxpool_kernel(%arg0: i32, %arg1: memref<32x128xbf16, #tpu.memory_space<vmem>>, %arg2: memref<32x128xbf16, #tpu.memory_space<vmem>>, %arg3: memref<32x128xbf16, #tpu.memory_space<vmem>>, %arg4: memref<32x128xbf16, #tpu.memory_space<vmem>>, %arg5: memref<32x128xbf16, #tpu.memory_space<vmem>>) attributes {dimension_semantics = [#tpu.dimension_semantics<parallel>], iteration_bounds = array<i64: 1>, scalar_prefetch = 0 : i64, scratch_operands = 0 : i64, tpu.core_type = #tpu.core_type<tc>, window_params = [{transform_indices = @transform_0, window_bounds = array<i64: 32, 128>}, {transform_indices = @transform_1, window_bounds = array<i64: 32, 128>}, {transform_indices = @transform_2, window_bounds = array<i64: 32, 128>}, {transform_indices = @transform_3, window_bounds = array<i64: 32, 128>}, {transform_indices = @transform_4, window_bounds = array<i64: 32, 128>}]} {
    %c0 = arith.constant 0 : index
    %c0_0 = arith.constant 0 : index
    %0 = vector.load %arg1[%c0, %c0_0] : memref<32x128xbf16, #tpu.memory_space<vmem>>, vector<32x128xbf16>
    %c0_1 = arith.constant 0 : index
    %c0_2 = arith.constant 0 : index
    %1 = vector.load %arg2[%c0_1, %c0_2] : memref<32x128xbf16, #tpu.memory_space<vmem>>, vector<32x128xbf16>
    %2 = arith.maximumf %0, %1 : vector<32x128xbf16>
    %c0_3 = arith.constant 0 : index
    %c0_4 = arith.constant 0 : index
    %3 = vector.load %arg3[%c0_3, %c0_4] : memref<32x128xbf16, #tpu.memory_space<vmem>>, vector<32x128xbf16>
    %c0_5 = arith.constant 0 : index
    %c0_6 = arith.constant 0 : index
    %4 = vector.load %arg4[%c0_5, %c0_6] : memref<32x128xbf16, #tpu.memory_space<vmem>>, vector<32x128xbf16>
    %5 = arith.maximumf %3, %4 : vector<32x128xbf16>
    %6 = arith.maximumf %2, %5 : vector<32x128xbf16>
    %c0_7 = arith.constant 0 : index
    %c0_8 = arith.constant 0 : index
    %7 = vector.load %arg5[%c0_7, %c0_8] : memref<32x128xbf16, #tpu.memory_space<vmem>>, vector<32x128xbf16>
    tpu.vector_store %arg5[%c0_7, %c0_8], %6 {strides = array<i32>} : memref<32x128xbf16, #tpu.memory_space<vmem>>, vector<32x128xbf16>,
    return
  }
  func.func @transform_0(%arg0: i32) -> (i32, i32) {
    %c0_i32 = arith.constant 0 : i32
    %c0_i32_0 = arith.constant 0 : i32
    return %arg0, %c0_i32 : i32, i32
  }
  func.func @transform_1(%arg0: i32) -> (i32, i32) {
    %c0_i32 = arith.constant 0 : i32
    %c0_i32_0 = arith.constant 0 : i32
    return %arg0, %c0_i32 : i32, i32
  }
  func.func @transform_2(%arg0: i32) -> (i32, i32) {
    %c0_i32 = arith.constant 0 : i32
    %c0_i32_0 = arith.constant 0 : i32
    return %arg0, %c0_i32 : i32, i32
  }
  func.func @transform_3(%arg0: i32) -> (i32, i32) {
    %c0_i32 = arith.constant 0 : i32
    %c0_i32_0 = arith.constant 0 : i32
    return %arg0, %c0_i32 : i32, i32
  }
  func.func @transform_4(%arg0: i32) -> (i32, i32) {
    %c0_i32 = arith.constant 0 : i32
    %c0_i32_0 = arith.constant 0 : i32
    return %arg0, %c0_i32 : i32, i32
  }
}

module attributes {stable_mosaic.version = 11 : i64} {
  func.func @_l1_partial_kernel(%arg0: i32, %arg1: memref<32x256xbf16, #tpu.memory_space<vmem>>, %arg2: memref<32x256xbf16, #tpu.memory_space<vmem>>, %arg3: memref<1x1xf32, #tpu.memory_space<vmem>>) attributes {dimension_semantics = [#tpu.dimension_semantics<arbitrary>], iteration_bounds = array<i64: 1>, scalar_prefetch = 0 : i64, scratch_operands = 0 : i64, tpu.core_type = #tpu.core_type<tc>, window_params = [{transform_indices = @transform_0, window_bounds = array<i64: 32, 256>}, {transform_indices = @transform_1, window_bounds = array<i64: 32, 256>}, {pipeline_mode = #tpu.pipeline_mode<synchronous>, transform_indices = @transform_2, window_bounds = array<i64: 1, 1>}]} {
    %c0_i32 = arith.constant 0 : i32
    %0 = arith.cmpi eq, %arg0, %c0_i32 : i32
    %1 = arith.extui %0 : i1 to i32
    %c0_i32_0 = arith.constant 0 : i32
    %2 = arith.cmpi ne, %1, %c0_i32_0 : i32
    scf.if %2 {
      %cst_9 = arith.constant 0.000000e+00 : f32
      %19 = vector.broadcast %cst_9 : f32 to vector<1x1xf32>
      %c0_10 = arith.constant 0 : index
      %c0_11 = arith.constant 0 : index
      %20 = vector.load %arg3[%c0_10, %c0_11] : memref<1x1xf32, #tpu.memory_space<vmem>>, vector<1x1xf32>
      tpu.vector_store %arg3[%c0_10, %c0_11], %19 {strides = array<i32>} : memref<1x1xf32, #tpu.memory_space<vmem>>, vector<1x1xf32>,
    } else {
    }
    %c0 = arith.constant 0 : index
    %c0_1 = arith.constant 0 : index
    %3 = vector.load %arg1[%c0, %c0_1] : memref<32x256xbf16, #tpu.memory_space<vmem>>, vector<32x256xbf16>
    %4 = arith.extf %3 : vector<32x256xbf16> to vector<32x256xf32>
    %c0_2 = arith.constant 0 : index
    %c0_3 = arith.constant 0 : index
    %5 = vector.load %arg2[%c0_2, %c0_3] : memref<32x256xbf16, #tpu.memory_space<vmem>>, vector<32x256xbf16>
    %6 = arith.extf %5 : vector<32x256xbf16> to vector<32x256xf32>
    %7 = arith.subf %4, %6 : vector<32x256xf32>
    %8 = math.absf %7 : vector<32x256xf32>
    %c0_4 = arith.constant 0 : index
    %c0_5 = arith.constant 0 : index
    %9 = vector.load %arg3[%c0_4, %c0_5] : memref<1x1xf32, #tpu.memory_space<vmem>>, vector<1x1xf32>
    %10 = vector.shape_cast %8 : vector<32x256xf32> to vector<1x32x256xf32>
    %cst = arith.constant dense<0.000000e+00> : vector<1xf32>
    %11 = vector.multi_reduction <add>, %10, %cst [1, 2] : vector<1x32x256xf32> to vector<1xf32>
    %12 = vector.shape_cast %11 : vector<1xf32> to vector<1x1x1xf32>
    %13 = vector.extract %12[0, 0, 0] : f32 from vector<1x1x1xf32>
    %14 = vector.broadcast %13 : f32 to vector<1x1xf32>
    %cst_6 = arith.constant 1.52587891E-5 : f32
    %15 = vector.broadcast %cst_6 : f32 to vector<1x1xf32>
    %16 = arith.mulf %15, %14 : vector<1x1xf32>
    %17 = arith.addf %9, %16 : vector<1x1xf32>
    %c0_7 = arith.constant 0 : index
    %c0_8 = arith.constant 0 : index
    %18 = vector.load %arg3[%c0_7, %c0_8] : memref<1x1xf32, #tpu.memory_space<vmem>>, vector<1x1xf32>
    tpu.vector_store %arg3[%c0_7, %c0_8], %17 {strides = array<i32>} : memref<1x1xf32, #tpu.memory_space<vmem>>, vector<1x1xf32>,
    return
  }
  func.func @transform_0(%arg0: i32) -> (i32, i32) {
    %c0_i32 = arith.constant 0 : i32
    %c0_i32_0 = arith.constant 0 : i32
    return %arg0, %c0_i32 : i32, i32
  }
  func.func @transform_1(%arg0: i32) -> (i32, i32) {
    %c0_i32 = arith.constant 0 : i32
    %c0_i32_0 = arith.constant 0 : i32
    return %arg0, %c0_i32 : i32, i32
  }
  func.func @transform_2(%arg0: i32) -> (i32, i32) {
    %c0_i32 = arith.constant 0 : i32
    %c0_i32_0 = arith.constant 0 : i32
    %c0_i32_1 = arith.constant 0 : i32
    return %c0_i32, %c0_i32_0 : i32, i32
  }
}

module attributes {stable_mosaic.version = 11 : i64} {
  func.func @_conv_tap_kernel(%arg0: i32, %arg1: i32, %arg2: memref<1x32x256xbf16, #tpu.memory_space<vmem>>, %arg3: memref<1x256x256xbf16, #tpu.memory_space<vmem>>, %arg4: memref<1x256xbf16, #tpu.memory_space<vmem>>, %arg5: memref<32x256xbf16, #tpu.memory_space<vmem>>, %arg6: memref<32x256xf32, #tpu.memory_space<vmem>>) attributes {dimension_semantics = [#tpu.dimension_semantics<parallel>, #tpu.dimension_semantics<arbitrary>], iteration_bounds = array<i64: 1, 9>, scalar_prefetch = 0 : i64, scratch_operands = 1 : i64, tpu.core_type = #tpu.core_type<tc>, window_params = [{transform_indices = @transform_0, window_bounds = array<i64: 1, 32, 256>}, {transform_indices = @transform_1, window_bounds = array<i64: 1, 256, 256>}, {pipeline_mode = #tpu.pipeline_mode<synchronous>, transform_indices = @transform_2, window_bounds = array<i64: 1, 256>}, {transform_indices = @transform_3, window_bounds = array<i64: 32, 256>}]} {
    %c0_i32 = arith.constant 0 : i32
    %0 = arith.cmpi eq, %arg1, %c0_i32 : i32
    %1 = arith.extui %0 : i1 to i32
    %c0_i32_0 = arith.constant 0 : i32
    %2 = arith.cmpi ne, %1, %c0_i32_0 : i32
    scf.if %2 {
      %cst_11 = arith.constant 0.000000e+00 : f32
      %14 = vector.broadcast %cst_11 : f32 to vector<32x256xf32>
      %c0_12 = arith.constant 0 : index
      %c0_13 = arith.constant 0 : index
      %15 = vector.load %arg6[%c0_12, %c0_13] : memref<32x256xf32, #tpu.memory_space<vmem>>, vector<32x256xf32>
      tpu.vector_store %arg6[%c0_12, %c0_13], %14 {strides = array<i32>} : memref<32x256xf32, #tpu.memory_space<vmem>>, vector<32x256xf32>,
    } else {
    }
    %c0 = arith.constant 0 : index
    %c0_1 = arith.constant 0 : index
    %3 = vector.load %arg6[%c0, %c0_1] : memref<32x256xf32, #tpu.memory_space<vmem>>, vector<32x256xf32>
    %c0_2 = arith.constant 0 : index
    %c0_3 = arith.constant 0 : index
    %c0_4 = arith.constant 0 : index
    %4 = vector.load %arg2[%c0_2, %c0_3, %c0_4] : memref<1x32x256xbf16, #tpu.memory_space<vmem>>, vector<1x32x256xbf16>
    %5 = vector.shape_cast %4 : vector<1x32x256xbf16> to vector<32x256xbf16>
    %c0_5 = arith.constant 0 : index
    %c0_6 = arith.constant 0 : index
    %c0_7 = arith.constant 0 : index
    %6 = vector.load %arg3[%c0_5, %c0_6, %c0_7] : memref<1x256x256xbf16, #tpu.memory_space<vmem>>, vector<1x256x256xbf16>
    %7 = vector.shape_cast %6 : vector<1x256x256xbf16> to vector<256x256xbf16>
    %cst = arith.constant dense<0.000000e+00> : vector<32x256xf32>
    %8 = tpu.matmul %5, %7, %cst {dimension_numbers = #tpu.dot_dimension_numbers<[1], [0], [0], [1], [0, 0, 1, 1], [], []>} : vector<32x256xbf16>, vector<256x256xbf16>, vector<32x256xf32> -> vector<32x256xf32>
    %9 = arith.addf %3, %8 : vector<32x256xf32>
    %c0_8 = arith.constant 0 : index
    %c0_9 = arith.constant 0 : index
    %10 = vector.load %arg6[%c0_8, %c0_9] : memref<32x256xf32, #tpu.memory_space<vmem>>, vector<32x256xf32>
    tpu.vector_store %arg6[%c0_8, %c0_9], %9 {strides = array<i32>} : memref<32x256xf32, #tpu.memory_space<vmem>>, vector<32x256xf32>,
    %c8_i32 = arith.constant 8 : i32
    %11 = arith.cmpi eq, %arg1, %c8_i32 : i32
    %12 = arith.extui %11 : i1 to i32
    %c0_i32_10 = arith.constant 0 : i32
    %13 = arith.cmpi ne, %12, %c0_i32_10 : i32
    scf.if %13 {
      %c0_11 = arith.constant 0 : index
      %c0_12 = arith.constant 0 : index
      %14 = vector.load %arg6[%c0_11, %c0_12] : memref<32x256xf32, #tpu.memory_space<vmem>>, vector<32x256xf32>
      %c0_13 = arith.constant 0 : index
      %c0_14 = arith.constant 0 : index
      %15 = vector.load %arg4[%c0_13, %c0_14] : memref<1x256xbf16, #tpu.memory_space<vmem>>, vector<1x256xbf16>
      %16 = arith.extf %15 : vector<1x256xbf16> to vector<1x256xf32>
      %17 = vector.broadcast %16 : vector<1x256xf32> to vector<32x256xf32>
      %18 = arith.addf %14, %17 : vector<32x256xf32>
      %cst_15 = arith.constant 0.000000e+00 : f32
      %19 = vector.broadcast %cst_15 : f32 to vector<32x256xf32>
      %20 = arith.maximumf %18, %19 : vector<32x256xf32>
      %21 = arith.truncf %20 : vector<32x256xf32> to vector<32x256xbf16>
      %c0_16 = arith.constant 0 : index
      %c0_17 = arith.constant 0 : index
      %22 = vector.load %arg5[%c0_16, %c0_17] : memref<32x256xbf16, #tpu.memory_space<vmem>>, vector<32x256xbf16>
      tpu.vector_store %arg5[%c0_16, %c0_17], %21 {strides = array<i32>} : memref<32x256xbf16, #tpu.memory_space<vmem>>, vector<32x256xbf16>,
    } else {
    }
    return
  }
  func.func @transform_0(%arg0: i32, %arg1: i32) -> (i32, i32, i32) {
    %c0_i32 = arith.constant 0 : i32
    %c0_i32_0 = arith.constant 0 : i32
    return %arg1, %arg0, %c0_i32 : i32, i32, i32
  }
  func.func @transform_1(%arg0: i32, %arg1: i32) -> (i32, i32, i32) {
    %c0_i32 = arith.constant 0 : i32
    %c0_i32_0 = arith.constant 0 : i32
    %c0_i32_1 = arith.constant 0 : i32
    return %arg1, %c0_i32, %c0_i32_0 : i32, i32, i32
  }
  func.func @transform_2(%arg0: i32, %arg1: i32) -> (i32, i32) {
    %c0_i32 = arith.constant 0 : i32
    %c0_i32_0 = arith.constant 0 : i32
    %c0_i32_1 = arith.constant 0 : i32
    return %c0_i32, %c0_i32_0 : i32, i32
  }
  func.func @transform_3(%arg0: i32, %arg1: i32) -> (i32, i32) {
    %c0_i32 = arith.constant 0 : i32
    %c0_i32_0 = arith.constant 0 : i32
    return %arg0, %c0_i32 : i32, i32
  }
}

module attributes {stable_mosaic.version = 11 : i64} {
  func.func @_maxpool_kernel(%arg0: i32, %arg1: memref<8x256xbf16, #tpu.memory_space<vmem>>, %arg2: memref<8x256xbf16, #tpu.memory_space<vmem>>, %arg3: memref<8x256xbf16, #tpu.memory_space<vmem>>, %arg4: memref<8x256xbf16, #tpu.memory_space<vmem>>, %arg5: memref<8x256xbf16, #tpu.memory_space<vmem>>) attributes {dimension_semantics = [#tpu.dimension_semantics<parallel>], iteration_bounds = array<i64: 1>, scalar_prefetch = 0 : i64, scratch_operands = 0 : i64, tpu.core_type = #tpu.core_type<tc>, window_params = [{transform_indices = @transform_0, window_bounds = array<i64: 8, 256>}, {transform_indices = @transform_1, window_bounds = array<i64: 8, 256>}, {transform_indices = @transform_2, window_bounds = array<i64: 8, 256>}, {transform_indices = @transform_3, window_bounds = array<i64: 8, 256>}, {transform_indices = @transform_4, window_bounds = array<i64: 8, 256>}]} {
    %c0 = arith.constant 0 : index
    %c0_0 = arith.constant 0 : index
    %0 = vector.load %arg1[%c0, %c0_0] : memref<8x256xbf16, #tpu.memory_space<vmem>>, vector<8x256xbf16>
    %c0_1 = arith.constant 0 : index
    %c0_2 = arith.constant 0 : index
    %1 = vector.load %arg2[%c0_1, %c0_2] : memref<8x256xbf16, #tpu.memory_space<vmem>>, vector<8x256xbf16>
    %2 = arith.maximumf %0, %1 : vector<8x256xbf16>
    %c0_3 = arith.constant 0 : index
    %c0_4 = arith.constant 0 : index
    %3 = vector.load %arg3[%c0_3, %c0_4] : memref<8x256xbf16, #tpu.memory_space<vmem>>, vector<8x256xbf16>
    %c0_5 = arith.constant 0 : index
    %c0_6 = arith.constant 0 : index
    %4 = vector.load %arg4[%c0_5, %c0_6] : memref<8x256xbf16, #tpu.memory_space<vmem>>, vector<8x256xbf16>
    %5 = arith.maximumf %3, %4 : vector<8x256xbf16>
    %6 = arith.maximumf %2, %5 : vector<8x256xbf16>
    %c0_7 = arith.constant 0 : index
    %c0_8 = arith.constant 0 : index
    %7 = vector.load %arg5[%c0_7, %c0_8] : memref<8x256xbf16, #tpu.memory_space<vmem>>, vector<8x256xbf16>
    tpu.vector_store %arg5[%c0_7, %c0_8], %6 {strides = array<i32>} : memref<8x256xbf16, #tpu.memory_space<vmem>>, vector<8x256xbf16>,
    return
  }
  func.func @transform_0(%arg0: i32) -> (i32, i32) {
    %c0_i32 = arith.constant 0 : i32
    %c0_i32_0 = arith.constant 0 : i32
    return %arg0, %c0_i32 : i32, i32
  }
  func.func @transform_1(%arg0: i32) -> (i32, i32) {
    %c0_i32 = arith.constant 0 : i32
    %c0_i32_0 = arith.constant 0 : i32
    return %arg0, %c0_i32 : i32, i32
  }
  func.func @transform_2(%arg0: i32) -> (i32, i32) {
    %c0_i32 = arith.constant 0 : i32
    %c0_i32_0 = arith.constant 0 : i32
    return %arg0, %c0_i32 : i32, i32
  }
  func.func @transform_3(%arg0: i32) -> (i32, i32) {
    %c0_i32 = arith.constant 0 : i32
    %c0_i32_0 = arith.constant 0 : i32
    return %arg0, %c0_i32 : i32, i32
  }
  func.func @transform_4(%arg0: i32) -> (i32, i32) {
    %c0_i32 = arith.constant 0 : i32
    %c0_i32_0 = arith.constant 0 : i32
    return %arg0, %c0_i32 : i32, i32
  }
}

module attributes {stable_mosaic.version = 11 : i64} {
  func.func @_conv_tap_kernel(%arg0: i32, %arg1: i32, %arg2: memref<1x8x256xbf16, #tpu.memory_space<vmem>>, %arg3: memref<1x256x512xbf16, #tpu.memory_space<vmem>>, %arg4: memref<1x512xbf16, #tpu.memory_space<vmem>>, %arg5: memref<8x512xbf16, #tpu.memory_space<vmem>>, %arg6: memref<8x512xf32, #tpu.memory_space<vmem>>) attributes {dimension_semantics = [#tpu.dimension_semantics<parallel>, #tpu.dimension_semantics<arbitrary>], iteration_bounds = array<i64: 1, 9>, scalar_prefetch = 0 : i64, scratch_operands = 1 : i64, tpu.core_type = #tpu.core_type<tc>, window_params = [{transform_indices = @transform_0, window_bounds = array<i64: 1, 8, 256>}, {transform_indices = @transform_1, window_bounds = array<i64: 1, 256, 512>}, {pipeline_mode = #tpu.pipeline_mode<synchronous>, transform_indices = @transform_2, window_bounds = array<i64: 1, 512>}, {transform_indices = @transform_3, window_bounds = array<i64: 8, 512>}]} {
    %c0_i32 = arith.constant 0 : i32
    %0 = arith.cmpi eq, %arg1, %c0_i32 : i32
    %1 = arith.extui %0 : i1 to i32
    %c0_i32_0 = arith.constant 0 : i32
    %2 = arith.cmpi ne, %1, %c0_i32_0 : i32
    scf.if %2 {
      %cst_11 = arith.constant 0.000000e+00 : f32
      %14 = vector.broadcast %cst_11 : f32 to vector<8x512xf32>
      %c0_12 = arith.constant 0 : index
      %c0_13 = arith.constant 0 : index
      %15 = vector.load %arg6[%c0_12, %c0_13] : memref<8x512xf32, #tpu.memory_space<vmem>>, vector<8x512xf32>
      tpu.vector_store %arg6[%c0_12, %c0_13], %14 {strides = array<i32>} : memref<8x512xf32, #tpu.memory_space<vmem>>, vector<8x512xf32>,
    } else {
    }
    %c0 = arith.constant 0 : index
    %c0_1 = arith.constant 0 : index
    %3 = vector.load %arg6[%c0, %c0_1] : memref<8x512xf32, #tpu.memory_space<vmem>>, vector<8x512xf32>
    %c0_2 = arith.constant 0 : index
    %c0_3 = arith.constant 0 : index
    %c0_4 = arith.constant 0 : index
    %4 = vector.load %arg2[%c0_2, %c0_3, %c0_4] : memref<1x8x256xbf16, #tpu.memory_space<vmem>>, vector<1x8x256xbf16>
    %5 = vector.shape_cast %4 : vector<1x8x256xbf16> to vector<8x256xbf16>
    %c0_5 = arith.constant 0 : index
    %c0_6 = arith.constant 0 : index
    %c0_7 = arith.constant 0 : index
    %6 = vector.load %arg3[%c0_5, %c0_6, %c0_7] : memref<1x256x512xbf16, #tpu.memory_space<vmem>>, vector<1x256x512xbf16>
    %7 = vector.shape_cast %6 : vector<1x256x512xbf16> to vector<256x512xbf16>
    %cst = arith.constant dense<0.000000e+00> : vector<8x512xf32>
    %8 = tpu.matmul %5, %7, %cst {dimension_numbers = #tpu.dot_dimension_numbers<[1], [0], [0], [1], [0, 0, 1, 1], [], []>} : vector<8x256xbf16>, vector<256x512xbf16>, vector<8x512xf32> -> vector<8x512xf32>
    %9 = arith.addf %3, %8 : vector<8x512xf32>
    %c0_8 = arith.constant 0 : index
    %c0_9 = arith.constant 0 : index
    %10 = vector.load %arg6[%c0_8, %c0_9] : memref<8x512xf32, #tpu.memory_space<vmem>>, vector<8x512xf32>
    tpu.vector_store %arg6[%c0_8, %c0_9], %9 {strides = array<i32>} : memref<8x512xf32, #tpu.memory_space<vmem>>, vector<8x512xf32>,
    %c8_i32 = arith.constant 8 : i32
    %11 = arith.cmpi eq, %arg1, %c8_i32 : i32
    %12 = arith.extui %11 : i1 to i32
    %c0_i32_10 = arith.constant 0 : i32
    %13 = arith.cmpi ne, %12, %c0_i32_10 : i32
    scf.if %13 {
      %c0_11 = arith.constant 0 : index
      %c0_12 = arith.constant 0 : index
      %14 = vector.load %arg6[%c0_11, %c0_12] : memref<8x512xf32, #tpu.memory_space<vmem>>, vector<8x512xf32>
      %c0_13 = arith.constant 0 : index
      %c0_14 = arith.constant 0 : index
      %15 = vector.load %arg4[%c0_13, %c0_14] : memref<1x512xbf16, #tpu.memory_space<vmem>>, vector<1x512xbf16>
      %16 = arith.extf %15 : vector<1x512xbf16> to vector<1x512xf32>
      %17 = vector.broadcast %16 : vector<1x512xf32> to vector<8x512xf32>
      %18 = arith.addf %14, %17 : vector<8x512xf32>
      %cst_15 = arith.constant 0.000000e+00 : f32
      %19 = vector.broadcast %cst_15 : f32 to vector<8x512xf32>
      %20 = arith.maximumf %18, %19 : vector<8x512xf32>
      %21 = arith.truncf %20 : vector<8x512xf32> to vector<8x512xbf16>
      %c0_16 = arith.constant 0 : index
      %c0_17 = arith.constant 0 : index
      %22 = vector.load %arg5[%c0_16, %c0_17] : memref<8x512xbf16, #tpu.memory_space<vmem>>, vector<8x512xbf16>
      tpu.vector_store %arg5[%c0_16, %c0_17], %21 {strides = array<i32>} : memref<8x512xbf16, #tpu.memory_space<vmem>>, vector<8x512xbf16>,
    } else {
    }
    return
  }
  func.func @transform_0(%arg0: i32, %arg1: i32) -> (i32, i32, i32) {
    %c0_i32 = arith.constant 0 : i32
    %c0_i32_0 = arith.constant 0 : i32
    return %arg1, %arg0, %c0_i32 : i32, i32, i32
  }
  func.func @transform_1(%arg0: i32, %arg1: i32) -> (i32, i32, i32) {
    %c0_i32 = arith.constant 0 : i32
    %c0_i32_0 = arith.constant 0 : i32
    %c0_i32_1 = arith.constant 0 : i32
    return %arg1, %c0_i32, %c0_i32_0 : i32, i32, i32
  }
  func.func @transform_2(%arg0: i32, %arg1: i32) -> (i32, i32) {
    %c0_i32 = arith.constant 0 : i32
    %c0_i32_0 = arith.constant 0 : i32
    %c0_i32_1 = arith.constant 0 : i32
    return %c0_i32, %c0_i32_0 : i32, i32
  }
  func.func @transform_3(%arg0: i32, %arg1: i32) -> (i32, i32) {
    %c0_i32 = arith.constant 0 : i32
    %c0_i32_0 = arith.constant 0 : i32
    return %arg0, %c0_i32 : i32, i32
  }
}

module attributes {stable_mosaic.version = 11 : i64} {
  func.func @_l1_partial_kernel(%arg0: i32, %arg1: memref<8x512xbf16, #tpu.memory_space<vmem>>, %arg2: memref<8x512xbf16, #tpu.memory_space<vmem>>, %arg3: memref<1x1xf32, #tpu.memory_space<vmem>>) attributes {dimension_semantics = [#tpu.dimension_semantics<arbitrary>], iteration_bounds = array<i64: 1>, scalar_prefetch = 0 : i64, scratch_operands = 0 : i64, tpu.core_type = #tpu.core_type<tc>, window_params = [{transform_indices = @transform_0, window_bounds = array<i64: 8, 512>}, {transform_indices = @transform_1, window_bounds = array<i64: 8, 512>}, {pipeline_mode = #tpu.pipeline_mode<synchronous>, transform_indices = @transform_2, window_bounds = array<i64: 1, 1>}]} {
    %c0_i32 = arith.constant 0 : i32
    %0 = arith.cmpi eq, %arg0, %c0_i32 : i32
    %1 = arith.extui %0 : i1 to i32
    %c0_i32_0 = arith.constant 0 : i32
    %2 = arith.cmpi ne, %1, %c0_i32_0 : i32
    scf.if %2 {
      %cst_9 = arith.constant 0.000000e+00 : f32
      %19 = vector.broadcast %cst_9 : f32 to vector<1x1xf32>
      %c0_10 = arith.constant 0 : index
      %c0_11 = arith.constant 0 : index
      %20 = vector.load %arg3[%c0_10, %c0_11] : memref<1x1xf32, #tpu.memory_space<vmem>>, vector<1x1xf32>
      tpu.vector_store %arg3[%c0_10, %c0_11], %19 {strides = array<i32>} : memref<1x1xf32, #tpu.memory_space<vmem>>, vector<1x1xf32>,
    } else {
    }
    %c0 = arith.constant 0 : index
    %c0_1 = arith.constant 0 : index
    %3 = vector.load %arg1[%c0, %c0_1] : memref<8x512xbf16, #tpu.memory_space<vmem>>, vector<8x512xbf16>
    %4 = arith.extf %3 : vector<8x512xbf16> to vector<8x512xf32>
    %c0_2 = arith.constant 0 : index
    %c0_3 = arith.constant 0 : index
    %5 = vector.load %arg2[%c0_2, %c0_3] : memref<8x512xbf16, #tpu.memory_space<vmem>>, vector<8x512xbf16>
    %6 = arith.extf %5 : vector<8x512xbf16> to vector<8x512xf32>
    %7 = arith.subf %4, %6 : vector<8x512xf32>
    %8 = math.absf %7 : vector<8x512xf32>
    %c0_4 = arith.constant 0 : index
    %c0_5 = arith.constant 0 : index
    %9 = vector.load %arg3[%c0_4, %c0_5] : memref<1x1xf32, #tpu.memory_space<vmem>>, vector<1x1xf32>
    %10 = vector.shape_cast %8 : vector<8x512xf32> to vector<1x8x512xf32>
    %cst = arith.constant dense<0.000000e+00> : vector<1xf32>
    %11 = vector.multi_reduction <add>, %10, %cst [1, 2] : vector<1x8x512xf32> to vector<1xf32>
    %12 = vector.shape_cast %11 : vector<1xf32> to vector<1x1x1xf32>
    %13 = vector.extract %12[0, 0, 0] : f32 from vector<1x1x1xf32>
    %14 = vector.broadcast %13 : f32 to vector<1x1xf32>
    %cst_6 = arith.constant 6.10351563E-5 : f32
    %15 = vector.broadcast %cst_6 : f32 to vector<1x1xf32>
    %16 = arith.mulf %15, %14 : vector<1x1xf32>
    %17 = arith.addf %9, %16 : vector<1x1xf32>
    %c0_7 = arith.constant 0 : index
    %c0_8 = arith.constant 0 : index
    %18 = vector.load %arg3[%c0_7, %c0_8] : memref<1x1xf32, #tpu.memory_space<vmem>>, vector<1x1xf32>
    tpu.vector_store %arg3[%c0_7, %c0_8], %17 {strides = array<i32>} : memref<1x1xf32, #tpu.memory_space<vmem>>, vector<1x1xf32>,
    return
  }
  func.func @transform_0(%arg0: i32) -> (i32, i32) {
    %c0_i32 = arith.constant 0 : i32
    %c0_i32_0 = arith.constant 0 : i32
    return %arg0, %c0_i32 : i32, i32
  }
  func.func @transform_1(%arg0: i32) -> (i32, i32) {
    %c0_i32 = arith.constant 0 : i32
    %c0_i32_0 = arith.constant 0 : i32
    return %arg0, %c0_i32 : i32, i32
  }
  func.func @transform_2(%arg0: i32) -> (i32, i32) {
    %c0_i32 = arith.constant 0 : i32
    %c0_i32_0 = arith.constant 0 : i32
    %c0_i32_1 = arith.constant 0 : i32
    return %c0_i32, %c0_i32_0 : i32, i32
  }
}

module attributes {stable_mosaic.version = 11 : i64} {
  func.func @_conv_tap_kernel(%arg0: i32, %arg1: i32, %arg2: memref<1x8x512xbf16, #tpu.memory_space<vmem>>, %arg3: memref<1x512x512xbf16, #tpu.memory_space<vmem>>, %arg4: memref<1x512xbf16, #tpu.memory_space<vmem>>, %arg5: memref<8x512xbf16, #tpu.memory_space<vmem>>, %arg6: memref<8x512xf32, #tpu.memory_space<vmem>>) attributes {dimension_semantics = [#tpu.dimension_semantics<parallel>, #tpu.dimension_semantics<arbitrary>], iteration_bounds = array<i64: 1, 9>, scalar_prefetch = 0 : i64, scratch_operands = 1 : i64, tpu.core_type = #tpu.core_type<tc>, window_params = [{transform_indices = @transform_0, window_bounds = array<i64: 1, 8, 512>}, {transform_indices = @transform_1, window_bounds = array<i64: 1, 512, 512>}, {pipeline_mode = #tpu.pipeline_mode<synchronous>, transform_indices = @transform_2, window_bounds = array<i64: 1, 512>}, {transform_indices = @transform_3, window_bounds = array<i64: 8, 512>}]} {
    %c0_i32 = arith.constant 0 : i32
    %0 = arith.cmpi eq, %arg1, %c0_i32 : i32
    %1 = arith.extui %0 : i1 to i32
    %c0_i32_0 = arith.constant 0 : i32
    %2 = arith.cmpi ne, %1, %c0_i32_0 : i32
    scf.if %2 {
      %cst_11 = arith.constant 0.000000e+00 : f32
      %14 = vector.broadcast %cst_11 : f32 to vector<8x512xf32>
      %c0_12 = arith.constant 0 : index
      %c0_13 = arith.constant 0 : index
      %15 = vector.load %arg6[%c0_12, %c0_13] : memref<8x512xf32, #tpu.memory_space<vmem>>, vector<8x512xf32>
      tpu.vector_store %arg6[%c0_12, %c0_13], %14 {strides = array<i32>} : memref<8x512xf32, #tpu.memory_space<vmem>>, vector<8x512xf32>,
    } else {
    }
    %c0 = arith.constant 0 : index
    %c0_1 = arith.constant 0 : index
    %3 = vector.load %arg6[%c0, %c0_1] : memref<8x512xf32, #tpu.memory_space<vmem>>, vector<8x512xf32>
    %c0_2 = arith.constant 0 : index
    %c0_3 = arith.constant 0 : index
    %c0_4 = arith.constant 0 : index
    %4 = vector.load %arg2[%c0_2, %c0_3, %c0_4] : memref<1x8x512xbf16, #tpu.memory_space<vmem>>, vector<1x8x512xbf16>
    %5 = vector.shape_cast %4 : vector<1x8x512xbf16> to vector<8x512xbf16>
    %c0_5 = arith.constant 0 : index
    %c0_6 = arith.constant 0 : index
    %c0_7 = arith.constant 0 : index
    %6 = vector.load %arg3[%c0_5, %c0_6, %c0_7] : memref<1x512x512xbf16, #tpu.memory_space<vmem>>, vector<1x512x512xbf16>
    %7 = vector.shape_cast %6 : vector<1x512x512xbf16> to vector<512x512xbf16>
    %cst = arith.constant dense<0.000000e+00> : vector<8x512xf32>
    %8 = tpu.matmul %5, %7, %cst {dimension_numbers = #tpu.dot_dimension_numbers<[1], [0], [0], [1], [0, 0, 1, 1], [], []>} : vector<8x512xbf16>, vector<512x512xbf16>, vector<8x512xf32> -> vector<8x512xf32>
    %9 = arith.addf %3, %8 : vector<8x512xf32>
    %c0_8 = arith.constant 0 : index
    %c0_9 = arith.constant 0 : index
    %10 = vector.load %arg6[%c0_8, %c0_9] : memref<8x512xf32, #tpu.memory_space<vmem>>, vector<8x512xf32>
    tpu.vector_store %arg6[%c0_8, %c0_9], %9 {strides = array<i32>} : memref<8x512xf32, #tpu.memory_space<vmem>>, vector<8x512xf32>,
    %c8_i32 = arith.constant 8 : i32
    %11 = arith.cmpi eq, %arg1, %c8_i32 : i32
    %12 = arith.extui %11 : i1 to i32
    %c0_i32_10 = arith.constant 0 : i32
    %13 = arith.cmpi ne, %12, %c0_i32_10 : i32
    scf.if %13 {
      %c0_11 = arith.constant 0 : index
      %c0_12 = arith.constant 0 : index
      %14 = vector.load %arg6[%c0_11, %c0_12] : memref<8x512xf32, #tpu.memory_space<vmem>>, vector<8x512xf32>
      %c0_13 = arith.constant 0 : index
      %c0_14 = arith.constant 0 : index
      %15 = vector.load %arg4[%c0_13, %c0_14] : memref<1x512xbf16, #tpu.memory_space<vmem>>, vector<1x512xbf16>
      %16 = arith.extf %15 : vector<1x512xbf16> to vector<1x512xf32>
      %17 = vector.broadcast %16 : vector<1x512xf32> to vector<8x512xf32>
      %18 = arith.addf %14, %17 : vector<8x512xf32>
      %cst_15 = arith.constant 0.000000e+00 : f32
      %19 = vector.broadcast %cst_15 : f32 to vector<8x512xf32>
      %20 = arith.maximumf %18, %19 : vector<8x512xf32>
      %21 = arith.truncf %20 : vector<8x512xf32> to vector<8x512xbf16>
      %c0_16 = arith.constant 0 : index
      %c0_17 = arith.constant 0 : index
      %22 = vector.load %arg5[%c0_16, %c0_17] : memref<8x512xbf16, #tpu.memory_space<vmem>>, vector<8x512xbf16>
      tpu.vector_store %arg5[%c0_16, %c0_17], %21 {strides = array<i32>} : memref<8x512xbf16, #tpu.memory_space<vmem>>, vector<8x512xbf16>,
    } else {
    }
    return
  }
  func.func @transform_0(%arg0: i32, %arg1: i32) -> (i32, i32, i32) {
    %c0_i32 = arith.constant 0 : i32
    %c0_i32_0 = arith.constant 0 : i32
    return %arg1, %arg0, %c0_i32 : i32, i32, i32
  }
  func.func @transform_1(%arg0: i32, %arg1: i32) -> (i32, i32, i32) {
    %c0_i32 = arith.constant 0 : i32
    %c0_i32_0 = arith.constant 0 : i32
    %c0_i32_1 = arith.constant 0 : i32
    return %arg1, %c0_i32, %c0_i32_0 : i32, i32, i32
  }
  func.func @transform_2(%arg0: i32, %arg1: i32) -> (i32, i32) {
    %c0_i32 = arith.constant 0 : i32
    %c0_i32_0 = arith.constant 0 : i32
    %c0_i32_1 = arith.constant 0 : i32
    return %c0_i32, %c0_i32_0 : i32, i32
  }
  func.func @transform_3(%arg0: i32, %arg1: i32) -> (i32, i32) {
    %c0_i32 = arith.constant 0 : i32
    %c0_i32_0 = arith.constant 0 : i32
    return %arg0, %c0_i32 : i32, i32
  }
}

module attributes {stable_mosaic.version = 11 : i64} {
  func.func @_maxpool_kernel(%arg0: i32, %arg1: memref<2x512xbf16, #tpu.memory_space<vmem>>, %arg2: memref<2x512xbf16, #tpu.memory_space<vmem>>, %arg3: memref<2x512xbf16, #tpu.memory_space<vmem>>, %arg4: memref<2x512xbf16, #tpu.memory_space<vmem>>, %arg5: memref<2x512xbf16, #tpu.memory_space<vmem>>) attributes {dimension_semantics = [#tpu.dimension_semantics<parallel>], iteration_bounds = array<i64: 1>, scalar_prefetch = 0 : i64, scratch_operands = 0 : i64, tpu.core_type = #tpu.core_type<tc>, window_params = [{transform_indices = @transform_0, window_bounds = array<i64: 2, 512>}, {transform_indices = @transform_1, window_bounds = array<i64: 2, 512>}, {transform_indices = @transform_2, window_bounds = array<i64: 2, 512>}, {transform_indices = @transform_3, window_bounds = array<i64: 2, 512>}, {transform_indices = @transform_4, window_bounds = array<i64: 2, 512>}]} {
    %c0 = arith.constant 0 : index
    %c0_0 = arith.constant 0 : index
    %0 = vector.load %arg1[%c0, %c0_0] : memref<2x512xbf16, #tpu.memory_space<vmem>>, vector<2x512xbf16>
    %c0_1 = arith.constant 0 : index
    %c0_2 = arith.constant 0 : index
    %1 = vector.load %arg2[%c0_1, %c0_2] : memref<2x512xbf16, #tpu.memory_space<vmem>>, vector<2x512xbf16>
    %2 = arith.maximumf %0, %1 : vector<2x512xbf16>
    %c0_3 = arith.constant 0 : index
    %c0_4 = arith.constant 0 : index
    %3 = vector.load %arg3[%c0_3, %c0_4] : memref<2x512xbf16, #tpu.memory_space<vmem>>, vector<2x512xbf16>
    %c0_5 = arith.constant 0 : index
    %c0_6 = arith.constant 0 : index
    %4 = vector.load %arg4[%c0_5, %c0_6] : memref<2x512xbf16, #tpu.memory_space<vmem>>, vector<2x512xbf16>
    %5 = arith.maximumf %3, %4 : vector<2x512xbf16>
    %6 = arith.maximumf %2, %5 : vector<2x512xbf16>
    %c0_7 = arith.constant 0 : index
    %c0_8 = arith.constant 0 : index
    %7 = vector.load %arg5[%c0_7, %c0_8] : memref<2x512xbf16, #tpu.memory_space<vmem>>, vector<2x512xbf16>
    tpu.vector_store %arg5[%c0_7, %c0_8], %6 {strides = array<i32>} : memref<2x512xbf16, #tpu.memory_space<vmem>>, vector<2x512xbf16>,
    return
  }
  func.func @transform_0(%arg0: i32) -> (i32, i32) {
    %c0_i32 = arith.constant 0 : i32
    %c0_i32_0 = arith.constant 0 : i32
    return %arg0, %c0_i32 : i32, i32
  }
  func.func @transform_1(%arg0: i32) -> (i32, i32) {
    %c0_i32 = arith.constant 0 : i32
    %c0_i32_0 = arith.constant 0 : i32
    return %arg0, %c0_i32 : i32, i32
  }
  func.func @transform_2(%arg0: i32) -> (i32, i32) {
    %c0_i32 = arith.constant 0 : i32
    %c0_i32_0 = arith.constant 0 : i32
    return %arg0, %c0_i32 : i32, i32
  }
  func.func @transform_3(%arg0: i32) -> (i32, i32) {
    %c0_i32 = arith.constant 0 : i32
    %c0_i32_0 = arith.constant 0 : i32
    return %arg0, %c0_i32 : i32, i32
  }
  func.func @transform_4(%arg0: i32) -> (i32, i32) {
    %c0_i32 = arith.constant 0 : i32
    %c0_i32_0 = arith.constant 0 : i32
    return %arg0, %c0_i32 : i32, i32
  }
}

module attributes {stable_mosaic.version = 11 : i64} {
  func.func @_conv_tap_kernel(%arg0: i32, %arg1: i32, %arg2: memref<1x2x512xbf16, #tpu.memory_space<vmem>>, %arg3: memref<1x512x512xbf16, #tpu.memory_space<vmem>>, %arg4: memref<1x512xbf16, #tpu.memory_space<vmem>>, %arg5: memref<2x512xbf16, #tpu.memory_space<vmem>>, %arg6: memref<2x512xf32, #tpu.memory_space<vmem>>) attributes {dimension_semantics = [#tpu.dimension_semantics<parallel>, #tpu.dimension_semantics<arbitrary>], iteration_bounds = array<i64: 1, 9>, scalar_prefetch = 0 : i64, scratch_operands = 1 : i64, tpu.core_type = #tpu.core_type<tc>, window_params = [{transform_indices = @transform_0, window_bounds = array<i64: 1, 2, 512>}, {transform_indices = @transform_1, window_bounds = array<i64: 1, 512, 512>}, {pipeline_mode = #tpu.pipeline_mode<synchronous>, transform_indices = @transform_2, window_bounds = array<i64: 1, 512>}, {transform_indices = @transform_3, window_bounds = array<i64: 2, 512>}]} {
    %c0_i32 = arith.constant 0 : i32
    %0 = arith.cmpi eq, %arg1, %c0_i32 : i32
    %1 = arith.extui %0 : i1 to i32
    %c0_i32_0 = arith.constant 0 : i32
    %2 = arith.cmpi ne, %1, %c0_i32_0 : i32
    scf.if %2 {
      %cst_11 = arith.constant 0.000000e+00 : f32
      %14 = vector.broadcast %cst_11 : f32 to vector<2x512xf32>
      %c0_12 = arith.constant 0 : index
      %c0_13 = arith.constant 0 : index
      %15 = vector.load %arg6[%c0_12, %c0_13] : memref<2x512xf32, #tpu.memory_space<vmem>>, vector<2x512xf32>
      tpu.vector_store %arg6[%c0_12, %c0_13], %14 {strides = array<i32>} : memref<2x512xf32, #tpu.memory_space<vmem>>, vector<2x512xf32>,
    } else {
    }
    %c0 = arith.constant 0 : index
    %c0_1 = arith.constant 0 : index
    %3 = vector.load %arg6[%c0, %c0_1] : memref<2x512xf32, #tpu.memory_space<vmem>>, vector<2x512xf32>
    %c0_2 = arith.constant 0 : index
    %c0_3 = arith.constant 0 : index
    %c0_4 = arith.constant 0 : index
    %4 = vector.load %arg2[%c0_2, %c0_3, %c0_4] : memref<1x2x512xbf16, #tpu.memory_space<vmem>>, vector<1x2x512xbf16>
    %5 = vector.shape_cast %4 : vector<1x2x512xbf16> to vector<2x512xbf16>
    %c0_5 = arith.constant 0 : index
    %c0_6 = arith.constant 0 : index
    %c0_7 = arith.constant 0 : index
    %6 = vector.load %arg3[%c0_5, %c0_6, %c0_7] : memref<1x512x512xbf16, #tpu.memory_space<vmem>>, vector<1x512x512xbf16>
    %7 = vector.shape_cast %6 : vector<1x512x512xbf16> to vector<512x512xbf16>
    %cst = arith.constant dense<0.000000e+00> : vector<2x512xf32>
    %8 = tpu.matmul %5, %7, %cst {dimension_numbers = #tpu.dot_dimension_numbers<[1], [0], [0], [1], [0, 0, 1, 1], [], []>} : vector<2x512xbf16>, vector<512x512xbf16>, vector<2x512xf32> -> vector<2x512xf32>
    %9 = arith.addf %3, %8 : vector<2x512xf32>
    %c0_8 = arith.constant 0 : index
    %c0_9 = arith.constant 0 : index
    %10 = vector.load %arg6[%c0_8, %c0_9] : memref<2x512xf32, #tpu.memory_space<vmem>>, vector<2x512xf32>
    tpu.vector_store %arg6[%c0_8, %c0_9], %9 {strides = array<i32>} : memref<2x512xf32, #tpu.memory_space<vmem>>, vector<2x512xf32>,
    %c8_i32 = arith.constant 8 : i32
    %11 = arith.cmpi eq, %arg1, %c8_i32 : i32
    %12 = arith.extui %11 : i1 to i32
    %c0_i32_10 = arith.constant 0 : i32
    %13 = arith.cmpi ne, %12, %c0_i32_10 : i32
    scf.if %13 {
      %c0_11 = arith.constant 0 : index
      %c0_12 = arith.constant 0 : index
      %14 = vector.load %arg6[%c0_11, %c0_12] : memref<2x512xf32, #tpu.memory_space<vmem>>, vector<2x512xf32>
      %c0_13 = arith.constant 0 : index
      %c0_14 = arith.constant 0 : index
      %15 = vector.load %arg4[%c0_13, %c0_14] : memref<1x512xbf16, #tpu.memory_space<vmem>>, vector<1x512xbf16>
      %16 = arith.extf %15 : vector<1x512xbf16> to vector<1x512xf32>
      %17 = vector.broadcast %16 : vector<1x512xf32> to vector<2x512xf32>
      %18 = arith.addf %14, %17 : vector<2x512xf32>
      %cst_15 = arith.constant 0.000000e+00 : f32
      %19 = vector.broadcast %cst_15 : f32 to vector<2x512xf32>
      %20 = arith.maximumf %18, %19 : vector<2x512xf32>
      %21 = arith.truncf %20 : vector<2x512xf32> to vector<2x512xbf16>
      %c0_16 = arith.constant 0 : index
      %c0_17 = arith.constant 0 : index
      %22 = vector.load %arg5[%c0_16, %c0_17] : memref<2x512xbf16, #tpu.memory_space<vmem>>, vector<2x512xbf16>
      tpu.vector_store %arg5[%c0_16, %c0_17], %21 {strides = array<i32>} : memref<2x512xbf16, #tpu.memory_space<vmem>>, vector<2x512xbf16>,
    } else {
    }
    return
  }
  func.func @transform_0(%arg0: i32, %arg1: i32) -> (i32, i32, i32) {
    %c0_i32 = arith.constant 0 : i32
    %c0_i32_0 = arith.constant 0 : i32
    return %arg1, %arg0, %c0_i32 : i32, i32, i32
  }
  func.func @transform_1(%arg0: i32, %arg1: i32) -> (i32, i32, i32) {
    %c0_i32 = arith.constant 0 : i32
    %c0_i32_0 = arith.constant 0 : i32
    %c0_i32_1 = arith.constant 0 : i32
    return %arg1, %c0_i32, %c0_i32_0 : i32, i32, i32
  }
  func.func @transform_2(%arg0: i32, %arg1: i32) -> (i32, i32) {
    %c0_i32 = arith.constant 0 : i32
    %c0_i32_0 = arith.constant 0 : i32
    %c0_i32_1 = arith.constant 0 : i32
    return %c0_i32, %c0_i32_0 : i32, i32
  }
  func.func @transform_3(%arg0: i32, %arg1: i32) -> (i32, i32) {
    %c0_i32 = arith.constant 0 : i32
    %c0_i32_0 = arith.constant 0 : i32
    return %arg0, %c0_i32 : i32, i32
  }
}

module attributes {stable_mosaic.version = 11 : i64} {
  func.func @_l1_partial_kernel(%arg0: i32, %arg1: memref<2x512xbf16, #tpu.memory_space<vmem>>, %arg2: memref<2x512xbf16, #tpu.memory_space<vmem>>, %arg3: memref<1x1xf32, #tpu.memory_space<vmem>>) attributes {dimension_semantics = [#tpu.dimension_semantics<arbitrary>], iteration_bounds = array<i64: 1>, scalar_prefetch = 0 : i64, scratch_operands = 0 : i64, tpu.core_type = #tpu.core_type<tc>, window_params = [{transform_indices = @transform_0, window_bounds = array<i64: 2, 512>}, {transform_indices = @transform_1, window_bounds = array<i64: 2, 512>}, {pipeline_mode = #tpu.pipeline_mode<synchronous>, transform_indices = @transform_2, window_bounds = array<i64: 1, 1>}]} {
    %c0_i32 = arith.constant 0 : i32
    %0 = arith.cmpi eq, %arg0, %c0_i32 : i32
    %1 = arith.extui %0 : i1 to i32
    %c0_i32_0 = arith.constant 0 : i32
    %2 = arith.cmpi ne, %1, %c0_i32_0 : i32
    scf.if %2 {
      %cst_9 = arith.constant 0.000000e+00 : f32
      %19 = vector.broadcast %cst_9 : f32 to vector<1x1xf32>
      %c0_10 = arith.constant 0 : index
      %c0_11 = arith.constant 0 : index
      %20 = vector.load %arg3[%c0_10, %c0_11] : memref<1x1xf32, #tpu.memory_space<vmem>>, vector<1x1xf32>
      tpu.vector_store %arg3[%c0_10, %c0_11], %19 {strides = array<i32>} : memref<1x1xf32, #tpu.memory_space<vmem>>, vector<1x1xf32>,
    } else {
    }
    %c0 = arith.constant 0 : index
    %c0_1 = arith.constant 0 : index
    %3 = vector.load %arg1[%c0, %c0_1] : memref<2x512xbf16, #tpu.memory_space<vmem>>, vector<2x512xbf16>
    %4 = arith.extf %3 : vector<2x512xbf16> to vector<2x512xf32>
    %c0_2 = arith.constant 0 : index
    %c0_3 = arith.constant 0 : index
    %5 = vector.load %arg2[%c0_2, %c0_3] : memref<2x512xbf16, #tpu.memory_space<vmem>>, vector<2x512xbf16>
    %6 = arith.extf %5 : vector<2x512xbf16> to vector<2x512xf32>
    %7 = arith.subf %4, %6 : vector<2x512xf32>
    %8 = math.absf %7 : vector<2x512xf32>
    %c0_4 = arith.constant 0 : index
    %c0_5 = arith.constant 0 : index
    %9 = vector.load %arg3[%c0_4, %c0_5] : memref<1x1xf32, #tpu.memory_space<vmem>>, vector<1x1xf32>
    %10 = vector.shape_cast %8 : vector<2x512xf32> to vector<1x2x512xf32>
    %cst = arith.constant dense<0.000000e+00> : vector<1xf32>
    %11 = vector.multi_reduction <add>, %10, %cst [1, 2] : vector<1x2x512xf32> to vector<1xf32>
    %12 = vector.shape_cast %11 : vector<1xf32> to vector<1x1x1xf32>
    %13 = vector.extract %12[0, 0, 0] : f32 from vector<1x1x1xf32>
    %14 = vector.broadcast %13 : f32 to vector<1x1xf32>
    %cst_6 = arith.constant 9.765625E-4 : f32
    %15 = vector.broadcast %cst_6 : f32 to vector<1x1xf32>
    %16 = arith.mulf %15, %14 : vector<1x1xf32>
    %17 = arith.addf %9, %16 : vector<1x1xf32>
    %c0_7 = arith.constant 0 : index
    %c0_8 = arith.constant 0 : index
    %18 = vector.load %arg3[%c0_7, %c0_8] : memref<1x1xf32, #tpu.memory_space<vmem>>, vector<1x1xf32>
    tpu.vector_store %arg3[%c0_7, %c0_8], %17 {strides = array<i32>} : memref<1x1xf32, #tpu.memory_space<vmem>>, vector<1x1xf32>,
    return
  }
  func.func @transform_0(%arg0: i32) -> (i32, i32) {
    %c0_i32 = arith.constant 0 : i32
    %c0_i32_0 = arith.constant 0 : i32
    return %arg0, %c0_i32 : i32, i32
  }
  func.func @transform_1(%arg0: i32) -> (i32, i32) {
    %c0_i32 = arith.constant 0 : i32
    %c0_i32_0 = arith.constant 0 : i32
    return %arg0, %c0_i32 : i32, i32
  }
  func.func @transform_2(%arg0: i32) -> (i32, i32) {
    %c0_i32 = arith.constant 0 : i32
    %c0_i32_0 = arith.constant 0 : i32
    %c0_i32_1 = arith.constant 0 : i32
    return %c0_i32, %c0_i32_0 : i32, i32
  }
}

</mosaic_0001>

<bundles_post_ra>
// kernel: vgg_loss.41
= control target key start
LH: loop header
LB: loop body
LE: loop exit
PB: predicated region body
PF: predicated region fallthrough
CT: control target
= control target key end

     0   :  { %s2112_s12 = smov 0   ;;  %s2114_s13 = smov 0   ;;  %s2737_s0 = inlined_call_operand.vmem [shape: bf16[9,512,3], index: 0, kind: input, shape index: {}]   ;;  %s2738_s1 = inlined_call_operand.vmem [shape: bf16[9,3,64], index: 1, kind: input, shape index: {}]   ;;  %s2739_s2 = inlined_call_operand.vmem [shape: bf16[1,64], index: 2, kind: input, shape index: {}]   ;;  %s2740_s3 = inlined_call_operand.vmem [shape: bf16[512,64], index: 3, kind: output, shape index: {}]  }
   0x1   :  { %s2116_s14 = smov 0  }
   0x2 LB: > { %s22_s15 = sadd.s32 1, %s2084_s13  ;;  %p1704_p0 = scmp.ge.s32.totalorder %s2088_s14, 1  ;;  %s2088_s14 = sphi %s2116_s14, %s13_s14   ;;  %s2084_s13 = sphi %s2114_s13, %s2742_s13   ;;  %s2080_s12 = sphi %s2112_s12, %s2741_s12  }
   0x3   : > { %p23_p1 = scmp.ge.s32.totalorder %s22_s15, 9  ;;  %p165_p2 = scmp.lt.s32.totalorder %s2088_s14, 10 }
   0x5   : > { %s2744_s15 = smov (%p23_p1, %s22_s15), 0  ;;  %p166_p3 = pnand %p1704_p0, %p165_p2 }
   0x6   : > { %p198_p4 = scmp.lt.s32.totalorder (!%p166_p3), %s2080_s12, 8  ;;  %p1708_p5 = scmp.ne.s32.totalorder (!%p166_p3), %s2080_s12, 0 }
   0x7   : > { %169 = sbr.rel (%p166_p3) target bundleno = 376 (0x178), region = 32 }
   0xe   : > { %s199_s16 = scalar_select %p198_p4, %s2080_s12, 8 }
   0xf   : > { %221 = sbr.rel (%p1708_p5) target bundleno = 48 (0x30), region = 36  ;;  %vm222_vm0 = vcmask (!%p1708_p5), 523264   ;;  %v2090_v0 = vmov (!%p1708_p5), 0.0  }
  0x10   : > { %s1842_s17 = sshll.u32 %s199_s16, 8  ;;  %s1707_s18 = sshll.u32 %s199_s16, 1  ;;  %223 = vst.msk [vmem:[#allocation2] sm:$0xff] (!%p1708_p5), %vm222_vm0, %v2090_v0  ;;  %224 = vst.msk [vmem:[#allocation2 + $0x8] sm:$0xff] (!%p1708_p5), %vm222_vm0, %v2090_v0 }
  0x11   : > { %s2137_s21 = scalar_lea.vmem %s2737_s0, %s1842_s17  ;;  %s2142_s24 = scalar_lea.vmem %s2738_s1, %s1707_s18  ;;  %225 = vst.msk [vmem:[#allocation2 + $0x10] sm:$0xff] (!%p1708_p5), %vm222_vm0, %v2090_v0  ;;  %226 = vst.msk [vmem:[#allocation2 + $0x18] sm:$0xff] (!%p1708_p5), %vm222_vm0, %v2090_v0 }
  0x12   : > { %227 = vst.msk [vmem:[#allocation2 + $0x20] sm:$0xff] (!%p1708_p5), %vm222_vm0, %v2090_v0  ;;  %228 = vst.msk [vmem:[#allocation2 + $0x28] sm:$0xff] (!%p1708_p5), %vm222_vm0, %v2090_v0 }
  0x13   : > { %229 = vst.msk [vmem:[#allocation2 + $0x30] sm:$0xff] (!%p1708_p5), %vm222_vm0, %v2090_v0  ;;  %230 = vst.msk [vmem:[#allocation2 + $0x38] sm:$0xff] (!%p1708_p5), %vm222_vm0, %v2090_v0 }
  0x14   : > { %231 = vst.msk [vmem:[#allocation2 + $0x40] sm:$0xff] (!%p1708_p5), %vm222_vm0, %v2090_v0  ;;  %232 = vst.msk [vmem:[#allocation2 + $0x48] sm:$0xff] (!%p1708_p5), %vm222_vm0, %v2090_v0 }
  0x15   : > { %233 = vst.msk [vmem:[#allocation2 + $0x50] sm:$0xff] (!%p1708_p5), %vm222_vm0, %v2090_v0  ;;  %234 = vst.msk [vmem:[#allocation2 + $0x58] sm:$0xff] (!%p1708_p5), %vm222_vm0, %v2090_v0 }
  0x16   : > { %235 = vst.msk [vmem:[#allocation2 + $0x60] sm:$0xff] %vm222_vm0, %v2090_v0  ;;  %236 = vst.msk [vmem:[#allocation2 + $0x68] sm:$0xff] %vm222_vm0, %v2090_v0 }
  0x17   : > { %237 = vst.msk [vmem:[#allocation2 + $0x70] sm:$0xff] %vm222_vm0, %v2090_v0  ;;  %238 = vst.msk [vmem:[#allocation2 + $0x78] sm:$0xff] %vm222_vm0, %v2090_v0 }
  0x18   : > { %239 = vst.msk [vmem:[#allocation2 + $0x80] sm:$0xff] %vm222_vm0, %v2090_v0  ;;  %240 = vst.msk [vmem:[#allocation2 + $0x88] sm:$0xff] %vm222_vm0, %v2090_v0 }
  0x19   : > { %241 = vst.msk [vmem:[#allocation2 + $0x90] sm:$0xff] %vm222_vm0, %v2090_v0  ;;  %242 = vst.msk [vmem:[#allocation2 + $0x98] sm:$0xff] %vm222_vm0, %v2090_v0 }
  0x1a   : > { %243 = vst.msk [vmem:[#allocation2 + $0xa0] sm:$0xff] %vm222_vm0, %v2090_v0  ;;  %244 = vst.msk [vmem:[#allocation2 + $0xa8] sm:$0xff] %vm222_vm0, %v2090_v0 }
  0x1b   : > { %245 = vst.msk [vmem:[#allocation2 + $0xb0] sm:$0xff] %vm222_vm0, %v2090_v0  ;;  %246 = vst.msk [vmem:[#allocation2 + $0xb8] sm:$0xff] %vm222_vm0, %v2090_v0 }
  0x1c   : > { %247 = vst.msk [vmem:[#allocation2 + $0xc0] sm:$0xff] %vm222_vm0, %v2090_v0  ;;  %248 = vst.msk [vmem:[#allocation2 + $0xc8] sm:$0xff] %vm222_vm0, %v2090_v0 }
  0x1d   : > { %249 = vst.msk [vmem:[#allocation2 + $0xd0] sm:$0xff] %vm222_vm0, %v2090_v0  ;;  %250 = vst.msk [vmem:[#allocation2 + $0xd8] sm:$0xff] %vm222_vm0, %v2090_v0 }
  0x1e   : > { %251 = vst.msk [vmem:[#allocation2 + $0xe0] sm:$0xff] %vm222_vm0, %v2090_v0  ;;  %252 = vst.msk [vmem:[#allocation2 + $0xe8] sm:$0xff] %vm222_vm0, %v2090_v0 }
  0x1f   : > { %253 = vst.msk [vmem:[#allocation2 + $0xf0] sm:$0xff] %vm222_vm0, %v2090_v0  ;;  %254 = vst.msk [vmem:[#allocation2 + $0xf8] sm:$0xff] %vm222_vm0, %v2090_v0 }
  0x20   : > { %255 = vst.msk [vmem:[#allocation2 + $0x100] sm:$0xff] %vm222_vm0, %v2090_v0  ;;  %256 = vst.msk [vmem:[#allocation2 + $0x108] sm:$0xff] %vm222_vm0, %v2090_v0 }
  0x21   : > { %257 = vst.msk [vmem:[#allocation2 + $0x110] sm:$0xff] %vm222_vm0, %v2090_v0  ;;  %258 = vst.msk [vmem:[#allocation2 + $0x118] sm:$0xff] %vm222_vm0, %v2090_v0 }
  0x22   : > { %259 = vst.msk [vmem:[#allocation2 + $0x120] sm:$0xff] %vm222_vm0, %v2090_v0  ;;  %260 = vst.msk [vmem:[#allocation2 + $0x128] sm:$0xff] %vm222_vm0, %v2090_v0 }
  0x23   : > { %261 = vst.msk [vmem:[#allocation2 + $0x130] sm:$0xff] %vm222_vm0, %v2090_v0  ;;  %262 = vst.msk [vmem:[#allocation2 + $0x138] sm:$0xff] %vm222_vm0, %v2090_v0 }
  0x24   : > { %263 = vst.msk [vmem:[#allocation2 + $0x140] sm:$0xff] %vm222_vm0, %v2090_v0  ;;  %264 = vst.msk [vmem:[#allocation2 + $0x148] sm:$0xff] %vm222_vm0, %v2090_v0 }
  0x25   : > { %265 = vst.msk [vmem:[#allocation2 + $0x150] sm:$0xff] %vm222_vm0, %v2090_v0  ;;  %266 = vst.msk [vmem:[#allocation2 + $0x158] sm:$0xff] %vm222_vm0, %v2090_v0 }
  0x26   : > { %267 = vst.msk [vmem:[#allocation2 + $0x160] sm:$0xff] %vm222_vm0, %v2090_v0  ;;  %268 = vst.msk [vmem:[#allocation2 + $0x168] sm:$0xff] %vm222_vm0, %v2090_v0 }
  0x27   : > { %269 = vst.msk [vmem:[#allocation2 + $0x170] sm:$0xff] %vm222_vm0, %v2090_v0  ;;  %270 = vst.msk [vmem:[#allocation2 + $0x178] sm:$0xff] %vm222_vm0, %v2090_v0 }
  0x28   : > { %271 = vst.msk [vmem:[#allocation2 + $0x180] sm:$0xff] %vm222_vm0, %v2090_v0  ;;  %272 = vst.msk [vmem:[#allocation2 + $0x188] sm:$0xff] %vm222_vm0, %v2090_v0 }
  0x29   : > { %273 = vst.msk [vmem:[#allocation2 + $0x190] sm:$0xff] %vm222_vm0, %v2090_v0  ;;  %274 = vst.msk [vmem:[#allocation2 + $0x198] sm:$0xff] %vm222_vm0, %v2090_v0 }
  0x2a   : > { %275 = vst.msk [vmem:[#allocation2 + $0x1a0] sm:$0xff] %vm222_vm0, %v2090_v0  ;;  %276 = vst.msk [vmem:[#allocation2 + $0x1a8] sm:$0xff] %vm222_vm0, %v2090_v0 }
  0x2b   : > { %277 = vst.msk [vmem:[#allocation2 + $0x1b0] sm:$0xff] %vm222_vm0, %v2090_v0  ;;  %278 = vst.msk [vmem:[#allocation2 + $0x1b8] sm:$0xff] %vm222_vm0, %v2090_v0 }
  0x2c   : > { %279 = vst.msk [vmem:[#allocation2 + $0x1c0] sm:$0xff] %vm222_vm0, %v2090_v0  ;;  %280 = vst.msk [vmem:[#allocation2 + $0x1c8] sm:$0xff] %vm222_vm0, %v2090_v0 }
  0x2d   : > { %281 = vst.msk [vmem:[#allocation2 + $0x1d0] sm:$0xff] %vm222_vm0, %v2090_v0  ;;  %282 = vst.msk [vmem:[#allocation2 + $0x1d8] sm:$0xff] %vm222_vm0, %v2090_v0 }
  0x2e   : > { %283 = vst.msk [vmem:[#allocation2 + $0x1e0] sm:$0xff] %vm222_vm0, %v2090_v0  ;;  %284 = vst.msk [vmem:[#allocation2 + $0x1e8] sm:$0xff] %vm222_vm0, %v2090_v0 }
  0x2f   : > { %285 = vst.msk [vmem:[#allocation2 + $0x1f0] sm:$0xff] %vm222_vm0, %v2090_v0  ;;  %286 = vst.msk [vmem:[#allocation2 + $0x1f8] sm:$0xff] %vm222_vm0, %v2090_v0 }
  0x30 PF: > { %v415_v1 = vld [vmem:[%s2142_s24] sm:$0x3]  ;;  %vm673_vm1 = vcmask 1040384   ;;  %vm674_vm2 = vcmask 1041408   ;;  %v2091_v3 = vmov 65535   ;;  %vm576_vm3 = vcmask 23552  }
  0x31   : > { %v2034_v2 = vld [vmem:[%s2137_s21] sm:$0xff]   ;;  %v675_v4 = vsel %vm673_vm1, 4294967295, %v2091_v3  ;;  %v2036_v8 = vld [vmem:[%s2137_s21 + $0x8] sm:$0xff]   ;;  %v2038_v10 = vld [vmem:[%s2137_s21 + $0x10] sm:$0xff]   ;;  %vm1033_vm4 = vcmask 523264   ;;  %p1773_p6 = scmp.ne.s32.totalorder %s2080_s12, 8 }
  0x32   : > { %v676_v5 = vsel %vm674_vm2, %v675_v4, 0  ;;  %1942 = vmatprep.mubr.msk.bf16.mxu0 %vm576_vm3, %v2034_v2  ;;  %v2035_v6 = vld [vmem:[%s2137_s21 + $0x80] sm:$0xff]   ;;  %v2037_v9 = vld [vmem:[%s2137_s21 + $0x88] sm:$0xff]   ;;  %v2039_v11 = vld [vmem:[%s2137_s21 + $0x90] sm:$0xff]   ;;  %vm1556_vm5 = vcmask (!%p1773_p6), 519168  }
  0x33   : > { %v678_v7 = vand.u32 %v676_v5, %v415_v1  ;;  %1974 = vmatprep.mubr.msk.bf16.mxu1 %vm576_vm3, %v2035_v6  ;;  %v2040_v12 = vld [vmem:[%s2137_s21 + $0x18] sm:$0xff]   ;;  %v2042_v14 = vld [vmem:[%s2137_s21 + $0x20] sm:$0xff]   ;;  %v2044_v16 = vld [vmem:[%s2137_s21 + $0x28] sm:$0xff]  }
  0x34   : > { %v2041_v13 = vld [vmem:[%s2137_s21 + $0x98] sm:$0xff]   ;;  %v2043_v15 = vld [vmem:[%s2137_s21 + $0xa0] sm:$0xff]   ;;  %v2045_v17 = vld [vmem:[%s2137_s21 + $0xa8] sm:$0xff]  }
  0x35   : > { %1940 = vmatprep.subr.bf16.mxu0 %v678_v7  ;;  %2006 = vmatprep.subr.bf16.mxu1 %v678_v7  ;;  %v2046_v18 = vld [vmem:[%s2137_s21 + $0x30] sm:$0xff]   ;;  %v2048_v20 = vld [vmem:[%s2137_s21 + $0x38] sm:$0xff]   ;;  %v2050_v22 = vld [vmem:[%s2137_s21 + $0x40] sm:$0xff]  }
  0x36   : > { %1941 = vmatpush3.bf16.msra.mxu0 %v678_v7  ;;  %2007 = vmatpush3.bf16.msra.mxu1 %v678_v7  ;;  %v2047_v19 = vld [vmem:[%s2137_s21 + $0xb0] sm:$0xff]   ;;  %v2049_v21 = vld [vmem:[%s2137_s21 + $0xb8] sm:$0xff]   ;;  %v2051_v23 = vld [vmem:[%s2137_s21 + $0xc0] sm:$0xff]  }
  0x37   : > { %v2052_v24 = vld [vmem:[%s2137_s21 + $0x48] sm:$0xff]   ;;  %v2054_v26 = vld [vmem:[%s2137_s21 + $0x50] sm:$0xff]   ;;  %v2056_v28 = vld [vmem:[%s2137_s21 + $0x58] sm:$0xff]  }
  0x38   : > { %v2053_v25 = vld [vmem:[%s2137_s21 + $0xc8] sm:$0xff]   ;;  %v2055_v27 = vld [vmem:[%s2137_s21 + $0xd0] sm:$0xff]   ;;  %v2057_v29 = vld [vmem:[%s2137_s21 + $0xd8] sm:$0xff]  }
  0x39   : > { %1943 = vmatmul.mubr.msk.bf16.vlgmr.msra.gmra.mrb[0].mxu0 %vm576_vm3, %v2036_v8  ;;  %1975 = vmatmul.mubr.msk.bf16.vlgmr.msra.gmra.mrb[0].mxu1 %vm576_vm3, %v2037_v9  ;;  %v2058_v30 = vld [vmem:[%s2137_s21 + $0x60] sm:$0xff]   ;;  %v2060_v32 = vld [vmem:[%s2137_s21 + $0x68] sm:$0xff]   ;;  %v2062_v34 = vld [vmem:[%s2137_s21 + $0x70] sm:$0xff]  }
  0x3a   : > { %1946 = vmatprep.mubr.msk.bf16.mxu0 %vm576_vm3, %v2038_v10  ;;  %1978 = vmatprep.mubr.msk.bf16.mxu1 %vm576_vm3, %v2039_v11  ;;  %v2059_v31 = vld [vmem:[%s2137_s21 + $0xe0] sm:$0xff]   ;;  %v2061_v33 = vld [vmem:[%s2137_s21 + $0xe8] sm:$0xff]   ;;  %v2063_v35 = vld [vmem:[%s2137_s21 + $0xf0] sm:$0xff]  }
  0x3b   : > { %v2064_v36 = vld [vmem:[%s2137_s21 + $0x78] sm:$0xff]   ;;  %v289_v38 = vld [vmem:[#allocation2 + $0x10] sm:$0xff]  ;;  %v287_v40 = vld [vmem:[#allocation2] sm:$0xff] }
  0x3c   : > { %v2065_v37 = vld [vmem:[%s2137_s21 + $0xf8] sm:$0xff]   ;;  %v321_v39 = vld [vmem:[#allocation2 + $0x110] sm:$0xff]  ;;  %v319_v41 = vld [vmem:[#allocation2 + $0x100] sm:$0xff] }
  0x3d   : > { %v290_v44 = vld [vmem:[#allocation2 + $0x18] sm:$0xff]  ;;  %v288_v50 = vld [vmem:[#allocation2 + $0x8] sm:$0xff]  ;;  %v293_v62 = vld [vmem:[#allocation2 + $0x30] sm:$0xff] }
  0x3e   : > { %v322_v45 = vld [vmem:[#allocation2 + $0x118] sm:$0xff]  ;;  %v320_v51 = vld [vmem:[#allocation2 + $0x108] sm:$0xff]  ;;  %v325_v63 = vld [vmem:[#allocation2 + $0x130] sm:$0xff] }
  0x3f   : > { %v291_v0 = vld [vmem:[#allocation2 + $0x20] sm:$0xff]  ;;  %v294_v4 = vld [vmem:[#allocation2 + $0x38] sm:$0xff]  ;;  %v292_v10 = vld [vmem:[#allocation2 + $0x28] sm:$0xff] }
  0x40   : > { %v323_v1 = vld [vmem:[#allocation2 + $0x120] sm:$0xff]  ;;  %v326_v5 = vld [vmem:[#allocation2 + $0x138] sm:$0xff]  ;;  %v324_v11 = vld [vmem:[#allocation2 + $0x128] sm:$0xff] }
  0x41   : > { %1947 = vmatmul.mubr.msk.bf16.gmra.mrb[4].mxu0 %vm576_vm3, %v2040_v12  ;;  %1979 = vmatmul.mubr.msk.bf16.gmra.mrb[4].mxu1 %vm576_vm3, %v2041_v13 }
  0x42   : > { %1950 = vmatprep.mubr.msk.bf16.mxu0 %vm576_vm3, %v2042_v14  ;;  %1982 = vmatprep.mubr.msk.bf16.mxu1 %vm576_vm3, %v2043_v15 }
  0x49   : > { %1951 = vmatmul.mubr.msk.bf16.gmra.mrb[8].mxu0 %vm576_vm3, %v2044_v16  ;;  %1983 = vmatmul.mubr.msk.bf16.gmra.mrb[8].mxu1 %vm576_vm3, %v2045_v17 }
  0x4a   : > { %1954 = vmatprep.mubr.msk.bf16.mxu0 %vm576_vm3, %v2046_v18  ;;  %1986 = vmatprep.mubr.msk.bf16.mxu1 %vm576_vm3, %v2047_v19 }
  0x51   : > { %1955 = vmatmul.mubr.msk.bf16.gmra.mrb[12].mxu0 %vm576_vm3, %v2048_v20  ;;  %1987 = vmatmul.mubr.msk.bf16.gmra.mrb[12].mxu1 %vm576_vm3, %v2049_v21 }
  0x52   : > { %1958 = vmatprep.mubr.msk.bf16.mxu0 %vm576_vm3, %v2050_v22  ;;  %1990 = vmatprep.mubr.msk.bf16.mxu1 %vm576_vm3, %v2051_v23  ;;  %v297_v22 = vld [vmem:[#allocation2 + $0x50] sm:$0xff] }
  0x53   : > { %v329_v23 = vld [vmem:[#allocation2 + $0x150] sm:$0xff] }
  0x59   : > { %1959 = vmatmul.mubr.msk.bf16.gmra.mrb[16].mxu0 %vm576_vm3, %v2052_v24  ;;  %1991 = vmatmul.mubr.msk.bf16.gmra.mrb[16].mxu1 %vm576_vm3, %v2053_v25  ;;  %v295_v24 = vld [vmem:[#allocation2 + $0x40] sm:$0xff] }
  0x5a   : > { %1962 = vmatprep.mubr.msk.bf16.mxu0 %vm576_vm3, %v2054_v26  ;;  %1994 = vmatprep.mubr.msk.bf16.mxu1 %vm576_vm3, %v2055_v27  ;;  %v327_v25 = vld [vmem:[#allocation2 + $0x140] sm:$0xff] }
  0x61   : > { %1963 = vmatmul.mubr.msk.bf16.gmra.mrb[20].mxu0 %vm576_vm3, %v2056_v28  ;;  %1995 = vmatmul.mubr.msk.bf16.gmra.mrb[20].mxu1 %vm576_vm3, %v2057_v29  ;;  %v298_v28 = vld [vmem:[#allocation2 + $0x58] sm:$0xff] }
  0x62   : > { %1966 = vmatprep.mubr.msk.bf16.mxu0 %vm576_vm3, %v2058_v30  ;;  %1998 = vmatprep.mubr.msk.bf16.mxu1 %vm576_vm3, %v2059_v31  ;;  %v330_v29 = vld [vmem:[#allocation2 + $0x158] sm:$0xff] }
  0x69   : > { %1967 = vmatmul.mubr.msk.bf16.gmra.mrb[24].mxu0 %vm576_vm3, %v2060_v32  ;;  %1999 = vmatmul.mubr.msk.bf16.gmra.mrb[24].mxu1 %vm576_vm3, %v2061_v33 }
  0x6a   : > { %1970 = vmatprep.mubr.msk.bf16.mxu0 %vm576_vm3, %v2062_v34  ;;  %2002 = vmatprep.mubr.msk.bf16.mxu1 %vm576_vm3, %v2063_v35  ;;  %v296_v34 = vld [vmem:[#allocation2 + $0x48] sm:$0xff] }
  0x6b   : > { %v328_v35 = vld [vmem:[#allocation2 + $0x148] sm:$0xff] }
  0x71   : > { %1971 = vmatmul.mubr.msk.bf16.gmra.mrb[28].mxu0 %vm576_vm3, %v2064_v36  ;;  %2003 = vmatmul.mubr.msk.bf16.gmra.mrb[28].mxu1 %vm576_vm3, %v2065_v37 }
 0x10c   : > { %v1944_v42 = vpop.f32.mrb[0].mxu0  ;;  %v1976_v43 = vpop.f32.mrb[0].mxu1 }
 0x10d   : > { %v971_v46 = vadd.f32 %v1944_v42, %v289_v38  ;;  %v1003_v47 = vadd.f32 %v1976_v43, %v321_v39  ;;  %v714_v48 = vpop.f32.mrb[1].mxu0  ;;  %v842_v49 = vpop.f32.mrb[1].mxu1 }
 0x10e   : > { %v969_v52 = vadd.f32 %v714_v48, %v287_v40  ;;  %v1001_v53 = vadd.f32 %v842_v49, %v319_v41  ;;  %v1945_v54 = vpop.f32.mrb[2].mxu0  ;;  %v1977_v55 = vpop.f32.mrb[2].mxu1  ;;  %v299_v48 = vld [vmem:[#allocation2 + $0x60] sm:$0xff] }
 0x10f   : > { %1036 = vst.msk [vmem:[#allocation2 + $0x10] sm:$0xff] %vm1033_vm4, %v971_v46  ;;  %1068 = vst.msk [vmem:[#allocation2 + $0x110] sm:$0xff] %vm1033_vm4, %v1003_v47  ;;  %v972_v56 = vadd.f32 %v1945_v54, %v290_v44  ;;  %v1004_v57 = vadd.f32 %v1977_v55, %v322_v45  ;;  %v717_v58 = vpop.f32.mrb[3].mxu0  ;;  %v845_v59 = vpop.f32.mrb[3].mxu1  ;;  %v301_v46 = vld [vmem:[#allocation2 + $0x70] sm:$0xff]  ;;  %v331_v49 = vld [vmem:[#allocation2 + $0x160] sm:$0xff] }
 0x110   : > { %1034 = vst.msk [vmem:[#allocation2] sm:$0xff] %vm1033_vm4, %v969_v52  ;;  %1066 = vst.msk [vmem:[#allocation2 + $0x100] sm:$0xff] %vm1033_vm4, %v1001_v53  ;;  %v970_v60 = vadd.f32 %v717_v58, %v288_v50  ;;  %v1002_v61 = vadd.f32 %v845_v59, %v320_v51  ;;  %v333_v47 = vld [vmem:[#allocation2 + $0x170] sm:$0xff]  ;;  %v302_v52 = vld [vmem:[#allocation2 + $0x78] sm:$0xff] }
 0x111   : > { %1037 = vst.msk [vmem:[#allocation2 + $0x18] sm:$0xff] %vm1033_vm4, %v972_v56  ;;  %1069 = vst.msk [vmem:[#allocation2 + $0x118] sm:$0xff] %vm1033_vm4, %v1004_v57  ;;  %v334_v53 = vld [vmem:[#allocation2 + $0x178] sm:$0xff]  ;;  %v300_v58 = vld [vmem:[#allocation2 + $0x68] sm:$0xff] }
 0x112   : > { %1035 = vst.msk [vmem:[#allocation2 + $0x8] sm:$0xff] %vm1033_vm4, %v970_v60  ;;  %1067 = vst.msk [vmem:[#allocation2 + $0x108] sm:$0xff] %vm1033_vm4, %v1002_v61  ;;  %v332_v59 = vld [vmem:[#allocation2 + $0x168] sm:$0xff] }
 0x114   : > { %v1948_v2 = vpop.f32.mrb[4].mxu0  ;;  %v1980_v3 = vpop.f32.mrb[4].mxu1 }
 0x115   : > { %v975_v6 = vadd.f32 %v1948_v2, %v293_v62  ;;  %v1007_v7 = vadd.f32 %v1980_v3, %v325_v63  ;;  %v730_v8 = vpop.f32.mrb[5].mxu0  ;;  %v858_v9 = vpop.f32.mrb[5].mxu1 }
 0x116   : > { %v973_v12 = vadd.f32 %v730_v8, %v291_v0  ;;  %v1005_v13 = vadd.f32 %v858_v9, %v323_v1  ;;  %v1949_v14 = vpop.f32.mrb[6].mxu0  ;;  %v1981_v15 = vpop.f32.mrb[6].mxu1  ;;  %v303_v8 = vld [vmem:[#allocation2 + $0x80] sm:$0xff] }
 0x117   : > { %1040 = vst.msk [vmem:[#allocation2 + $0x30] sm:$0xff] %vm1033_vm4, %v975_v6  ;;  %1072 = vst.msk [vmem:[#allocation2 + $0x130] sm:$0xff] %vm1033_vm4, %v1007_v7  ;;  %v976_v16 = vadd.f32 %v1949_v14, %v294_v4  ;;  %v1008_v17 = vadd.f32 %v1981_v15, %v326_v5  ;;  %v733_v18 = vpop.f32.mrb[7].mxu0  ;;  %v861_v19 = vpop.f32.mrb[7].mxu1  ;;  %v305_v6 = vld [vmem:[#allocation2 + $0x90] sm:$0xff]  ;;  %v335_v9 = vld [vmem:[#allocation2 + $0x180] sm:$0xff] }
 0x118   : > { %1038 = vst.msk [vmem:[#allocation2 + $0x20] sm:$0xff] %vm1033_vm4, %v973_v12  ;;  %1070 = vst.msk [vmem:[#allocation2 + $0x120] sm:$0xff] %vm1033_vm4, %v1005_v13  ;;  %v974_v20 = vadd.f32 %v733_v18, %v292_v10  ;;  %v1006_v21 = vadd.f32 %v861_v19, %v324_v11  ;;  %v337_v7 = vld [vmem:[#allocation2 + $0x190] sm:$0xff]  ;;  %v306_v12 = vld [vmem:[#allocation2 + $0x98] sm:$0xff] }
 0x119   : > { %1041 = vst.msk [vmem:[#allocation2 + $0x38] sm:$0xff] %vm1033_vm4, %v976_v16  ;;  %1073 = vst.msk [vmem:[#allocation2 + $0x138] sm:$0xff] %vm1033_vm4, %v1008_v17  ;;  %v338_v13 = vld [vmem:[#allocation2 + $0x198] sm:$0xff]  ;;  %v304_v18 = vld [vmem:[#allocation2 + $0x88] sm:$0xff] }
 0x11a   : > { %1039 = vst.msk [vmem:[#allocation2 + $0x28] sm:$0xff] %vm1033_vm4, %v974_v20  ;;  %1071 = vst.msk [vmem:[#allocation2 + $0x128] sm:$0xff] %vm1033_vm4, %v1006_v21  ;;  %v336_v19 = vld [vmem:[#allocation2 + $0x188] sm:$0xff] }
 0x11c   : > { %v1952_v26 = vpop.f32.mrb[8].mxu0  ;;  %v1984_v27 = vpop.f32.mrb[8].mxu1 }
 0x11d   : > { %v979_v30 = vadd.f32 %v1952_v26, %v297_v22  ;;  %v1011_v31 = vadd.f32 %v1984_v27, %v329_v23  ;;  %v746_v32 = vpop.f32.mrb[9].mxu0  ;;  %v874_v33 = vpop.f32.mrb[9].mxu1 }
 0x11e   : > { %v977_v36 = vadd.f32 %v746_v32, %v295_v24  ;;  %v1009_v37 = vadd.f32 %v874_v33, %v327_v25  ;;  %v1953_v38 = vpop.f32.mrb[10].mxu0  ;;  %v1985_v39 = vpop.f32.mrb[10].mxu1  ;;  %v307_v32 = vld [vmem:[#allocation2 + $0xa0] sm:$0xff] }
 0x11f   : > { %1044 = vst.msk [vmem:[#allocation2 + $0x50] sm:$0xff] %vm1033_vm4, %v979_v30  ;;  %1076 = vst.msk [vmem:[#allocation2 + $0x150] sm:$0xff] %vm1033_vm4, %v1011_v31  ;;  %v980_v40 = vadd.f32 %v1953_v38, %v298_v28  ;;  %v1012_v41 = vadd.f32 %v1985_v39, %v330_v29  ;;  %v749_v42 = vpop.f32.mrb[11].mxu0  ;;  %v877_v43 = vpop.f32.mrb[11].mxu1  ;;  %v309_v30 = vld [vmem:[#allocation2 + $0xb0] sm:$0xff]  ;;  %v339_v33 = vld [vmem:[#allocation2 + $0x1a0] sm:$0xff] }
 0x120   : > { %1042 = vst.msk [vmem:[#allocation2 + $0x40] sm:$0xff] %vm1033_vm4, %v977_v36  ;;  %1074 = vst.msk [vmem:[#allocation2 + $0x140] sm:$0xff] %vm1033_vm4, %v1009_v37  ;;  %v978_v44 = vadd.f32 %v749_v42, %v296_v34  ;;  %v1010_v45 = vadd.f32 %v877_v43, %v328_v35  ;;  %v341_v31 = vld [vmem:[#allocation2 + $0x1b0] sm:$0xff]  ;;  %v310_v36 = vld [vmem:[#allocation2 + $0xb8] sm:$0xff] }
 0x121   : > { %1045 = vst.msk [vmem:[#allocation2 + $0x58] sm:$0xff] %vm1033_vm4, %v980_v40  ;;  %1077 = vst.msk [vmem:[#allocation2 + $0x158] sm:$0xff] %vm1033_vm4, %v1012_v41  ;;  %v342_v37 = vld [vmem:[#allocation2 + $0x1b8] sm:$0xff]  ;;  %v308_v42 = vld [vmem:[#allocation2 + $0xa8] sm:$0xff] }
 0x122   : > { %1043 = vst.msk [vmem:[#allocation2 + $0x48] sm:$0xff] %vm1033_vm4, %v978_v44  ;;  %1075 = vst.msk [vmem:[#allocation2 + $0x148] sm:$0xff] %vm1033_vm4, %v1010_v45  ;;  %v340_v43 = vld [vmem:[#allocation2 + $0x1a8] sm:$0xff] }
 0x124   : > { %v1956_v50 = vpop.f32.mrb[12].mxu0  ;;  %v1988_v51 = vpop.f32.mrb[12].mxu1 }
 0x125   : > { %v983_v54 = vadd.f32 %v1956_v50, %v301_v46  ;;  %v1015_v55 = vadd.f32 %v1988_v51, %v333_v47  ;;  %v762_v56 = vpop.f32.mrb[13].mxu0  ;;  %v890_v57 = vpop.f32.mrb[13].mxu1 }
 0x126   : > { %v981_v60 = vadd.f32 %v762_v56, %v299_v48  ;;  %v1013_v61 = vadd.f32 %v890_v57, %v331_v49  ;;  %v1957_v62 = vpop.f32.mrb[14].mxu0  ;;  %v1989_v63 = vpop.f32.mrb[14].mxu1  ;;  %v311_v56 = vld [vmem:[#allocation2 + $0xc0] sm:$0xff] }
 0x127   : > { %1048 = vst.msk [vmem:[#allocation2 + $0x70] sm:$0xff] %vm1033_vm4, %v983_v54  ;;  %1080 = vst.msk [vmem:[#allocation2 + $0x170] sm:$0xff] %vm1033_vm4, %v1015_v55  ;;  %v984_v0 = vadd.f32 %v1957_v62, %v302_v52  ;;  %v1016_v1 = vadd.f32 %v1989_v63, %v334_v53  ;;  %v765_v2 = vpop.f32.mrb[15].mxu0  ;;  %v893_v3 = vpop.f32.mrb[15].mxu1  ;;  %v313_v54 = vld [vmem:[#allocation2 + $0xd0] sm:$0xff]  ;;  %v343_v57 = vld [vmem:[#allocation2 + $0x1c0] sm:$0xff] }
 0x128   : > { %1046 = vst.msk [vmem:[#allocation2 + $0x60] sm:$0xff] %vm1033_vm4, %v981_v60  ;;  %1078 = vst.msk [vmem:[#allocation2 + $0x160] sm:$0xff] %vm1033_vm4, %v1013_v61  ;;  %v982_v4 = vadd.f32 %v765_v2, %v300_v58  ;;  %v1014_v5 = vadd.f32 %v893_v3, %v332_v59  ;;  %v345_v55 = vld [vmem:[#allocation2 + $0x1d0] sm:$0xff]  ;;  %v314_v60 = vld [vmem:[#allocation2 + $0xd8] sm:$0xff] }
 0x129   : > { %1049 = vst.msk [vmem:[#allocation2 + $0x78] sm:$0xff] %vm1033_vm4, %v984_v0  ;;  %1081 = vst.msk [vmem:[#allocation2 + $0x178] sm:$0xff] %vm1033_vm4, %v1016_v1  ;;  %v346_v61 = vld [vmem:[#allocation2 + $0x1d8] sm:$0xff]  ;;  %v312_v2 = vld [vmem:[#allocation2 + $0xc8] sm:$0xff] }
 0x12a   : > { %1047 = vst.msk [vmem:[#allocation2 + $0x68] sm:$0xff] %vm1033_vm4, %v982_v4  ;;  %1079 = vst.msk [vmem:[#allocation2 + $0x168] sm:$0xff] %vm1033_vm4, %v1014_v5  ;;  %v344_v3 = vld [vmem:[#allocation2 + $0x1c8] sm:$0xff] }
 0x12c   : > { %v1960_v10 = vpop.f32.mrb[16].mxu0  ;;  %v1992_v11 = vpop.f32.mrb[16].mxu1 }
 0x12d   : > { %v987_v14 = vadd.f32 %v1960_v10, %v305_v6  ;;  %v1019_v15 = vadd.f32 %v1992_v11, %v337_v7  ;;  %v778_v16 = vpop.f32.mrb[17].mxu0  ;;  %v906_v17 = vpop.f32.mrb[17].mxu1 }
 0x12e   : > { %v985_v20 = vadd.f32 %v778_v16, %v303_v8  ;;  %v1017_v21 = vadd.f32 %v906_v17, %v335_v9  ;;  %v1961_v22 = vpop.f32.mrb[18].mxu0  ;;  %v1993_v23 = vpop.f32.mrb[18].mxu1  ;;  %v315_v16 = vld [vmem:[#allocation2 + $0xe0] sm:$0xff] }
 0x12f   : > { %1052 = vst.msk [vmem:[#allocation2 + $0x90] sm:$0xff] %vm1033_vm4, %v987_v14  ;;  %1084 = vst.msk [vmem:[#allocation2 + $0x190] sm:$0xff] %vm1033_vm4, %v1019_v15  ;;  %v988_v24 = vadd.f32 %v1961_v22, %v306_v12  ;;  %v1020_v25 = vadd.f32 %v1993_v23, %v338_v13  ;;  %v781_v26 = vpop.f32.mrb[19].mxu0  ;;  %v909_v27 = vpop.f32.mrb[19].mxu1  ;;  %v317_v14 = vld [vmem:[#allocation2 + $0xf0] sm:$0xff]  ;;  %v347_v17 = vld [vmem:[#allocation2 + $0x1e0] sm:$0xff] }
 0x130   : > { %1050 = vst.msk [vmem:[#allocation2 + $0x80] sm:$0xff] %vm1033_vm4, %v985_v20  ;;  %1082 = vst.msk [vmem:[#allocation2 + $0x180] sm:$0xff] %vm1033_vm4, %v1017_v21  ;;  %v986_v28 = vadd.f32 %v781_v26, %v304_v18  ;;  %v1018_v29 = vadd.f32 %v909_v27, %v336_v19  ;;  %v349_v15 = vld [vmem:[#allocation2 + $0x1f0] sm:$0xff]  ;;  %v318_v20 = vld [vmem:[#allocation2 + $0xf8] sm:$0xff] }
 0x131   : > { %1053 = vst.msk [vmem:[#allocation2 + $0x98] sm:$0xff] %vm1033_vm4, %v988_v24  ;;  %1085 = vst.msk [vmem:[#allocation2 + $0x198] sm:$0xff] %vm1033_vm4, %v1020_v25  ;;  %v350_v21 = vld [vmem:[#allocation2 + $0x1f8] sm:$0xff]  ;;  %v316_v26 = vld [vmem:[#allocation2 + $0xe8] sm:$0xff] }
 0x132   : > { %1051 = vst.msk [vmem:[#allocation2 + $0x88] sm:$0xff] %vm1033_vm4, %v986_v28  ;;  %1083 = vst.msk [vmem:[#allocation2 + $0x188] sm:$0xff] %vm1033_vm4, %v1018_v29  ;;  %v348_v27 = vld [vmem:[#allocation2 + $0x1e8] sm:$0xff] }
 0x134   : > { %v1964_v34 = vpop.f32.mrb[20].mxu0  ;;  %v1996_v35 = vpop.f32.mrb[20].mxu1 }
 0x135   : > { %v991_v38 = vadd.f32 %v1964_v34, %v309_v30  ;;  %v1023_v39 = vadd.f32 %v1996_v35, %v341_v31  ;;  %v794_v40 = vpop.f32.mrb[21].mxu0  ;;  %v922_v41 = vpop.f32.mrb[21].mxu1 }
 0x136   : > { %v989_v44 = vadd.f32 %v794_v40, %v307_v32  ;;  %v1021_v45 = vadd.f32 %v922_v41, %v339_v33  ;;  %v1965_v46 = vpop.f32.mrb[22].mxu0  ;;  %v1997_v47 = vpop.f32.mrb[22].mxu1 }
 0x137   : > { %1056 = vst.msk [vmem:[#allocation2 + $0xb0] sm:$0xff] %vm1033_vm4, %v991_v38  ;;  %1088 = vst.msk [vmem:[#allocation2 + $0x1b0] sm:$0xff] %vm1033_vm4, %v1023_v39  ;;  %v992_v48 = vadd.f32 %v1965_v46, %v310_v36  ;;  %v1024_v49 = vadd.f32 %v1997_v47, %v342_v37  ;;  %v797_v50 = vpop.f32.mrb[23].mxu0  ;;  %v925_v51 = vpop.f32.mrb[23].mxu1  ;;  %v1166_v38 = vld [vmem:[%s2739_s2] sm:$0x1] (!%p1773_p6)  ;;  %v1168_v39 = vlaneseq (!%p1773_p6) }
 0x138   : > { %1054 = vst.msk [vmem:[#allocation2 + $0xa0] sm:$0xff] %vm1033_vm4, %v989_v44  ;;  %1086 = vst.msk [vmem:[#allocation2 + $0x1a0] sm:$0xff] %vm1033_vm4, %v1021_v45  ;;  %v990_v52 = vadd.f32 %v797_v50, %v308_v42  ;;  %v1022_v53 = vadd.f32 %v925_v51, %v340_v43  ;;  %v1167_v40 = vunpack.c.l.bf16 (!%p1773_p6), %v1166_v38  ;;  %v1102_v42 = vld [vmem:[#allocation2] sm:$0xff] (!%p1773_p6)  ;;  %v1103_v44 = vld [vmem:[#allocation2 + $0x8] sm:$0xff] (!%p1773_p6) }
 0x139   : > { %1057 = vst.msk [vmem:[#allocation2 + $0xb8] sm:$0xff] %vm1033_vm4, %v992_v48  ;;  %1089 = vst.msk [vmem:[#allocation2 + $0x1b8] sm:$0xff] %vm1033_vm4, %v1024_v49  ;;  %v1169_v41 = vshrl.u32 (!%p1773_p6), %v1168_v39, 7  ;;  %v1104_v45 = vld [vmem:[#allocation2 + $0x10] sm:$0xff] (!%p1773_p6)  ;;  %v1105_v46 = vld [vmem:[#allocation2 + $0x18] sm:$0xff] (!%p1773_p6) }
 0x13a   : > { %1055 = vst.msk [vmem:[#allocation2 + $0xa8] sm:$0xff] %vm1033_vm4, %v990_v52  ;;  %1087 = vst.msk [vmem:[#allocation2 + $0x1a8] sm:$0xff] %vm1033_vm4, %v1022_v53  ;;  %v1106_v47 = vld [vmem:[#allocation2 + $0x20] sm:$0xff] (!%p1773_p6)  ;;  %v1107_v49 = vld [vmem:[#allocation2 + $0x28] sm:$0xff] (!%p1773_p6) }
 0x13b   : > { %v1170_v43 = vsub.s32 (!%p1773_p6), 0, %v1169_v41  ;;  %v1108_v50 = vld [vmem:[#allocation2 + $0x30] sm:$0xff] (!%p1773_p6)  ;;  %v1109_v51 = vld [vmem:[#allocation2 + $0x38] sm:$0xff] (!%p1773_p6) }
 0x13c   : > { %v1968_v58 = vpop.f32.mrb[24].mxu0  ;;  %v2000_v59 = vpop.f32.mrb[24].mxu1  ;;  %v1121_v39 = vld [vmem:[#allocation2 + $0x98] sm:$0xff] (!%p1773_p6) }
 0x13d   : > { %v995_v62 = vadd.f32 %v1968_v58, %v313_v54  ;;  %v1027_v63 = vadd.f32 %v2000_v59, %v345_v55  ;;  %v810_v0 = vpop.f32.mrb[25].mxu0  ;;  %v938_v1 = vpop.f32.mrb[25].mxu1  ;;  %v2406_v48 = vrot.slane (!%p1773_p6), %v1167_v40, %v1170_v43 }
 0x13e   : > { %v993_v4 = vadd.f32 %v810_v0, %v311_v56  ;;  %v1025_v5 = vadd.f32 %v938_v1, %v343_v57  ;;  %v1969_v6 = vpop.f32.mrb[26].mxu0  ;;  %v2001_v7 = vpop.f32.mrb[26].mxu1  ;;  %v1111_v1 = vld [vmem:[#allocation2 + $0x48] sm:$0xff] (!%p1773_p6) }
 0x13f   : > { %1060 = vst.msk [vmem:[#allocation2 + $0xd0] sm:$0xff] %vm1033_vm4, %v995_v62  ;;  %1092 = vst.msk [vmem:[#allocation2 + $0x1d0] sm:$0xff] %vm1033_vm4, %v1027_v63  ;;  %v996_v8 = vadd.f32 %v1969_v6, %v314_v60  ;;  %v1028_v9 = vadd.f32 %v2001_v7, %v346_v61  ;;  %v813_v10 = vpop.f32.mrb[27].mxu0  ;;  %v941_v11 = vpop.f32.mrb[27].mxu1  ;;  %v1172_v52 = vadd.f32 (!%p1773_p6), %v2406_v48, %v1102_v42  ;;  %v1110_v60 = vld [vmem:[#allocation2 + $0x40] sm:$0xff] (!%p1773_p6)  ;;  %v1113_v7 = vld [vmem:[#allocation2 + $0x58] sm:$0xff] (!%p1773_p6) }
 0x140   : > { %1058 = vst.msk [vmem:[#allocation2 + $0xc0] sm:$0xff] %vm1033_vm4, %v993_v4  ;;  %1090 = vst.msk [vmem:[#allocation2 + $0x1c0] sm:$0xff] %vm1033_vm4, %v1025_v5  ;;  %v994_v12 = vadd.f32 %v813_v10, %v312_v2  ;;  %v1026_v13 = vadd.f32 %v941_v11, %v344_v3  ;;  %v1173_v53 = vadd.f32 (!%p1773_p6), %v2406_v48, %v1103_v44  ;;  %v1112_v2 = vld [vmem:[#allocation2 + $0x50] sm:$0xff] (!%p1773_p6)  ;;  %v1122_v40 = vld [vmem:[#allocation2 + $0xa0] sm:$0xff] (!%p1773_p6) }
 0x141   : > { %1061 = vst.msk [vmem:[#allocation2 + $0xd8] sm:$0xff] %vm1033_vm4, %v996_v8  ;;  %1093 = vst.msk [vmem:[#allocation2 + $0x1d8] sm:$0xff] %vm1033_vm4, %v1028_v9  ;;  %v1174_v54 = vadd.f32 (!%p1773_p6), %v2406_v48, %v1104_v45  ;;  %v1175_v55 = vadd.f32 (!%p1773_p6), %v2406_v48, %v1105_v46  ;;  %v1176_v56 = vadd.f32 (!%p1773_p6), %v2406_v48, %v1106_v47  ;;  %v1236_v61 = vmax.f32 (!%p1773_p6), %v1172_v52, 0.0  ;;  %v1114_v8 = vld [vmem:[#allocation2 + $0x60] sm:$0xff] (!%p1773_p6)  ;;  %v1123_v45 = vld [vmem:[#allocation2 + $0xa8] sm:$0xff] (!%p1773_p6) }
 0x142   : > { %1059 = vst.msk [vmem:[#allocation2 + $0xc8] sm:$0xff] %vm1033_vm4, %v994_v12  ;;  %1091 = vst.msk [vmem:[#allocation2 + $0x1c8] sm:$0xff] %vm1033_vm4, %v1026_v13  ;;  %v1177_v57 = vadd.f32 (!%p1773_p6), %v2406_v48, %v1107_v49  ;;  %v1178_v58 = vadd.f32 (!%p1773_p6), %v2406_v48, %v1108_v50  ;;  %v1179_v59 = vadd.f32 (!%p1773_p6), %v2406_v48, %v1109_v51  ;;  %v1237_v62 = vmax.f32 (!%p1773_p6), %v1173_v53, 0.0  ;;  %v1115_v13 = vld [vmem:[#allocation2 + $0x68] sm:$0xff] (!%p1773_p6)  ;;  %v1124_v46 = vld [vmem:[#allocation2 + $0xb0] sm:$0xff] (!%p1773_p6) }
 0x143   : > { %v1238_v63 = vmax.f32 (!%p1773_p6), %v1174_v54, 0.0  ;;  %v1239_v0 = vmax.f32 (!%p1773_p6), %v1175_v55, 0.0  ;;  %v1240_v3 = vmax.f32 (!%p1773_p6), %v1176_v56, 0.0  ;;  %v1843_v9 = vpack.c.bf16 (!%p1773_p6), %v1236_v61, %v1236_v61  ;;  %v1125_v47 = vld [vmem:[#allocation2 + $0xb8] sm:$0xff] (!%p1773_p6) }
 0x144   : > { %v1972_v18 = vpop.f32.mrb[28].mxu0  ;;  %v2004_v19 = vpop.f32.mrb[28].mxu1  ;;  %1101 = sbr.rel (%p1773_p6) target bundleno = 376 (0x178), region = 40  ;;  %v1241_v4 = vmax.f32 (!%p1773_p6), %v1177_v57, 0.0  ;;  %v1242_v5 = vmax.f32 (!%p1773_p6), %v1178_v58, 0.0  ;;  %v1243_v6 = vmax.f32 (!%p1773_p6), %v1179_v59, 0.0  ;;  %v1844_v10 = vpack.c.bf16 (!%p1773_p6), %v1237_v62, %v1237_v62 }
 0x145   : > { %v999_v22 = vadd.f32 %v1972_v18, %v317_v14  ;;  %v1031_v23 = vadd.f32 %v2004_v19, %v349_v15  ;;  %v826_v24 = vpop.f32.mrb[29].mxu0  ;;  %v954_v25 = vpop.f32.mrb[29].mxu1  ;;  %v1845_v11 = vpack.c.bf16 (!%p1773_p6), %v1238_v63, %v1238_v63  ;;  %v1846_v12 = vpack.c.bf16 (!%p1773_p6), %v1239_v0, %v1239_v0  ;;  %v1116_v14 = vld [vmem:[#allocation2 + $0x70] sm:$0xff] (!%p1773_p6)  ;;  %v1117_v15 = vld [vmem:[#allocation2 + $0x78] sm:$0xff] (!%p1773_p6)  ;;  %1557 = vst.msk [vmem:[%s2740_s3] sm:$0xf] (!%p1773_p6), %vm1556_vm5, %v1843_v9 }
 0x146   : > { %v997_v28 = vadd.f32 %v826_v24, %v315_v16  ;;  %v1029_v29 = vadd.f32 %v954_v25, %v347_v17  ;;  %v1973_v30 = vpop.f32.mrb[30].mxu0  ;;  %v2005_v31 = vpop.f32.mrb[30].mxu1  ;;  %v1847_v16 = vpack.c.bf16 (!%p1773_p6), %v1240_v3, %v1240_v3  ;;  %v1848_v17 = vpack.c.bf16 (!%p1773_p6), %v1241_v4, %v1241_v4  ;;  %1558 = vst.msk [vmem:[%s2740_s3 + $0x4] sm:$0xf] (!%p1773_p6), %vm1556_vm5, %v1844_v10  ;;  %v1128_v3 = vld [vmem:[#allocation2 + $0xd0] sm:$0xff] (!%p1773_p6) }
 0x147   : > { %1064 = vst.msk [vmem:[#allocation2 + $0xf0] sm:$0xff] %vm1033_vm4, %v999_v22  ;;  %1096 = vst.msk [vmem:[#allocation2 + $0x1f0] sm:$0xff] %vm1033_vm4, %v1031_v23  ;;  %v1000_v32 = vadd.f32 %v1973_v30, %v318_v20  ;;  %v1032_v33 = vadd.f32 %v2005_v31, %v350_v21  ;;  %v829_v34 = vpop.f32.mrb[31].mxu0  ;;  %v957_v35 = vpop.f32.mrb[31].mxu1  ;;  %v1849_v18 = vpack.c.bf16 (!%p1773_p6), %v1242_v5, %v1242_v5  ;;  %v1126_v61 = vld [vmem:[#allocation2 + $0xc0] sm:$0xff] (!%p1773_p6) }
 0x148   : > { %1062 = vst.msk [vmem:[#allocation2 + $0xe0] sm:$0xff] %vm1033_vm4, %v997_v28  ;;  %1094 = vst.msk [vmem:[#allocation2 + $0x1e0] sm:$0xff] %vm1033_vm4, %v1029_v29  ;;  %v998_v36 = vadd.f32 %v829_v34, %v316_v26  ;;  %v1030_v37 = vadd.f32 %v957_v35, %v348_v27  ;;  %v1850_v19 = vpack.c.bf16 (!%p1773_p6), %v1243_v6, %v1243_v6  ;;  %v1118_v28 = vld [vmem:[#allocation2 + $0x80] sm:$0xff] (!%p1773_p6)  ;;  %v1120_v34 = vld [vmem:[#allocation2 + $0x90] sm:$0xff] (!%p1773_p6) }
 0x149   : > { %1065 = vst.msk [vmem:[#allocation2 + $0xf8] sm:$0xff] %vm1033_vm4, %v1000_v32  ;;  %1097 = vst.msk [vmem:[#allocation2 + $0x1f8] sm:$0xff] %vm1033_vm4, %v1032_v33  ;;  %v1180_v20 = vadd.f32 (!%p1773_p6), %v2406_v48, %v1110_v60  ;;  %v1181_v21 = vadd.f32 (!%p1773_p6), %v2406_v48, %v1111_v1  ;;  %v1182_v22 = vadd.f32 (!%p1773_p6), %v2406_v48, %v1112_v2  ;;  %v1119_v33 = vld [vmem:[#allocation2 + $0x88] sm:$0xff] (!%p1773_p6) }
 0x14a   : > { %1063 = vst.msk [vmem:[#allocation2 + $0xe8] sm:$0xff] %vm1033_vm4, %v998_v36  ;;  %1095 = vst.msk [vmem:[#allocation2 + $0x1e8] sm:$0xff] %vm1033_vm4, %v1030_v37  ;;  %v1183_v23 = vadd.f32 (!%p1773_p6), %v2406_v48, %v1113_v7  ;;  %v1184_v24 = vadd.f32 (!%p1773_p6), %v2406_v48, %v1114_v8  ;;  %v1185_v25 = vadd.f32 (!%p1773_p6), %v2406_v48, %v1115_v13  ;;  %v1127_v2 = vld [vmem:[#allocation2 + $0xc8] sm:$0xff] (!%p1773_p6)  ;;  %v1129_v8 = vld [vmem:[#allocation2 + $0xd8] sm:$0xff] (!%p1773_p6) }
 0x14b   : > { %1559 = vst.msk [vmem:[%s2740_s3 + $0x8] sm:$0xf] %vm1556_vm5, %v1845_v11  ;;  %1560 = vst.msk [vmem:[%s2740_s3 + $0xc] sm:$0xf] %vm1556_vm5, %v1846_v12  ;;  %v1186_v26 = vadd.f32 %v2406_v48, %v1116_v14  ;;  %v1187_v27 = vadd.f32 %v2406_v48, %v1117_v15  ;;  %v1244_v29 = vmax.f32 %v1180_v20, 0.0  ;;  %v1245_v30 = vmax.f32 %v1181_v21, 0.0 }
 0x14c   : > { %1561 = vst.msk [vmem:[%s2740_s3 + $0x10] sm:$0xf] %vm1556_vm5, %v1847_v16  ;;  %1562 = vst.msk [vmem:[%s2740_s3 + $0x14] sm:$0xf] %vm1556_vm5, %v1848_v17  ;;  %v1246_v31 = vmax.f32 %v1182_v22, 0.0  ;;  %v1247_v32 = vmax.f32 %v1183_v23, 0.0  ;;  %v1188_v53 = vadd.f32 %v2406_v48, %v1118_v28  ;;  %v1189_v54 = vadd.f32 %v2406_v48, %v1119_v33 }
 0x14d   : > { %1563 = vst.msk [vmem:[%s2740_s3 + $0x18] sm:$0xf] %vm1556_vm5, %v1849_v18  ;;  %1564 = vst.msk [vmem:[%s2740_s3 + $0x1c] sm:$0xf] %vm1556_vm5, %v1850_v19  ;;  %v1248_v35 = vmax.f32 %v1184_v24, 0.0  ;;  %v1249_v36 = vmax.f32 %v1185_v25, 0.0  ;;  %v1851_v41 = vpack.c.bf16 %v1244_v29, %v1244_v29  ;;  %v1852_v42 = vpack.c.bf16 %v1245_v30, %v1245_v30 }
 0x14e   : > { %v1250_v37 = vmax.f32 %v1186_v26, 0.0  ;;  %v1251_v38 = vmax.f32 %v1187_v27, 0.0  ;;  %v1853_v43 = vpack.c.bf16 %v1246_v31, %v1246_v31  ;;  %v1854_v44 = vpack.c.bf16 %v1247_v32, %v1247_v32  ;;  %v1132_v15 = vld [vmem:[#allocation2 + $0xf0] sm:$0xff]  ;;  %v1134_v29 = vld [vmem:[#allocation2 + $0x100] sm:$0xff] }
 0x14f   : > { %v1855_v49 = vpack.c.bf16 %v1248_v35, %v1248_v35  ;;  %v1856_v50 = vpack.c.bf16 %v1249_v36, %v1249_v36  ;;  %1565 = vst.msk [vmem:[%s2740_s3 + $0x20] sm:$0xf] %vm1556_vm5, %v1851_v41  ;;  %1566 = vst.msk [vmem:[%s2740_s3 + $0x24] sm:$0xf] %vm1556_vm5, %v1852_v42  ;;  %v1190_v55 = vadd.f32 %v2406_v48, %v1120_v34  ;;  %v1252_v62 = vmax.f32 %v1188_v53, 0.0  ;;  %v1130_v9 = vld [vmem:[#allocation2 + $0xe0] sm:$0xff] }
 0x150   : > { %v1857_v51 = vpack.c.bf16 %v1250_v37, %v1250_v37  ;;  %v1858_v52 = vpack.c.bf16 %v1251_v38, %v1251_v38  ;;  %1567 = vst.msk [vmem:[%s2740_s3 + $0x28] sm:$0xf] %vm1556_vm5, %v1853_v43  ;;  %1568 = vst.msk [vmem:[%s2740_s3 + $0x2c] sm:$0xf] %vm1556_vm5, %v1854_v44  ;;  %v1191_v56 = vadd.f32 %v2406_v48, %v1121_v39  ;;  %v1253_v63 = vmax.f32 %v1189_v54, 0.0  ;;  %v1133_v16 = vld [vmem:[#allocation2 + $0xf8] sm:$0xff] }
 0x151   : > { %1569 = vst.msk [vmem:[%s2740_s3 + $0x30] sm:$0xf] %vm1556_vm5, %v1855_v49  ;;  %1570 = vst.msk [vmem:[%s2740_s3 + $0x34] sm:$0xf] %vm1556_vm5, %v1856_v50  ;;  %v1192_v57 = vadd.f32 %v2406_v48, %v1122_v40  ;;  %v1193_v58 = vadd.f32 %v2406_v48, %v1123_v45  ;;  %v1194_v59 = vadd.f32 %v2406_v48, %v1124_v46  ;;  %v1254_v0 = vmax.f32 %v1190_v55, 0.0  ;;  %v1131_v14 = vld [vmem:[#allocation2 + $0xe8] sm:$0xff] }
 0x152   : > { %1571 = vst.msk [vmem:[%s2740_s3 + $0x38] sm:$0xf] %vm1556_vm5, %v1857_v51  ;;  %1572 = vst.msk [vmem:[%s2740_s3 + $0x3c] sm:$0xf] %vm1556_vm5, %v1858_v52  ;;  %v1195_v60 = vadd.f32 %v2406_v48, %v1125_v47  ;;  %v1255_v1 = vmax.f32 %v1191_v56, 0.0  ;;  %v1859_v10 = vpack.c.bf16 %v1252_v62, %v1252_v62  ;;  %v1860_v11 = vpack.c.bf16 %v1253_v63, %v1253_v63  ;;  %v1135_v34 = vld [vmem:[#allocation2 + $0x108] sm:$0xff] }
 0x153   : > { %v1256_v4 = vmax.f32 %v1192_v57, 0.0  ;;  %v1257_v5 = vmax.f32 %v1193_v58, 0.0  ;;  %v1258_v6 = vmax.f32 %v1194_v59, 0.0  ;;  %v1861_v12 = vpack.c.bf16 %v1254_v0, %v1254_v0  ;;  %v1136_v35 = vld [vmem:[#allocation2 + $0x110] sm:$0xff]  ;;  %v1137_v40 = vld [vmem:[#allocation2 + $0x118] sm:$0xff]  ;;  %v1138_v41 = vld [vmem:[#allocation2 + $0x120] sm:$0xff] }
 0x154   : > { %v1259_v7 = vmax.f32 %v1195_v60, 0.0  ;;  %v1862_v13 = vpack.c.bf16 %v1255_v1, %v1255_v1  ;;  %1573 = vst.msk [vmem:[%s2740_s3 + $0x40] sm:$0xf] %vm1556_vm5, %v1859_v10  ;;  %1574 = vst.msk [vmem:[%s2740_s3 + $0x44] sm:$0xf] %vm1556_vm5, %v1860_v11  ;;  %v1196_v21 = vadd.f32 %v2406_v48, %v1126_v61  ;;  %v1197_v22 = vadd.f32 %v2406_v48, %v1127_v2  ;;  %v1139_v46 = vld [vmem:[#allocation2 + $0x128] sm:$0xff] }
 0x155   : > { %v1863_v17 = vpack.c.bf16 %v1256_v4, %v1256_v4  ;;  %v1864_v18 = vpack.c.bf16 %v1257_v5, %v1257_v5  ;;  %v1865_v19 = vpack.c.bf16 %v1258_v6, %v1258_v6  ;;  %1575 = vst.msk [vmem:[%s2740_s3 + $0x48] sm:$0xf] %vm1556_vm5, %v1861_v12  ;;  %v1198_v23 = vadd.f32 %v2406_v48, %v1128_v3  ;;  %v1140_v47 = vld [vmem:[#allocation2 + $0x130] sm:$0xff]  ;;  %v1141_v49 = vld [vmem:[#allocation2 + $0x138] sm:$0xff]  ;;  %v1142_v62 = vld [vmem:[#allocation2 + $0x140] sm:$0xff] }
 0x156   : > { %v1866_v20 = vpack.c.bf16 %v1259_v7, %v1259_v7  ;;  %1576 = vst.msk [vmem:[%s2740_s3 + $0x4c] sm:$0xf] %vm1556_vm5, %v1862_v13  ;;  %v1199_v24 = vadd.f32 %v2406_v48, %v1129_v8  ;;  %v1200_v25 = vadd.f32 %v2406_v48, %v1130_v9  ;;  %v1201_v26 = vadd.f32 %v2406_v48, %v1131_v14  ;;  %v1143_v3 = vld [vmem:[#allocation2 + $0x148] sm:$0xff]  ;;  %v1144_v4 = vld [vmem:[#allocation2 + $0x150] sm:$0xff]  ;;  %v1145_v9 = vld [vmem:[#allocation2 + $0x158] sm:$0xff] }
 0x157   : > { %1577 = vst.msk [vmem:[%s2740_s3 + $0x50] sm:$0xf] %vm1556_vm5, %v1863_v17  ;;  %1578 = vst.msk [vmem:[%s2740_s3 + $0x54] sm:$0xf] %vm1556_vm5, %v1864_v18  ;;  %v1202_v27 = vadd.f32 %v2406_v48, %v1132_v15  ;;  %v1203_v28 = vadd.f32 %v2406_v48, %v1133_v16  ;;  %v1260_v30 = vmax.f32 %v1196_v21, 0.0  ;;  %v1261_v31 = vmax.f32 %v1197_v22, 0.0 }
 0x158   : > { %1579 = vst.msk [vmem:[%s2740_s3 + $0x58] sm:$0xf] %vm1556_vm5, %v1865_v19  ;;  %1580 = vst.msk [vmem:[%s2740_s3 + $0x5c] sm:$0xf] %vm1556_vm5, %v1866_v20  ;;  %v1262_v32 = vmax.f32 %v1198_v23, 0.0  ;;  %v1263_v33 = vmax.f32 %v1199_v24, 0.0  ;;  %v1204_v54 = vadd.f32 %v2406_v48, %v1134_v29  ;;  %v1205_v55 = vadd.f32 %v2406_v48, %v1135_v34 }
 0x159   : > { %v1264_v36 = vmax.f32 %v1200_v25, 0.0  ;;  %v1265_v37 = vmax.f32 %v1201_v26, 0.0  ;;  %v1266_v38 = vmax.f32 %v1202_v27, 0.0  ;;  %v1267_v39 = vmax.f32 %v1203_v28, 0.0  ;;  %v1146_v10 = vld [vmem:[#allocation2 + $0x160] sm:$0xff]  ;;  %v1147_v15 = vld [vmem:[#allocation2 + $0x168] sm:$0xff] }
 0x15a   : > { %v1867_v42 = vpack.c.bf16 %v1260_v30, %v1260_v30  ;;  %v1868_v43 = vpack.c.bf16 %v1261_v31, %v1261_v31  ;;  %v1869_v44 = vpack.c.bf16 %v1262_v32, %v1262_v32  ;;  %v1870_v45 = vpack.c.bf16 %v1263_v33, %v1263_v33  ;;  %v1148_v16 = vld [vmem:[#allocation2 + $0x170] sm:$0xff]  ;;  %v1149_v17 = vld [vmem:[#allocation2 + $0x178] sm:$0xff]  ;;  %v1150_v30 = vld [vmem:[#allocation2 + $0x180] sm:$0xff] }
 0x15b   : > { %v1871_v50 = vpack.c.bf16 %v1264_v36, %v1264_v36  ;;  %v1872_v51 = vpack.c.bf16 %v1265_v37, %v1265_v37  ;;  %v1873_v52 = vpack.c.bf16 %v1266_v38, %v1266_v38  ;;  %v1874_v53 = vpack.c.bf16 %v1267_v39, %v1267_v39  ;;  %v1152_v36 = vld [vmem:[#allocation2 + $0x190] sm:$0xff] }
 0x15c   : > { %1581 = vst.msk [vmem:[%s2740_s3 + $0x60] sm:$0xf] %vm1556_vm5, %v1867_v42  ;;  %1582 = vst.msk [vmem:[%s2740_s3 + $0x64] sm:$0xf] %vm1556_vm5, %v1868_v43  ;;  %v1206_v56 = vadd.f32 %v2406_v48, %v1136_v35  ;;  %v1207_v57 = vadd.f32 %v2406_v48, %v1137_v40  ;;  %v1208_v58 = vadd.f32 %v2406_v48, %v1138_v41  ;;  %v1268_v63 = vmax.f32 %v1204_v54, 0.0  ;;  %v1151_v35 = vld [vmem:[#allocation2 + $0x188] sm:$0xff] }
 0x15d   : > { %1583 = vst.msk [vmem:[%s2740_s3 + $0x68] sm:$0xf] %vm1556_vm5, %v1869_v44  ;;  %1584 = vst.msk [vmem:[%s2740_s3 + $0x6c] sm:$0xf] %vm1556_vm5, %v1870_v45  ;;  %v1209_v59 = vadd.f32 %v2406_v48, %v1139_v46  ;;  %v1210_v60 = vadd.f32 %v2406_v48, %v1140_v47  ;;  %v1211_v61 = vadd.f32 %v2406_v48, %v1141_v49  ;;  %v1269_v0 = vmax.f32 %v1205_v55, 0.0  ;;  %v1153_v41 = vld [vmem:[#allocation2 + $0x198] sm:$0xff] }
 0x15e   : > { %1585 = vst.msk [vmem:[%s2740_s3 + $0x70] sm:$0xf] %vm1556_vm5, %v1871_v50  ;;  %1586 = vst.msk [vmem:[%s2740_s3 + $0x74] sm:$0xf] %vm1556_vm5, %v1872_v51  ;;  %v1270_v1 = vmax.f32 %v1206_v56, 0.0  ;;  %v1271_v2 = vmax.f32 %v1207_v57, 0.0  ;;  %v1875_v11 = vpack.c.bf16 %v1268_v63, %v1268_v63  ;;  %v1212_v22 = vadd.f32 %v2406_v48, %v1142_v62 }
 0x15f   : > { %1587 = vst.msk [vmem:[%s2740_s3 + $0x78] sm:$0xf] %vm1556_vm5, %v1873_v52  ;;  %1588 = vst.msk [vmem:[%s2740_s3 + $0x7c] sm:$0xf] %vm1556_vm5, %v1874_v53  ;;  %v1272_v5 = vmax.f32 %v1208_v58, 0.0  ;;  %v1273_v6 = vmax.f32 %v1209_v59, 0.0  ;;  %v1876_v12 = vpack.c.bf16 %v1269_v0, %v1269_v0  ;;  %v1213_v23 = vadd.f32 %v2406_v48, %v1143_v3 }
 0x160   : > { %v1274_v7 = vmax.f32 %v1210_v60, 0.0  ;;  %v1275_v8 = vmax.f32 %v1211_v61, 0.0  ;;  %v1877_v13 = vpack.c.bf16 %v1270_v1, %v1270_v1  ;;  %v1878_v14 = vpack.c.bf16 %v1271_v2, %v1271_v2  ;;  %1589 = vst.msk [vmem:[%s2740_s3 + $0x80] sm:$0xf] %vm1556_vm5, %v1875_v11  ;;  %v1154_v42 = vld [vmem:[#allocation2 + $0x1a0] sm:$0xff]  ;;  %v1155_v47 = vld [vmem:[#allocation2 + $0x1a8] sm:$0xff] }
 0x161   : > { %v1879_v18 = vpack.c.bf16 %v1272_v5, %v1272_v5  ;;  %v1880_v19 = vpack.c.bf16 %v1273_v6, %v1273_v6  ;;  %1590 = vst.msk [vmem:[%s2740_s3 + $0x84] sm:$0xf] %vm1556_vm5, %v1876_v12  ;;  %v1214_v24 = vadd.f32 %v2406_v48, %v1144_v4  ;;  %v1215_v25 = vadd.f32 %v2406_v48, %v1145_v9  ;;  %v1156_v49 = vld [vmem:[#allocation2 + $0x1b0] sm:$0xff]  ;;  %v1157_v50 = vld [vmem:[#allocation2 + $0x1b8] sm:$0xff]  ;;  %v1158_v63 = vld [vmem:[#allocation2 + $0x1c0] sm:$0xff] }
 0x162   : > { %v1881_v20 = vpack.c.bf16 %v1274_v7, %v1274_v7  ;;  %v1882_v21 = vpack.c.bf16 %v1275_v8, %v1275_v8  ;;  %1591 = vst.msk [vmem:[%s2740_s3 + $0x88] sm:$0xf] %vm1556_vm5, %v1877_v13  ;;  %1592 = vst.msk [vmem:[%s2740_s3 + $0x8c] sm:$0xf] %vm1556_vm5, %v1878_v14  ;;  %v1216_v26 = vadd.f32 %v2406_v48, %v1146_v10  ;;  %v1276_v31 = vmax.f32 %v1212_v22, 0.0  ;;  %v1159_v4 = vld [vmem:[#allocation2 + $0x1c8] sm:$0xff] }
 0x163   : > { %1593 = vst.msk [vmem:[%s2740_s3 + $0x90] sm:$0xf] %vm1556_vm5, %v1879_v18  ;;  %1594 = vst.msk [vmem:[%s2740_s3 + $0x94] sm:$0xf] %vm1556_vm5, %v1880_v19  ;;  %v1217_v27 = vadd.f32 %v2406_v48, %v1147_v15  ;;  %v1218_v28 = vadd.f32 %v2406_v48, %v1148_v16  ;;  %v1219_v29 = vadd.f32 %v2406_v48, %v1149_v17  ;;  %v1277_v32 = vmax.f32 %v1213_v23, 0.0  ;;  %v1160_v5 = vld [vmem:[#allocation2 + $0x1d0] sm:$0xff] }
 0x164   : > { %1595 = vst.msk [vmem:[%s2740_s3 + $0x98] sm:$0xf] %vm1556_vm5, %v1881_v20  ;;  %1596 = vst.msk [vmem:[%s2740_s3 + $0x9c] sm:$0xf] %vm1556_vm5, %v1882_v21  ;;  %v1278_v33 = vmax.f32 %v1214_v24, 0.0  ;;  %v1279_v34 = vmax.f32 %v1215_v25, 0.0  ;;  %v1883_v43 = vpack.c.bf16 %v1276_v31, %v1276_v31  ;;  %v1220_v55 = vadd.f32 %v2406_v48, %v1150_v30 }
 0x165   : > { %v1280_v37 = vmax.f32 %v1216_v26, 0.0  ;;  %v1281_v38 = vmax.f32 %v1217_v27, 0.0  ;;  %v1282_v39 = vmax.f32 %v1218_v28, 0.0  ;;  %v1283_v40 = vmax.f32 %v1219_v29, 0.0  ;;  %v1161_v10 = vld [vmem:[#allocation2 + $0x1d8] sm:$0xff]  ;;  %v1162_v11 = vld [vmem:[#allocation2 + $0x1e0] sm:$0xff] }
 0x166   : > { %v1884_v44 = vpack.c.bf16 %v1277_v32, %v1277_v32  ;;  %v1885_v45 = vpack.c.bf16 %v1278_v33, %v1278_v33  ;;  %v1886_v46 = vpack.c.bf16 %v1279_v34, %v1279_v34  ;;  %1597 = vst.msk [vmem:[%s2740_s3 + $0xa0] sm:$0xf] %vm1556_vm5, %v1883_v43  ;;  %v1221_v56 = vadd.f32 %v2406_v48, %v1151_v35  ;;  %v1163_v16 = vld [vmem:[#allocation2 + $0x1e8] sm:$0xff]  ;;  %v1164_v17 = vld [vmem:[#allocation2 + $0x1f0] sm:$0xff]  ;;  %v1165_v18 = vld [vmem:[#allocation2 + $0x1f8] sm:$0xff] }
 0x167   : > { %v1887_v51 = vpack.c.bf16 %v1280_v37, %v1280_v37  ;;  %v1888_v52 = vpack.c.bf16 %v1281_v38, %v1281_v38  ;;  %v1889_v53 = vpack.c.bf16 %v1282_v39, %v1282_v39  ;;  %v1890_v54 = vpack.c.bf16 %v1283_v40, %v1283_v40 }
 0x168   : > { %1598 = vst.msk [vmem:[%s2740_s3 + $0xa4] sm:$0xf] %vm1556_vm5, %v1884_v44  ;;  %1599 = vst.msk [vmem:[%s2740_s3 + $0xa8] sm:$0xf] %vm1556_vm5, %v1885_v45  ;;  %v1222_v57 = vadd.f32 %v2406_v48, %v1152_v36  ;;  %v1223_v58 = vadd.f32 %v2406_v48, %v1153_v41  ;;  %v1224_v59 = vadd.f32 %v2406_v48, %v1154_v42  ;;  %v1284_v0 = vmax.f32 %v1220_v55, 0.0 }
 0x169   : > { %1600 = vst.msk [vmem:[%s2740_s3 + $0xac] sm:$0xf] %vm1556_vm5, %v1886_v46  ;;  %1601 = vst.msk [vmem:[%s2740_s3 + $0xb0] sm:$0xf] %vm1556_vm5, %v1887_v51  ;;  %v1225_v60 = vadd.f32 %v2406_v48, %v1155_v47  ;;  %v1226_v61 = vadd.f32 %v2406_v48, %v1156_v49  ;;  %v1227_v62 = vadd.f32 %v2406_v48, %v1157_v50  ;;  %v1285_v1 = vmax.f32 %v1221_v56, 0.0 }
 0x16a   : > { %1602 = vst.msk [vmem:[%s2740_s3 + $0xb4] sm:$0xf] %vm1556_vm5, %v1888_v52  ;;  %1603 = vst.msk [vmem:[%s2740_s3 + $0xb8] sm:$0xf] %vm1556_vm5, %v1889_v53  ;;  %v1286_v2 = vmax.f32 %v1222_v57, 0.0  ;;  %v1287_v3 = vmax.f32 %v1223_v58, 0.0  ;;  %v1891_v12 = vpack.c.bf16 %v1284_v0, %v1284_v0  ;;  %v1228_v23 = vadd.f32 %v2406_v48, %v1158_v63 }
 0x16b   : > { %1604 = vst.msk [vmem:[%s2740_s3 + $0xbc] sm:$0xf] %vm1556_vm5, %v1890_v54  ;;  %v1288_v6 = vmax.f32 %v1224_v59, 0.0  ;;  %v1289_v7 = vmax.f32 %v1225_v60, 0.0  ;;  %v1290_v8 = vmax.f32 %v1226_v61, 0.0  ;;  %v1291_v9 = vmax.f32 %v1227_v62, 0.0 }
 0x16c   : > { %v1892_v13 = vpack.c.bf16 %v1285_v1, %v1285_v1  ;;  %v1893_v14 = vpack.c.bf16 %v1286_v2, %v1286_v2  ;;  %v1894_v15 = vpack.c.bf16 %v1287_v3, %v1287_v3  ;;  %1605 = vst.msk [vmem:[%s2740_s3 + $0xc0] sm:$0xf] %vm1556_vm5, %v1891_v12  ;;  %v1229_v24 = vadd.f32 %v2406_v48, %v1159_v4 }
 0x16d   : > { %v1895_v19 = vpack.c.bf16 %v1288_v6, %v1288_v6  ;;  %v1896_v20 = vpack.c.bf16 %v1289_v7, %v1289_v7  ;;  %v1897_v21 = vpack.c.bf16 %v1290_v8, %v1290_v8  ;;  %v1898_v22 = vpack.c.bf16 %v1291_v9, %v1291_v9 }
 0x16e   : > { %1606 = vst.msk [vmem:[%s2740_s3 + $0xc4] sm:$0xf] %vm1556_vm5, %v1892_v13  ;;  %1607 = vst.msk [vmem:[%s2740_s3 + $0xc8] sm:$0xf] %vm1556_vm5, %v1893_v14  ;;  %v1230_v25 = vadd.f32 %v2406_v48, %v1160_v5  ;;  %v1231_v26 = vadd.f32 %v2406_v48, %v1161_v10  ;;  %v1232_v27 = vadd.f32 %v2406_v48, %v1162_v11  ;;  %v1292_v31 = vmax.f32 %v1228_v23, 0.0 }
 0x16f   : > { %1608 = vst.msk [vmem:[%s2740_s3 + $0xcc] sm:$0xf] %vm1556_vm5, %v1894_v15  ;;  %1609 = vst.msk [vmem:[%s2740_s3 + $0xd0] sm:$0xf] %vm1556_vm5, %v1895_v19  ;;  %v1233_v28 = vadd.f32 %v2406_v48, %v1163_v16  ;;  %v1234_v29 = vadd.f32 %v2406_v48, %v1164_v17  ;;  %v1235_v30 = vadd.f32 %v2406_v48, %v1165_v18  ;;  %v1293_v32 = vmax.f32 %v1229_v24, 0.0 }
 0x170   : > { %1610 = vst.msk [vmem:[%s2740_s3 + $0xd4] sm:$0xf] %vm1556_vm5, %v1896_v20  ;;  %1611 = vst.msk [vmem:[%s2740_s3 + $0xd8] sm:$0xf] %vm1556_vm5, %v1897_v21  ;;  %v1294_v33 = vmax.f32 %v1230_v25, 0.0  ;;  %v1295_v34 = vmax.f32 %v1231_v26, 0.0  ;;  %v1899_v39 = vpack.c.bf16 %v1292_v31, %v1292_v31 }
 0x171   : > { %1612 = vst.msk [vmem:[%s2740_s3 + $0xdc] sm:$0xf] %vm1556_vm5, %v1898_v22  ;;  %v1296_v35 = vmax.f32 %v1232_v27, 0.0  ;;  %v1297_v36 = vmax.f32 %v1233_v28, 0.0  ;;  %v1298_v37 = vmax.f32 %v1234_v29, 0.0  ;;  %v1299_v38 = vmax.f32 %v1235_v30, 0.0 }
 0x172   : > { %v1900_v40 = vpack.c.bf16 %v1293_v32, %v1293_v32  ;;  %v1901_v41 = vpack.c.bf16 %v1294_v33, %v1294_v33  ;;  %v1902_v42 = vpack.c.bf16 %v1295_v34, %v1295_v34  ;;  %1613 = vst.msk [vmem:[%s2740_s3 + $0xe0] sm:$0xf] %vm1556_vm5, %v1899_v39 }
 0x173   : > { %v1903_v43 = vpack.c.bf16 %v1296_v35, %v1296_v35  ;;  %v1904_v44 = vpack.c.bf16 %v1297_v36, %v1297_v36  ;;  %v1905_v45 = vpack.c.bf16 %v1298_v37, %v1298_v37  ;;  %v1906_v46 = vpack.c.bf16 %v1299_v38, %v1299_v38 }
 0x174   : > { %1614 = vst.msk [vmem:[%s2740_s3 + $0xe4] sm:$0xf] %vm1556_vm5, %v1900_v40  ;;  %1615 = vst.msk [vmem:[%s2740_s3 + $0xe8] sm:$0xf] %vm1556_vm5, %v1901_v41 }
 0x175   : > { %1616 = vst.msk [vmem:[%s2740_s3 + $0xec] sm:$0xf] %vm1556_vm5, %v1902_v42  ;;  %1617 = vst.msk [vmem:[%s2740_s3 + $0xf0] sm:$0xf] %vm1556_vm5, %v1903_v43 }
 0x176   : > { %1618 = vst.msk [vmem:[%s2740_s3 + $0xf4] sm:$0xf] %vm1556_vm5, %v1904_v44  ;;  %1619 = vst.msk [vmem:[%s2740_s3 + $0xf8] sm:$0xf] %vm1556_vm5, %v1905_v45 }
 0x177   : > { %1620 = vst.msk [vmem:[%s2740_s3 + $0xfc] sm:$0xf] %vm1556_vm5, %v1906_v46 }
 0x178 PF: > { %s13_s14 = sadd.s32 1, %s2088_s14   ;;  %s2741_s12 = smov %s2084_s13 }
 0x179   : > { %p10_p7 = scmp.ge.s32.totalorder %s13_s14, 11   ;;  %s2742_s13 = smov %s2744_s15 }
 0x17b   :  { %12 = sbr.rel (!%p10_p7) target bundleno = 2 (0x2), region = 73 }

// kernel: vgg_loss.73
= control target key start
LH: loop header
LB: loop body
LE: loop exit
PB: predicated region body
PF: predicated region fallthrough
CT: control target
= control target key end

     0   :  { %7 = vsyncpa [#allocation3], 0  ;;  %vm16_vm0 = vcmask 0   ;;  %v905_v0 = vmov 0.0   ;;  %vm403_vm1 = vcmask 523264   ;;  %s1192_s0 = inlined_call_operand.vmem [shape: bf16[512,64], index: 0, kind: input, shape index: {}]   ;;  %s1193_s1 = inlined_call_operand.vmem [shape: bf16[512,64], index: 1, kind: input, shape index: {}]   ;;  %s1194_s2 = inlined_call_operand.hbm [shape: f32[1,1], index: 2, kind: output, shape index: {}]  }
   0x1   :  { %17 = vst.msk [vmem:[#allocation2] sm:$0x1] %vm16_vm0, %v905_v0  ;;  %v560_v1 = vld [vmem:[%s1192_s0] sm:$0xff]   ;;  %v815_v2 = vld [vmem:[%s1192_s0 + $0x8] sm:$0xff]   ;;  %v816_v8 = vld [vmem:[%s1192_s0 + $0x10] sm:$0xff]  }
   0x2   :  { %v688_v3 = vld [vmem:[%s1193_s1] sm:$0xff]   ;;  %v846_v4 = vld [vmem:[%s1193_s1 + $0x8] sm:$0xff]   ;;  %v561_v5 = vunpack.c.l.bf16 %v560_v1  ;;  %v562_v6 = vunpack.c.h.bf16 %v560_v1  ;;  %v565_v7 = vunpack.c.l.bf16 %v815_v2  ;;  %v847_v12 = vld [vmem:[%s1193_s1 + $0x10] sm:$0xff]   ;;  %v566_v13 = vunpack.c.h.bf16 %v815_v2 }
   0x3   :  { %v689_v9 = vunpack.c.l.bf16 %v688_v3  ;;  %v690_v10 = vunpack.c.h.bf16 %v688_v3  ;;  %v693_v11 = vunpack.c.l.bf16 %v846_v4  ;;  %v694_v14 = vunpack.c.h.bf16 %v846_v4  ;;  %v817_v16 = vld [vmem:[%s1192_s0 + $0x18] sm:$0xff]   ;;  %v818_v26 = vld [vmem:[%s1192_s0 + $0x20] sm:$0xff]   ;;  %v819_v40 = vld [vmem:[%s1192_s0 + $0x28] sm:$0xff]  }
   0x4   :  { %v569_v15 = vunpack.c.l.bf16 %v816_v8  ;;  %v697_v17 = vunpack.c.l.bf16 %v847_v12  ;;  %v848_v18 = vld [vmem:[%s1193_s1 + $0x18] sm:$0xff]   ;;  %v570_v22 = vunpack.c.h.bf16 %v816_v8  ;;  %v698_v23 = vunpack.c.h.bf16 %v847_v12  ;;  %v849_v28 = vld [vmem:[%s1193_s1 + $0x20] sm:$0xff]   ;;  %v850_v46 = vld [vmem:[%s1193_s1 + $0x28] sm:$0xff]  }
   0x5   :  { %v274_v19 = vsub.f32 %v561_v5, %v689_v9  ;;  %v275_v20 = vsub.f32 %v562_v6, %v690_v10  ;;  %v276_v21 = vsub.f32 %v565_v7, %v693_v11  ;;  %v277_v24 = vsub.f32 %v566_v13, %v694_v14  ;;  %v820_v54 = vld [vmem:[%s1192_s0 + $0x30] sm:$0xff]   ;;  %v821_v4 = vld [vmem:[%s1192_s0 + $0x38] sm:$0xff]  }
   0x6   :  { %v573_v25 = vunpack.c.l.bf16 %v817_v16  ;;  %v701_v27 = vunpack.c.l.bf16 %v848_v18  ;;  %v278_v29 = vsub.f32 %v569_v15, %v697_v17  ;;  %v574_v33 = vunpack.c.h.bf16 %v817_v16  ;;  %v851_v60 = vld [vmem:[%s1193_s1 + $0x30] sm:$0xff]   ;;  %v852_v10 = vld [vmem:[%s1193_s1 + $0x38] sm:$0xff]  }
   0x7   :  { %v338_v30 = vand.u32 2147483647, %v274_v19  ;;  %v339_v31 = vand.u32 2147483647, %v275_v20  ;;  %v340_v32 = vand.u32 2147483647, %v276_v21  ;;  %v702_v34 = vunpack.c.h.bf16 %v848_v18 }
   0x8   :  { %v279_v35 = vsub.f32 %v570_v22, %v698_v23  ;;  %v341_v36 = vand.u32 2147483647, %v277_v24  ;;  %v577_v37 = vunpack.c.l.bf16 %v818_v26  ;;  %v705_v38 = vunpack.c.l.bf16 %v849_v28  ;;  %v822_v18 = vld [vmem:[%s1192_s0 + $0x40] sm:$0xff]  }
   0x9   :  { %v280_v39 = vsub.f32 %v573_v25, %v701_v27  ;;  %v342_v41 = vand.u32 2147483647, %v278_v29  ;;  %v404_v42 = vsel %vm403_vm1, %v338_v30, 0.0  ;;  %v405_v43 = vsel %vm403_vm1, %v339_v31, 0.0  ;;  %v853_v24 = vld [vmem:[%s1193_s1 + $0x40] sm:$0xff]  }
   0xa   :  { %v407_v44 = vsel %vm403_vm1, %v340_v32, 0.0  ;;  %v578_v45 = vunpack.c.h.bf16 %v818_v26  ;;  %v406_v47 = vadd.f32 %v405_v43, %v404_v42  ;;  %v706_v48 = vunpack.c.h.bf16 %v849_v28  ;;  %v823_v32 = vld [vmem:[%s1192_s0 + $0x48] sm:$0xff]  }
   0xb   :  { %v281_v49 = vsub.f32 %v574_v33, %v702_v34  ;;  %v343_v50 = vand.u32 2147483647, %v279_v35  ;;  %v409_v51 = vsel %vm403_vm1, %v341_v36, 0.0  ;;  %v581_v52 = vunpack.c.l.bf16 %v819_v40 }
   0xc   :  { %v408_v53 = vadd.f32 %v407_v44, %v406_v47  ;;  %v709_v55 = vunpack.c.l.bf16 %v850_v46  ;;  %v282_v56 = vsub.f32 %v577_v37, %v705_v38  ;;  %v344_v57 = vand.u32 2147483647, %v280_v39  ;;  %v854_v38 = vld [vmem:[%s1193_s1 + $0x48] sm:$0xff]  }
   0xd   :  { %v411_v58 = vsel %vm403_vm1, %v342_v41, 0.0  ;;  %v582_v59 = vunpack.c.h.bf16 %v819_v40  ;;  %v710_v62 = vunpack.c.h.bf16 %v850_v46  ;;  %v283_v63 = vsub.f32 %v578_v45, %v706_v48  ;;  %v824_v46 = vld [vmem:[%s1192_s0 + $0x50] sm:$0xff]  }
   0xe   :  { %v410_v61 = vadd.f32 %v409_v51, %v408_v53  ;;  %v345_v0 = vand.u32 2147483647, %v281_v49  ;;  %v413_v1 = vsel %vm403_vm1, %v343_v50, 0.0  ;;  %v585_v2 = vunpack.c.l.bf16 %v820_v54 }
   0xf   :  { %v713_v5 = vunpack.c.l.bf16 %v851_v60  ;;  %v284_v6 = vsub.f32 %v581_v52, %v709_v55  ;;  %v346_v7 = vand.u32 2147483647, %v282_v56  ;;  %v415_v8 = vsel %vm403_vm1, %v344_v57, 0.0  ;;  %v855_v52 = vld [vmem:[%s1193_s1 + $0x50] sm:$0xff]  }
  0x10   :  { %v412_v3 = vadd.f32 %v411_v58, %v410_v61  ;;  %v586_v9 = vunpack.c.h.bf16 %v820_v54  ;;  %v714_v12 = vunpack.c.h.bf16 %v851_v60  ;;  %v285_v13 = vsub.f32 %v582_v59, %v710_v62  ;;  %v825_v60 = vld [vmem:[%s1192_s0 + $0x58] sm:$0xff]  }
  0x11   :  { %v347_v14 = vand.u32 2147483647, %v283_v63  ;;  %v417_v15 = vsel %vm403_vm1, %v345_v0, 0.0  ;;  %v589_v16 = vunpack.c.l.bf16 %v821_v4  ;;  %v717_v19 = vunpack.c.l.bf16 %v852_v10 }
  0x12   :  { %v414_v11 = vadd.f32 %v413_v1, %v412_v3  ;;  %v286_v20 = vsub.f32 %v585_v2, %v713_v5  ;;  %v348_v21 = vand.u32 2147483647, %v284_v6  ;;  %v419_v22 = vsel %vm403_vm1, %v346_v7, 0.0  ;;  %v856_v2 = vld [vmem:[%s1193_s1 + $0x58] sm:$0xff]  }
  0x13   :  { %v590_v23 = vunpack.c.h.bf16 %v821_v4  ;;  %v718_v26 = vunpack.c.h.bf16 %v852_v10  ;;  %v287_v27 = vsub.f32 %v586_v9, %v714_v12  ;;  %v349_v28 = vand.u32 2147483647, %v285_v13  ;;  %v826_v10 = vld [vmem:[%s1192_s0 + $0x60] sm:$0xff]  }
  0x14   :  { %v416_v17 = vadd.f32 %v415_v8, %v414_v11  ;;  %v421_v29 = vsel %vm403_vm1, %v347_v14, 0.0  ;;  %v593_v30 = vunpack.c.l.bf16 %v822_v18  ;;  %v721_v33 = vunpack.c.l.bf16 %v853_v24 }
  0x15   :  { %v288_v34 = vsub.f32 %v589_v16, %v717_v19  ;;  %v350_v35 = vand.u32 2147483647, %v286_v20  ;;  %v423_v36 = vsel %vm403_vm1, %v348_v21, 0.0  ;;  %v594_v37 = vunpack.c.h.bf16 %v822_v18  ;;  %v857_v16 = vld [vmem:[%s1193_s1 + $0x60] sm:$0xff]  }
  0x16   :  { %v418_v25 = vadd.f32 %v417_v15, %v416_v17  ;;  %v722_v40 = vunpack.c.h.bf16 %v853_v24  ;;  %v289_v41 = vsub.f32 %v590_v23, %v718_v26  ;;  %v351_v42 = vand.u32 2147483647, %v287_v27  ;;  %v827_v24 = vld [vmem:[%s1192_s0 + $0x68] sm:$0xff]  }
  0x17   :  { %v425_v43 = vsel %vm403_vm1, %v349_v28, 0.0  ;;  %v597_v44 = vunpack.c.l.bf16 %v823_v32  ;;  %v725_v47 = vunpack.c.l.bf16 %v854_v38  ;;  %v290_v48 = vsub.f32 %v593_v30, %v721_v33  ;;  %v858_v30 = vld [vmem:[%s1193_s1 + $0x68] sm:$0xff]  }
  0x18   :  { %v420_v31 = vadd.f32 %v419_v22, %v418_v25  ;;  %v352_v49 = vand.u32 2147483647, %v288_v34  ;;  %v427_v50 = vsel %vm403_vm1, %v350_v35, 0.0  ;;  %v598_v51 = vunpack.c.h.bf16 %v823_v32 }
  0x19   :  { %v726_v54 = vunpack.c.h.bf16 %v854_v38  ;;  %v291_v55 = vsub.f32 %v594_v37, %v722_v40  ;;  %v353_v56 = vand.u32 2147483647, %v289_v41  ;;  %v429_v57 = vsel %vm403_vm1, %v351_v42, 0.0  ;;  %v828_v38 = vld [vmem:[%s1192_s0 + $0x70] sm:$0xff]  }
  0x1a   :  { %v422_v39 = vadd.f32 %v421_v29, %v420_v31  ;;  %v601_v58 = vunpack.c.l.bf16 %v824_v46  ;;  %v729_v61 = vunpack.c.l.bf16 %v855_v52  ;;  %v292_v62 = vsub.f32 %v597_v44, %v725_v47  ;;  %v859_v44 = vld [vmem:[%s1193_s1 + $0x70] sm:$0xff]  }
  0x1b   :  { %v354_v63 = vand.u32 2147483647, %v290_v48  ;;  %v431_v0 = vsel %vm403_vm1, %v352_v49, 0.0  ;;  %v602_v1 = vunpack.c.h.bf16 %v824_v46  ;;  %v730_v4 = vunpack.c.h.bf16 %v855_v52  ;;  %v829_v52 = vld [vmem:[%s1192_s0 + $0x78] sm:$0xff]  }
  0x1c   :  { %v424_v45 = vadd.f32 %v423_v36, %v422_v39  ;;  %v293_v5 = vsub.f32 %v598_v51, %v726_v54  ;;  %v355_v6 = vand.u32 2147483647, %v291_v55  ;;  %v433_v7 = vsel %vm403_vm1, %v353_v56, 0.0 }
  0x1d   :  { %v605_v8 = vunpack.c.l.bf16 %v825_v60  ;;  %v733_v11 = vunpack.c.l.bf16 %v856_v2  ;;  %v294_v12 = vsub.f32 %v601_v58, %v729_v61  ;;  %v356_v13 = vand.u32 2147483647, %v292_v62  ;;  %v860_v58 = vld [vmem:[%s1193_s1 + $0x78] sm:$0xff]  }
  0x1e   :  { %v426_v53 = vadd.f32 %v425_v43, %v424_v45  ;;  %v435_v14 = vsel %vm403_vm1, %v354_v63, 0.0  ;;  %v606_v15 = vunpack.c.h.bf16 %v825_v60  ;;  %v734_v18 = vunpack.c.h.bf16 %v856_v2  ;;  %v830_v2 = vld [vmem:[%s1192_s0 + $0x80] sm:$0xff]  }
  0x1f   :  { %v295_v19 = vsub.f32 %v602_v1, %v730_v4  ;;  %v357_v20 = vand.u32 2147483647, %v293_v5  ;;  %v437_v21 = vsel %vm403_vm1, %v355_v6, 0.0  ;;  %v609_v22 = vunpack.c.l.bf16 %v826_v10 }
  0x20   :  { %v428_v59 = vadd.f32 %v427_v50, %v426_v53  ;;  %v737_v25 = vunpack.c.l.bf16 %v857_v16  ;;  %v296_v26 = vsub.f32 %v605_v8, %v733_v11  ;;  %v358_v27 = vand.u32 2147483647, %v294_v12  ;;  %v861_v8 = vld [vmem:[%s1193_s1 + $0x80] sm:$0xff]  }
  0x21   :  { %v439_v28 = vsel %vm403_vm1, %v356_v13, 0.0  ;;  %v610_v29 = vunpack.c.h.bf16 %v826_v10  ;;  %v738_v32 = vunpack.c.h.bf16 %v857_v16  ;;  %v297_v33 = vsub.f32 %v606_v15, %v734_v18  ;;  %v831_v16 = vld [vmem:[%s1192_s0 + $0x88] sm:$0xff]  }
  0x22   :  { %v430_v3 = vadd.f32 %v429_v57, %v428_v59  ;;  %v359_v34 = vand.u32 2147483647, %v295_v19  ;;  %v441_v35 = vsel %vm403_vm1, %v357_v20, 0.0  ;;  %v613_v36 = vunpack.c.l.bf16 %v827_v24 }
  0x23   :  { %v741_v39 = vunpack.c.l.bf16 %v858_v30  ;;  %v298_v40 = vsub.f32 %v609_v22, %v737_v25  ;;  %v360_v41 = vand.u32 2147483647, %v296_v26  ;;  %v443_v42 = vsel %vm403_vm1, %v358_v27, 0.0  ;;  %v862_v22 = vld [vmem:[%s1193_s1 + $0x88] sm:$0xff]  }
  0x24   :  { %v432_v9 = vadd.f32 %v431_v0, %v430_v3  ;;  %v614_v43 = vunpack.c.h.bf16 %v827_v24  ;;  %v742_v46 = vunpack.c.h.bf16 %v858_v30  ;;  %v299_v47 = vsub.f32 %v610_v29, %v738_v32  ;;  %v832_v30 = vld [vmem:[%s1192_s0 + $0x90] sm:$0xff]  }
  0x25   :  { %v361_v48 = vand.u32 2147483647, %v297_v33  ;;  %v445_v49 = vsel %vm403_vm1, %v359_v34, 0.0  ;;  %v617_v50 = vunpack.c.l.bf16 %v828_v38  ;;  %v745_v53 = vunpack.c.l.bf16 %v859_v44 }
  0x26   :  { %v434_v17 = vadd.f32 %v433_v7, %v432_v9  ;;  %v300_v54 = vsub.f32 %v613_v36, %v741_v39  ;;  %v362_v55 = vand.u32 2147483647, %v298_v40  ;;  %v447_v56 = vsel %vm403_vm1, %v360_v41, 0.0  ;;  %v863_v36 = vld [vmem:[%s1193_s1 + $0x90] sm:$0xff]  }
  0x27   :  { %v618_v57 = vunpack.c.h.bf16 %v828_v38  ;;  %v746_v60 = vunpack.c.h.bf16 %v859_v44  ;;  %v301_v61 = vsub.f32 %v614_v43, %v742_v46  ;;  %v363_v62 = vand.u32 2147483647, %v299_v47  ;;  %v833_v44 = vld [vmem:[%s1192_s0 + $0x98] sm:$0xff]  }
  0x28   :  { %v436_v23 = vadd.f32 %v435_v14, %v434_v17  ;;  %v449_v63 = vsel %vm403_vm1, %v361_v48, 0.0  ;;  %v621_v0 = vunpack.c.l.bf16 %v829_v52  ;;  %v749_v3 = vunpack.c.l.bf16 %v860_v58 }
  0x29   :  { %v302_v4 = vsub.f32 %v617_v50, %v745_v53  ;;  %v364_v5 = vand.u32 2147483647, %v300_v54  ;;  %v451_v6 = vsel %vm403_vm1, %v362_v55, 0.0  ;;  %v622_v7 = vunpack.c.h.bf16 %v829_v52  ;;  %v864_v50 = vld [vmem:[%s1193_s1 + $0x98] sm:$0xff]  }
  0x2a   :  { %v438_v31 = vadd.f32 %v437_v21, %v436_v23  ;;  %v750_v10 = vunpack.c.h.bf16 %v860_v58  ;;  %v303_v11 = vsub.f32 %v618_v57, %v746_v60  ;;  %v365_v12 = vand.u32 2147483647, %v301_v61  ;;  %v834_v58 = vld [vmem:[%s1192_s0 + $0xa0] sm:$0xff]  }
  0x2b   :  { %v453_v13 = vsel %vm403_vm1, %v363_v62, 0.0  ;;  %v625_v14 = vunpack.c.l.bf16 %v830_v2  ;;  %v753_v17 = vunpack.c.l.bf16 %v861_v8  ;;  %v304_v18 = vsub.f32 %v621_v0, %v749_v3  ;;  %v865_v0 = vld [vmem:[%s1193_s1 + $0xa0] sm:$0xff]  }
  0x2c   :  { %v440_v37 = vadd.f32 %v439_v28, %v438_v31  ;;  %v366_v19 = vand.u32 2147483647, %v302_v4  ;;  %v455_v20 = vsel %vm403_vm1, %v364_v5, 0.0  ;;  %v626_v21 = vunpack.c.h.bf16 %v830_v2 }
  0x2d   :  { %v754_v24 = vunpack.c.h.bf16 %v861_v8  ;;  %v305_v25 = vsub.f32 %v622_v7, %v750_v10  ;;  %v367_v26 = vand.u32 2147483647, %v303_v11  ;;  %v457_v27 = vsel %vm403_vm1, %v365_v12, 0.0  ;;  %v835_v8 = vld [vmem:[%s1192_s0 + $0xa8] sm:$0xff]  }
  0x2e   :  { %v442_v45 = vadd.f32 %v441_v35, %v440_v37  ;;  %v629_v28 = vunpack.c.l.bf16 %v831_v16  ;;  %v757_v31 = vunpack.c.l.bf16 %v862_v22  ;;  %v306_v32 = vsub.f32 %v625_v14, %v753_v17  ;;  %v866_v14 = vld [vmem:[%s1193_s1 + $0xa8] sm:$0xff]  }
  0x2f   :  { %v368_v33 = vand.u32 2147483647, %v304_v18  ;;  %v459_v34 = vsel %vm403_vm1, %v366_v19, 0.0  ;;  %v630_v35 = vunpack.c.h.bf16 %v831_v16  ;;  %v758_v38 = vunpack.c.h.bf16 %v862_v22  ;;  %v836_v22 = vld [vmem:[%s1192_s0 + $0xb0] sm:$0xff]  }
  0x30   :  { %v444_v51 = vadd.f32 %v443_v42, %v442_v45  ;;  %v307_v39 = vsub.f32 %v626_v21, %v754_v24  ;;  %v369_v40 = vand.u32 2147483647, %v305_v25  ;;  %v461_v41 = vsel %vm403_vm1, %v367_v26, 0.0 }
  0x31   :  { %v633_v42 = vunpack.c.l.bf16 %v832_v30  ;;  %v761_v45 = vunpack.c.l.bf16 %v863_v36  ;;  %v308_v46 = vsub.f32 %v629_v28, %v757_v31  ;;  %v370_v47 = vand.u32 2147483647, %v306_v32  ;;  %v867_v28 = vld [vmem:[%s1193_s1 + $0xb0] sm:$0xff]  }
  0x32   :  { %v446_v59 = vadd.f32 %v445_v49, %v444_v51  ;;  %v463_v48 = vsel %vm403_vm1, %v368_v33, 0.0  ;;  %v634_v49 = vunpack.c.h.bf16 %v832_v30  ;;  %v762_v52 = vunpack.c.h.bf16 %v863_v36  ;;  %v837_v36 = vld [vmem:[%s1192_s0 + $0xb8] sm:$0xff]  }
  0x33   :  { %v309_v53 = vsub.f32 %v630_v35, %v758_v38  ;;  %v371_v54 = vand.u32 2147483647, %v307_v39  ;;  %v465_v55 = vsel %vm403_vm1, %v369_v40, 0.0  ;;  %v310_v60 = vsub.f32 %v633_v42, %v761_v45  ;;  %v868_v42 = vld [vmem:[%s1193_s1 + $0xb8] sm:$0xff]  }
  0x34   :  { %v448_v1 = vadd.f32 %v447_v56, %v446_v59  ;;  %v637_v56 = vunpack.c.l.bf16 %v833_v44  ;;  %v765_v59 = vunpack.c.l.bf16 %v864_v50  ;;  %v372_v61 = vand.u32 2147483647, %v308_v46 }
  0x35   :  { %v467_v62 = vsel %vm403_vm1, %v370_v47, 0.0  ;;  %v766_v2 = vunpack.c.h.bf16 %v864_v50  ;;  %v311_v3 = vsub.f32 %v634_v49, %v762_v52  ;;  %v373_v4 = vand.u32 2147483647, %v309_v53  ;;  %v838_v50 = vld [vmem:[%s1192_s0 + $0xc0] sm:$0xff]  }
  0x36   :  { %v450_v9 = vadd.f32 %v449_v63, %v448_v1  ;;  %v638_v63 = vunpack.c.h.bf16 %v833_v44  ;;  %v469_v5 = vsel %vm403_vm1, %v371_v54, 0.0  ;;  %v312_v10 = vsub.f32 %v637_v56, %v765_v59  ;;  %v869_v56 = vld [vmem:[%s1193_s1 + $0xc0] sm:$0xff]  }
  0x37   :  { %v374_v11 = vand.u32 2147483647, %v310_v60  ;;  %v471_v12 = vsel %vm403_vm1, %v372_v61, 0.0  ;;  %v770_v16 = vunpack.c.h.bf16 %v865_v0  ;;  %v375_v18 = vand.u32 2147483647, %v311_v3 }
  0x38   :  { %v452_v15 = vadd.f32 %v451_v6, %v450_v9  ;;  %v641_v6 = vunpack.c.l.bf16 %v834_v58  ;;  %v769_v9 = vunpack.c.l.bf16 %v865_v0  ;;  %v313_v17 = vsub.f32 %v638_v63, %v766_v2  ;;  %v839_v0 = vld [vmem:[%s1192_s0 + $0xc8] sm:$0xff]  }
  0x39   :  { %v473_v19 = vsel %vm403_vm1, %v373_v4, 0.0  ;;  %v376_v25 = vand.u32 2147483647, %v312_v10  ;;  %v475_v26 = vsel %vm403_vm1, %v374_v11, 0.0  ;;  %v774_v30 = vunpack.c.h.bf16 %v866_v14 }
  0x3a   :  { %v454_v23 = vadd.f32 %v453_v13, %v452_v15  ;;  %v642_v13 = vunpack.c.h.bf16 %v834_v58  ;;  %v314_v24 = vsub.f32 %v641_v6, %v769_v9  ;;  %v377_v32 = vand.u32 2147483647, %v313_v17  ;;  %v870_v6 = vld [vmem:[%s1193_s1 + $0xc8] sm:$0xff]  }
  0x3b   :  { %v477_v33 = vsel %vm403_vm1, %v375_v18, 0.0  ;;  %v479_v40 = vsel %vm403_vm1, %v376_v25, 0.0  ;;  %v778_v44 = vunpack.c.h.bf16 %v867_v28  ;;  %v782_v58 = vunpack.c.h.bf16 %v868_v42 }
  0x3c   :  { %v456_v29 = vadd.f32 %v455_v20, %v454_v23  ;;  %v645_v20 = vunpack.c.l.bf16 %v835_v8  ;;  %v773_v23 = vunpack.c.l.bf16 %v866_v14  ;;  %v315_v31 = vsub.f32 %v642_v13, %v770_v16  ;;  %v840_v14 = vld [vmem:[%s1192_s0 + $0xd0] sm:$0xff]  }
  0x3d   :  { %v378_v39 = vand.u32 2147483647, %v314_v24  ;;  %v481_v47 = vsel %vm403_vm1, %v377_v32, 0.0 }
  0x3e   :  { %v458_v37 = vadd.f32 %v457_v27, %v456_v29  ;;  %v646_v27 = vunpack.c.h.bf16 %v835_v8  ;;  %v316_v38 = vsub.f32 %v645_v20, %v773_v23  ;;  %v379_v46 = vand.u32 2147483647, %v315_v31  ;;  %v871_v20 = vld [vmem:[%s1193_s1 + $0xd0] sm:$0xff]  }
  0x3f   :  { %v483_v54 = vsel %vm403_vm1, %v378_v39, 0.0  ;;  %v786_v8 = vunpack.c.h.bf16 %v869_v56 }
  0x40   :  { %v460_v43 = vadd.f32 %v459_v34, %v458_v37  ;;  %v649_v34 = vunpack.c.l.bf16 %v836_v22  ;;  %v777_v37 = vunpack.c.l.bf16 %v867_v28  ;;  %v317_v45 = vsub.f32 %v646_v27, %v774_v30  ;;  %v841_v28 = vld [vmem:[%s1192_s0 + $0xd8] sm:$0xff]  }
  0x41   :  { %v380_v53 = vand.u32 2147483647, %v316_v38  ;;  %v485_v61 = vsel %vm403_vm1, %v379_v46, 0.0 }
  0x42   :  { %v462_v51 = vadd.f32 %v461_v41, %v460_v43  ;;  %v650_v41 = vunpack.c.h.bf16 %v836_v22  ;;  %v318_v52 = vsub.f32 %v649_v34, %v777_v37  ;;  %v381_v60 = vand.u32 2147483647, %v317_v45  ;;  %v872_v34 = vld [vmem:[%s1193_s1 + $0xd8] sm:$0xff]  }
  0x43   :  { %v487_v4 = vsel %vm403_vm1, %v380_v53, 0.0  ;;  %v790_v22 = vunpack.c.h.bf16 %v870_v6 }
  0x44   :  { %v464_v57 = vadd.f32 %v463_v48, %v462_v51  ;;  %v653_v48 = vunpack.c.l.bf16 %v837_v36  ;;  %v781_v51 = vunpack.c.l.bf16 %v868_v42  ;;  %v319_v59 = vsub.f32 %v650_v41, %v778_v44  ;;  %v842_v42 = vld [vmem:[%s1192_s0 + $0xe0] sm:$0xff]  }
  0x45   :  { %v382_v3 = vand.u32 2147483647, %v318_v52  ;;  %v489_v11 = vsel %vm403_vm1, %v381_v60, 0.0 }
  0x46   :  { %v466_v1 = vadd.f32 %v465_v55, %v464_v57  ;;  %v654_v55 = vunpack.c.h.bf16 %v837_v36  ;;  %v320_v2 = vsub.f32 %v653_v48, %v781_v51  ;;  %v383_v10 = vand.u32 2147483647, %v319_v59  ;;  %v873_v48 = vld [vmem:[%s1193_s1 + $0xe0] sm:$0xff]  }
  0x47   :  { %v491_v18 = vsel %vm403_vm1, %v382_v3, 0.0  ;;  %v794_v36 = vunpack.c.h.bf16 %v871_v20 }
  0x48   :  { %v468_v7 = vadd.f32 %v467_v62, %v466_v1  ;;  %v657_v62 = vunpack.c.l.bf16 %v838_v50  ;;  %v785_v1 = vunpack.c.l.bf16 %v869_v56  ;;  %v321_v9 = vsub.f32 %v654_v55, %v782_v58  ;;  %v843_v56 = vld [vmem:[%s1192_s0 + $0xe8] sm:$0xff]  }
  0x49   :  { %v384_v17 = vand.u32 2147483647, %v320_v2  ;;  %v493_v25 = vsel %vm403_vm1, %v383_v10, 0.0 }
  0x4a   :  { %v470_v15 = vadd.f32 %v469_v5, %v468_v7  ;;  %v658_v5 = vunpack.c.h.bf16 %v838_v50  ;;  %v322_v16 = vsub.f32 %v657_v62, %v785_v1  ;;  %v385_v24 = vand.u32 2147483647, %v321_v9  ;;  %v874_v62 = vld [vmem:[%s1193_s1 + $0xe8] sm:$0xff]  }
  0x4b   :  { %v495_v32 = vsel %vm403_vm1, %v384_v17, 0.0  ;;  %v798_v50 = vunpack.c.h.bf16 %v872_v34 }
  0x4c   :  { %v472_v21 = vadd.f32 %v471_v12, %v470_v15  ;;  %v661_v12 = vunpack.c.l.bf16 %v839_v0  ;;  %v789_v15 = vunpack.c.l.bf16 %v870_v6  ;;  %v323_v23 = vsub.f32 %v658_v5, %v786_v8  ;;  %v844_v6 = vld [vmem:[%s1192_s0 + $0xf0] sm:$0xff]  }
  0x4d   :  { %v386_v31 = vand.u32 2147483647, %v322_v16  ;;  %v497_v39 = vsel %vm403_vm1, %v385_v24, 0.0 }
  0x4e   :  { %v474_v29 = vadd.f32 %v473_v19, %v472_v21  ;;  %v662_v19 = vunpack.c.h.bf16 %v839_v0  ;;  %v324_v30 = vsub.f32 %v661_v12, %v789_v15  ;;  %v387_v38 = vand.u32 2147483647, %v323_v23  ;;  %v875_v12 = vld [vmem:[%s1193_s1 + $0xf0] sm:$0xff]  }
  0x4f   :  { %v499_v46 = vsel %vm403_vm1, %v386_v31, 0.0  ;;  %v802_v0 = vunpack.c.h.bf16 %v873_v48 }
  0x50   :  { %v476_v35 = vadd.f32 %v475_v26, %v474_v29  ;;  %v665_v26 = vunpack.c.l.bf16 %v840_v14  ;;  %v793_v29 = vunpack.c.l.bf16 %v871_v20  ;;  %v325_v37 = vsub.f32 %v662_v19, %v790_v22  ;;  %v845_v20 = vld [vmem:[%s1192_s0 + $0xf8] sm:$0xff]  }
  0x51   :  { %v388_v45 = vand.u32 2147483647, %v324_v30  ;;  %v501_v53 = vsel %vm403_vm1, %v387_v38, 0.0  ;;  %v686_v38 = vunpack.c.h.bf16 %v845_v20 }
  0x52   :  { %v478_v43 = vadd.f32 %v477_v33, %v476_v35  ;;  %v666_v33 = vunpack.c.h.bf16 %v840_v14  ;;  %v326_v44 = vsub.f32 %v665_v26, %v793_v29  ;;  %v389_v52 = vand.u32 2147483647, %v325_v37  ;;  %v876_v26 = vld [vmem:[%s1193_s1 + $0xf8] sm:$0xff]   ;;  %s906_s1 = smov [#allocation2]  }
  0x53   :  { %v503_v60 = vsel %vm403_vm1, %v388_v45, 0.0  ;;  %v806_v14 = vunpack.c.h.bf16 %v874_v62  ;;  %s551_s25 = sshll.u32 %s906_s1, 4  ;;  %s552_s25 = int_to_ptr.vmem [resolvable:$true] %s551_s25 }
  0x54   :  { %v480_v49 = vadd.f32 %v479_v40, %v478_v43  ;;  %v669_v40 = vunpack.c.l.bf16 %v841_v28  ;;  %v797_v43 = vunpack.c.l.bf16 %v872_v34  ;;  %v327_v51 = vsub.f32 %v666_v33, %v794_v36  ;;  %s881_s26 = scalar_lea.vmem %s552_s25, 16  ;;  %s885_s27 = scalar_lea.vmem %s552_s25, 32 }
  0x55   :  { %v390_v59 = vand.u32 2147483647, %v326_v44  ;;  %v505_v3 = vsel %vm403_vm1, %v389_v52, 0.0  ;;  %v813_v34 = vunpack.c.l.bf16 %v876_v26  ;;  %p882_p0 = scmp.ne.s32.totalorder %s552_s25, %s881_s26  ;;  %p886_p1 = scmp.lt.s32.totalorder %s552_s25, %s552_s25 }
  0x56   :  { %v482_v57 = vadd.f32 %v481_v47, %v480_v49  ;;  %v670_v47 = vunpack.c.h.bf16 %v841_v28  ;;  %v328_v58 = vsub.f32 %v669_v40, %v797_v43  ;;  %v391_v2 = vand.u32 2147483647, %v327_v51  ;;  %p887_p2 = scmp.lt.s32.totalorder %s885_s27, %s881_s26 }
  0x57   :  { %v507_v10 = vsel %vm403_vm1, %v390_v59, 0.0  ;;  %v810_v28 = vunpack.c.h.bf16 %v875_v12  ;;  %v814_v40 = vunpack.c.h.bf16 %v876_v26 }
  0x58   :  { %v484_v63 = vadd.f32 %v483_v54, %v482_v57  ;;  %v673_v54 = vunpack.c.l.bf16 %v842_v42  ;;  %v801_v57 = vunpack.c.l.bf16 %v873_v48  ;;  %v329_v1 = vsub.f32 %v670_v47, %v798_v50  ;;  %p888_p3 = por %p887_p2, %p886_p1 }
  0x59   :  { %v392_v9 = vand.u32 2147483647, %v328_v58  ;;  %v509_v17 = vsel %vm403_vm1, %v391_v2, 0.0 }
  0x5a   :  { %v486_v7 = vadd.f32 %v485_v61, %v484_v63  ;;  %v674_v61 = vunpack.c.h.bf16 %v842_v42  ;;  %v330_v8 = vsub.f32 %v673_v54, %v801_v57  ;;  %v393_v16 = vand.u32 2147483647, %v329_v1  ;;  %p889_p4 = pnand %p888_p3, %p882_p0 }
  0x5b   :  { %v511_v24 = vsel %vm403_vm1, %v392_v9, 0.0 }
  0x5c   :  { %v488_v13 = vadd.f32 %v487_v4, %v486_v7  ;;  %v677_v4 = vunpack.c.l.bf16 %v843_v56  ;;  %v805_v7 = vunpack.c.l.bf16 %v874_v62  ;;  %v331_v15 = vsub.f32 %v674_v61, %v802_v0 }
  0x5d   :  { %v394_v23 = vand.u32 2147483647, %v330_v8  ;;  %v513_v31 = vsel %vm403_vm1, %v393_v16, 0.0 }
  0x5e   :  { %v490_v21 = vadd.f32 %v489_v11, %v488_v13  ;;  %v678_v11 = vunpack.c.h.bf16 %v843_v56  ;;  %v332_v22 = vsub.f32 %v677_v4, %v805_v7  ;;  %v395_v30 = vand.u32 2147483647, %v331_v15  ;;  %v402_v7 = vld [vmem:[#allocation2] sm:$0x1] }
  0x5f   :  { %v515_v37 = vsel %vm403_vm1, %v394_v23, 0.0 }
  0x60   :  { %v492_v27 = vadd.f32 %v491_v18, %v490_v21  ;;  %v681_v18 = vunpack.c.l.bf16 %v844_v6  ;;  %v809_v21 = vunpack.c.l.bf16 %v875_v12  ;;  %v333_v29 = vsub.f32 %v678_v11, %v806_v14 }
  0x61   :  { %v396_v36 = vand.u32 2147483647, %v332_v22  ;;  %v517_v43 = vsel %vm403_vm1, %v395_v30, 0.0 }
  0x62   :  { %v494_v35 = vadd.f32 %v493_v25, %v492_v27  ;;  %v682_v25 = vunpack.c.h.bf16 %v844_v6  ;;  %v397_v42 = vand.u32 2147483647, %v333_v29 }
  0x63   :  { %v519_v47 = vsel %vm403_vm1, %v396_v36, 0.0 }
  0x64   :  { %v496_v41 = vadd.f32 %v495_v32, %v494_v35  ;;  %v685_v32 = vunpack.c.l.bf16 %v845_v20  ;;  %v334_v35 = vsub.f32 %v681_v18, %v809_v21  ;;  %v521_v51 = vsel %vm403_vm1, %v397_v42, 0.0 }
  0x66   :  { %v498_v49 = vadd.f32 %v497_v39, %v496_v41  ;;  %v335_v41 = vsub.f32 %v682_v25, %v810_v28  ;;  %v336_v45 = vsub.f32 %v685_v32, %v813_v34 }
  0x68   :  { %v500_v55 = vadd.f32 %v499_v46, %v498_v49  ;;  %v398_v46 = vand.u32 2147483647, %v334_v35  ;;  %v337_v49 = vsub.f32 %v686_v38, %v814_v40  ;;  %v399_v50 = vand.u32 2147483647, %v335_v41 }
  0x6a   :  { %v502_v63 = vadd.f32 %v501_v53, %v500_v55  ;;  %v400_v53 = vand.u32 2147483647, %v336_v45  ;;  %v523_v54 = vsel %vm403_vm1, %v398_v46, 0.0  ;;  %v401_v56 = vand.u32 2147483647, %v337_v49 }
  0x6b   :  { %v525_v57 = vsel %vm403_vm1, %v399_v50, 0.0 }
  0x6c   :  { %v504_v5 = vadd.f32 %v503_v60, %v502_v63  ;;  %v527_v59 = vsel %vm403_vm1, %v400_v53, 0.0  ;;  %v529_v61 = vsel %vm403_vm1, %v401_v56, 0.0 }
  0x6e   :  { %v506_v13 = vadd.f32 %v505_v3, %v504_v5 }
  0x70   :  { %v508_v19 = vadd.f32 %v507_v10, %v506_v13 }
  0x72   :  { %v510_v27 = vadd.f32 %v509_v17, %v508_v19 }
  0x74   :  { %v512_v33 = vadd.f32 %v511_v24, %v510_v27 }
  0x76   :  { %v514_v39 = vadd.f32 %v513_v31, %v512_v33 }
  0x78   :  { %v516_v44 = vadd.f32 %v515_v37, %v514_v39 }
  0x7a   :  { %v518_v48 = vadd.f32 %v517_v43, %v516_v44 }
  0x7c   :  { %v520_v52 = vadd.f32 %v519_v47, %v518_v48 }
  0x7e   :  { %v522_v55 = vadd.f32 %v521_v51, %v520_v52 }
  0x80   :  { %v524_v58 = vadd.f32 %v523_v54, %v522_v55 }
  0x82   :  { %v526_v60 = vadd.f32 %v525_v57, %v524_v58 }
  0x84   :  { %v528_v62 = vadd.f32 %v527_v59, %v526_v60 }
  0x86   :  { %v530_v63 = vadd.f32 %v529_v61, %v528_v62 }
  0x88   :  { %531 = vadd.xlane.f32.xlu0 %v530_v63 }
 0x115   :  { %v532_v0 = vpop.xlane.xlu0 %531 }
 0x116   :  { %v533_v1 = vrot.slane %v532_v0, 4 }
 0x118   :  { %v534_v2 = vadd.f32 %v533_v1, %v532_v0 }
 0x11a   :  { %v535_v3 = vrot.slane %v534_v2, 2 }
 0x11c   :  { %v536_v4 = vadd.f32 %v535_v3, %v534_v2 }
 0x11e   :  { %v537_v5 = vrot.slane %v536_v4, 1 }
 0x120   :  { %v538_v6 = vadd.f32 %v537_v5, %v536_v4 }
 0x122   :  { %877 = vpush %v538_v6 }
 0x153   :  { %s878_s0 = spop %877 }
 0x154   :  { %v540_v8 = vstv %s878_s0 }
 0x155   :  { %v541_v9 = vmul.f32 9.536743e-07, %v540_v8 }
 0x157   :  { %v542_v10 = vadd.f32 %v541_v9, %v402_v7 }
 0x159   :  { %544 = vst.msk [vmem:[#allocation2] sm:$0x1] %vm16_vm0, %v542_v10 }
 0x15a   :  { %892 = shalt.err (!%p889_p4)
}
 0x15b   :  { %s893_s30 = scalar_lea.hbm %s1194_s2, 16 }
 0x15c   :  { %p894_p5 = scmp.ne.s32.totalorder %s1194_s2, %s893_s30  ;;  %p897_p6 = scmp.lt.u32.totalorder %s893_s30, %s1194_s2 }
 0x15e   :  { %p899_p7 = pnand %p897_p6, %p894_p5 }
 0x160   :  { %902 = shalt.err (!%p899_p7)
}
 0x161   :  { %554 = dma.vmem_to_hbm [thread:$0]  %s552_s25, 16, %s1194_s2, [#allocation3]  }
 0x162   :  { %903 = dma.done.wait [#allocation3], 16  }
 0x163   :  { %904 = vsyncadd [#allocation3], 4294967280 }
 0x164   :  { %558 = vsyncpa [#allocation3], 1 }

// kernel: vgg_loss.43
= control target key start
LH: loop header
LB: loop body
LE: loop exit
PB: predicated region body
PF: predicated region fallthrough
CT: control target
= control target key end

     0   :  { %vm129_vm0 = vcmask 519168   ;;  %s431_s0 = inlined_call_operand.vmem [shape: bf16[128,64], index: 0, kind: input, shape index: {}]   ;;  %s432_s1 = inlined_call_operand.vmem [shape: bf16[128,64], index: 1, kind: input, shape index: {}]   ;;  %s433_s2 = inlined_call_operand.vmem [shape: bf16[128,64], index: 2, kind: input, shape index: {}]   ;;  %s434_s3 = inlined_call_operand.vmem [shape: bf16[128,64], index: 3, kind: input, shape index: {}]   ;;  %s435_s4 = inlined_call_operand.vmem [shape: bf16[128,64], index: 4, kind: output, shape index: {}]  }
   0x1   :  { %v17_v0 = vld [vmem:[%s431_s0] sm:$0xf]  ;;  %v18_v5 = vld [vmem:[%s431_s0 + $0x4] sm:$0xf]  ;;  %v19_v11 = vld [vmem:[%s431_s0 + $0x8] sm:$0xf] }
   0x2   :  { %v33_v1 = vld [vmem:[%s432_s1] sm:$0xf]  ;;  %v34_v6 = vld [vmem:[%s432_s1 + $0x4] sm:$0xf]  ;;  %v35_v13 = vld [vmem:[%s432_s1 + $0x8] sm:$0xf] }
   0x3   :  { %v65_v2 = vld [vmem:[%s433_s2] sm:$0xf]  ;;  %v49_v3 = vmax.bf16 %v33_v1, %v17_v0  ;;  %v50_v8 = vmax.bf16 %v34_v6, %v18_v5  ;;  %v66_v9 = vld [vmem:[%s433_s2 + $0x4] sm:$0xf]  ;;  %v67_v14 = vld [vmem:[%s433_s2 + $0x8] sm:$0xf]  ;;  %v51_v17 = vmax.bf16 %v35_v13, %v19_v11 }
   0x4   :  { %v81_v4 = vld [vmem:[%s434_s3] sm:$0xf]  ;;  %v82_v10 = vld [vmem:[%s434_s3 + $0x4] sm:$0xf]  ;;  %v83_v15 = vld [vmem:[%s434_s3 + $0x8] sm:$0xf] }
   0x5   :  { %v97_v7 = vmax.bf16 %v81_v4, %v65_v2  ;;  %v98_v12 = vmax.bf16 %v82_v10, %v66_v9  ;;  %v99_v18 = vmax.bf16 %v83_v15, %v67_v14  ;;  %v20_v19 = vld [vmem:[%s431_s0 + $0xc] sm:$0xf]  ;;  %v21_v25 = vld [vmem:[%s431_s0 + $0x10] sm:$0xf]  ;;  %v22_v32 = vld [vmem:[%s431_s0 + $0x14] sm:$0xf] }
   0x6   :  { %v36_v20 = vld [vmem:[%s432_s1 + $0xc] sm:$0xf]  ;;  %v37_v26 = vld [vmem:[%s432_s1 + $0x10] sm:$0xf]  ;;  %v38_v34 = vld [vmem:[%s432_s1 + $0x14] sm:$0xf] }
   0x7   :  { %v113_v16 = vmax.bf16 %v97_v7, %v49_v3  ;;  %v68_v21 = vld [vmem:[%s433_s2 + $0xc] sm:$0xf]  ;;  %v114_v22 = vmax.bf16 %v98_v12, %v50_v8  ;;  %v52_v23 = vmax.bf16 %v36_v20, %v20_v19  ;;  %v115_v27 = vmax.bf16 %v99_v18, %v51_v17  ;;  %v69_v30 = vld [vmem:[%s433_s2 + $0x10] sm:$0xf]  ;;  %v70_v35 = vld [vmem:[%s433_s2 + $0x14] sm:$0xf] }
   0x8   :  { %v84_v24 = vld [vmem:[%s434_s3 + $0xc] sm:$0xf]  ;;  %v53_v29 = vmax.bf16 %v37_v26, %v21_v25  ;;  %v85_v31 = vld [vmem:[%s434_s3 + $0x10] sm:$0xf]  ;;  %v86_v36 = vld [vmem:[%s434_s3 + $0x14] sm:$0xf]  ;;  %v54_v38 = vmax.bf16 %v38_v34, %v22_v32 }
   0x9   :  { %130 = vst.msk [vmem:[%s435_s4] sm:$0xf] %vm129_vm0, %v113_v16  ;;  %v100_v28 = vmax.bf16 %v84_v24, %v68_v21  ;;  %131 = vst.msk [vmem:[%s435_s4 + $0x4] sm:$0xf] %vm129_vm0, %v114_v22  ;;  %v101_v33 = vmax.bf16 %v85_v31, %v69_v30  ;;  %v102_v39 = vmax.bf16 %v86_v36, %v70_v35  ;;  %v23_v40 = vld [vmem:[%s431_s0 + $0x18] sm:$0xf] }
   0xa   :  { %132 = vst.msk [vmem:[%s435_s4 + $0x8] sm:$0xf] %vm129_vm0, %v115_v27  ;;  %v39_v41 = vld [vmem:[%s432_s1 + $0x18] sm:$0xf]  ;;  %v24_v46 = vld [vmem:[%s431_s0 + $0x1c] sm:$0xf] }
   0xb   :  { %v116_v37 = vmax.bf16 %v100_v28, %v52_v23  ;;  %v71_v42 = vld [vmem:[%s433_s2 + $0x18] sm:$0xf]  ;;  %v117_v43 = vmax.bf16 %v101_v33, %v53_v29  ;;  %v55_v44 = vmax.bf16 %v39_v41, %v23_v40  ;;  %v40_v47 = vld [vmem:[%s432_s1 + $0x1c] sm:$0xf]  ;;  %v118_v48 = vmax.bf16 %v102_v39, %v54_v38  ;;  %v25_v53 = vld [vmem:[%s431_s0 + $0x20] sm:$0xf] }
   0xc   :  { %v87_v45 = vld [vmem:[%s434_s3 + $0x18] sm:$0xf]  ;;  %v56_v50 = vmax.bf16 %v40_v47, %v24_v46  ;;  %v72_v51 = vld [vmem:[%s433_s2 + $0x1c] sm:$0xf]  ;;  %v41_v55 = vld [vmem:[%s432_s1 + $0x20] sm:$0xf] }
   0xd   :  { %133 = vst.msk [vmem:[%s435_s4 + $0xc] sm:$0xf] %vm129_vm0, %v116_v37  ;;  %v103_v49 = vmax.bf16 %v87_v45, %v71_v42  ;;  %v88_v52 = vld [vmem:[%s434_s3 + $0x1c] sm:$0xf]  ;;  %134 = vst.msk [vmem:[%s435_s4 + $0x10] sm:$0xf] %vm129_vm0, %v117_v43  ;;  %v57_v59 = vmax.bf16 %v41_v55, %v25_v53 }
   0xe   :  { %v104_v54 = vmax.bf16 %v88_v52, %v72_v51  ;;  %v73_v56 = vld [vmem:[%s433_s2 + $0x20] sm:$0xf]  ;;  %135 = vst.msk [vmem:[%s435_s4 + $0x14] sm:$0xf] %vm129_vm0, %v118_v48  ;;  %v26_v61 = vld [vmem:[%s431_s0 + $0x24] sm:$0xf] }
   0xf   :  { %v89_v57 = vld [vmem:[%s434_s3 + $0x20] sm:$0xf]  ;;  %v119_v58 = vmax.bf16 %v103_v49, %v55_v44  ;;  %v42_v62 = vld [vmem:[%s432_s1 + $0x24] sm:$0xf]  ;;  %v27_v3 = vld [vmem:[%s431_s0 + $0x28] sm:$0xf] }
  0x10   :  { %v105_v60 = vmax.bf16 %v89_v57, %v73_v56  ;;  %v74_v63 = vld [vmem:[%s433_s2 + $0x24] sm:$0xf]  ;;  %v120_v0 = vmax.bf16 %v104_v54, %v56_v50  ;;  %v58_v1 = vmax.bf16 %v42_v62, %v26_v61  ;;  %v43_v4 = vld [vmem:[%s432_s1 + $0x28] sm:$0xf]  ;;  %v28_v10 = vld [vmem:[%s431_s0 + $0x2c] sm:$0xf] }
  0x11   :  { %v90_v2 = vld [vmem:[%s434_s3 + $0x24] sm:$0xf]  ;;  %136 = vst.msk [vmem:[%s435_s4 + $0x18] sm:$0xf] %vm129_vm0, %v119_v58  ;;  %v59_v7 = vmax.bf16 %v43_v4, %v27_v3  ;;  %v75_v8 = vld [vmem:[%s433_s2 + $0x28] sm:$0xf] }
  0x12   :  { %v121_v5 = vmax.bf16 %v105_v60, %v57_v59  ;;  %v106_v6 = vmax.bf16 %v90_v2, %v74_v63  ;;  %v91_v9 = vld [vmem:[%s434_s3 + $0x28] sm:$0xf]  ;;  %137 = vst.msk [vmem:[%s435_s4 + $0x1c] sm:$0xf] %vm129_vm0, %v120_v0  ;;  %v44_v12 = vld [vmem:[%s432_s1 + $0x2c] sm:$0xf] }
  0x13   :  { %v107_v11 = vmax.bf16 %v91_v9, %v75_v8  ;;  %v76_v13 = vld [vmem:[%s433_s2 + $0x2c] sm:$0xf]  ;;  %v60_v16 = vmax.bf16 %v44_v12, %v28_v10  ;;  %v29_v18 = vld [vmem:[%s431_s0 + $0x30] sm:$0xf]  ;;  %v30_v24 = vld [vmem:[%s431_s0 + $0x34] sm:$0xf] }
  0x14   :  { %v92_v14 = vld [vmem:[%s434_s3 + $0x2c] sm:$0xf]  ;;  %138 = vst.msk [vmem:[%s435_s4 + $0x20] sm:$0xf] %vm129_vm0, %v121_v5  ;;  %v122_v15 = vmax.bf16 %v106_v6, %v58_v1  ;;  %v45_v19 = vld [vmem:[%s432_s1 + $0x30] sm:$0xf] }
  0x15   :  { %v108_v17 = vmax.bf16 %v92_v14, %v76_v13  ;;  %v77_v20 = vld [vmem:[%s433_s2 + $0x30] sm:$0xf]  ;;  %v123_v21 = vmax.bf16 %v107_v11, %v59_v7  ;;  %v61_v22 = vmax.bf16 %v45_v19, %v29_v18  ;;  %v46_v25 = vld [vmem:[%s432_s1 + $0x34] sm:$0xf]  ;;  %v31_v31 = vld [vmem:[%s431_s0 + $0x38] sm:$0xf] }
  0x16   :  { %v93_v23 = vld [vmem:[%s434_s3 + $0x30] sm:$0xf]  ;;  %139 = vst.msk [vmem:[%s435_s4 + $0x24] sm:$0xf] %vm129_vm0, %v122_v15  ;;  %v62_v28 = vmax.bf16 %v46_v25, %v30_v24  ;;  %v78_v29 = vld [vmem:[%s433_s2 + $0x34] sm:$0xf] }
  0x17   :  { %v124_v26 = vmax.bf16 %v108_v17, %v60_v16  ;;  %v109_v27 = vmax.bf16 %v93_v23, %v77_v20  ;;  %v94_v30 = vld [vmem:[%s434_s3 + $0x34] sm:$0xf]  ;;  %140 = vst.msk [vmem:[%s435_s4 + $0x28] sm:$0xf] %vm129_vm0, %v123_v21  ;;  %v47_v33 = vld [vmem:[%s432_s1 + $0x38] sm:$0xf] }
  0x18   :  { %v110_v32 = vmax.bf16 %v94_v30, %v78_v29  ;;  %v79_v34 = vld [vmem:[%s433_s2 + $0x38] sm:$0xf]  ;;  %v63_v37 = vmax.bf16 %v47_v33, %v31_v31  ;;  %v32_v39 = vld [vmem:[%s431_s0 + $0x3c] sm:$0xf] }
  0x19   :  { %v95_v35 = vld [vmem:[%s434_s3 + $0x38] sm:$0xf]  ;;  %141 = vst.msk [vmem:[%s435_s4 + $0x2c] sm:$0xf] %vm129_vm0, %v124_v26  ;;  %v125_v36 = vmax.bf16 %v109_v27, %v61_v22  ;;  %v48_v40 = vld [vmem:[%s432_s1 + $0x3c] sm:$0xf] }
  0x1a   :  { %v111_v38 = vmax.bf16 %v95_v35, %v79_v34  ;;  %v80_v41 = vld [vmem:[%s433_s2 + $0x3c] sm:$0xf]  ;;  %v126_v42 = vmax.bf16 %v110_v32, %v62_v28  ;;  %v64_v43 = vmax.bf16 %v48_v40, %v32_v39 }
  0x1b   :  { %v96_v44 = vld [vmem:[%s434_s3 + $0x3c] sm:$0xf]  ;;  %142 = vst.msk [vmem:[%s435_s4 + $0x30] sm:$0xf] %vm129_vm0, %v125_v36 }
  0x1c   :  { %v127_v45 = vmax.bf16 %v111_v38, %v63_v37  ;;  %v112_v46 = vmax.bf16 %v96_v44, %v80_v41  ;;  %143 = vst.msk [vmem:[%s435_s4 + $0x34] sm:$0xf] %vm129_vm0, %v126_v42 }
  0x1e   :  { %144 = vst.msk [vmem:[%s435_s4 + $0x38] sm:$0xf] %vm129_vm0, %v127_v45  ;;  %v128_v47 = vmax.bf16 %v112_v46, %v64_v43 }
  0x20   :  { %145 = vst.msk [vmem:[%s435_s4 + $0x3c] sm:$0xf] %vm129_vm0, %v128_v47 }

// kernel: vgg_loss.74
= control target key start
LH: loop header
LB: loop body
LE: loop exit
PB: predicated region body
PF: predicated region fallthrough
CT: control target
= control target key end

     0   :  { %s343_s0 = inlined_call_operand.vmem [shape: bf16[128,128], index: 0, kind: input, shape index: {}]   ;;  %s344_s1 = inlined_call_operand.vmem [shape: bf16[128,128], index: 1, kind: input, shape index: {}]   ;;  %s345_s2 = inlined_call_operand.hbm [shape: f32[1,1], index: 2, kind: output, shape index: {}]  }
   0x1   :  { %v159_v0 = vld [vmem:[%s343_s0] sm:$0xff]   ;;  %v222_v1 = vld [vmem:[%s343_s0 + $0x8] sm:$0xff]   ;;  %v223_v7 = vld [vmem:[%s343_s0 + $0x10] sm:$0xff]  }
   0x2   :  { %v191_v2 = vld [vmem:[%s344_s1] sm:$0xff]   ;;  %v229_v3 = vld [vmem:[%s344_s1 + $0x8] sm:$0xff]   ;;  %v160_v4 = vunpack.c.l.bf16 %v159_v0  ;;  %v161_v5 = vunpack.c.h.bf16 %v159_v0  ;;  %v164_v6 = vunpack.c.l.bf16 %v222_v1 }
   0x3   :  { %v192_v8 = vunpack.c.l.bf16 %v191_v2  ;;  %v193_v9 = vunpack.c.h.bf16 %v191_v2  ;;  %v196_v10 = vunpack.c.l.bf16 %v229_v3 }
   0x4   :  { %7 = vsyncpa [#allocation3], 0  ;;  %v230_v11 = vld [vmem:[%s344_s1 + $0x10] sm:$0xff]   ;;  %v165_v12 = vunpack.c.h.bf16 %v222_v1  ;;  %v197_v13 = vunpack.c.h.bf16 %v229_v3  ;;  %v168_v14 = vunpack.c.l.bf16 %v223_v7  ;;  %v224_v15 = vld [vmem:[%s343_s0 + $0x18] sm:$0xff]   ;;  %v169_v21 = vunpack.c.h.bf16 %v223_v7 }
   0x5   :  { %v200_v16 = vunpack.c.l.bf16 %v230_v11  ;;  %v231_v17 = vld [vmem:[%s344_s1 + $0x18] sm:$0xff]   ;;  %v82_v18 = vsub.f32 %v160_v4, %v192_v8  ;;  %v83_v19 = vsub.f32 %v161_v5, %v193_v9  ;;  %v84_v20 = vsub.f32 %v164_v6, %v196_v10  ;;  %v225_v25 = vld [vmem:[%s343_s0 + $0x20] sm:$0xff]   ;;  %v226_v38 = vld [vmem:[%s343_s0 + $0x28] sm:$0xff]  }
   0x6   :  { %v201_v22 = vunpack.c.h.bf16 %v230_v11  ;;  %v85_v23 = vsub.f32 %v165_v12, %v197_v13  ;;  %v172_v24 = vunpack.c.l.bf16 %v224_v15  ;;  %v204_v26 = vunpack.c.l.bf16 %v231_v17  ;;  %v232_v32 = vld [vmem:[%s344_s1 + $0x20] sm:$0xff]   ;;  %v233_v44 = vld [vmem:[%s344_s1 + $0x28] sm:$0xff]   ;;  %v227_v50 = vld [vmem:[%s343_s0 + $0x30] sm:$0xff]  }
   0x7   :  { %v86_v27 = vsub.f32 %v168_v14, %v200_v16  ;;  %v98_v28 = vand.u32 2147483647, %v82_v18  ;;  %v99_v29 = vand.u32 2147483647, %v83_v19  ;;  %v100_v30 = vand.u32 2147483647, %v84_v20 }
   0x8   :  { %v173_v31 = vunpack.c.h.bf16 %v224_v15  ;;  %v205_v33 = vunpack.c.h.bf16 %v231_v17  ;;  %v87_v34 = vsub.f32 %v169_v21, %v201_v22  ;;  %v101_v35 = vand.u32 2147483647, %v85_v23  ;;  %v234_v56 = vld [vmem:[%s344_s1 + $0x30] sm:$0xff]   ;;  %v228_v62 = vld [vmem:[%s343_s0 + $0x38] sm:$0xff]  }
   0x9   :  { %v115_v36 = vadd.f32 %v99_v29, %v98_v28  ;;  %v176_v37 = vunpack.c.l.bf16 %v225_v25  ;;  %v208_v39 = vunpack.c.l.bf16 %v232_v32  ;;  %v88_v40 = vsub.f32 %v172_v24, %v204_v26  ;;  %v235_v4 = vld [vmem:[%s344_s1 + $0x38] sm:$0xff]   ;;  %s265_s1 = smov [#allocation2]  }
   0xa   :  { %v102_v41 = vand.u32 2147483647, %v86_v27  ;;  %v177_v43 = vunpack.c.h.bf16 %v225_v25  ;;  %v209_v45 = vunpack.c.h.bf16 %v232_v32  ;;  %v89_v46 = vsub.f32 %v173_v31, %v205_v33  ;;  %s150_s13 = sshll.u32 %s265_s1, 4  ;;  %s151_s13 = int_to_ptr.vmem [resolvable:$true] %s150_s13 }
   0xb   :  { %v116_v42 = vadd.f32 %v115_v36, %v100_v30  ;;  %v103_v47 = vand.u32 2147483647, %v87_v34  ;;  %v180_v49 = vunpack.c.l.bf16 %v226_v38  ;;  %v212_v51 = vunpack.c.l.bf16 %v233_v44  ;;  %s240_s14 = scalar_lea.vmem %s151_s13, 16  ;;  %s244_s15 = scalar_lea.vmem %s151_s13, 32 }
   0xc   :  { %v90_v52 = vsub.f32 %v176_v37, %v208_v39  ;;  %v104_v53 = vand.u32 2147483647, %v88_v40  ;;  %v181_v55 = vunpack.c.h.bf16 %v226_v38  ;;  %v213_v57 = vunpack.c.h.bf16 %v233_v44  ;;  %p241_p0 = scmp.ne.s32.totalorder %s151_s13, %s240_s14  ;;  %p245_p1 = scmp.lt.s32.totalorder %s151_s13, %s151_s13 }
   0xd   :  { %v117_v48 = vadd.f32 %v116_v42, %v101_v35  ;;  %v91_v58 = vsub.f32 %v177_v43, %v209_v45  ;;  %v105_v59 = vand.u32 2147483647, %v89_v46  ;;  %v184_v61 = vunpack.c.l.bf16 %v227_v50  ;;  %p246_p2 = scmp.lt.s32.totalorder %s244_s15, %s240_s14 }
   0xe   :  { %v216_v63 = vunpack.c.l.bf16 %v234_v56  ;;  %v92_v0 = vsub.f32 %v180_v49, %v212_v51  ;;  %v106_v1 = vand.u32 2147483647, %v90_v52  ;;  %v185_v3 = vunpack.c.h.bf16 %v227_v50 }
   0xf   :  { %v118_v54 = vadd.f32 %v117_v48, %v102_v41  ;;  %v217_v5 = vunpack.c.h.bf16 %v234_v56  ;;  %v93_v6 = vsub.f32 %v181_v55, %v213_v57  ;;  %v107_v7 = vand.u32 2147483647, %v91_v58  ;;  %p247_p3 = por %p246_p2, %p245_p1 }
  0x10   :  { %v188_v9 = vunpack.c.l.bf16 %v228_v62  ;;  %v220_v10 = vunpack.c.l.bf16 %v235_v4  ;;  %v94_v11 = vsub.f32 %v184_v61, %v216_v63  ;;  %v108_v12 = vand.u32 2147483647, %v92_v0 }
  0x11   :  { %v119_v60 = vadd.f32 %v118_v54, %v103_v47  ;;  %v189_v14 = vunpack.c.h.bf16 %v228_v62  ;;  %v221_v15 = vunpack.c.h.bf16 %v235_v4  ;;  %v95_v16 = vsub.f32 %v185_v3, %v217_v5  ;;  %p248_p4 = pnand %p247_p3, %p241_p0 }
  0x12   :  { %v109_v17 = vand.u32 2147483647, %v93_v6  ;;  %v96_v19 = vsub.f32 %v188_v9, %v220_v10  ;;  %v110_v20 = vand.u32 2147483647, %v94_v11  ;;  %vm16_vm0 = vcmask 0  }
  0x13   :  { %v120_v2 = vadd.f32 %v119_v60, %v104_v53  ;;  %v97_v22 = vsub.f32 %v189_v14, %v221_v15  ;;  %v111_v23 = vand.u32 2147483647, %v95_v16  ;;  %v264_v31 = vmov 0.0  }
  0x14   :  { %v112_v25 = vand.u32 2147483647, %v96_v19  ;;  %17 = vst.msk [vmem:[#allocation2] sm:$0x1] %vm16_vm0, %v264_v31 }
  0x15   :  { %v121_v8 = vadd.f32 %v120_v2, %v105_v59  ;;  %v113_v27 = vand.u32 2147483647, %v97_v22 }
  0x17   :  { %v122_v13 = vadd.f32 %v121_v8, %v106_v1 }
  0x19   :  { %v123_v18 = vadd.f32 %v122_v13, %v107_v7 }
  0x1b   :  { %v124_v21 = vadd.f32 %v123_v18, %v108_v12  ;;  %v114_v39 = vld [vmem:[#allocation2] sm:$0x1] }
  0x1d   :  { %v125_v24 = vadd.f32 %v124_v21, %v109_v17 }
  0x1f   :  { %v126_v26 = vadd.f32 %v125_v24, %v110_v20 }
  0x21   :  { %v127_v28 = vadd.f32 %v126_v26, %v111_v23 }
  0x23   :  { %v128_v29 = vadd.f32 %v127_v28, %v112_v25 }
  0x25   :  { %v129_v30 = vadd.f32 %v128_v29, %v113_v27 }
  0x27   :  { %130 = vadd.xlane.f32.xlu0 %v129_v30 }
  0xb4   :  { %v131_v32 = vpop.xlane.xlu0 %130 }
  0xb5   :  { %v132_v33 = vrot.slane %v131_v32, 4 }
  0xb7   :  { %v133_v34 = vadd.f32 %v132_v33, %v131_v32 }
  0xb9   :  { %v134_v35 = vrot.slane %v133_v34, 2 }
  0xbb   :  { %v135_v36 = vadd.f32 %v134_v35, %v133_v34 }
  0xbd   :  { %v136_v37 = vrot.slane %v135_v36, 1 }
  0xbf   :  { %v137_v38 = vadd.f32 %v136_v37, %v135_v36 }
  0xc1   :  { %236 = vpush %v137_v38 }
  0xf2   :  { %s237_s0 = spop %236 }
  0xf3   :  { %v139_v40 = vstv %s237_s0 }
  0xf4   :  { %v140_v41 = vmul.f32 3.8146973e-06, %v139_v40 }
  0xf6   :  { %v141_v42 = vadd.f32 %v140_v41, %v114_v39 }
  0xf8   :  { %143 = vst.msk [vmem:[#allocation2] sm:$0x1] %vm16_vm0, %v141_v42 }
  0xf9   :  { %251 = shalt.err (!%p248_p4)
}
  0xfa   :  { %s252_s18 = scalar_lea.hbm %s345_s2, 16 }
  0xfb   :  { %p253_p5 = scmp.ne.s32.totalorder %s345_s2, %s252_s18  ;;  %p256_p6 = scmp.lt.u32.totalorder %s252_s18, %s345_s2 }
  0xfd   :  { %p258_p7 = pnand %p256_p6, %p253_p5 }
  0xff   :  { %261 = shalt.err (!%p258_p7)
}
 0x100   :  { %153 = dma.vmem_to_hbm [thread:$0]  %s151_s13, 16, %s345_s2, [#allocation3]  }
 0x101   :  { %262 = dma.done.wait [#allocation3], 16  }
 0x102   :  { %263 = vsyncadd [#allocation3], 4294967280 }
 0x103   :  { %157 = vsyncpa [#allocation3], 1 }

// kernel: vgg_loss.44
= control target key start
LH: loop header
LB: loop body
LE: loop exit
PB: predicated region body
PF: predicated region fallthrough
CT: control target
= control target key end

     0   :  { %s958_s12 = smov 0   ;;  %s960_s13 = smov 0   ;;  %s1048_s0 = inlined_call_operand.vmem [shape: bf16[9,128,64], index: 0, kind: input, shape index: {}]   ;;  %s1049_s1 = inlined_call_operand.vmem [shape: bf16[9,64,128], index: 1, kind: input, shape index: {}]   ;;  %s1050_s2 = inlined_call_operand.vmem [shape: bf16[1,128], index: 2, kind: input, shape index: {}]   ;;  %s1051_s3 = inlined_call_operand.vmem [shape: bf16[128,128], index: 3, kind: output, shape index: {}]  }
   0x1   :  { %s962_s14 = smov 0  }
   0x2 LB: > { %s22_s15 = sadd.s32 1, %s931_s13  ;;  %p720_p0 = scmp.ge.s32.totalorder %s935_s14, 1  ;;  %s935_s14 = sphi %s962_s14, %s13_s14   ;;  %s931_s13 = sphi %s960_s13, %s1053_s13   ;;  %s927_s12 = sphi %s958_s12, %s1052_s12  }
   0x3   : > { %p23_p1 = scmp.ge.s32.totalorder %s22_s15, 9  ;;  %p166_p2 = scmp.lt.s32.totalorder %s935_s14, 10 }
   0x5   : > { %s1055_s15 = smov (%p23_p1, %s22_s15), 0  ;;  %p167_p3 = pnand %p720_p0, %p166_p2 }
   0x6   : > { %p200_p4 = scmp.lt.s32.totalorder (!%p167_p3), %s927_s12, 8  ;;  %p725_p5 = scmp.ne.s32.totalorder (!%p167_p3), %s927_s12, 0 }
   0x7   : > { %170 = sbr.rel (%p167_p3) target bundleno = 282 (0x11a), region = 32 }
   0xe   : > { %s201_s16 = scalar_select %p200_p4, %s927_s12, 8 }
   0xf   : > { %224 = sbr.rel (%p725_p5) target bundleno = 24 (0x18), region = 36  ;;  %v937_v0 = vmov (!%p725_p5), 0.0  }
  0x10   : > { %s767_s17 = sshll.u32 %s201_s16, 6  ;;  %s768_s18 = sshll.u32 %s201_s16, 5  ;;  %225 = vst [vmem:[#allocation2] sm:$0xff] (!%p725_p5), %v937_v0  ;;  %226 = vst [vmem:[#allocation2 + $0x8] sm:$0xff] (!%p725_p5), %v937_v0 }
  0x11   : > { %s983_s21 = scalar_lea.vmem %s1048_s0, %s767_s17  ;;  %s988_s24 = scalar_lea.vmem %s1049_s1, %s768_s18  ;;  %227 = vst [vmem:[#allocation2 + $0x10] sm:$0xff] (!%p725_p5), %v937_v0  ;;  %228 = vst [vmem:[#allocation2 + $0x18] sm:$0xff] (!%p725_p5), %v937_v0 }
  0x12   : > { %229 = vst [vmem:[#allocation2 + $0x20] sm:$0xff] (!%p725_p5), %v937_v0  ;;  %230 = vst [vmem:[#allocation2 + $0x28] sm:$0xff] (!%p725_p5), %v937_v0 }
  0x13   : > { %231 = vst [vmem:[#allocation2 + $0x30] sm:$0xff] (!%p725_p5), %v937_v0  ;;  %232 = vst [vmem:[#allocation2 + $0x38] sm:$0xff] (!%p725_p5), %v937_v0 }
  0x14   : > { %233 = vst [vmem:[#allocation2 + $0x40] sm:$0xff] (!%p725_p5), %v937_v0  ;;  %234 = vst [vmem:[#allocation2 + $0x48] sm:$0xff] (!%p725_p5), %v937_v0 }
  0x15   : > { %235 = vst [vmem:[#allocation2 + $0x50] sm:$0xff] (!%p725_p5), %v937_v0  ;;  %236 = vst [vmem:[#allocation2 + $0x58] sm:$0xff] (!%p725_p5), %v937_v0 }
  0x16   : > { %237 = vst [vmem:[#allocation2 + $0x60] sm:$0xff] %v937_v0  ;;  %238 = vst [vmem:[#allocation2 + $0x68] sm:$0xff] %v937_v0 }
  0x17   : > { %239 = vst [vmem:[#allocation2 + $0x70] sm:$0xff] %v937_v0  ;;  %240 = vst [vmem:[#allocation2 + $0x78] sm:$0xff] %v937_v0 }
  0x18 PF: > { %v901_v1 = vld [vmem:[%s988_s24] sm:$0xff]   ;;  %v902_v2 = vld [vmem:[%s988_s24 + $0x8] sm:$0xff]   ;;  %v903_v3 = vld [vmem:[%s988_s24 + $0x10] sm:$0xff]   ;;  %vm345_vm0 = vcmask 523264   ;;  %p746_p6 = scmp.ne.s32.totalorder %s927_s12, 8 }
  0x19   : > { %844 = vmatprep.subr.bf16.mxu0 %v901_v1  ;;  %868 = vmatprep.subr.bf16.mxu1 %v901_v1  ;;  %v905_v4 = vld [vmem:[%s983_s21] sm:$0xff]   ;;  %v904_v6 = vld [vmem:[%s988_s24 + $0x18] sm:$0xff]   ;;  %v907_v7 = vld [vmem:[%s983_s21 + $0x8] sm:$0xff]   ;;  %v521_v62 = vlaneseq (!%p746_p6) }
  0x1a   : > { %845 = vmatpush3.bf16.msra.mxu0 %v901_v1  ;;  %872 = vmatpush3.bf16.msra.mxu1 %v901_v1  ;;  %v906_v5 = vld [vmem:[%s983_s21 + $0x20] sm:$0xff]   ;;  %v908_v8 = vld [vmem:[%s983_s21 + $0x28] sm:$0xff]   ;;  %v909_v9 = vld [vmem:[%s983_s21 + $0x10] sm:$0xff]  }
  0x1b   : > { %846 = vmatprep.subr.bf16.mxu0 %v902_v2  ;;  %869 = vmatprep.subr.bf16.mxu1 %v902_v2  ;;  %v910_v10 = vld [vmem:[%s983_s21 + $0x30] sm:$0xff]   ;;  %v911_v11 = vld [vmem:[%s983_s21 + $0x18] sm:$0xff]   ;;  %v241_v15 = vld [vmem:[#allocation2] sm:$0xff]  ;;  %v522_v0 = vshrl.u32 (!%p746_p6), %v521_v62, 7 }
  0x1c   : > { %852 = vmatprep.mubr.msk.bf16.mxu0 %vm345_vm0, %v905_v4  ;;  %860 = vmatprep.mubr.msk.bf16.mxu1 %vm345_vm0, %v906_v5  ;;  %v912_v12 = vld [vmem:[%s983_s21 + $0x38] sm:$0xff]   ;;  %v243_v13 = vld [vmem:[#allocation2 + $0x10] sm:$0xff]  ;;  %v242_v25 = vld [vmem:[#allocation2 + $0x8] sm:$0xff] }
  0x1d   : > { %v249_v16 = vld [vmem:[#allocation2 + $0x40] sm:$0xff]  ;;  %v244_v19 = vld [vmem:[#allocation2 + $0x18] sm:$0xff]  ;;  %v250_v26 = vld [vmem:[#allocation2 + $0x48] sm:$0xff] }
  0x1e   : > { %847 = vmatpush3.bf16.msra.mxu0 %v902_v2  ;;  %873 = vmatpush3.bf16.msra.mxu1 %v902_v2  ;;  %v251_v14 = vld [vmem:[#allocation2 + $0x50] sm:$0xff]  ;;  %v252_v20 = vld [vmem:[#allocation2 + $0x58] sm:$0xff]  ;;  %v245_v39 = vld [vmem:[#allocation2 + $0x20] sm:$0xff] }
  0x1f   : > { %848 = vmatprep.subr.bf16.mxu0 %v903_v3  ;;  %870 = vmatprep.subr.bf16.mxu1 %v903_v3  ;;  %v247_v37 = vld [vmem:[#allocation2 + $0x30] sm:$0xff]  ;;  %v253_v40 = vld [vmem:[#allocation2 + $0x60] sm:$0xff]  ;;  %v248_v43 = vld [vmem:[#allocation2 + $0x38] sm:$0xff] }
  0x20   : > { %v255_v38 = vld [vmem:[#allocation2 + $0x70] sm:$0xff]  ;;  %v256_v44 = vld [vmem:[#allocation2 + $0x78] sm:$0xff]  ;;  %v246_v49 = vld [vmem:[#allocation2 + $0x28] sm:$0xff] }
  0x21   : > { %v254_v50 = vld [vmem:[#allocation2 + $0x68] sm:$0xff]  ;;  %v519_v61 = vld [vmem:[%s1050_s2] sm:$0x1] (!%p746_p6) }
  0x22   : > { %849 = vmatpush3.bf16.msra.mxu0 %v903_v3  ;;  %874 = vmatpush3.bf16.msra.mxu1 %v903_v3  ;;  %v520_v63 = vunpack.c.l.bf16 (!%p746_p6), %v519_v61  ;;  %v523_v3 = vsub.s32 (!%p746_p6), 0, %v522_v0 }
  0x23   : > { %850 = vmatprep.subr.bf16.mxu0 %v904_v6  ;;  %871 = vmatprep.subr.bf16.mxu1 %v904_v6 }
  0x26   : > { %851 = vmatpush3.bf16.msra.mxu0 %v904_v6  ;;  %875 = vmatpush3.bf16.msra.mxu1 %v904_v6 }
  0x29   : > { %853 = vmatmul.mubr.msk.bf16.vlgmr.msra.gmra.mrb[0].mxu0 %vm345_vm0, %v907_v7  ;;  %861 = vmatmul.mubr.msk.bf16.vlgmr.msra.gmra.mrb[0].mxu1 %vm345_vm0, %v908_v8  ;;  %v524_v7 = vrot.slane (!%p746_p6), %v520_v63, %v523_v3 }
  0x2a   : > { %856 = vmatprep.mubr.msk.bf16.mxu0 %vm345_vm0, %v909_v9  ;;  %864 = vmatprep.mubr.msk.bf16.mxu1 %vm345_vm0, %v910_v10 }
  0x31   : > { %857 = vmatmul.mubr.msk.bf16.gmra.mrb[4].mxu0 %vm345_vm0, %v911_v11  ;;  %865 = vmatmul.mubr.msk.bf16.gmra.mrb[4].mxu1 %vm345_vm0, %v912_v12 }
  0xfc   : > { %v854_v17 = vpop.f32.mrb[0].mxu0  ;;  %v862_v18 = vpop.f32.mrb[0].mxu1 }
  0xfd   : > { %v469_v21 = vadd.f32 %v854_v17, %v243_v13  ;;  %v477_v22 = vadd.f32 %v862_v18, %v251_v14  ;;  %v404_v23 = vpop.f32.mrb[1].mxu0  ;;  %v436_v24 = vpop.f32.mrb[1].mxu1 }
  0xfe   : > { %v467_v27 = vadd.f32 %v404_v23, %v241_v15  ;;  %v475_v28 = vadd.f32 %v436_v24, %v249_v16  ;;  %v855_v29 = vpop.f32.mrb[2].mxu0  ;;  %v863_v30 = vpop.f32.mrb[2].mxu1 }
  0xff   : > { %485 = vst [vmem:[#allocation2 + $0x10] sm:$0xff] %v469_v21  ;;  %493 = vst [vmem:[#allocation2 + $0x50] sm:$0xff] %v477_v22  ;;  %v470_v31 = vadd.f32 %v855_v29, %v244_v19  ;;  %v478_v32 = vadd.f32 %v863_v30, %v252_v20  ;;  %v407_v33 = vpop.f32.mrb[3].mxu0  ;;  %v439_v34 = vpop.f32.mrb[3].mxu1 }
 0x100   : > { %483 = vst [vmem:[#allocation2] sm:$0xff] %v467_v27  ;;  %491 = vst [vmem:[#allocation2 + $0x40] sm:$0xff] %v475_v28  ;;  %v468_v35 = vadd.f32 %v407_v33, %v242_v25  ;;  %v476_v36 = vadd.f32 %v439_v34, %v250_v26 }
 0x101   : > { %486 = vst [vmem:[#allocation2 + $0x18] sm:$0xff] %v470_v31  ;;  %494 = vst [vmem:[#allocation2 + $0x58] sm:$0xff] %v478_v32 }
 0x102   : > { %484 = vst [vmem:[#allocation2 + $0x8] sm:$0xff] %v468_v35  ;;  %492 = vst [vmem:[#allocation2 + $0x48] sm:$0xff] %v476_v36 }
 0x104   : > { %v858_v41 = vpop.f32.mrb[4].mxu0  ;;  %v866_v42 = vpop.f32.mrb[4].mxu1  ;;  %502 = sbr.rel (%p746_p6) target bundleno = 282 (0x11a), region = 40 }
 0x105   : > { %v473_v45 = vadd.f32 %v858_v41, %v247_v37  ;;  %v481_v46 = vadd.f32 %v866_v42, %v255_v38  ;;  %v420_v47 = vpop.f32.mrb[5].mxu0  ;;  %v452_v48 = vpop.f32.mrb[5].mxu1 }
 0x106   : > { %v471_v51 = vadd.f32 %v420_v47, %v245_v39  ;;  %v479_v52 = vadd.f32 %v452_v48, %v253_v40  ;;  %v859_v53 = vpop.f32.mrb[6].mxu0  ;;  %v867_v54 = vpop.f32.mrb[6].mxu1  ;;  %v505_v4 = vld [vmem:[#allocation2 + $0x10] sm:$0xff] (!%p746_p6) }
 0x107   : > { %489 = vst [vmem:[#allocation2 + $0x30] sm:$0xff] %v473_v45  ;;  %497 = vst [vmem:[#allocation2 + $0x70] sm:$0xff] %v481_v46  ;;  %v474_v55 = vadd.f32 %v859_v53, %v248_v43  ;;  %v482_v56 = vadd.f32 %v867_v54, %v256_v44  ;;  %v423_v57 = vpop.f32.mrb[7].mxu0  ;;  %v455_v58 = vpop.f32.mrb[7].mxu1  ;;  %v503_v1 = vld [vmem:[#allocation2] sm:$0xff] (!%p746_p6)  ;;  %v527_v13 = vadd.f32 (!%p746_p6), %v524_v7, %v505_v4  ;;  %v513_v25 = vld [vmem:[#allocation2 + $0x50] sm:$0xff] (!%p746_p6) }
 0x108   : > { %487 = vst [vmem:[#allocation2 + $0x20] sm:$0xff] %v471_v51  ;;  %495 = vst [vmem:[#allocation2 + $0x60] sm:$0xff] %v479_v52  ;;  %v472_v59 = vadd.f32 %v423_v57, %v246_v49  ;;  %v480_v60 = vadd.f32 %v455_v58, %v254_v50  ;;  %v506_v5 = vld [vmem:[#allocation2 + $0x18] sm:$0xff] (!%p746_p6)  ;;  %v525_v11 = vadd.f32 (!%p746_p6), %v524_v7, %v503_v1  ;;  %v511_v19 = vld [vmem:[#allocation2 + $0x40] sm:$0xff] (!%p746_p6) }
 0x109   : > { %490 = vst [vmem:[#allocation2 + $0x38] sm:$0xff] %v474_v55  ;;  %498 = vst [vmem:[#allocation2 + $0x78] sm:$0xff] %v482_v56  ;;  %v504_v2 = vld [vmem:[#allocation2 + $0x8] sm:$0xff] (!%p746_p6)  ;;  %v528_v14 = vadd.f32 (!%p746_p6), %v524_v7, %v506_v5  ;;  %v543_v23 = vmax.f32 (!%p746_p6), %v527_v13, 0.0  ;;  %v514_v26 = vld [vmem:[#allocation2 + $0x58] sm:$0xff] (!%p746_p6)  ;;  %v533_v35 = vadd.f32 (!%p746_p6), %v524_v7, %v511_v19  ;;  %v535_v41 = vadd.f32 (!%p746_p6), %v524_v7, %v513_v25 }
 0x10a   : > { %488 = vst [vmem:[#allocation2 + $0x28] sm:$0xff] %v472_v59  ;;  %496 = vst [vmem:[#allocation2 + $0x68] sm:$0xff] %v480_v60  ;;  %v526_v12 = vadd.f32 (!%p746_p6), %v524_v7, %v504_v2  ;;  %v512_v20 = vld [vmem:[#allocation2 + $0x48] sm:$0xff] (!%p746_p6)  ;;  %v541_v21 = vmax.f32 (!%p746_p6), %v525_v11, 0.0  ;;  %v536_v42 = vadd.f32 (!%p746_p6), %v524_v7, %v514_v26 }
 0x10b   : > { %v544_v24 = vmax.f32 %v528_v14, 0.0  ;;  %v534_v36 = vadd.f32 %v524_v7, %v512_v20  ;;  %v549_v43 = vmax.f32 %v533_v35, 0.0  ;;  %v551_v47 = vmax.f32 %v535_v41, 0.0 }
 0x10c   : > { %v542_v22 = vmax.f32 %v526_v12, 0.0  ;;  %v552_v48 = vmax.f32 %v536_v42, 0.0 }
 0x10d   : > { %v793_v34 = vpack.c.bf16 %v544_v24, %v543_v23  ;;  %v550_v44 = vmax.f32 %v534_v36, 0.0 }
 0x10e   : > { %v509_v9 = vld [vmem:[#allocation2 + $0x30] sm:$0xff]  ;;  %v788_v33 = vpack.c.bf16 %v542_v22, %v541_v21  ;;  %v813_v54 = vpack.c.bf16 %v552_v48, %v551_v47 }
 0x10f   : > { %v507_v6 = vld [vmem:[#allocation2 + $0x20] sm:$0xff]  ;;  %v531_v17 = vadd.f32 %v524_v7, %v509_v9  ;;  %v517_v37 = vld [vmem:[#allocation2 + $0x70] sm:$0xff]  ;;  %825 = vst [vmem:[%s1051_s3 + $0x8] sm:$0xff] %v793_v34   ;;  %v808_v51 = vpack.c.bf16 %v550_v44, %v549_v43 }
 0x110   : > { %v510_v10 = vld [vmem:[#allocation2 + $0x38] sm:$0xff]  ;;  %v529_v15 = vadd.f32 %v524_v7, %v507_v6  ;;  %v515_v31 = vld [vmem:[#allocation2 + $0x60] sm:$0xff]  ;;  %789 = vst [vmem:[%s1051_s3] sm:$0xff] %v788_v33   ;;  %v539_v49 = vadd.f32 %v524_v7, %v517_v37  ;;  %829 = vst [vmem:[%s1051_s3 + $0x28] sm:$0xff] %v813_v54  }
 0x111   : > { %v508_v8 = vld [vmem:[#allocation2 + $0x28] sm:$0xff]  ;;  %v532_v18 = vadd.f32 %v524_v7, %v510_v10  ;;  %v547_v29 = vmax.f32 %v531_v17, 0.0  ;;  %v518_v38 = vld [vmem:[#allocation2 + $0x78] sm:$0xff]  ;;  %v537_v45 = vadd.f32 %v524_v7, %v515_v31  ;;  %828 = vst [vmem:[%s1051_s3 + $0x20] sm:$0xff] %v808_v51  }
 0x112   : > { %v530_v16 = vadd.f32 %v524_v7, %v508_v8  ;;  %v545_v27 = vmax.f32 %v529_v15, 0.0  ;;  %v516_v32 = vld [vmem:[#allocation2 + $0x68] sm:$0xff]  ;;  %v540_v50 = vadd.f32 %v524_v7, %v518_v38  ;;  %v555_v55 = vmax.f32 %v539_v49, 0.0 }
 0x113   : > { %v548_v30 = vmax.f32 %v532_v18, 0.0  ;;  %v538_v46 = vadd.f32 %v524_v7, %v516_v32  ;;  %v553_v52 = vmax.f32 %v537_v45, 0.0 }
 0x114   : > { %v546_v28 = vmax.f32 %v530_v16, 0.0  ;;  %v556_v56 = vmax.f32 %v540_v50, 0.0 }
 0x115   : > { %v803_v40 = vpack.c.bf16 %v548_v30, %v547_v29  ;;  %v554_v53 = vmax.f32 %v538_v46, 0.0 }
 0x116   : > { %v798_v39 = vpack.c.bf16 %v546_v28, %v545_v27  ;;  %v823_v58 = vpack.c.bf16 %v556_v56, %v555_v55 }
 0x117   : > { %827 = vst [vmem:[%s1051_s3 + $0x18] sm:$0xff] %v803_v40   ;;  %v818_v57 = vpack.c.bf16 %v554_v53, %v553_v52 }
 0x118   : > { %826 = vst [vmem:[%s1051_s3 + $0x10] sm:$0xff] %v798_v39   ;;  %831 = vst [vmem:[%s1051_s3 + $0x38] sm:$0xff] %v823_v58  }
 0x119   : > { %830 = vst [vmem:[%s1051_s3 + $0x30] sm:$0xff] %v818_v57  }
 0x11a PF: > { %s13_s14 = sadd.s32 1, %s935_s14   ;;  %s1052_s12 = smov %s931_s13 }
 0x11b   : > { %p10_p7 = scmp.ge.s32.totalorder %s13_s14, 11   ;;  %s1053_s13 = smov %s1055_s15 }
 0x11d   :  { %12 = sbr.rel (!%p10_p7) target bundleno = 2 (0x2), region = 73 }

// kernel: vgg_loss.42
= control target key start
LH: loop header
LB: loop body
LE: loop exit
PB: predicated region body
PF: predicated region fallthrough
CT: control target
= control target key end

     0   :  { %s2161_s12 = smov 0   ;;  %s2163_s13 = smov 0   ;;  %s2789_s0 = inlined_call_operand.vmem [shape: bf16[9,512,64], index: 0, kind: input, shape index: {}]   ;;  %s2790_s1 = inlined_call_operand.vmem [shape: bf16[9,64,64], index: 1, kind: input, shape index: {}]   ;;  %s2791_s2 = inlined_call_operand.vmem [shape: bf16[1,64], index: 2, kind: input, shape index: {}]   ;;  %s2792_s3 = inlined_call_operand.vmem [shape: bf16[512,64], index: 3, kind: output, shape index: {}]  }
   0x1   :  { %s2165_s14 = smov 0  }
   0x2 LB: > { %s22_s15 = sadd.s32 1, %s2134_s13  ;;  %p1730_p0 = scmp.ge.s32.totalorder %s2138_s14, 1  ;;  %s2138_s14 = sphi %s2165_s14, %s13_s14   ;;  %s2134_s13 = sphi %s2163_s13, %s2794_s13   ;;  %s2130_s12 = sphi %s2161_s12, %s2793_s12  }
   0x3   : > { %p23_p1 = scmp.ge.s32.totalorder %s22_s15, 9  ;;  %p166_p2 = scmp.lt.s32.totalorder %s2138_s14, 10 }
   0x5   : > { %s2796_s15 = smov (%p23_p1, %s22_s15), 0  ;;  %p167_p3 = pnand %p1730_p0, %p166_p2 }
   0x6   : > { %p200_p4 = scmp.lt.s32.totalorder (!%p167_p3), %s2130_s12, 8  ;;  %p1735_p5 = scmp.ne.s32.totalorder (!%p167_p3), %s2130_s12, 0 }
   0x7   : > { %170 = sbr.rel (%p167_p3) target bundleno = 384 (0x180), region = 32 }
   0xe   : > { %s201_s16 = scalar_select %p200_p4, %s2130_s12, 8 }
   0xf   : > { %224 = sbr.rel (%p1735_p5) target bundleno = 48 (0x30), region = 36  ;;  %vm225_vm0 = vcmask (!%p1735_p5), 523264   ;;  %v2140_v0 = vmov (!%p1735_p5), 0.0  }
  0x10   : > { %s1873_s17 = sshll.u32 %s201_s16, 8  ;;  %s1874_s18 = sshll.u32 %s201_s16, 5  ;;  %226 = vst.msk [vmem:[#allocation2] sm:$0xff] (!%p1735_p5), %vm225_vm0, %v2140_v0  ;;  %227 = vst.msk [vmem:[#allocation2 + $0x8] sm:$0xff] (!%p1735_p5), %vm225_vm0, %v2140_v0 }
  0x11   : > { %s2186_s21 = scalar_lea.vmem %s2789_s0, %s1873_s17  ;;  %s2191_s24 = scalar_lea.vmem %s2790_s1, %s1874_s18  ;;  %228 = vst.msk [vmem:[#allocation2 + $0x10] sm:$0xff] (!%p1735_p5), %vm225_vm0, %v2140_v0  ;;  %229 = vst.msk [vmem:[#allocation2 + $0x18] sm:$0xff] (!%p1735_p5), %vm225_vm0, %v2140_v0 }
  0x12   : > { %230 = vst.msk [vmem:[#allocation2 + $0x20] sm:$0xff] (!%p1735_p5), %vm225_vm0, %v2140_v0  ;;  %231 = vst.msk [vmem:[#allocation2 + $0x28] sm:$0xff] (!%p1735_p5), %vm225_vm0, %v2140_v0 }
  0x13   : > { %232 = vst.msk [vmem:[#allocation2 + $0x30] sm:$0xff] (!%p1735_p5), %vm225_vm0, %v2140_v0  ;;  %233 = vst.msk [vmem:[#allocation2 + $0x38] sm:$0xff] (!%p1735_p5), %vm225_vm0, %v2140_v0 }
  0x14   : > { %234 = vst.msk [vmem:[#allocation2 + $0x40] sm:$0xff] (!%p1735_p5), %vm225_vm0, %v2140_v0  ;;  %235 = vst.msk [vmem:[#allocation2 + $0x48] sm:$0xff] (!%p1735_p5), %vm225_vm0, %v2140_v0 }
  0x15   : > { %236 = vst.msk [vmem:[#allocation2 + $0x50] sm:$0xff] (!%p1735_p5), %vm225_vm0, %v2140_v0  ;;  %237 = vst.msk [vmem:[#allocation2 + $0x58] sm:$0xff] (!%p1735_p5), %vm225_vm0, %v2140_v0 }
  0x16   : > { %238 = vst.msk [vmem:[#allocation2 + $0x60] sm:$0xff] %vm225_vm0, %v2140_v0  ;;  %239 = vst.msk [vmem:[#allocation2 + $0x68] sm:$0xff] %vm225_vm0, %v2140_v0 }
  0x17   : > { %240 = vst.msk [vmem:[#allocation2 + $0x70] sm:$0xff] %vm225_vm0, %v2140_v0  ;;  %241 = vst.msk [vmem:[#allocation2 + $0x78] sm:$0xff] %vm225_vm0, %v2140_v0 }
  0x18   : > { %242 = vst.msk [vmem:[#allocation2 + $0x80] sm:$0xff] %vm225_vm0, %v2140_v0  ;;  %243 = vst.msk [vmem:[#allocation2 + $0x88] sm:$0xff] %vm225_vm0, %v2140_v0 }
  0x19   : > { %244 = vst.msk [vmem:[#allocation2 + $0x90] sm:$0xff] %vm225_vm0, %v2140_v0  ;;  %245 = vst.msk [vmem:[#allocation2 + $0x98] sm:$0xff] %vm225_vm0, %v2140_v0 }
  0x1a   : > { %246 = vst.msk [vmem:[#allocation2 + $0xa0] sm:$0xff] %vm225_vm0, %v2140_v0  ;;  %247 = vst.msk [vmem:[#allocation2 + $0xa8] sm:$0xff] %vm225_vm0, %v2140_v0 }
  0x1b   : > { %248 = vst.msk [vmem:[#allocation2 + $0xb0] sm:$0xff] %vm225_vm0, %v2140_v0  ;;  %249 = vst.msk [vmem:[#allocation2 + $0xb8] sm:$0xff] %vm225_vm0, %v2140_v0 }
  0x1c   : > { %250 = vst.msk [vmem:[#allocation2 + $0xc0] sm:$0xff] %vm225_vm0, %v2140_v0  ;;  %251 = vst.msk [vmem:[#allocation2 + $0xc8] sm:$0xff] %vm225_vm0, %v2140_v0 }
  0x1d   : > { %252 = vst.msk [vmem:[#allocation2 + $0xd0] sm:$0xff] %vm225_vm0, %v2140_v0  ;;  %253 = vst.msk [vmem:[#allocation2 + $0xd8] sm:$0xff] %vm225_vm0, %v2140_v0 }
  0x1e   : > { %254 = vst.msk [vmem:[#allocation2 + $0xe0] sm:$0xff] %vm225_vm0, %v2140_v0  ;;  %255 = vst.msk [vmem:[#allocation2 + $0xe8] sm:$0xff] %vm225_vm0, %v2140_v0 }
  0x1f   : > { %256 = vst.msk [vmem:[#allocation2 + $0xf0] sm:$0xff] %vm225_vm0, %v2140_v0  ;;  %257 = vst.msk [vmem:[#allocation2 + $0xf8] sm:$0xff] %vm225_vm0, %v2140_v0 }
  0x20   : > { %258 = vst.msk [vmem:[#allocation2 + $0x100] sm:$0xff] %vm225_vm0, %v2140_v0  ;;  %259 = vst.msk [vmem:[#allocation2 + $0x108] sm:$0xff] %vm225_vm0, %v2140_v0 }
  0x21   : > { %260 = vst.msk [vmem:[#allocation2 + $0x110] sm:$0xff] %vm225_vm0, %v2140_v0  ;;  %261 = vst.msk [vmem:[#allocation2 + $0x118] sm:$0xff] %vm225_vm0, %v2140_v0 }
  0x22   : > { %262 = vst.msk [vmem:[#allocation2 + $0x120] sm:$0xff] %vm225_vm0, %v2140_v0  ;;  %263 = vst.msk [vmem:[#allocation2 + $0x128] sm:$0xff] %vm225_vm0, %v2140_v0 }
  0x23   : > { %264 = vst.msk [vmem:[#allocation2 + $0x130] sm:$0xff] %vm225_vm0, %v2140_v0  ;;  %265 = vst.msk [vmem:[#allocation2 + $0x138] sm:$0xff] %vm225_vm0, %v2140_v0 }
  0x24   : > { %266 = vst.msk [vmem:[#allocation2 + $0x140] sm:$0xff] %vm225_vm0, %v2140_v0  ;;  %267 = vst.msk [vmem:[#allocation2 + $0x148] sm:$0xff] %vm225_vm0, %v2140_v0 }
  0x25   : > { %268 = vst.msk [vmem:[#allocation2 + $0x150] sm:$0xff] %vm225_vm0, %v2140_v0  ;;  %269 = vst.msk [vmem:[#allocation2 + $0x158] sm:$0xff] %vm225_vm0, %v2140_v0 }
  0x26   : > { %270 = vst.msk [vmem:[#allocation2 + $0x160] sm:$0xff] %vm225_vm0, %v2140_v0  ;;  %271 = vst.msk [vmem:[#allocation2 + $0x168] sm:$0xff] %vm225_vm0, %v2140_v0 }
  0x27   : > { %272 = vst.msk [vmem:[#allocation2 + $0x170] sm:$0xff] %vm225_vm0, %v2140_v0  ;;  %273 = vst.msk [vmem:[#allocation2 + $0x178] sm:$0xff] %vm225_vm0, %v2140_v0 }
  0x28   : > { %274 = vst.msk [vmem:[#allocation2 + $0x180] sm:$0xff] %vm225_vm0, %v2140_v0  ;;  %275 = vst.msk [vmem:[#allocation2 + $0x188] sm:$0xff] %vm225_vm0, %v2140_v0 }
  0x29   : > { %276 = vst.msk [vmem:[#allocation2 + $0x190] sm:$0xff] %vm225_vm0, %v2140_v0  ;;  %277 = vst.msk [vmem:[#allocation2 + $0x198] sm:$0xff] %vm225_vm0, %v2140_v0 }
  0x2a   : > { %278 = vst.msk [vmem:[#allocation2 + $0x1a0] sm:$0xff] %vm225_vm0, %v2140_v0  ;;  %279 = vst.msk [vmem:[#allocation2 + $0x1a8] sm:$0xff] %vm225_vm0, %v2140_v0 }
  0x2b   : > { %280 = vst.msk [vmem:[#allocation2 + $0x1b0] sm:$0xff] %vm225_vm0, %v2140_v0  ;;  %281 = vst.msk [vmem:[#allocation2 + $0x1b8] sm:$0xff] %vm225_vm0, %v2140_v0 }
  0x2c   : > { %282 = vst.msk [vmem:[#allocation2 + $0x1c0] sm:$0xff] %vm225_vm0, %v2140_v0  ;;  %283 = vst.msk [vmem:[#allocation2 + $0x1c8] sm:$0xff] %vm225_vm0, %v2140_v0 }
  0x2d   : > { %284 = vst.msk [vmem:[#allocation2 + $0x1d0] sm:$0xff] %vm225_vm0, %v2140_v0  ;;  %285 = vst.msk [vmem:[#allocation2 + $0x1d8] sm:$0xff] %vm225_vm0, %v2140_v0 }
  0x2e   : > { %286 = vst.msk [vmem:[#allocation2 + $0x1e0] sm:$0xff] %vm225_vm0, %v2140_v0  ;;  %287 = vst.msk [vmem:[#allocation2 + $0x1e8] sm:$0xff] %vm225_vm0, %v2140_v0 }
  0x2f   : > { %288 = vst.msk [vmem:[#allocation2 + $0x1f0] sm:$0xff] %vm225_vm0, %v2140_v0  ;;  %289 = vst.msk [vmem:[#allocation2 + $0x1f8] sm:$0xff] %vm225_vm0, %v2140_v0 }
  0x30 PF: > { %v2080_v1 = vld [vmem:[%s2191_s24] sm:$0xff]   ;;  %v2081_v2 = vld [vmem:[%s2191_s24 + $0x8] sm:$0xff]   ;;  %v2082_v3 = vld [vmem:[%s2191_s24 + $0x10] sm:$0xff]   ;;  %vm610_vm1 = vcmask 523264   ;;  %p1804_p6 = scmp.ne.s32.totalorder %s2130_s12, 8 }
  0x31   : > { %1975 = vmatprep.subr.bf16.mxu0 %v2080_v1  ;;  %2047 = vmatprep.subr.bf16.mxu1 %v2080_v1  ;;  %v2084_v4 = vld [vmem:[%s2186_s21] sm:$0xff]   ;;  %v2083_v6 = vld [vmem:[%s2191_s24 + $0x18] sm:$0xff]   ;;  %v2086_v7 = vld [vmem:[%s2186_s21 + $0x8] sm:$0xff]   ;;  %vm1582_vm2 = vcmask (!%p1804_p6), 519168  }
  0x32   : > { %1976 = vmatpush3.bf16.msra.mxu0 %v2080_v1  ;;  %2051 = vmatpush3.bf16.msra.mxu1 %v2080_v1  ;;  %v2085_v5 = vld [vmem:[%s2186_s21 + $0x80] sm:$0xff]   ;;  %v2087_v8 = vld [vmem:[%s2186_s21 + $0x88] sm:$0xff]   ;;  %v2088_v9 = vld [vmem:[%s2186_s21 + $0x10] sm:$0xff]  }
  0x33   : > { %1977 = vmatprep.subr.bf16.mxu0 %v2081_v2  ;;  %2048 = vmatprep.subr.bf16.mxu1 %v2081_v2  ;;  %v2089_v10 = vld [vmem:[%s2186_s21 + $0x90] sm:$0xff]   ;;  %v2090_v11 = vld [vmem:[%s2186_s21 + $0x18] sm:$0xff]   ;;  %v2092_v13 = vld [vmem:[%s2186_s21 + $0x20] sm:$0xff]  }
  0x34   : > { %1983 = vmatprep.mubr.msk.bf16.mxu0 %vm610_vm1, %v2084_v4  ;;  %2015 = vmatprep.mubr.msk.bf16.mxu1 %vm610_vm1, %v2085_v5  ;;  %v2091_v12 = vld [vmem:[%s2186_s21 + $0x98] sm:$0xff]   ;;  %v2093_v14 = vld [vmem:[%s2186_s21 + $0xa0] sm:$0xff]   ;;  %v2094_v15 = vld [vmem:[%s2186_s21 + $0x28] sm:$0xff]  }
  0x35   : > { %v2095_v16 = vld [vmem:[%s2186_s21 + $0xa8] sm:$0xff]   ;;  %v2096_v17 = vld [vmem:[%s2186_s21 + $0x30] sm:$0xff]   ;;  %v2098_v19 = vld [vmem:[%s2186_s21 + $0x38] sm:$0xff]  }
  0x36   : > { %1978 = vmatpush3.bf16.msra.mxu0 %v2081_v2  ;;  %2052 = vmatpush3.bf16.msra.mxu1 %v2081_v2  ;;  %v2097_v18 = vld [vmem:[%s2186_s21 + $0xb0] sm:$0xff]   ;;  %v2099_v20 = vld [vmem:[%s2186_s21 + $0xb8] sm:$0xff]   ;;  %v2100_v21 = vld [vmem:[%s2186_s21 + $0x40] sm:$0xff]  }
  0x37   : > { %1979 = vmatprep.subr.bf16.mxu0 %v2082_v3  ;;  %2049 = vmatprep.subr.bf16.mxu1 %v2082_v3  ;;  %v2101_v22 = vld [vmem:[%s2186_s21 + $0xc0] sm:$0xff]   ;;  %v2102_v23 = vld [vmem:[%s2186_s21 + $0x48] sm:$0xff]   ;;  %v2104_v25 = vld [vmem:[%s2186_s21 + $0x50] sm:$0xff]  }
  0x38   : > { %v2103_v24 = vld [vmem:[%s2186_s21 + $0xc8] sm:$0xff]   ;;  %v2105_v26 = vld [vmem:[%s2186_s21 + $0xd0] sm:$0xff]   ;;  %v2106_v27 = vld [vmem:[%s2186_s21 + $0x58] sm:$0xff]  }
  0x39   : > { %v2107_v28 = vld [vmem:[%s2186_s21 + $0xd8] sm:$0xff]   ;;  %v2108_v29 = vld [vmem:[%s2186_s21 + $0x60] sm:$0xff]   ;;  %v2110_v31 = vld [vmem:[%s2186_s21 + $0x68] sm:$0xff]  }
  0x3a   : > { %1980 = vmatpush3.bf16.msra.mxu0 %v2082_v3  ;;  %2053 = vmatpush3.bf16.msra.mxu1 %v2082_v3  ;;  %v2109_v30 = vld [vmem:[%s2186_s21 + $0xe0] sm:$0xff]   ;;  %v2111_v32 = vld [vmem:[%s2186_s21 + $0xe8] sm:$0xff]   ;;  %v2112_v33 = vld [vmem:[%s2186_s21 + $0x70] sm:$0xff]  }
  0x3b   : > { %1981 = vmatprep.subr.bf16.mxu0 %v2083_v6  ;;  %2050 = vmatprep.subr.bf16.mxu1 %v2083_v6  ;;  %v2113_v34 = vld [vmem:[%s2186_s21 + $0xf0] sm:$0xff]   ;;  %v2114_v35 = vld [vmem:[%s2186_s21 + $0x78] sm:$0xff]   ;;  %v290_v39 = vld [vmem:[#allocation2] sm:$0xff] }
  0x3c   : > { %v2115_v36 = vld [vmem:[%s2186_s21 + $0xf8] sm:$0xff]   ;;  %v292_v37 = vld [vmem:[#allocation2 + $0x10] sm:$0xff]  ;;  %v322_v40 = vld [vmem:[#allocation2 + $0x100] sm:$0xff] }
  0x3d   : > { %v324_v38 = vld [vmem:[#allocation2 + $0x110] sm:$0xff]  ;;  %v293_v43 = vld [vmem:[#allocation2 + $0x18] sm:$0xff]  ;;  %v291_v49 = vld [vmem:[#allocation2 + $0x8] sm:$0xff] }
  0x3e   : > { %1982 = vmatpush3.bf16.msra.mxu0 %v2083_v6  ;;  %2054 = vmatpush3.bf16.msra.mxu1 %v2083_v6  ;;  %v325_v44 = vld [vmem:[#allocation2 + $0x118] sm:$0xff]  ;;  %v323_v50 = vld [vmem:[#allocation2 + $0x108] sm:$0xff]  ;;  %v296_v61 = vld [vmem:[#allocation2 + $0x30] sm:$0xff] }
  0x3f   : > { %v328_v62 = vld [vmem:[#allocation2 + $0x130] sm:$0xff]  ;;  %v294_v63 = vld [vmem:[#allocation2 + $0x20] sm:$0xff]  ;;  %v297_v3 = vld [vmem:[#allocation2 + $0x38] sm:$0xff] }
  0x40   : > { %v326_v0 = vld [vmem:[#allocation2 + $0x120] sm:$0xff]  ;;  %v329_v4 = vld [vmem:[#allocation2 + $0x138] sm:$0xff] }
  0x41   : > { %1984 = vmatmul.mubr.msk.bf16.vlgmr.msra.gmra.mrb[0].mxu0 %vm610_vm1, %v2086_v7  ;;  %2016 = vmatmul.mubr.msk.bf16.vlgmr.msra.gmra.mrb[0].mxu1 %vm610_vm1, %v2087_v8 }
  0x42   : > { %1987 = vmatprep.mubr.msk.bf16.mxu0 %vm610_vm1, %v2088_v9  ;;  %2019 = vmatprep.mubr.msk.bf16.mxu1 %vm610_vm1, %v2089_v10  ;;  %v295_v9 = vld [vmem:[#allocation2 + $0x28] sm:$0xff] }
  0x43   : > { %v327_v10 = vld [vmem:[#allocation2 + $0x128] sm:$0xff] }
  0x49   : > { %1988 = vmatmul.mubr.msk.bf16.gmra.mrb[4].mxu0 %vm610_vm1, %v2090_v11  ;;  %2020 = vmatmul.mubr.msk.bf16.gmra.mrb[4].mxu1 %vm610_vm1, %v2091_v12 }
  0x4a   : > { %1991 = vmatprep.mubr.msk.bf16.mxu0 %vm610_vm1, %v2092_v13  ;;  %2023 = vmatprep.mubr.msk.bf16.mxu1 %vm610_vm1, %v2093_v14 }
  0x51   : > { %1992 = vmatmul.mubr.msk.bf16.gmra.mrb[8].mxu0 %vm610_vm1, %v2094_v15  ;;  %2024 = vmatmul.mubr.msk.bf16.gmra.mrb[8].mxu1 %vm610_vm1, %v2095_v16 }
  0x52   : > { %1995 = vmatprep.mubr.msk.bf16.mxu0 %vm610_vm1, %v2096_v17  ;;  %2027 = vmatprep.mubr.msk.bf16.mxu1 %vm610_vm1, %v2097_v18 }
  0x59   : > { %1996 = vmatmul.mubr.msk.bf16.gmra.mrb[12].mxu0 %vm610_vm1, %v2098_v19  ;;  %2028 = vmatmul.mubr.msk.bf16.gmra.mrb[12].mxu1 %vm610_vm1, %v2099_v20 }
  0x5a   : > { %1999 = vmatprep.mubr.msk.bf16.mxu0 %vm610_vm1, %v2100_v21  ;;  %2031 = vmatprep.mubr.msk.bf16.mxu1 %vm610_vm1, %v2101_v22  ;;  %v300_v21 = vld [vmem:[#allocation2 + $0x50] sm:$0xff] }
  0x5b   : > { %v332_v22 = vld [vmem:[#allocation2 + $0x150] sm:$0xff] }
  0x61   : > { %2000 = vmatmul.mubr.msk.bf16.gmra.mrb[16].mxu0 %vm610_vm1, %v2102_v23  ;;  %2032 = vmatmul.mubr.msk.bf16.gmra.mrb[16].mxu1 %vm610_vm1, %v2103_v24  ;;  %v298_v23 = vld [vmem:[#allocation2 + $0x40] sm:$0xff] }
  0x62   : > { %2003 = vmatprep.mubr.msk.bf16.mxu0 %vm610_vm1, %v2104_v25  ;;  %2035 = vmatprep.mubr.msk.bf16.mxu1 %vm610_vm1, %v2105_v26  ;;  %v330_v24 = vld [vmem:[#allocation2 + $0x140] sm:$0xff] }
  0x69   : > { %2004 = vmatmul.mubr.msk.bf16.gmra.mrb[20].mxu0 %vm610_vm1, %v2106_v27  ;;  %2036 = vmatmul.mubr.msk.bf16.gmra.mrb[20].mxu1 %vm610_vm1, %v2107_v28  ;;  %v301_v27 = vld [vmem:[#allocation2 + $0x58] sm:$0xff] }
  0x6a   : > { %2007 = vmatprep.mubr.msk.bf16.mxu0 %vm610_vm1, %v2108_v29  ;;  %2039 = vmatprep.mubr.msk.bf16.mxu1 %vm610_vm1, %v2109_v30  ;;  %v333_v28 = vld [vmem:[#allocation2 + $0x158] sm:$0xff] }
  0x71   : > { %2008 = vmatmul.mubr.msk.bf16.gmra.mrb[24].mxu0 %vm610_vm1, %v2110_v31  ;;  %2040 = vmatmul.mubr.msk.bf16.gmra.mrb[24].mxu1 %vm610_vm1, %v2111_v32 }
  0x72   : > { %2011 = vmatprep.mubr.msk.bf16.mxu0 %vm610_vm1, %v2112_v33  ;;  %2043 = vmatprep.mubr.msk.bf16.mxu1 %vm610_vm1, %v2113_v34  ;;  %v299_v33 = vld [vmem:[#allocation2 + $0x48] sm:$0xff] }
  0x73   : > { %v331_v34 = vld [vmem:[#allocation2 + $0x148] sm:$0xff] }
  0x79   : > { %2012 = vmatmul.mubr.msk.bf16.gmra.mrb[28].mxu0 %vm610_vm1, %v2114_v35  ;;  %2044 = vmatmul.mubr.msk.bf16.gmra.mrb[28].mxu1 %vm610_vm1, %v2115_v36 }
 0x114   : > { %v1985_v41 = vpop.f32.mrb[0].mxu0  ;;  %v2017_v42 = vpop.f32.mrb[0].mxu1 }
 0x115   : > { %v998_v45 = vadd.f32 %v1985_v41, %v292_v37  ;;  %v1030_v46 = vadd.f32 %v2017_v42, %v324_v38  ;;  %v741_v47 = vpop.f32.mrb[1].mxu0  ;;  %v869_v48 = vpop.f32.mrb[1].mxu1 }
 0x116   : > { %v996_v51 = vadd.f32 %v741_v47, %v290_v39  ;;  %v1028_v52 = vadd.f32 %v869_v48, %v322_v40  ;;  %v1986_v53 = vpop.f32.mrb[2].mxu0  ;;  %v2018_v54 = vpop.f32.mrb[2].mxu1  ;;  %v302_v47 = vld [vmem:[#allocation2 + $0x60] sm:$0xff] }
 0x117   : > { %1062 = vst.msk [vmem:[#allocation2 + $0x10] sm:$0xff] %vm610_vm1, %v998_v45  ;;  %1094 = vst.msk [vmem:[#allocation2 + $0x110] sm:$0xff] %vm610_vm1, %v1030_v46  ;;  %v999_v55 = vadd.f32 %v1986_v53, %v293_v43  ;;  %v1031_v56 = vadd.f32 %v2018_v54, %v325_v44  ;;  %v744_v57 = vpop.f32.mrb[3].mxu0  ;;  %v872_v58 = vpop.f32.mrb[3].mxu1  ;;  %v304_v45 = vld [vmem:[#allocation2 + $0x70] sm:$0xff]  ;;  %v334_v48 = vld [vmem:[#allocation2 + $0x160] sm:$0xff] }
 0x118   : > { %1060 = vst.msk [vmem:[#allocation2] sm:$0xff] %vm610_vm1, %v996_v51  ;;  %1092 = vst.msk [vmem:[#allocation2 + $0x100] sm:$0xff] %vm610_vm1, %v1028_v52  ;;  %v997_v59 = vadd.f32 %v744_v57, %v291_v49  ;;  %v1029_v60 = vadd.f32 %v872_v58, %v323_v50  ;;  %v336_v46 = vld [vmem:[#allocation2 + $0x170] sm:$0xff]  ;;  %v305_v51 = vld [vmem:[#allocation2 + $0x78] sm:$0xff] }
 0x119   : > { %1063 = vst.msk [vmem:[#allocation2 + $0x18] sm:$0xff] %vm610_vm1, %v999_v55  ;;  %1095 = vst.msk [vmem:[#allocation2 + $0x118] sm:$0xff] %vm610_vm1, %v1031_v56  ;;  %v337_v52 = vld [vmem:[#allocation2 + $0x178] sm:$0xff]  ;;  %v303_v57 = vld [vmem:[#allocation2 + $0x68] sm:$0xff] }
 0x11a   : > { %1061 = vst.msk [vmem:[#allocation2 + $0x8] sm:$0xff] %vm610_vm1, %v997_v59  ;;  %1093 = vst.msk [vmem:[#allocation2 + $0x108] sm:$0xff] %vm610_vm1, %v1029_v60  ;;  %v335_v58 = vld [vmem:[#allocation2 + $0x168] sm:$0xff] }
 0x11c   : > { %v1989_v1 = vpop.f32.mrb[4].mxu0  ;;  %v2021_v2 = vpop.f32.mrb[4].mxu1 }
 0x11d   : > { %v1002_v5 = vadd.f32 %v1989_v1, %v296_v61  ;;  %v1034_v6 = vadd.f32 %v2021_v2, %v328_v62  ;;  %v757_v7 = vpop.f32.mrb[5].mxu0  ;;  %v885_v8 = vpop.f32.mrb[5].mxu1 }
 0x11e   : > { %v1000_v11 = vadd.f32 %v757_v7, %v294_v63  ;;  %v1032_v12 = vadd.f32 %v885_v8, %v326_v0  ;;  %v1990_v13 = vpop.f32.mrb[6].mxu0  ;;  %v2022_v14 = vpop.f32.mrb[6].mxu1  ;;  %v306_v7 = vld [vmem:[#allocation2 + $0x80] sm:$0xff] }
 0x11f   : > { %1066 = vst.msk [vmem:[#allocation2 + $0x30] sm:$0xff] %vm610_vm1, %v1002_v5  ;;  %1098 = vst.msk [vmem:[#allocation2 + $0x130] sm:$0xff] %vm610_vm1, %v1034_v6  ;;  %v1003_v15 = vadd.f32 %v1990_v13, %v297_v3  ;;  %v1035_v16 = vadd.f32 %v2022_v14, %v329_v4  ;;  %v760_v17 = vpop.f32.mrb[7].mxu0  ;;  %v888_v18 = vpop.f32.mrb[7].mxu1  ;;  %v308_v5 = vld [vmem:[#allocation2 + $0x90] sm:$0xff]  ;;  %v338_v8 = vld [vmem:[#allocation2 + $0x180] sm:$0xff] }
 0x120   : > { %1064 = vst.msk [vmem:[#allocation2 + $0x20] sm:$0xff] %vm610_vm1, %v1000_v11  ;;  %1096 = vst.msk [vmem:[#allocation2 + $0x120] sm:$0xff] %vm610_vm1, %v1032_v12  ;;  %v1001_v19 = vadd.f32 %v760_v17, %v295_v9  ;;  %v1033_v20 = vadd.f32 %v888_v18, %v327_v10  ;;  %v340_v6 = vld [vmem:[#allocation2 + $0x190] sm:$0xff]  ;;  %v309_v11 = vld [vmem:[#allocation2 + $0x98] sm:$0xff] }
 0x121   : > { %1067 = vst.msk [vmem:[#allocation2 + $0x38] sm:$0xff] %vm610_vm1, %v1003_v15  ;;  %1099 = vst.msk [vmem:[#allocation2 + $0x138] sm:$0xff] %vm610_vm1, %v1035_v16  ;;  %v341_v12 = vld [vmem:[#allocation2 + $0x198] sm:$0xff]  ;;  %v307_v17 = vld [vmem:[#allocation2 + $0x88] sm:$0xff] }
 0x122   : > { %1065 = vst.msk [vmem:[#allocation2 + $0x28] sm:$0xff] %vm610_vm1, %v1001_v19  ;;  %1097 = vst.msk [vmem:[#allocation2 + $0x128] sm:$0xff] %vm610_vm1, %v1033_v20  ;;  %v339_v18 = vld [vmem:[#allocation2 + $0x188] sm:$0xff] }
 0x124   : > { %v1993_v25 = vpop.f32.mrb[8].mxu0  ;;  %v2025_v26 = vpop.f32.mrb[8].mxu1 }
 0x125   : > { %v1006_v29 = vadd.f32 %v1993_v25, %v300_v21  ;;  %v1038_v30 = vadd.f32 %v2025_v26, %v332_v22  ;;  %v773_v31 = vpop.f32.mrb[9].mxu0  ;;  %v901_v32 = vpop.f32.mrb[9].mxu1 }
 0x126   : > { %v1004_v35 = vadd.f32 %v773_v31, %v298_v23  ;;  %v1036_v36 = vadd.f32 %v901_v32, %v330_v24  ;;  %v1994_v37 = vpop.f32.mrb[10].mxu0  ;;  %v2026_v38 = vpop.f32.mrb[10].mxu1  ;;  %v310_v31 = vld [vmem:[#allocation2 + $0xa0] sm:$0xff] }
 0x127   : > { %1070 = vst.msk [vmem:[#allocation2 + $0x50] sm:$0xff] %vm610_vm1, %v1006_v29  ;;  %1102 = vst.msk [vmem:[#allocation2 + $0x150] sm:$0xff] %vm610_vm1, %v1038_v30  ;;  %v1007_v39 = vadd.f32 %v1994_v37, %v301_v27  ;;  %v1039_v40 = vadd.f32 %v2026_v38, %v333_v28  ;;  %v776_v41 = vpop.f32.mrb[11].mxu0  ;;  %v904_v42 = vpop.f32.mrb[11].mxu1  ;;  %v312_v29 = vld [vmem:[#allocation2 + $0xb0] sm:$0xff]  ;;  %v342_v32 = vld [vmem:[#allocation2 + $0x1a0] sm:$0xff] }
 0x128   : > { %1068 = vst.msk [vmem:[#allocation2 + $0x40] sm:$0xff] %vm610_vm1, %v1004_v35  ;;  %1100 = vst.msk [vmem:[#allocation2 + $0x140] sm:$0xff] %vm610_vm1, %v1036_v36  ;;  %v1005_v43 = vadd.f32 %v776_v41, %v299_v33  ;;  %v1037_v44 = vadd.f32 %v904_v42, %v331_v34  ;;  %v344_v30 = vld [vmem:[#allocation2 + $0x1b0] sm:$0xff]  ;;  %v313_v35 = vld [vmem:[#allocation2 + $0xb8] sm:$0xff] }
 0x129   : > { %1071 = vst.msk [vmem:[#allocation2 + $0x58] sm:$0xff] %vm610_vm1, %v1007_v39  ;;  %1103 = vst.msk [vmem:[#allocation2 + $0x158] sm:$0xff] %vm610_vm1, %v1039_v40  ;;  %v345_v36 = vld [vmem:[#allocation2 + $0x1b8] sm:$0xff]  ;;  %v311_v41 = vld [vmem:[#allocation2 + $0xa8] sm:$0xff] }
 0x12a   : > { %1069 = vst.msk [vmem:[#allocation2 + $0x48] sm:$0xff] %vm610_vm1, %v1005_v43  ;;  %1101 = vst.msk [vmem:[#allocation2 + $0x148] sm:$0xff] %vm610_vm1, %v1037_v44  ;;  %v343_v42 = vld [vmem:[#allocation2 + $0x1a8] sm:$0xff] }
 0x12c   : > { %v1997_v49 = vpop.f32.mrb[12].mxu0  ;;  %v2029_v50 = vpop.f32.mrb[12].mxu1 }
 0x12d   : > { %v1010_v53 = vadd.f32 %v1997_v49, %v304_v45  ;;  %v1042_v54 = vadd.f32 %v2029_v50, %v336_v46  ;;  %v789_v55 = vpop.f32.mrb[13].mxu0  ;;  %v917_v56 = vpop.f32.mrb[13].mxu1 }
 0x12e   : > { %v1008_v59 = vadd.f32 %v789_v55, %v302_v47  ;;  %v1040_v60 = vadd.f32 %v917_v56, %v334_v48  ;;  %v1998_v61 = vpop.f32.mrb[14].mxu0  ;;  %v2030_v62 = vpop.f32.mrb[14].mxu1  ;;  %v314_v55 = vld [vmem:[#allocation2 + $0xc0] sm:$0xff] }
 0x12f   : > { %1074 = vst.msk [vmem:[#allocation2 + $0x70] sm:$0xff] %vm610_vm1, %v1010_v53  ;;  %1106 = vst.msk [vmem:[#allocation2 + $0x170] sm:$0xff] %vm610_vm1, %v1042_v54  ;;  %v1011_v63 = vadd.f32 %v1998_v61, %v305_v51  ;;  %v1043_v0 = vadd.f32 %v2030_v62, %v337_v52  ;;  %v792_v1 = vpop.f32.mrb[15].mxu0  ;;  %v920_v2 = vpop.f32.mrb[15].mxu1  ;;  %v316_v53 = vld [vmem:[#allocation2 + $0xd0] sm:$0xff]  ;;  %v346_v56 = vld [vmem:[#allocation2 + $0x1c0] sm:$0xff] }
 0x130   : > { %1072 = vst.msk [vmem:[#allocation2 + $0x60] sm:$0xff] %vm610_vm1, %v1008_v59  ;;  %1104 = vst.msk [vmem:[#allocation2 + $0x160] sm:$0xff] %vm610_vm1, %v1040_v60  ;;  %v1009_v3 = vadd.f32 %v792_v1, %v303_v57  ;;  %v1041_v4 = vadd.f32 %v920_v2, %v335_v58  ;;  %v348_v54 = vld [vmem:[#allocation2 + $0x1d0] sm:$0xff]  ;;  %v317_v59 = vld [vmem:[#allocation2 + $0xd8] sm:$0xff] }
 0x131   : > { %1075 = vst.msk [vmem:[#allocation2 + $0x78] sm:$0xff] %vm610_vm1, %v1011_v63  ;;  %1107 = vst.msk [vmem:[#allocation2 + $0x178] sm:$0xff] %vm610_vm1, %v1043_v0  ;;  %v349_v60 = vld [vmem:[#allocation2 + $0x1d8] sm:$0xff]  ;;  %v315_v1 = vld [vmem:[#allocation2 + $0xc8] sm:$0xff] }
 0x132   : > { %1073 = vst.msk [vmem:[#allocation2 + $0x68] sm:$0xff] %vm610_vm1, %v1009_v3  ;;  %1105 = vst.msk [vmem:[#allocation2 + $0x168] sm:$0xff] %vm610_vm1, %v1041_v4  ;;  %v347_v2 = vld [vmem:[#allocation2 + $0x1c8] sm:$0xff] }
 0x134   : > { %v2001_v9 = vpop.f32.mrb[16].mxu0  ;;  %v2033_v10 = vpop.f32.mrb[16].mxu1 }
 0x135   : > { %v1014_v13 = vadd.f32 %v2001_v9, %v308_v5  ;;  %v1046_v14 = vadd.f32 %v2033_v10, %v340_v6  ;;  %v805_v15 = vpop.f32.mrb[17].mxu0  ;;  %v933_v16 = vpop.f32.mrb[17].mxu1 }
 0x136   : > { %v1012_v19 = vadd.f32 %v805_v15, %v306_v7  ;;  %v1044_v20 = vadd.f32 %v933_v16, %v338_v8  ;;  %v2002_v21 = vpop.f32.mrb[18].mxu0  ;;  %v2034_v22 = vpop.f32.mrb[18].mxu1  ;;  %v318_v15 = vld [vmem:[#allocation2 + $0xe0] sm:$0xff] }
 0x137   : > { %1078 = vst.msk [vmem:[#allocation2 + $0x90] sm:$0xff] %vm610_vm1, %v1014_v13  ;;  %1110 = vst.msk [vmem:[#allocation2 + $0x190] sm:$0xff] %vm610_vm1, %v1046_v14  ;;  %v1015_v23 = vadd.f32 %v2002_v21, %v309_v11  ;;  %v1047_v24 = vadd.f32 %v2034_v22, %v341_v12  ;;  %v808_v25 = vpop.f32.mrb[19].mxu0  ;;  %v936_v26 = vpop.f32.mrb[19].mxu1  ;;  %v320_v13 = vld [vmem:[#allocation2 + $0xf0] sm:$0xff]  ;;  %v350_v16 = vld [vmem:[#allocation2 + $0x1e0] sm:$0xff] }
 0x138   : > { %1076 = vst.msk [vmem:[#allocation2 + $0x80] sm:$0xff] %vm610_vm1, %v1012_v19  ;;  %1108 = vst.msk [vmem:[#allocation2 + $0x180] sm:$0xff] %vm610_vm1, %v1044_v20  ;;  %v1013_v27 = vadd.f32 %v808_v25, %v307_v17  ;;  %v1045_v28 = vadd.f32 %v936_v26, %v339_v18  ;;  %v352_v14 = vld [vmem:[#allocation2 + $0x1f0] sm:$0xff]  ;;  %v321_v19 = vld [vmem:[#allocation2 + $0xf8] sm:$0xff] }
 0x139   : > { %1079 = vst.msk [vmem:[#allocation2 + $0x98] sm:$0xff] %vm610_vm1, %v1015_v23  ;;  %1111 = vst.msk [vmem:[#allocation2 + $0x198] sm:$0xff] %vm610_vm1, %v1047_v24  ;;  %v353_v20 = vld [vmem:[#allocation2 + $0x1f8] sm:$0xff]  ;;  %v319_v25 = vld [vmem:[#allocation2 + $0xe8] sm:$0xff] }
 0x13a   : > { %1077 = vst.msk [vmem:[#allocation2 + $0x88] sm:$0xff] %vm610_vm1, %v1013_v27  ;;  %1109 = vst.msk [vmem:[#allocation2 + $0x188] sm:$0xff] %vm610_vm1, %v1045_v28  ;;  %v351_v26 = vld [vmem:[#allocation2 + $0x1e8] sm:$0xff] }
 0x13c   : > { %v2005_v33 = vpop.f32.mrb[20].mxu0  ;;  %v2037_v34 = vpop.f32.mrb[20].mxu1 }
 0x13d   : > { %v1018_v37 = vadd.f32 %v2005_v33, %v312_v29  ;;  %v1050_v38 = vadd.f32 %v2037_v34, %v344_v30  ;;  %v821_v39 = vpop.f32.mrb[21].mxu0  ;;  %v949_v40 = vpop.f32.mrb[21].mxu1 }
 0x13e   : > { %v1016_v43 = vadd.f32 %v821_v39, %v310_v31  ;;  %v1048_v44 = vadd.f32 %v949_v40, %v342_v32  ;;  %v2006_v45 = vpop.f32.mrb[22].mxu0  ;;  %v2038_v46 = vpop.f32.mrb[22].mxu1 }
 0x13f   : > { %1082 = vst.msk [vmem:[#allocation2 + $0xb0] sm:$0xff] %vm610_vm1, %v1018_v37  ;;  %1114 = vst.msk [vmem:[#allocation2 + $0x1b0] sm:$0xff] %vm610_vm1, %v1050_v38  ;;  %v1019_v47 = vadd.f32 %v2006_v45, %v313_v35  ;;  %v1051_v48 = vadd.f32 %v2038_v46, %v345_v36  ;;  %v824_v49 = vpop.f32.mrb[23].mxu0  ;;  %v952_v50 = vpop.f32.mrb[23].mxu1  ;;  %v1192_v37 = vld [vmem:[%s2791_s2] sm:$0x1] (!%p1804_p6)  ;;  %v1194_v38 = vlaneseq (!%p1804_p6) }
 0x140   : > { %1080 = vst.msk [vmem:[#allocation2 + $0xa0] sm:$0xff] %vm610_vm1, %v1016_v43  ;;  %1112 = vst.msk [vmem:[#allocation2 + $0x1a0] sm:$0xff] %vm610_vm1, %v1048_v44  ;;  %v1017_v51 = vadd.f32 %v824_v49, %v311_v41  ;;  %v1049_v52 = vadd.f32 %v952_v50, %v343_v42  ;;  %v1193_v39 = vunpack.c.l.bf16 (!%p1804_p6), %v1192_v37  ;;  %v1128_v41 = vld [vmem:[#allocation2] sm:$0xff] (!%p1804_p6)  ;;  %v1129_v43 = vld [vmem:[#allocation2 + $0x8] sm:$0xff] (!%p1804_p6) }
 0x141   : > { %1083 = vst.msk [vmem:[#allocation2 + $0xb8] sm:$0xff] %vm610_vm1, %v1019_v47  ;;  %1115 = vst.msk [vmem:[#allocation2 + $0x1b8] sm:$0xff] %vm610_vm1, %v1051_v48  ;;  %v1195_v40 = vshrl.u32 (!%p1804_p6), %v1194_v38, 7  ;;  %v1130_v44 = vld [vmem:[#allocation2 + $0x10] sm:$0xff] (!%p1804_p6)  ;;  %v1131_v45 = vld [vmem:[#allocation2 + $0x18] sm:$0xff] (!%p1804_p6) }
 0x142   : > { %1081 = vst.msk [vmem:[#allocation2 + $0xa8] sm:$0xff] %vm610_vm1, %v1017_v51  ;;  %1113 = vst.msk [vmem:[#allocation2 + $0x1a8] sm:$0xff] %vm610_vm1, %v1049_v52  ;;  %v1132_v46 = vld [vmem:[#allocation2 + $0x20] sm:$0xff] (!%p1804_p6)  ;;  %v1133_v48 = vld [vmem:[#allocation2 + $0x28] sm:$0xff] (!%p1804_p6) }
 0x143   : > { %v1196_v42 = vsub.s32 (!%p1804_p6), 0, %v1195_v40  ;;  %v1134_v49 = vld [vmem:[#allocation2 + $0x30] sm:$0xff] (!%p1804_p6)  ;;  %v1135_v50 = vld [vmem:[#allocation2 + $0x38] sm:$0xff] (!%p1804_p6) }
 0x144   : > { %v2009_v57 = vpop.f32.mrb[24].mxu0  ;;  %v2041_v58 = vpop.f32.mrb[24].mxu1  ;;  %v1147_v38 = vld [vmem:[#allocation2 + $0x98] sm:$0xff] (!%p1804_p6) }
 0x145   : > { %v1022_v61 = vadd.f32 %v2009_v57, %v316_v53  ;;  %v1054_v62 = vadd.f32 %v2041_v58, %v348_v54  ;;  %v837_v63 = vpop.f32.mrb[25].mxu0  ;;  %v965_v0 = vpop.f32.mrb[25].mxu1  ;;  %v2458_v47 = vrot.slane (!%p1804_p6), %v1193_v39, %v1196_v42 }
 0x146   : > { %v1020_v3 = vadd.f32 %v837_v63, %v314_v55  ;;  %v1052_v4 = vadd.f32 %v965_v0, %v346_v56  ;;  %v2010_v5 = vpop.f32.mrb[26].mxu0  ;;  %v2042_v6 = vpop.f32.mrb[26].mxu1  ;;  %v1137_v0 = vld [vmem:[#allocation2 + $0x48] sm:$0xff] (!%p1804_p6) }
 0x147   : > { %1086 = vst.msk [vmem:[#allocation2 + $0xd0] sm:$0xff] %vm610_vm1, %v1022_v61  ;;  %1118 = vst.msk [vmem:[#allocation2 + $0x1d0] sm:$0xff] %vm610_vm1, %v1054_v62  ;;  %v1023_v7 = vadd.f32 %v2010_v5, %v317_v59  ;;  %v1055_v8 = vadd.f32 %v2042_v6, %v349_v60  ;;  %v840_v9 = vpop.f32.mrb[27].mxu0  ;;  %v968_v10 = vpop.f32.mrb[27].mxu1  ;;  %v1198_v51 = vadd.f32 (!%p1804_p6), %v2458_v47, %v1128_v41  ;;  %v1136_v59 = vld [vmem:[#allocation2 + $0x40] sm:$0xff] (!%p1804_p6)  ;;  %v1139_v6 = vld [vmem:[#allocation2 + $0x58] sm:$0xff] (!%p1804_p6) }
 0x148   : > { %1084 = vst.msk [vmem:[#allocation2 + $0xc0] sm:$0xff] %vm610_vm1, %v1020_v3  ;;  %1116 = vst.msk [vmem:[#allocation2 + $0x1c0] sm:$0xff] %vm610_vm1, %v1052_v4  ;;  %v1021_v11 = vadd.f32 %v840_v9, %v315_v1  ;;  %v1053_v12 = vadd.f32 %v968_v10, %v347_v2  ;;  %v1199_v52 = vadd.f32 (!%p1804_p6), %v2458_v47, %v1129_v43  ;;  %v1138_v1 = vld [vmem:[#allocation2 + $0x50] sm:$0xff] (!%p1804_p6)  ;;  %v1148_v39 = vld [vmem:[#allocation2 + $0xa0] sm:$0xff] (!%p1804_p6) }
 0x149   : > { %1087 = vst.msk [vmem:[#allocation2 + $0xd8] sm:$0xff] %vm610_vm1, %v1023_v7  ;;  %1119 = vst.msk [vmem:[#allocation2 + $0x1d8] sm:$0xff] %vm610_vm1, %v1055_v8  ;;  %v1200_v53 = vadd.f32 (!%p1804_p6), %v2458_v47, %v1130_v44  ;;  %v1201_v54 = vadd.f32 (!%p1804_p6), %v2458_v47, %v1131_v45  ;;  %v1202_v55 = vadd.f32 (!%p1804_p6), %v2458_v47, %v1132_v46  ;;  %v1262_v60 = vmax.f32 (!%p1804_p6), %v1198_v51, 0.0  ;;  %v1140_v7 = vld [vmem:[#allocation2 + $0x60] sm:$0xff] (!%p1804_p6)  ;;  %v1149_v44 = vld [vmem:[#allocation2 + $0xa8] sm:$0xff] (!%p1804_p6) }
 0x14a   : > { %1085 = vst.msk [vmem:[#allocation2 + $0xc8] sm:$0xff] %vm610_vm1, %v1021_v11  ;;  %1117 = vst.msk [vmem:[#allocation2 + $0x1c8] sm:$0xff] %vm610_vm1, %v1053_v12  ;;  %v1203_v56 = vadd.f32 (!%p1804_p6), %v2458_v47, %v1133_v48  ;;  %v1204_v57 = vadd.f32 (!%p1804_p6), %v2458_v47, %v1134_v49  ;;  %v1205_v58 = vadd.f32 (!%p1804_p6), %v2458_v47, %v1135_v50  ;;  %v1263_v61 = vmax.f32 (!%p1804_p6), %v1199_v52, 0.0  ;;  %v1141_v12 = vld [vmem:[#allocation2 + $0x68] sm:$0xff] (!%p1804_p6)  ;;  %v1150_v45 = vld [vmem:[#allocation2 + $0xb0] sm:$0xff] (!%p1804_p6) }
 0x14b   : > { %v1264_v62 = vmax.f32 (!%p1804_p6), %v1200_v53, 0.0  ;;  %v1265_v63 = vmax.f32 (!%p1804_p6), %v1201_v54, 0.0  ;;  %v1266_v2 = vmax.f32 (!%p1804_p6), %v1202_v55, 0.0  ;;  %v1875_v8 = vpack.c.bf16 (!%p1804_p6), %v1262_v60, %v1262_v60  ;;  %v1151_v46 = vld [vmem:[#allocation2 + $0xb8] sm:$0xff] (!%p1804_p6) }
 0x14c   : > { %v2013_v17 = vpop.f32.mrb[28].mxu0  ;;  %v2045_v18 = vpop.f32.mrb[28].mxu1  ;;  %1127 = sbr.rel (%p1804_p6) target bundleno = 384 (0x180), region = 40  ;;  %v1267_v3 = vmax.f32 (!%p1804_p6), %v1203_v56, 0.0  ;;  %v1268_v4 = vmax.f32 (!%p1804_p6), %v1204_v57, 0.0  ;;  %v1269_v5 = vmax.f32 (!%p1804_p6), %v1205_v58, 0.0  ;;  %v1876_v9 = vpack.c.bf16 (!%p1804_p6), %v1263_v61, %v1263_v61 }
 0x14d   : > { %v1026_v21 = vadd.f32 %v2013_v17, %v320_v13  ;;  %v1058_v22 = vadd.f32 %v2045_v18, %v352_v14  ;;  %v853_v23 = vpop.f32.mrb[29].mxu0  ;;  %v981_v24 = vpop.f32.mrb[29].mxu1  ;;  %v1877_v10 = vpack.c.bf16 (!%p1804_p6), %v1264_v62, %v1264_v62  ;;  %v1878_v11 = vpack.c.bf16 (!%p1804_p6), %v1265_v63, %v1265_v63  ;;  %v1142_v13 = vld [vmem:[#allocation2 + $0x70] sm:$0xff] (!%p1804_p6)  ;;  %v1143_v14 = vld [vmem:[#allocation2 + $0x78] sm:$0xff] (!%p1804_p6)  ;;  %1583 = vst.msk [vmem:[%s2792_s3] sm:$0xf] (!%p1804_p6), %vm1582_vm2, %v1875_v8 }
 0x14e   : > { %v1024_v27 = vadd.f32 %v853_v23, %v318_v15  ;;  %v1056_v28 = vadd.f32 %v981_v24, %v350_v16  ;;  %v2014_v29 = vpop.f32.mrb[30].mxu0  ;;  %v2046_v30 = vpop.f32.mrb[30].mxu1  ;;  %v1879_v15 = vpack.c.bf16 (!%p1804_p6), %v1266_v2, %v1266_v2  ;;  %v1880_v16 = vpack.c.bf16 (!%p1804_p6), %v1267_v3, %v1267_v3  ;;  %1584 = vst.msk [vmem:[%s2792_s3 + $0x4] sm:$0xf] (!%p1804_p6), %vm1582_vm2, %v1876_v9  ;;  %v1154_v2 = vld [vmem:[#allocation2 + $0xd0] sm:$0xff] (!%p1804_p6) }
 0x14f   : > { %1090 = vst.msk [vmem:[#allocation2 + $0xf0] sm:$0xff] %vm610_vm1, %v1026_v21  ;;  %1122 = vst.msk [vmem:[#allocation2 + $0x1f0] sm:$0xff] %vm610_vm1, %v1058_v22  ;;  %v1027_v31 = vadd.f32 %v2014_v29, %v321_v19  ;;  %v1059_v32 = vadd.f32 %v2046_v30, %v353_v20  ;;  %v856_v33 = vpop.f32.mrb[31].mxu0  ;;  %v984_v34 = vpop.f32.mrb[31].mxu1  ;;  %v1881_v17 = vpack.c.bf16 (!%p1804_p6), %v1268_v4, %v1268_v4  ;;  %v1152_v60 = vld [vmem:[#allocation2 + $0xc0] sm:$0xff] (!%p1804_p6) }
 0x150   : > { %1088 = vst.msk [vmem:[#allocation2 + $0xe0] sm:$0xff] %vm610_vm1, %v1024_v27  ;;  %1120 = vst.msk [vmem:[#allocation2 + $0x1e0] sm:$0xff] %vm610_vm1, %v1056_v28  ;;  %v1025_v35 = vadd.f32 %v856_v33, %v319_v25  ;;  %v1057_v36 = vadd.f32 %v984_v34, %v351_v26  ;;  %v1882_v18 = vpack.c.bf16 (!%p1804_p6), %v1269_v5, %v1269_v5  ;;  %v1144_v27 = vld [vmem:[#allocation2 + $0x80] sm:$0xff] (!%p1804_p6)  ;;  %v1146_v33 = vld [vmem:[#allocation2 + $0x90] sm:$0xff] (!%p1804_p6) }
 0x151   : > { %1091 = vst.msk [vmem:[#allocation2 + $0xf8] sm:$0xff] %vm610_vm1, %v1027_v31  ;;  %1123 = vst.msk [vmem:[#allocation2 + $0x1f8] sm:$0xff] %vm610_vm1, %v1059_v32  ;;  %v1206_v19 = vadd.f32 (!%p1804_p6), %v2458_v47, %v1136_v59  ;;  %v1207_v20 = vadd.f32 (!%p1804_p6), %v2458_v47, %v1137_v0  ;;  %v1208_v21 = vadd.f32 (!%p1804_p6), %v2458_v47, %v1138_v1  ;;  %v1145_v32 = vld [vmem:[#allocation2 + $0x88] sm:$0xff] (!%p1804_p6) }
 0x152   : > { %1089 = vst.msk [vmem:[#allocation2 + $0xe8] sm:$0xff] %vm610_vm1, %v1025_v35  ;;  %1121 = vst.msk [vmem:[#allocation2 + $0x1e8] sm:$0xff] %vm610_vm1, %v1057_v36  ;;  %v1209_v22 = vadd.f32 (!%p1804_p6), %v2458_v47, %v1139_v6  ;;  %v1210_v23 = vadd.f32 (!%p1804_p6), %v2458_v47, %v1140_v7  ;;  %v1211_v24 = vadd.f32 (!%p1804_p6), %v2458_v47, %v1141_v12  ;;  %v1153_v1 = vld [vmem:[#allocation2 + $0xc8] sm:$0xff] (!%p1804_p6)  ;;  %v1155_v7 = vld [vmem:[#allocation2 + $0xd8] sm:$0xff] (!%p1804_p6) }
 0x153   : > { %1585 = vst.msk [vmem:[%s2792_s3 + $0x8] sm:$0xf] %vm1582_vm2, %v1877_v10  ;;  %1586 = vst.msk [vmem:[%s2792_s3 + $0xc] sm:$0xf] %vm1582_vm2, %v1878_v11  ;;  %v1212_v25 = vadd.f32 %v2458_v47, %v1142_v13  ;;  %v1213_v26 = vadd.f32 %v2458_v47, %v1143_v14  ;;  %v1270_v28 = vmax.f32 %v1206_v19, 0.0  ;;  %v1271_v29 = vmax.f32 %v1207_v20, 0.0 }
 0x154   : > { %1587 = vst.msk [vmem:[%s2792_s3 + $0x10] sm:$0xf] %vm1582_vm2, %v1879_v15  ;;  %1588 = vst.msk [vmem:[%s2792_s3 + $0x14] sm:$0xf] %vm1582_vm2, %v1880_v16  ;;  %v1272_v30 = vmax.f32 %v1208_v21, 0.0  ;;  %v1273_v31 = vmax.f32 %v1209_v22, 0.0  ;;  %v1214_v52 = vadd.f32 %v2458_v47, %v1144_v27  ;;  %v1215_v53 = vadd.f32 %v2458_v47, %v1145_v32 }
 0x155   : > { %1589 = vst.msk [vmem:[%s2792_s3 + $0x18] sm:$0xf] %vm1582_vm2, %v1881_v17  ;;  %1590 = vst.msk [vmem:[%s2792_s3 + $0x1c] sm:$0xf] %vm1582_vm2, %v1882_v18  ;;  %v1274_v34 = vmax.f32 %v1210_v23, 0.0  ;;  %v1275_v35 = vmax.f32 %v1211_v24, 0.0  ;;  %v1883_v40 = vpack.c.bf16 %v1270_v28, %v1270_v28  ;;  %v1884_v41 = vpack.c.bf16 %v1271_v29, %v1271_v29 }
 0x156   : > { %v1276_v36 = vmax.f32 %v1212_v25, 0.0  ;;  %v1277_v37 = vmax.f32 %v1213_v26, 0.0  ;;  %v1885_v42 = vpack.c.bf16 %v1272_v30, %v1272_v30  ;;  %v1886_v43 = vpack.c.bf16 %v1273_v31, %v1273_v31  ;;  %v1158_v14 = vld [vmem:[#allocation2 + $0xf0] sm:$0xff]  ;;  %v1160_v28 = vld [vmem:[#allocation2 + $0x100] sm:$0xff] }
 0x157   : > { %v1887_v48 = vpack.c.bf16 %v1274_v34, %v1274_v34  ;;  %v1888_v49 = vpack.c.bf16 %v1275_v35, %v1275_v35  ;;  %1591 = vst.msk [vmem:[%s2792_s3 + $0x20] sm:$0xf] %vm1582_vm2, %v1883_v40  ;;  %1592 = vst.msk [vmem:[%s2792_s3 + $0x24] sm:$0xf] %vm1582_vm2, %v1884_v41  ;;  %v1216_v54 = vadd.f32 %v2458_v47, %v1146_v33  ;;  %v1278_v61 = vmax.f32 %v1214_v52, 0.0  ;;  %v1156_v8 = vld [vmem:[#allocation2 + $0xe0] sm:$0xff] }
 0x158   : > { %v1889_v50 = vpack.c.bf16 %v1276_v36, %v1276_v36  ;;  %v1890_v51 = vpack.c.bf16 %v1277_v37, %v1277_v37  ;;  %1593 = vst.msk [vmem:[%s2792_s3 + $0x28] sm:$0xf] %vm1582_vm2, %v1885_v42  ;;  %1594 = vst.msk [vmem:[%s2792_s3 + $0x2c] sm:$0xf] %vm1582_vm2, %v1886_v43  ;;  %v1217_v55 = vadd.f32 %v2458_v47, %v1147_v38  ;;  %v1279_v62 = vmax.f32 %v1215_v53, 0.0  ;;  %v1159_v15 = vld [vmem:[#allocation2 + $0xf8] sm:$0xff] }
 0x159   : > { %1595 = vst.msk [vmem:[%s2792_s3 + $0x30] sm:$0xf] %vm1582_vm2, %v1887_v48  ;;  %1596 = vst.msk [vmem:[%s2792_s3 + $0x34] sm:$0xf] %vm1582_vm2, %v1888_v49  ;;  %v1218_v56 = vadd.f32 %v2458_v47, %v1148_v39  ;;  %v1219_v57 = vadd.f32 %v2458_v47, %v1149_v44  ;;  %v1220_v58 = vadd.f32 %v2458_v47, %v1150_v45  ;;  %v1280_v63 = vmax.f32 %v1216_v54, 0.0  ;;  %v1157_v13 = vld [vmem:[#allocation2 + $0xe8] sm:$0xff] }
 0x15a   : > { %1597 = vst.msk [vmem:[%s2792_s3 + $0x38] sm:$0xf] %vm1582_vm2, %v1889_v50  ;;  %1598 = vst.msk [vmem:[%s2792_s3 + $0x3c] sm:$0xf] %vm1582_vm2, %v1890_v51  ;;  %v1221_v59 = vadd.f32 %v2458_v47, %v1151_v46  ;;  %v1281_v0 = vmax.f32 %v1217_v55, 0.0  ;;  %v1891_v9 = vpack.c.bf16 %v1278_v61, %v1278_v61  ;;  %v1892_v10 = vpack.c.bf16 %v1279_v62, %v1279_v62  ;;  %v1161_v33 = vld [vmem:[#allocation2 + $0x108] sm:$0xff] }
 0x15b   : > { %v1282_v3 = vmax.f32 %v1218_v56, 0.0  ;;  %v1283_v4 = vmax.f32 %v1219_v57, 0.0  ;;  %v1284_v5 = vmax.f32 %v1220_v58, 0.0  ;;  %v1893_v11 = vpack.c.bf16 %v1280_v63, %v1280_v63  ;;  %v1162_v34 = vld [vmem:[#allocation2 + $0x110] sm:$0xff]  ;;  %v1163_v39 = vld [vmem:[#allocation2 + $0x118] sm:$0xff]  ;;  %v1164_v40 = vld [vmem:[#allocation2 + $0x120] sm:$0xff] }
 0x15c   : > { %v1285_v6 = vmax.f32 %v1221_v59, 0.0  ;;  %v1894_v12 = vpack.c.bf16 %v1281_v0, %v1281_v0  ;;  %1599 = vst.msk [vmem:[%s2792_s3 + $0x40] sm:$0xf] %vm1582_vm2, %v1891_v9  ;;  %1600 = vst.msk [vmem:[%s2792_s3 + $0x44] sm:$0xf] %vm1582_vm2, %v1892_v10  ;;  %v1222_v20 = vadd.f32 %v2458_v47, %v1152_v60  ;;  %v1223_v21 = vadd.f32 %v2458_v47, %v1153_v1  ;;  %v1165_v45 = vld [vmem:[#allocation2 + $0x128] sm:$0xff] }
 0x15d   : > { %v1895_v16 = vpack.c.bf16 %v1282_v3, %v1282_v3  ;;  %v1896_v17 = vpack.c.bf16 %v1283_v4, %v1283_v4  ;;  %v1897_v18 = vpack.c.bf16 %v1284_v5, %v1284_v5  ;;  %1601 = vst.msk [vmem:[%s2792_s3 + $0x48] sm:$0xf] %vm1582_vm2, %v1893_v11  ;;  %v1224_v22 = vadd.f32 %v2458_v47, %v1154_v2  ;;  %v1166_v46 = vld [vmem:[#allocation2 + $0x130] sm:$0xff]  ;;  %v1167_v48 = vld [vmem:[#allocation2 + $0x138] sm:$0xff]  ;;  %v1168_v61 = vld [vmem:[#allocation2 + $0x140] sm:$0xff] }
 0x15e   : > { %v1898_v19 = vpack.c.bf16 %v1285_v6, %v1285_v6  ;;  %1602 = vst.msk [vmem:[%s2792_s3 + $0x4c] sm:$0xf] %vm1582_vm2, %v1894_v12  ;;  %v1225_v23 = vadd.f32 %v2458_v47, %v1155_v7  ;;  %v1226_v24 = vadd.f32 %v2458_v47, %v1156_v8  ;;  %v1227_v25 = vadd.f32 %v2458_v47, %v1157_v13  ;;  %v1169_v2 = vld [vmem:[#allocation2 + $0x148] sm:$0xff]  ;;  %v1170_v3 = vld [vmem:[#allocation2 + $0x150] sm:$0xff]  ;;  %v1171_v8 = vld [vmem:[#allocation2 + $0x158] sm:$0xff] }
 0x15f   : > { %1603 = vst.msk [vmem:[%s2792_s3 + $0x50] sm:$0xf] %vm1582_vm2, %v1895_v16  ;;  %1604 = vst.msk [vmem:[%s2792_s3 + $0x54] sm:$0xf] %vm1582_vm2, %v1896_v17  ;;  %v1228_v26 = vadd.f32 %v2458_v47, %v1158_v14  ;;  %v1229_v27 = vadd.f32 %v2458_v47, %v1159_v15  ;;  %v1286_v29 = vmax.f32 %v1222_v20, 0.0  ;;  %v1287_v30 = vmax.f32 %v1223_v21, 0.0 }
 0x160   : > { %1605 = vst.msk [vmem:[%s2792_s3 + $0x58] sm:$0xf] %vm1582_vm2, %v1897_v18  ;;  %1606 = vst.msk [vmem:[%s2792_s3 + $0x5c] sm:$0xf] %vm1582_vm2, %v1898_v19  ;;  %v1288_v31 = vmax.f32 %v1224_v22, 0.0  ;;  %v1289_v32 = vmax.f32 %v1225_v23, 0.0  ;;  %v1230_v53 = vadd.f32 %v2458_v47, %v1160_v28  ;;  %v1231_v54 = vadd.f32 %v2458_v47, %v1161_v33 }
 0x161   : > { %v1290_v35 = vmax.f32 %v1226_v24, 0.0  ;;  %v1291_v36 = vmax.f32 %v1227_v25, 0.0  ;;  %v1292_v37 = vmax.f32 %v1228_v26, 0.0  ;;  %v1293_v38 = vmax.f32 %v1229_v27, 0.0  ;;  %v1172_v9 = vld [vmem:[#allocation2 + $0x160] sm:$0xff]  ;;  %v1173_v14 = vld [vmem:[#allocation2 + $0x168] sm:$0xff] }
 0x162   : > { %v1899_v41 = vpack.c.bf16 %v1286_v29, %v1286_v29  ;;  %v1900_v42 = vpack.c.bf16 %v1287_v30, %v1287_v30  ;;  %v1901_v43 = vpack.c.bf16 %v1288_v31, %v1288_v31  ;;  %v1902_v44 = vpack.c.bf16 %v1289_v32, %v1289_v32  ;;  %v1174_v15 = vld [vmem:[#allocation2 + $0x170] sm:$0xff]  ;;  %v1175_v16 = vld [vmem:[#allocation2 + $0x178] sm:$0xff]  ;;  %v1176_v29 = vld [vmem:[#allocation2 + $0x180] sm:$0xff] }
 0x163   : > { %v1903_v49 = vpack.c.bf16 %v1290_v35, %v1290_v35  ;;  %v1904_v50 = vpack.c.bf16 %v1291_v36, %v1291_v36  ;;  %v1905_v51 = vpack.c.bf16 %v1292_v37, %v1292_v37  ;;  %v1906_v52 = vpack.c.bf16 %v1293_v38, %v1293_v38  ;;  %v1178_v35 = vld [vmem:[#allocation2 + $0x190] sm:$0xff] }
 0x164   : > { %1607 = vst.msk [vmem:[%s2792_s3 + $0x60] sm:$0xf] %vm1582_vm2, %v1899_v41  ;;  %1608 = vst.msk [vmem:[%s2792_s3 + $0x64] sm:$0xf] %vm1582_vm2, %v1900_v42  ;;  %v1232_v55 = vadd.f32 %v2458_v47, %v1162_v34  ;;  %v1233_v56 = vadd.f32 %v2458_v47, %v1163_v39  ;;  %v1234_v57 = vadd.f32 %v2458_v47, %v1164_v40  ;;  %v1294_v62 = vmax.f32 %v1230_v53, 0.0  ;;  %v1177_v34 = vld [vmem:[#allocation2 + $0x188] sm:$0xff] }
 0x165   : > { %1609 = vst.msk [vmem:[%s2792_s3 + $0x68] sm:$0xf] %vm1582_vm2, %v1901_v43  ;;  %1610 = vst.msk [vmem:[%s2792_s3 + $0x6c] sm:$0xf] %vm1582_vm2, %v1902_v44  ;;  %v1235_v58 = vadd.f32 %v2458_v47, %v1165_v45  ;;  %v1236_v59 = vadd.f32 %v2458_v47, %v1166_v46  ;;  %v1237_v60 = vadd.f32 %v2458_v47, %v1167_v48  ;;  %v1295_v63 = vmax.f32 %v1231_v54, 0.0  ;;  %v1179_v40 = vld [vmem:[#allocation2 + $0x198] sm:$0xff] }
 0x166   : > { %1611 = vst.msk [vmem:[%s2792_s3 + $0x70] sm:$0xf] %vm1582_vm2, %v1903_v49  ;;  %1612 = vst.msk [vmem:[%s2792_s3 + $0x74] sm:$0xf] %vm1582_vm2, %v1904_v50  ;;  %v1296_v0 = vmax.f32 %v1232_v55, 0.0  ;;  %v1297_v1 = vmax.f32 %v1233_v56, 0.0  ;;  %v1907_v10 = vpack.c.bf16 %v1294_v62, %v1294_v62  ;;  %v1238_v21 = vadd.f32 %v2458_v47, %v1168_v61 }
 0x167   : > { %1613 = vst.msk [vmem:[%s2792_s3 + $0x78] sm:$0xf] %vm1582_vm2, %v1905_v51  ;;  %1614 = vst.msk [vmem:[%s2792_s3 + $0x7c] sm:$0xf] %vm1582_vm2, %v1906_v52  ;;  %v1298_v4 = vmax.f32 %v1234_v57, 0.0  ;;  %v1299_v5 = vmax.f32 %v1235_v58, 0.0  ;;  %v1908_v11 = vpack.c.bf16 %v1295_v63, %v1295_v63  ;;  %v1239_v22 = vadd.f32 %v2458_v47, %v1169_v2 }
 0x168   : > { %v1300_v6 = vmax.f32 %v1236_v59, 0.0  ;;  %v1301_v7 = vmax.f32 %v1237_v60, 0.0  ;;  %v1909_v12 = vpack.c.bf16 %v1296_v0, %v1296_v0  ;;  %v1910_v13 = vpack.c.bf16 %v1297_v1, %v1297_v1  ;;  %1615 = vst.msk [vmem:[%s2792_s3 + $0x80] sm:$0xf] %vm1582_vm2, %v1907_v10  ;;  %v1180_v41 = vld [vmem:[#allocation2 + $0x1a0] sm:$0xff]  ;;  %v1181_v46 = vld [vmem:[#allocation2 + $0x1a8] sm:$0xff] }
 0x169   : > { %v1911_v17 = vpack.c.bf16 %v1298_v4, %v1298_v4  ;;  %v1912_v18 = vpack.c.bf16 %v1299_v5, %v1299_v5  ;;  %1616 = vst.msk [vmem:[%s2792_s3 + $0x84] sm:$0xf] %vm1582_vm2, %v1908_v11  ;;  %v1240_v23 = vadd.f32 %v2458_v47, %v1170_v3  ;;  %v1241_v24 = vadd.f32 %v2458_v47, %v1171_v8  ;;  %v1182_v48 = vld [vmem:[#allocation2 + $0x1b0] sm:$0xff]  ;;  %v1183_v49 = vld [vmem:[#allocation2 + $0x1b8] sm:$0xff]  ;;  %v1184_v62 = vld [vmem:[#allocation2 + $0x1c0] sm:$0xff] }
 0x16a   : > { %v1913_v19 = vpack.c.bf16 %v1300_v6, %v1300_v6  ;;  %v1914_v20 = vpack.c.bf16 %v1301_v7, %v1301_v7  ;;  %1617 = vst.msk [vmem:[%s2792_s3 + $0x88] sm:$0xf] %vm1582_vm2, %v1909_v12  ;;  %1618 = vst.msk [vmem:[%s2792_s3 + $0x8c] sm:$0xf] %vm1582_vm2, %v1910_v13  ;;  %v1242_v25 = vadd.f32 %v2458_v47, %v1172_v9  ;;  %v1302_v30 = vmax.f32 %v1238_v21, 0.0  ;;  %v1185_v3 = vld [vmem:[#allocation2 + $0x1c8] sm:$0xff] }
 0x16b   : > { %1619 = vst.msk [vmem:[%s2792_s3 + $0x90] sm:$0xf] %vm1582_vm2, %v1911_v17  ;;  %1620 = vst.msk [vmem:[%s2792_s3 + $0x94] sm:$0xf] %vm1582_vm2, %v1912_v18  ;;  %v1243_v26 = vadd.f32 %v2458_v47, %v1173_v14  ;;  %v1244_v27 = vadd.f32 %v2458_v47, %v1174_v15  ;;  %v1245_v28 = vadd.f32 %v2458_v47, %v1175_v16  ;;  %v1303_v31 = vmax.f32 %v1239_v22, 0.0  ;;  %v1186_v4 = vld [vmem:[#allocation2 + $0x1d0] sm:$0xff] }
 0x16c   : > { %1621 = vst.msk [vmem:[%s2792_s3 + $0x98] sm:$0xf] %vm1582_vm2, %v1913_v19  ;;  %1622 = vst.msk [vmem:[%s2792_s3 + $0x9c] sm:$0xf] %vm1582_vm2, %v1914_v20  ;;  %v1304_v32 = vmax.f32 %v1240_v23, 0.0  ;;  %v1305_v33 = vmax.f32 %v1241_v24, 0.0  ;;  %v1915_v42 = vpack.c.bf16 %v1302_v30, %v1302_v30  ;;  %v1246_v54 = vadd.f32 %v2458_v47, %v1176_v29 }
 0x16d   : > { %v1306_v36 = vmax.f32 %v1242_v25, 0.0  ;;  %v1307_v37 = vmax.f32 %v1243_v26, 0.0  ;;  %v1308_v38 = vmax.f32 %v1244_v27, 0.0  ;;  %v1309_v39 = vmax.f32 %v1245_v28, 0.0  ;;  %v1187_v9 = vld [vmem:[#allocation2 + $0x1d8] sm:$0xff]  ;;  %v1188_v10 = vld [vmem:[#allocation2 + $0x1e0] sm:$0xff] }
 0x16e   : > { %v1916_v43 = vpack.c.bf16 %v1303_v31, %v1303_v31  ;;  %v1917_v44 = vpack.c.bf16 %v1304_v32, %v1304_v32  ;;  %v1918_v45 = vpack.c.bf16 %v1305_v33, %v1305_v33  ;;  %1623 = vst.msk [vmem:[%s2792_s3 + $0xa0] sm:$0xf] %vm1582_vm2, %v1915_v42  ;;  %v1247_v55 = vadd.f32 %v2458_v47, %v1177_v34  ;;  %v1189_v15 = vld [vmem:[#allocation2 + $0x1e8] sm:$0xff]  ;;  %v1190_v16 = vld [vmem:[#allocation2 + $0x1f0] sm:$0xff]  ;;  %v1191_v17 = vld [vmem:[#allocation2 + $0x1f8] sm:$0xff] }
 0x16f   : > { %v1919_v50 = vpack.c.bf16 %v1306_v36, %v1306_v36  ;;  %v1920_v51 = vpack.c.bf16 %v1307_v37, %v1307_v37  ;;  %v1921_v52 = vpack.c.bf16 %v1308_v38, %v1308_v38  ;;  %v1922_v53 = vpack.c.bf16 %v1309_v39, %v1309_v39 }
 0x170   : > { %1624 = vst.msk [vmem:[%s2792_s3 + $0xa4] sm:$0xf] %vm1582_vm2, %v1916_v43  ;;  %1625 = vst.msk [vmem:[%s2792_s3 + $0xa8] sm:$0xf] %vm1582_vm2, %v1917_v44  ;;  %v1248_v56 = vadd.f32 %v2458_v47, %v1178_v35  ;;  %v1249_v57 = vadd.f32 %v2458_v47, %v1179_v40  ;;  %v1250_v58 = vadd.f32 %v2458_v47, %v1180_v41  ;;  %v1310_v63 = vmax.f32 %v1246_v54, 0.0 }
 0x171   : > { %1626 = vst.msk [vmem:[%s2792_s3 + $0xac] sm:$0xf] %vm1582_vm2, %v1918_v45  ;;  %1627 = vst.msk [vmem:[%s2792_s3 + $0xb0] sm:$0xf] %vm1582_vm2, %v1919_v50  ;;  %v1251_v59 = vadd.f32 %v2458_v47, %v1181_v46  ;;  %v1252_v60 = vadd.f32 %v2458_v47, %v1182_v48  ;;  %v1253_v61 = vadd.f32 %v2458_v47, %v1183_v49  ;;  %v1311_v0 = vmax.f32 %v1247_v55, 0.0 }
 0x172   : > { %1628 = vst.msk [vmem:[%s2792_s3 + $0xb4] sm:$0xf] %vm1582_vm2, %v1920_v51  ;;  %1629 = vst.msk [vmem:[%s2792_s3 + $0xb8] sm:$0xf] %vm1582_vm2, %v1921_v52  ;;  %v1312_v1 = vmax.f32 %v1248_v56, 0.0  ;;  %v1313_v2 = vmax.f32 %v1249_v57, 0.0  ;;  %v1923_v11 = vpack.c.bf16 %v1310_v63, %v1310_v63  ;;  %v1254_v22 = vadd.f32 %v2458_v47, %v1184_v62 }
 0x173   : > { %1630 = vst.msk [vmem:[%s2792_s3 + $0xbc] sm:$0xf] %vm1582_vm2, %v1922_v53  ;;  %v1314_v5 = vmax.f32 %v1250_v58, 0.0  ;;  %v1315_v6 = vmax.f32 %v1251_v59, 0.0  ;;  %v1316_v7 = vmax.f32 %v1252_v60, 0.0  ;;  %v1317_v8 = vmax.f32 %v1253_v61, 0.0 }
 0x174   : > { %v1924_v12 = vpack.c.bf16 %v1311_v0, %v1311_v0  ;;  %v1925_v13 = vpack.c.bf16 %v1312_v1, %v1312_v1  ;;  %v1926_v14 = vpack.c.bf16 %v1313_v2, %v1313_v2  ;;  %1631 = vst.msk [vmem:[%s2792_s3 + $0xc0] sm:$0xf] %vm1582_vm2, %v1923_v11  ;;  %v1255_v23 = vadd.f32 %v2458_v47, %v1185_v3 }
 0x175   : > { %v1927_v18 = vpack.c.bf16 %v1314_v5, %v1314_v5  ;;  %v1928_v19 = vpack.c.bf16 %v1315_v6, %v1315_v6  ;;  %v1929_v20 = vpack.c.bf16 %v1316_v7, %v1316_v7  ;;  %v1930_v21 = vpack.c.bf16 %v1317_v8, %v1317_v8 }
 0x176   : > { %1632 = vst.msk [vmem:[%s2792_s3 + $0xc4] sm:$0xf] %vm1582_vm2, %v1924_v12  ;;  %1633 = vst.msk [vmem:[%s2792_s3 + $0xc8] sm:$0xf] %vm1582_vm2, %v1925_v13  ;;  %v1256_v24 = vadd.f32 %v2458_v47, %v1186_v4  ;;  %v1257_v25 = vadd.f32 %v2458_v47, %v1187_v9  ;;  %v1258_v26 = vadd.f32 %v2458_v47, %v1188_v10  ;;  %v1318_v30 = vmax.f32 %v1254_v22, 0.0 }
 0x177   : > { %1634 = vst.msk [vmem:[%s2792_s3 + $0xcc] sm:$0xf] %vm1582_vm2, %v1926_v14  ;;  %1635 = vst.msk [vmem:[%s2792_s3 + $0xd0] sm:$0xf] %vm1582_vm2, %v1927_v18  ;;  %v1259_v27 = vadd.f32 %v2458_v47, %v1189_v15  ;;  %v1260_v28 = vadd.f32 %v2458_v47, %v1190_v16  ;;  %v1261_v29 = vadd.f32 %v2458_v47, %v1191_v17  ;;  %v1319_v31 = vmax.f32 %v1255_v23, 0.0 }
 0x178   : > { %1636 = vst.msk [vmem:[%s2792_s3 + $0xd4] sm:$0xf] %vm1582_vm2, %v1928_v19  ;;  %1637 = vst.msk [vmem:[%s2792_s3 + $0xd8] sm:$0xf] %vm1582_vm2, %v1929_v20  ;;  %v1320_v32 = vmax.f32 %v1256_v24, 0.0  ;;  %v1321_v33 = vmax.f32 %v1257_v25, 0.0  ;;  %v1931_v38 = vpack.c.bf16 %v1318_v30, %v1318_v30 }
 0x179   : > { %1638 = vst.msk [vmem:[%s2792_s3 + $0xdc] sm:$0xf] %vm1582_vm2, %v1930_v21  ;;  %v1322_v34 = vmax.f32 %v1258_v26, 0.0  ;;  %v1323_v35 = vmax.f32 %v1259_v27, 0.0  ;;  %v1324_v36 = vmax.f32 %v1260_v28, 0.0  ;;  %v1325_v37 = vmax.f32 %v1261_v29, 0.0 }
 0x17a   : > { %v1932_v39 = vpack.c.bf16 %v1319_v31, %v1319_v31  ;;  %v1933_v40 = vpack.c.bf16 %v1320_v32, %v1320_v32  ;;  %v1934_v41 = vpack.c.bf16 %v1321_v33, %v1321_v33  ;;  %1639 = vst.msk [vmem:[%s2792_s3 + $0xe0] sm:$0xf] %vm1582_vm2, %v1931_v38 }
 0x17b   : > { %v1935_v42 = vpack.c.bf16 %v1322_v34, %v1322_v34  ;;  %v1936_v43 = vpack.c.bf16 %v1323_v35, %v1323_v35  ;;  %v1937_v44 = vpack.c.bf16 %v1324_v36, %v1324_v36  ;;  %v1938_v45 = vpack.c.bf16 %v1325_v37, %v1325_v37 }
 0x17c   : > { %1640 = vst.msk [vmem:[%s2792_s3 + $0xe4] sm:$0xf] %vm1582_vm2, %v1932_v39  ;;  %1641 = vst.msk [vmem:[%s2792_s3 + $0xe8] sm:$0xf] %vm1582_vm2, %v1933_v40 }
 0x17d   : > { %1642 = vst.msk [vmem:[%s2792_s3 + $0xec] sm:$0xf] %vm1582_vm2, %v1934_v41  ;;  %1643 = vst.msk [vmem:[%s2792_s3 + $0xf0] sm:$0xf] %vm1582_vm2, %v1935_v42 }
 0x17e   : > { %1644 = vst.msk [vmem:[%s2792_s3 + $0xf4] sm:$0xf] %vm1582_vm2, %v1936_v43  ;;  %1645 = vst.msk [vmem:[%s2792_s3 + $0xf8] sm:$0xf] %vm1582_vm2, %v1937_v44 }
 0x17f   : > { %1646 = vst.msk [vmem:[%s2792_s3 + $0xfc] sm:$0xf] %vm1582_vm2, %v1938_v45 }
 0x180 PF: > { %s13_s14 = sadd.s32 1, %s2138_s14   ;;  %s2793_s12 = smov %s2134_s13 }
 0x181   : > { %p10_p7 = scmp.ge.s32.totalorder %s13_s14, 11   ;;  %s2794_s13 = smov %s2796_s15 }
 0x183   :  { %12 = sbr.rel (!%p10_p7) target bundleno = 2 (0x2), region = 73 }

// kernel: vgg_loss.45
= control target key start
LH: loop header
LB: loop body
LE: loop exit
PB: predicated region body
PF: predicated region fallthrough
CT: control target
= control target key end

     0   :  { %s993_s12 = smov 0   ;;  %s995_s13 = smov 0   ;;  %s1079_s0 = inlined_call_operand.vmem [shape: bf16[9,128,128], index: 0, kind: input, shape index: {}]   ;;  %s1080_s1 = inlined_call_operand.vmem [shape: bf16[9,128,128], index: 1, kind: input, shape index: {}]   ;;  %s1081_s2 = inlined_call_operand.vmem [shape: bf16[1,128], index: 2, kind: input, shape index: {}]   ;;  %s1082_s3 = inlined_call_operand.vmem [shape: bf16[128,128], index: 3, kind: output, shape index: {}]  }
   0x1   :  { %s997_s14 = smov 0  }
   0x2 LB: > { %s22_s15 = sadd.s32 1, %s966_s13  ;;  %p735_p0 = scmp.ge.s32.totalorder %s970_s14, 1  ;;  %s970_s14 = sphi %s997_s14, %s13_s14   ;;  %s966_s13 = sphi %s995_s13, %s1084_s13   ;;  %s962_s12 = sphi %s993_s12, %s1083_s12  }
   0x3   : > { %p23_p1 = scmp.ge.s32.totalorder %s22_s15, 9  ;;  %p166_p2 = scmp.lt.s32.totalorder %s970_s14, 10 }
   0x5   : > { %s1086_s15 = smov (%p23_p1, %s22_s15), 0  ;;  %p167_p3 = pnand %p735_p0, %p166_p2 }
   0x6   : > { %p200_p4 = scmp.lt.s32.totalorder (!%p167_p3), %s962_s12, 8  ;;  %p740_p5 = scmp.ne.s32.totalorder (!%p167_p3), %s962_s12, 0 }
   0x7   : > { %170 = sbr.rel (%p167_p3) target bundleno = 298 (0x12a), region = 32 }
   0xe   : > { %s201_s16 = scalar_select %p200_p4, %s962_s12, 8 }
   0xf   : > { %224 = sbr.rel (%p740_p5) target bundleno = 24 (0x18), region = 36  ;;  %v972_v0 = vmov (!%p740_p5), 0.0  }
  0x10   : > { %s778_s17 = sshll.u32 %s201_s16, 6  ;;  %225 = vst [vmem:[#allocation2] sm:$0xff] (!%p740_p5), %v972_v0  ;;  %226 = vst [vmem:[#allocation2 + $0x8] sm:$0xff] (!%p740_p5), %v972_v0 }
  0x11   : > { %s1018_s20 = scalar_lea.vmem %s1079_s0, %s778_s17  ;;  %s1023_s23 = scalar_lea.vmem %s1080_s1, %s778_s17  ;;  %227 = vst [vmem:[#allocation2 + $0x10] sm:$0xff] (!%p740_p5), %v972_v0  ;;  %228 = vst [vmem:[#allocation2 + $0x18] sm:$0xff] (!%p740_p5), %v972_v0 }
  0x12   : > { %229 = vst [vmem:[#allocation2 + $0x20] sm:$0xff] (!%p740_p5), %v972_v0  ;;  %230 = vst [vmem:[#allocation2 + $0x28] sm:$0xff] (!%p740_p5), %v972_v0 }
  0x13   : > { %231 = vst [vmem:[#allocation2 + $0x30] sm:$0xff] (!%p740_p5), %v972_v0  ;;  %232 = vst [vmem:[#allocation2 + $0x38] sm:$0xff] (!%p740_p5), %v972_v0 }
  0x14   : > { %233 = vst [vmem:[#allocation2 + $0x40] sm:$0xff] (!%p740_p5), %v972_v0  ;;  %234 = vst [vmem:[#allocation2 + $0x48] sm:$0xff] (!%p740_p5), %v972_v0 }
  0x15   : > { %235 = vst [vmem:[#allocation2 + $0x50] sm:$0xff] (!%p740_p5), %v972_v0  ;;  %236 = vst [vmem:[#allocation2 + $0x58] sm:$0xff] (!%p740_p5), %v972_v0 }
  0x16   : > { %237 = vst [vmem:[#allocation2 + $0x60] sm:$0xff] %v972_v0  ;;  %238 = vst [vmem:[#allocation2 + $0x68] sm:$0xff] %v972_v0 }
  0x17   : > { %239 = vst [vmem:[#allocation2 + $0x70] sm:$0xff] %v972_v0  ;;  %240 = vst [vmem:[#allocation2 + $0x78] sm:$0xff] %v972_v0 }
  0x18 PF: > { %v932_v1 = vld [vmem:[%s1023_s23] sm:$0xff]   ;;  %v933_v2 = vld [vmem:[%s1023_s23 + $0x8] sm:$0xff]   ;;  %v934_v3 = vld [vmem:[%s1023_s23 + $0x10] sm:$0xff]   ;;  %p757_p6 = scmp.ne.s32.totalorder %s962_s12, 8 }
  0x19   : > { %859 = vmatprep.subr.bf16.mxu0 %v932_v1  ;;  %891 = vmatprep.subr.bf16.mxu1 %v932_v1  ;;  %v935_v4 = vld [vmem:[%s1023_s23 + $0x18] sm:$0xff]   ;;  %v940_v5 = vld [vmem:[%s1018_s20] sm:$0xff]   ;;  %v937_v8 = vld [vmem:[%s1023_s23 + $0x28] sm:$0xff]  }
  0x1a   : > { %860 = vmatpush3.bf16.msra.mxu0 %v932_v1  ;;  %899 = vmatpush3.bf16.msra.mxu1 %v932_v1  ;;  %v941_v6 = vld [vmem:[%s1018_s20 + $0x20] sm:$0xff]   ;;  %v938_v9 = vld [vmem:[%s1023_s23 + $0x30] sm:$0xff]   ;;  %v939_v10 = vld [vmem:[%s1023_s23 + $0x38] sm:$0xff]  }
  0x1b   : > { %861 = vmatprep.subr.bf16.mxu0 %v933_v2  ;;  %892 = vmatprep.subr.bf16.mxu1 %v933_v2  ;;  %v936_v7 = vld [vmem:[%s1023_s23 + $0x20] sm:$0xff]   ;;  %v942_v11 = vld [vmem:[%s1018_s20 + $0x8] sm:$0xff]   ;;  %v944_v13 = vld [vmem:[%s1018_s20 + $0x10] sm:$0xff]  }
  0x1c   : > { %875 = vmatprep.mubr.bf16.mxu0 %v940_v5  ;;  %883 = vmatprep.mubr.bf16.mxu1 %v941_v6  ;;  %v943_v12 = vld [vmem:[%s1018_s20 + $0x28] sm:$0xff]   ;;  %v945_v14 = vld [vmem:[%s1018_s20 + $0x30] sm:$0xff]   ;;  %v946_v15 = vld [vmem:[%s1018_s20 + $0x18] sm:$0xff]  }
  0x1d   : > { %v947_v16 = vld [vmem:[%s1018_s20 + $0x38] sm:$0xff]   ;;  %v243_v17 = vld [vmem:[#allocation2 + $0x10] sm:$0xff]  ;;  %v241_v19 = vld [vmem:[#allocation2] sm:$0xff] }
  0x1e   : > { %862 = vmatpush3.bf16.msra.mxu0 %v933_v2  ;;  %900 = vmatpush3.bf16.msra.mxu1 %v933_v2  ;;  %v251_v18 = vld [vmem:[#allocation2 + $0x50] sm:$0xff]  ;;  %v249_v20 = vld [vmem:[#allocation2 + $0x40] sm:$0xff]  ;;  %v244_v23 = vld [vmem:[#allocation2 + $0x18] sm:$0xff]  ;;  %v536_v2 = vlaneseq (!%p757_p6) }
  0x1f   : > { %863 = vmatprep.subr.bf16.mxu0 %v934_v3  ;;  %893 = vmatprep.subr.bf16.mxu1 %v934_v3  ;;  %v252_v24 = vld [vmem:[#allocation2 + $0x58] sm:$0xff]  ;;  %v242_v29 = vld [vmem:[#allocation2 + $0x8] sm:$0xff]  ;;  %v247_v41 = vld [vmem:[#allocation2 + $0x30] sm:$0xff] }
  0x20   : > { %v250_v30 = vld [vmem:[#allocation2 + $0x48] sm:$0xff]  ;;  %v255_v42 = vld [vmem:[#allocation2 + $0x70] sm:$0xff]  ;;  %v245_v43 = vld [vmem:[#allocation2 + $0x20] sm:$0xff] }
  0x21   : > { %v253_v44 = vld [vmem:[#allocation2 + $0x60] sm:$0xff]  ;;  %v248_v47 = vld [vmem:[#allocation2 + $0x38] sm:$0xff]  ;;  %v246_v53 = vld [vmem:[#allocation2 + $0x28] sm:$0xff] }
  0x22   : > { %864 = vmatpush3.bf16.msra.mxu0 %v934_v3  ;;  %901 = vmatpush3.bf16.msra.mxu1 %v934_v3  ;;  %v256_v48 = vld [vmem:[#allocation2 + $0x78] sm:$0xff]  ;;  %v254_v54 = vld [vmem:[#allocation2 + $0x68] sm:$0xff]  ;;  %v534_v1 = vld [vmem:[%s1081_s2] sm:$0x1] (!%p757_p6) }
  0x23   : > { %865 = vmatprep.subr.bf16.mxu0 %v935_v4  ;;  %894 = vmatprep.subr.bf16.mxu1 %v935_v4  ;;  %v535_v3 = vunpack.c.l.bf16 (!%p757_p6), %v534_v1 }
  0x26   : > { %866 = vmatpush3.bf16.msra.mxu0 %v935_v4  ;;  %902 = vmatpush3.bf16.msra.mxu1 %v935_v4  ;;  %v537_v4 = vshrl.u32 (!%p757_p6), %v536_v2, 7 }
  0x27   : > { %867 = vmatprep.subr.bf16.mxu0 %v936_v7  ;;  %895 = vmatprep.subr.bf16.mxu1 %v936_v7 }
  0x2a   : > { %868 = vmatpush3.bf16.msra.mxu0 %v936_v7  ;;  %903 = vmatpush3.bf16.msra.mxu1 %v936_v7  ;;  %v538_v7 = vsub.s32 (!%p757_p6), 0, %v537_v4 }
  0x2b   : > { %869 = vmatprep.subr.bf16.mxu0 %v937_v8  ;;  %896 = vmatprep.subr.bf16.mxu1 %v937_v8 }
  0x2e   : > { %870 = vmatpush3.bf16.msra.mxu0 %v937_v8  ;;  %904 = vmatpush3.bf16.msra.mxu1 %v937_v8 }
  0x2f   : > { %871 = vmatprep.subr.bf16.mxu0 %v938_v9  ;;  %897 = vmatprep.subr.bf16.mxu1 %v938_v9 }
  0x32   : > { %872 = vmatpush3.bf16.msra.mxu0 %v938_v9  ;;  %905 = vmatpush3.bf16.msra.mxu1 %v938_v9 }
  0x33   : > { %873 = vmatprep.subr.bf16.mxu0 %v939_v10  ;;  %898 = vmatprep.subr.bf16.mxu1 %v939_v10 }
  0x36   : > { %874 = vmatpush3.bf16.msra.mxu0 %v939_v10  ;;  %906 = vmatpush3.bf16.msra.mxu1 %v939_v10 }
  0x39   : > { %876 = vmatmul.mubr.bf16.vlgmr.msra.gmra.mrb[0].mxu0 %v942_v11  ;;  %884 = vmatmul.mubr.bf16.vlgmr.msra.gmra.mrb[0].mxu1 %v943_v12  ;;  %v539_v11 = vrot.slane (!%p757_p6), %v535_v3, %v538_v7 }
  0x3a   : > { %879 = vmatprep.mubr.bf16.mxu0 %v944_v13  ;;  %887 = vmatprep.mubr.bf16.mxu1 %v945_v14 }
  0x41   : > { %880 = vmatmul.mubr.bf16.gmra.mrb[4].mxu0 %v946_v15  ;;  %888 = vmatmul.mubr.bf16.gmra.mrb[4].mxu1 %v947_v16 }
 0x10c   : > { %v877_v21 = vpop.f32.mrb[0].mxu0  ;;  %v885_v22 = vpop.f32.mrb[0].mxu1 }
 0x10d   : > { %v484_v25 = vadd.f32 %v877_v21, %v243_v17  ;;  %v492_v26 = vadd.f32 %v885_v22, %v251_v18  ;;  %v419_v27 = vpop.f32.mrb[1].mxu0  ;;  %v451_v28 = vpop.f32.mrb[1].mxu1 }
 0x10e   : > { %v482_v31 = vadd.f32 %v419_v27, %v241_v19  ;;  %v490_v32 = vadd.f32 %v451_v28, %v249_v20  ;;  %v878_v33 = vpop.f32.mrb[2].mxu0  ;;  %v886_v34 = vpop.f32.mrb[2].mxu1 }
 0x10f   : > { %500 = vst [vmem:[#allocation2 + $0x10] sm:$0xff] %v484_v25  ;;  %508 = vst [vmem:[#allocation2 + $0x50] sm:$0xff] %v492_v26  ;;  %v485_v35 = vadd.f32 %v878_v33, %v244_v23  ;;  %v493_v36 = vadd.f32 %v886_v34, %v252_v24  ;;  %v422_v37 = vpop.f32.mrb[3].mxu0  ;;  %v454_v38 = vpop.f32.mrb[3].mxu1 }
 0x110   : > { %498 = vst [vmem:[#allocation2] sm:$0xff] %v482_v31  ;;  %506 = vst [vmem:[#allocation2 + $0x40] sm:$0xff] %v490_v32  ;;  %v483_v39 = vadd.f32 %v422_v37, %v242_v29  ;;  %v491_v40 = vadd.f32 %v454_v38, %v250_v30 }
 0x111   : > { %501 = vst [vmem:[#allocation2 + $0x18] sm:$0xff] %v485_v35  ;;  %509 = vst [vmem:[#allocation2 + $0x58] sm:$0xff] %v493_v36 }
 0x112   : > { %499 = vst [vmem:[#allocation2 + $0x8] sm:$0xff] %v483_v39  ;;  %507 = vst [vmem:[#allocation2 + $0x48] sm:$0xff] %v491_v40 }
 0x114   : > { %v881_v45 = vpop.f32.mrb[4].mxu0  ;;  %v889_v46 = vpop.f32.mrb[4].mxu1  ;;  %517 = sbr.rel (%p757_p6) target bundleno = 298 (0x12a), region = 40 }
 0x115   : > { %v488_v49 = vadd.f32 %v881_v45, %v247_v41  ;;  %v496_v50 = vadd.f32 %v889_v46, %v255_v42  ;;  %v435_v51 = vpop.f32.mrb[5].mxu0  ;;  %v467_v52 = vpop.f32.mrb[5].mxu1 }
 0x116   : > { %v486_v55 = vadd.f32 %v435_v51, %v245_v43  ;;  %v494_v56 = vadd.f32 %v467_v52, %v253_v44  ;;  %v882_v57 = vpop.f32.mrb[6].mxu0  ;;  %v890_v58 = vpop.f32.mrb[6].mxu1  ;;  %v520_v8 = vld [vmem:[#allocation2 + $0x10] sm:$0xff] (!%p757_p6) }
 0x117   : > { %504 = vst [vmem:[#allocation2 + $0x30] sm:$0xff] %v488_v49  ;;  %512 = vst [vmem:[#allocation2 + $0x70] sm:$0xff] %v496_v50  ;;  %v489_v59 = vadd.f32 %v882_v57, %v248_v47  ;;  %v497_v60 = vadd.f32 %v890_v58, %v256_v48  ;;  %v438_v61 = vpop.f32.mrb[7].mxu0  ;;  %v470_v62 = vpop.f32.mrb[7].mxu1  ;;  %v518_v5 = vld [vmem:[#allocation2] sm:$0xff] (!%p757_p6)  ;;  %v542_v17 = vadd.f32 (!%p757_p6), %v539_v11, %v520_v8  ;;  %v528_v29 = vld [vmem:[#allocation2 + $0x50] sm:$0xff] (!%p757_p6) }
 0x118   : > { %502 = vst [vmem:[#allocation2 + $0x20] sm:$0xff] %v486_v55  ;;  %510 = vst [vmem:[#allocation2 + $0x60] sm:$0xff] %v494_v56  ;;  %v487_v63 = vadd.f32 %v438_v61, %v246_v53  ;;  %v495_v0 = vadd.f32 %v470_v62, %v254_v54  ;;  %v521_v9 = vld [vmem:[#allocation2 + $0x18] sm:$0xff] (!%p757_p6)  ;;  %v540_v15 = vadd.f32 (!%p757_p6), %v539_v11, %v518_v5  ;;  %v526_v23 = vld [vmem:[#allocation2 + $0x40] sm:$0xff] (!%p757_p6) }
 0x119   : > { %505 = vst [vmem:[#allocation2 + $0x38] sm:$0xff] %v489_v59  ;;  %513 = vst [vmem:[#allocation2 + $0x78] sm:$0xff] %v497_v60  ;;  %v519_v6 = vld [vmem:[#allocation2 + $0x8] sm:$0xff] (!%p757_p6)  ;;  %v543_v18 = vadd.f32 (!%p757_p6), %v539_v11, %v521_v9  ;;  %v558_v27 = vmax.f32 (!%p757_p6), %v542_v17, 0.0  ;;  %v529_v30 = vld [vmem:[#allocation2 + $0x58] sm:$0xff] (!%p757_p6)  ;;  %v548_v39 = vadd.f32 (!%p757_p6), %v539_v11, %v526_v23  ;;  %v550_v45 = vadd.f32 (!%p757_p6), %v539_v11, %v528_v29 }
 0x11a   : > { %503 = vst [vmem:[#allocation2 + $0x28] sm:$0xff] %v487_v63  ;;  %511 = vst [vmem:[#allocation2 + $0x68] sm:$0xff] %v495_v0  ;;  %v541_v16 = vadd.f32 (!%p757_p6), %v539_v11, %v519_v6  ;;  %v527_v24 = vld [vmem:[#allocation2 + $0x48] sm:$0xff] (!%p757_p6)  ;;  %v556_v25 = vmax.f32 (!%p757_p6), %v540_v15, 0.0  ;;  %v551_v46 = vadd.f32 (!%p757_p6), %v539_v11, %v529_v30 }
 0x11b   : > { %v559_v28 = vmax.f32 %v543_v18, 0.0  ;;  %v549_v40 = vadd.f32 %v539_v11, %v527_v24  ;;  %v564_v47 = vmax.f32 %v548_v39, 0.0  ;;  %v566_v51 = vmax.f32 %v550_v45, 0.0 }
 0x11c   : > { %v557_v26 = vmax.f32 %v541_v16, 0.0  ;;  %v567_v52 = vmax.f32 %v551_v46, 0.0 }
 0x11d   : > { %v804_v38 = vpack.c.bf16 %v559_v28, %v558_v27  ;;  %v565_v48 = vmax.f32 %v549_v40, 0.0 }
 0x11e   : > { %v524_v13 = vld [vmem:[#allocation2 + $0x30] sm:$0xff]  ;;  %v799_v37 = vpack.c.bf16 %v557_v26, %v556_v25  ;;  %v824_v58 = vpack.c.bf16 %v567_v52, %v566_v51 }
 0x11f   : > { %v522_v10 = vld [vmem:[#allocation2 + $0x20] sm:$0xff]  ;;  %v546_v21 = vadd.f32 %v539_v11, %v524_v13  ;;  %v532_v41 = vld [vmem:[#allocation2 + $0x70] sm:$0xff]  ;;  %836 = vst [vmem:[%s1082_s3 + $0x8] sm:$0xff] %v804_v38   ;;  %v819_v55 = vpack.c.bf16 %v565_v48, %v564_v47 }
 0x120   : > { %v525_v14 = vld [vmem:[#allocation2 + $0x38] sm:$0xff]  ;;  %v544_v19 = vadd.f32 %v539_v11, %v522_v10  ;;  %v530_v35 = vld [vmem:[#allocation2 + $0x60] sm:$0xff]  ;;  %800 = vst [vmem:[%s1082_s3] sm:$0xff] %v799_v37   ;;  %v554_v53 = vadd.f32 %v539_v11, %v532_v41  ;;  %840 = vst [vmem:[%s1082_s3 + $0x28] sm:$0xff] %v824_v58  }
 0x121   : > { %v523_v12 = vld [vmem:[#allocation2 + $0x28] sm:$0xff]  ;;  %v547_v22 = vadd.f32 %v539_v11, %v525_v14  ;;  %v562_v33 = vmax.f32 %v546_v21, 0.0  ;;  %v533_v42 = vld [vmem:[#allocation2 + $0x78] sm:$0xff]  ;;  %v552_v49 = vadd.f32 %v539_v11, %v530_v35  ;;  %839 = vst [vmem:[%s1082_s3 + $0x20] sm:$0xff] %v819_v55  }
 0x122   : > { %v545_v20 = vadd.f32 %v539_v11, %v523_v12  ;;  %v560_v31 = vmax.f32 %v544_v19, 0.0  ;;  %v531_v36 = vld [vmem:[#allocation2 + $0x68] sm:$0xff]  ;;  %v555_v54 = vadd.f32 %v539_v11, %v533_v42  ;;  %v570_v59 = vmax.f32 %v554_v53, 0.0 }
 0x123   : > { %v563_v34 = vmax.f32 %v547_v22, 0.0  ;;  %v553_v50 = vadd.f32 %v539_v11, %v531_v36  ;;  %v568_v56 = vmax.f32 %v552_v49, 0.0 }
 0x124   : > { %v561_v32 = vmax.f32 %v545_v20, 0.0  ;;  %v571_v60 = vmax.f32 %v555_v54, 0.0 }
 0x125   : > { %v814_v44 = vpack.c.bf16 %v563_v34, %v562_v33  ;;  %v569_v57 = vmax.f32 %v553_v50, 0.0 }
 0x126   : > { %v809_v43 = vpack.c.bf16 %v561_v32, %v560_v31  ;;  %v834_v62 = vpack.c.bf16 %v571_v60, %v570_v59 }
 0x127   : > { %838 = vst [vmem:[%s1082_s3 + $0x18] sm:$0xff] %v814_v44   ;;  %v829_v61 = vpack.c.bf16 %v569_v57, %v568_v56 }
 0x128   : > { %837 = vst [vmem:[%s1082_s3 + $0x10] sm:$0xff] %v809_v43   ;;  %842 = vst [vmem:[%s1082_s3 + $0x38] sm:$0xff] %v834_v62  }
 0x129   : > { %841 = vst [vmem:[%s1082_s3 + $0x30] sm:$0xff] %v829_v61  }
 0x12a PF: > { %s13_s14 = sadd.s32 1, %s970_s14   ;;  %s1083_s12 = smov %s966_s13 }
 0x12b   : > { %p10_p7 = scmp.ge.s32.totalorder %s13_s14, 11   ;;  %s1084_s13 = smov %s1086_s15 }
 0x12d   :  { %12 = sbr.rel (!%p10_p7) target bundleno = 2 (0x2), region = 73 }

// kernel: vgg_loss.47
= control target key start
LH: loop header
LB: loop body
LE: loop exit
PB: predicated region body
PF: predicated region fallthrough
CT: control target
= control target key end

     0   :  { %s739_s12 = smov 0   ;;  %s741_s13 = smov 0   ;;  %s815_s0 = inlined_call_operand.vmem [shape: bf16[9,32,128], index: 0, kind: input, shape index: {}]   ;;  %s816_s1 = inlined_call_operand.vmem [shape: bf16[9,128,256], index: 1, kind: input, shape index: {}]   ;;  %s817_s2 = inlined_call_operand.vmem [shape: bf16[1,256], index: 2, kind: input, shape index: {}]   ;;  %s818_s3 = inlined_call_operand.vmem [shape: bf16[32,256], index: 3, kind: output, shape index: {}]  }
   0x1   :  { %s743_s14 = smov 0  }
   0x2 LB: > { %s22_s15 = sadd.s32 1, %s711_s13  ;;  %p586_p0 = scmp.ge.s32.totalorder %s715_s14, 1  ;;  %s715_s14 = sphi %s743_s14, %s13_s14   ;;  %s711_s13 = sphi %s741_s13, %s820_s13   ;;  %s707_s12 = sphi %s739_s12, %s819_s12  }
   0x3   : > { %p23_p1 = scmp.ge.s32.totalorder %s22_s15, 9  ;;  %p166_p2 = scmp.lt.s32.totalorder %s715_s14, 10 }
   0x5   : > { %s822_s15 = smov (%p23_p1, %s22_s15), 0  ;;  %p167_p3 = pnand %p586_p0, %p166_p2 }
   0x6   : > { %p201_p4 = scmp.lt.s32.totalorder (!%p167_p3), %s707_s12, 8  ;;  %p591_p5 = scmp.ne.s32.totalorder (!%p167_p3), %s707_s12, 0 }
   0x7   : > { %170 = sbr.rel (%p167_p3) target bundleno = 289 (0x121), region = 32 }
   0xe   : > { %s202_s16 = scalar_select %p201_p4, %s707_s12, 8 }
   0xf   : > { %226 = sbr.rel (%p591_p5) target bundleno = 22 (0x16), region = 36  ;;  %v717_v0 = vmov (!%p591_p5), 0.0  }
  0x10   : > { %s619_s17 = sshll.u32 %s202_s16, 4  ;;  %s620_s18 = sshll.u32 %s202_s16, 7  ;;  %227 = vst [vmem:[#allocation2] sm:$0xff] (!%p591_p5), %v717_v0  ;;  %228 = vst [vmem:[#allocation2 + $0x8] sm:$0xff] (!%p591_p5), %v717_v0 }
  0x11   : > { %s764_s21 = scalar_lea.vmem %s815_s0, %s619_s17  ;;  %s769_s24 = scalar_lea.vmem %s816_s1, %s620_s18  ;;  %229 = vst [vmem:[#allocation2 + $0x10] sm:$0xff] (!%p591_p5), %v717_v0  ;;  %230 = vst [vmem:[#allocation2 + $0x18] sm:$0xff] (!%p591_p5), %v717_v0 }
  0x12   : > { %231 = vst [vmem:[#allocation2 + $0x20] sm:$0xff] (!%p591_p5), %v717_v0  ;;  %232 = vst [vmem:[#allocation2 + $0x28] sm:$0xff] (!%p591_p5), %v717_v0 }
  0x13   : > { %233 = vst [vmem:[#allocation2 + $0x30] sm:$0xff] (!%p591_p5), %v717_v0  ;;  %234 = vst [vmem:[#allocation2 + $0x38] sm:$0xff] (!%p591_p5), %v717_v0 }
  0x16 PF: > { %v667_v1 = vld [vmem:[%s769_s24 + $0x4] ss:$8 sps:$4 sm:$0xff]   ;;  %v669_v2 = vld [vmem:[%s769_s24] ss:$8 sps:$4 sm:$0xff]   ;;  %v718_v3 = vmov 0   ;;  %p610_p6 = scmp.ne.s32.totalorder %s707_s12, 8 }
  0x17   : > { %387 = vmatprep.mubr.bf16.mxu0 %v718_v3  ;;  %397 = vmatprep.mubr.bf16.mxu1 %v718_v3  ;;  %v670_v4 = vld [vmem:[%s769_s24 + $0x14] ss:$8 sps:$4 sm:$0xff]   ;;  %v672_v5 = vld [vmem:[%s769_s24 + $0x10] ss:$8 sps:$4 sm:$0xff]   ;;  %v673_v6 = vld [vmem:[%s769_s24 + $0x24] ss:$8 sps:$4 sm:$0xff]   ;;  %v439_v45 = vlaneseq (!%p610_p6) }
  0x18   : > { %355 = vmatprep.subr.bf16.mxu0 %v667_v1  ;;  %625 = vmatprep.subr.bf16.mxu1 %v667_v1  ;;  %v675_v7 = vld [vmem:[%s769_s24 + $0x20] ss:$8 sps:$4 sm:$0xff]   ;;  %v676_v8 = vld [vmem:[%s769_s24 + $0x34] ss:$8 sps:$4 sm:$0xff]   ;;  %v678_v9 = vld [vmem:[%s769_s24 + $0x30] ss:$8 sps:$4 sm:$0xff]  }
  0x19   : > { %356 = vmatpush1.bf16.msra.mxu0 %v669_v2  ;;  %633 = vmatpush1.bf16.msra.mxu1 %v669_v2  ;;  %v679_v10 = vld [vmem:[%s769_s24 + $0x44] ss:$8 sps:$4 sm:$0xff]   ;;  %v681_v11 = vld [vmem:[%s769_s24 + $0x40] ss:$8 sps:$4 sm:$0xff]   ;;  %v682_v12 = vld [vmem:[%s769_s24 + $0x54] ss:$8 sps:$4 sm:$0xff]  }
  0x1a   : > { %357 = vmatprep.subr.bf16.mxu0 %v670_v4  ;;  %626 = vmatprep.subr.bf16.mxu1 %v670_v4  ;;  %v684_v13 = vld [vmem:[%s769_s24 + $0x50] ss:$8 sps:$4 sm:$0xff]   ;;  %v685_v14 = vld [vmem:[%s769_s24 + $0x64] ss:$8 sps:$4 sm:$0xff]   ;;  %v687_v15 = vld [vmem:[%s769_s24 + $0x60] ss:$8 sps:$4 sm:$0xff]  }
  0x1b   : > { %v688_v16 = vld [vmem:[%s769_s24 + $0x74] ss:$8 sps:$4 sm:$0xff]   ;;  %v690_v17 = vld [vmem:[%s769_s24 + $0x70] ss:$8 sps:$4 sm:$0xff]   ;;  %v691_v18 = vld [vmem:[%s764_s21] sm:$0xff]   ;;  %v440_v47 = vshrl.u32 (!%p610_p6), %v439_v45, 7 }
  0x1c   : > { %v692_v19 = vld [vmem:[%s764_s21 + $0x8] sm:$0xff]   ;;  %v235_v20 = vld [vmem:[#allocation2] sm:$0xff]  ;;  %v237_v26 = vld [vmem:[#allocation2 + $0x10] sm:$0xff] }
  0x1d   : > { %358 = vmatpush1.bf16.msra.mxu0 %v672_v5  ;;  %634 = vmatpush1.bf16.msra.mxu1 %v672_v5  ;;  %v239_v21 = vld [vmem:[#allocation2 + $0x20] sm:$0xff]  ;;  %v236_v22 = vld [vmem:[#allocation2 + $0x8] sm:$0xff]  ;;  %v241_v27 = vld [vmem:[#allocation2 + $0x30] sm:$0xff]  ;;  %v441_v48 = vsub.s32 (!%p610_p6), 0, %v440_v47  ;;  %v445_v49 = vsub.s32 (!%p610_p6), 2, %v440_v47 }
  0x1e   : > { %359 = vmatprep.subr.bf16.mxu0 %v673_v6  ;;  %627 = vmatprep.subr.bf16.mxu1 %v673_v6  ;;  %v240_v23 = vld [vmem:[#allocation2 + $0x28] sm:$0xff]  ;;  %v238_v32 = vld [vmem:[#allocation2 + $0x18] sm:$0xff]  ;;  %v436_v44 = vld [vmem:[%s817_s2] sm:$0x3] (!%p610_p6) }
  0x1f   : > { %v242_v33 = vld [vmem:[#allocation2 + $0x38] sm:$0xff]  ;;  %v437_v46 = vunpack.c.l.bf16 (!%p610_p6), %v436_v44 }
  0x21   : > { %360 = vmatpush1.bf16.msra.mxu0 %v675_v7  ;;  %635 = vmatpush1.bf16.msra.mxu1 %v675_v7  ;;  %v442_v52 = vrot.slane (!%p610_p6), %v437_v46, %v441_v48  ;;  %v446_v53 = vrot.slane (!%p610_p6), %v437_v46, %v445_v49 }
  0x22   : > { %361 = vmatprep.subr.bf16.mxu0 %v676_v8  ;;  %628 = vmatprep.subr.bf16.mxu1 %v676_v8 }
  0x23   : > { %v452_v57 = vrot.slane (!%p610_p6), %v442_v52, %v441_v48  ;;  %v456_v58 = vrot.slane (!%p610_p6), %v446_v53, %v441_v48 }
  0x25   : > { %362 = vmatpush1.bf16.msra.mxu0 %v678_v9  ;;  %636 = vmatpush1.bf16.msra.mxu1 %v678_v9 }
  0x26   : > { %363 = vmatprep.subr.bf16.mxu0 %v679_v10  ;;  %629 = vmatprep.subr.bf16.mxu1 %v679_v10 }
  0x29   : > { %364 = vmatpush1.bf16.msra.mxu0 %v681_v11  ;;  %637 = vmatpush1.bf16.msra.mxu1 %v681_v11 }
  0x2a   : > { %365 = vmatprep.subr.bf16.mxu0 %v682_v12  ;;  %630 = vmatprep.subr.bf16.mxu1 %v682_v12 }
  0x2d   : > { %366 = vmatpush1.bf16.msra.mxu0 %v684_v13  ;;  %638 = vmatpush1.bf16.msra.mxu1 %v684_v13 }
  0x2e   : > { %367 = vmatprep.subr.bf16.mxu0 %v685_v14  ;;  %631 = vmatprep.subr.bf16.mxu1 %v685_v14 }
  0x31   : > { %368 = vmatpush1.bf16.msra.mxu0 %v687_v15  ;;  %639 = vmatpush1.bf16.msra.mxu1 %v687_v15 }
  0x32   : > { %369 = vmatprep.subr.bf16.mxu0 %v688_v16  ;;  %632 = vmatprep.subr.bf16.mxu1 %v688_v16 }
  0x35   : > { %370 = vmatpush1.bf16.msra.mxu0 %v690_v17  ;;  %640 = vmatpush1.bf16.msra.mxu1 %v690_v17 }
  0x38   : > { %388 = vmatmul.mubr.bf16.vlgmr.msra.gmra.mrb[0].mxu0 %v691_v18  ;;  %398 = vmatmul.mubr.bf16.vlgmr.msra.gmra.mrb[0].mxu1 %v692_v19 }
 0x10b   : > { %v389_v24 = vpop.f32.mrb[0].mxu0  ;;  %v399_v25 = vpop.f32.mrb[0].mxu1  ;;  %427 = sbr.rel (%p610_p6) target bundleno = 289 (0x121), region = 40 }
 0x10c   : > { %v408_v28 = vadd.f32 %v389_v24, %v235_v20  ;;  %v412_v29 = vadd.f32 %v399_v25, %v239_v21  ;;  %v391_v30 = vpop.f32.mrb[1].mxu0  ;;  %v401_v31 = vpop.f32.mrb[1].mxu1 }
 0x10d   : > { %v409_v34 = vadd.f32 %v391_v30, %v236_v22  ;;  %v413_v35 = vadd.f32 %v401_v31, %v240_v23  ;;  %v393_v36 = vpop.f32.mrb[2].mxu0  ;;  %v403_v37 = vpop.f32.mrb[2].mxu1 }
 0x10e   : > { %416 = vst [vmem:[#allocation2] sm:$0xff] %v408_v28  ;;  %420 = vst [vmem:[#allocation2 + $0x20] sm:$0xff] %v412_v29  ;;  %v410_v38 = vadd.f32 %v393_v36, %v237_v26  ;;  %v414_v39 = vadd.f32 %v403_v37, %v241_v27  ;;  %v395_v40 = vpop.f32.mrb[3].mxu0  ;;  %v405_v41 = vpop.f32.mrb[3].mxu1 }
 0x10f   : > { %417 = vst [vmem:[#allocation2 + $0x8] sm:$0xff] %v409_v34  ;;  %421 = vst [vmem:[#allocation2 + $0x28] sm:$0xff] %v413_v35  ;;  %v411_v42 = vadd.f32 %v395_v40, %v238_v32  ;;  %v415_v43 = vadd.f32 %v405_v41, %v242_v33 }
 0x110   : > { %418 = vst [vmem:[#allocation2 + $0x10] sm:$0xff] %v410_v38  ;;  %422 = vst [vmem:[#allocation2 + $0x30] sm:$0xff] %v414_v39 }
 0x111   : > { %419 = vst [vmem:[#allocation2 + $0x18] sm:$0xff] %v411_v42  ;;  %423 = vst [vmem:[#allocation2 + $0x38] sm:$0xff] %v415_v43 }
 0x115   : > { %v428_v50 = vld [vmem:[#allocation2] sm:$0xff] }
 0x116   : > { %v429_v51 = vld [vmem:[#allocation2 + $0x8] sm:$0xff]  ;;  %v432_v56 = vld [vmem:[#allocation2 + $0x20] sm:$0xff]  ;;  %v457_v62 = vadd.f32 %v452_v57, %v428_v50 }
 0x117   : > { %v430_v54 = vld [vmem:[#allocation2 + $0x10] sm:$0xff]  ;;  %v433_v59 = vld [vmem:[#allocation2 + $0x28] sm:$0xff]  ;;  %v458_v63 = vadd.f32 %v456_v58, %v429_v51  ;;  %v461_v2 = vadd.f32 %v452_v57, %v432_v56 }
 0x118   : > { %v431_v55 = vld [vmem:[#allocation2 + $0x18] sm:$0xff]  ;;  %v434_v60 = vld [vmem:[#allocation2 + $0x30] sm:$0xff]  ;;  %v459_v0 = vadd.f32 %v452_v57, %v430_v54  ;;  %v462_v3 = vadd.f32 %v456_v58, %v433_v59  ;;  %v465_v6 = vmax.f32 %v457_v62, 0.0 }
 0x119   : > { %v435_v61 = vld [vmem:[#allocation2 + $0x38] sm:$0xff]  ;;  %v460_v1 = vadd.f32 %v456_v58, %v431_v55  ;;  %v463_v4 = vadd.f32 %v452_v57, %v434_v60  ;;  %v466_v7 = vmax.f32 %v458_v63, 0.0  ;;  %v469_v10 = vmax.f32 %v461_v2, 0.0 }
 0x11a   : > { %v464_v5 = vadd.f32 %v456_v58, %v435_v61  ;;  %v467_v8 = vmax.f32 %v459_v0, 0.0  ;;  %v470_v11 = vmax.f32 %v462_v3, 0.0 }
 0x11b   : > { %v468_v9 = vmax.f32 %v460_v1, 0.0  ;;  %v471_v12 = vmax.f32 %v463_v4, 0.0  ;;  %v621_v14 = vpack.c.bf16 %v466_v7, %v465_v6 }
 0x11c   : > { %v472_v13 = vmax.f32 %v464_v5, 0.0  ;;  %v623_v16 = vpack.c.bf16 %v470_v11, %v469_v10 }
 0x11d   : > { %v622_v15 = vpack.c.bf16 %v468_v9, %v467_v8  ;;  %497 = vst [vmem:[%s818_s3] sm:$0xff] %v621_v14 }
 0x11e   : > { %v624_v17 = vpack.c.bf16 %v472_v13, %v471_v12  ;;  %499 = vst [vmem:[%s818_s3 + $0x10] sm:$0xff] %v623_v16 }
 0x11f   : > { %498 = vst [vmem:[%s818_s3 + $0x8] sm:$0xff] %v622_v15 }
 0x120   : > { %500 = vst [vmem:[%s818_s3 + $0x18] sm:$0xff] %v624_v17 }
 0x121 PF: > { %s13_s14 = sadd.s32 1, %s715_s14   ;;  %s819_s12 = smov %s711_s13 }
 0x122   : > { %p10_p7 = scmp.ge.s32.totalorder %s13_s14, 11   ;;  %s820_s13 = smov %s822_s15 }
 0x124   :  { %12 = sbr.rel (!%p10_p7) target bundleno = 2 (0x2), region = 73 }

// kernel: vgg_loss.46
= control target key start
LH: loop header
LB: loop body
LE: loop exit
PB: predicated region body
PF: predicated region fallthrough
CT: control target
= control target key end

     0   :  { %s145_s0 = inlined_call_operand.vmem [shape: bf16[32,128], index: 0, kind: input, shape index: {}]   ;;  %s146_s1 = inlined_call_operand.vmem [shape: bf16[32,128], index: 1, kind: input, shape index: {}]   ;;  %s147_s2 = inlined_call_operand.vmem [shape: bf16[32,128], index: 2, kind: input, shape index: {}]   ;;  %s148_s3 = inlined_call_operand.vmem [shape: bf16[32,128], index: 3, kind: input, shape index: {}]   ;;  %s149_s4 = inlined_call_operand.vmem [shape: bf16[32,128], index: 4, kind: output, shape index: {}]  }
   0x1   :  { %v17_v0 = vld [vmem:[%s145_s0] sm:$0xf]  ;;  %v18_v1 = vld [vmem:[%s145_s0 + $0x4] sm:$0xf]  ;;  %v19_v10 = vld [vmem:[%s145_s0 + $0x8] sm:$0xf] }
   0x2   :  { %v21_v2 = vld [vmem:[%s146_s1] sm:$0xf]  ;;  %v22_v3 = vld [vmem:[%s146_s1 + $0x4] sm:$0xf]  ;;  %v20_v13 = vld [vmem:[%s145_s0 + $0xc] sm:$0xf] }
   0x3   :  { %v25_v4 = vmax.bf16 %v21_v2, %v17_v0  ;;  %v29_v5 = vld [vmem:[%s147_s2] sm:$0xf]  ;;  %v30_v6 = vld [vmem:[%s147_s2 + $0x4] sm:$0xf]  ;;  %v26_v7 = vmax.bf16 %v22_v3, %v18_v1  ;;  %v23_v14 = vld [vmem:[%s146_s1 + $0x8] sm:$0xf] }
   0x4   :  { %v33_v8 = vld [vmem:[%s148_s3] sm:$0xf]  ;;  %v34_v9 = vld [vmem:[%s148_s3 + $0x4] sm:$0xf]  ;;  %v24_v15 = vld [vmem:[%s146_s1 + $0xc] sm:$0xf]  ;;  %v27_v16 = vmax.bf16 %v23_v14, %v19_v10 }
   0x5   :  { %v37_v11 = vmax.bf16 %v33_v8, %v29_v5  ;;  %v38_v12 = vmax.bf16 %v34_v9, %v30_v6  ;;  %v28_v17 = vmax.bf16 %v24_v15, %v20_v13  ;;  %v31_v18 = vld [vmem:[%s147_s2 + $0x8] sm:$0xf]  ;;  %v32_v19 = vld [vmem:[%s147_s2 + $0xc] sm:$0xf] }
   0x6   :  { %v35_v20 = vld [vmem:[%s148_s3 + $0x8] sm:$0xf]  ;;  %v36_v23 = vld [vmem:[%s148_s3 + $0xc] sm:$0xf] }
   0x7   :  { %v41_v21 = vmax.bf16 %v37_v11, %v25_v4  ;;  %v42_v22 = vmax.bf16 %v38_v12, %v26_v7  ;;  %v39_v24 = vmax.bf16 %v35_v20, %v31_v18  ;;  %v40_v25 = vmax.bf16 %v36_v23, %v32_v19 }
   0x9   :  { %v63_v26 = vcombine.low %v41_v21, %v42_v22  ;;  %v43_v27 = vmax.bf16 %v39_v24, %v27_v16  ;;  %v44_v28 = vmax.bf16 %v40_v25, %v28_v17 }
   0xb   :  { %57 = vst [vmem:[%s149_s4] sm:$0xff] %v63_v26   ;;  %v64_v29 = vcombine.low %v43_v27, %v44_v28 }
   0xd   :  { %65 = vst [vmem:[%s149_s4 + $0x8] sm:$0xff] %v64_v29  }

// kernel: vgg_loss.75
= control target key start
LH: loop header
LB: loop body
LE: loop exit
PB: predicated region body
PF: predicated region fallthrough
CT: control target
= control target key end

     0   :  { %s177_s0 = inlined_call_operand.vmem [shape: bf16[32,256], index: 0, kind: input, shape index: {}]   ;;  %s178_s1 = inlined_call_operand.vmem [shape: bf16[32,256], index: 1, kind: input, shape index: {}]   ;;  %s179_s2 = inlined_call_operand.hbm [shape: f32[1,1], index: 2, kind: output, shape index: {}]  }
   0x1   :  { %v18_v0 = vld [vmem:[%s177_s0] sm:$0xff]  ;;  %v19_v1 = vld [vmem:[%s177_s0 + $0x8] sm:$0xff]  ;;  %v20_v2 = vld [vmem:[%s177_s0 + $0x10] sm:$0xff] }
   0x2   :  { %v22_v3 = vunpack.c.l.bf16 %v18_v0  ;;  %v23_v4 = vunpack.c.h.bf16 %v18_v0  ;;  %v24_v5 = vunpack.c.l.bf16 %v19_v1  ;;  %v25_v6 = vunpack.c.h.bf16 %v19_v1  ;;  %v30_v7 = vld [vmem:[%s178_s1] sm:$0xff]  ;;  %v31_v8 = vld [vmem:[%s178_s1 + $0x8] sm:$0xff]  ;;  %v32_v10 = vld [vmem:[%s178_s1 + $0x10] sm:$0xff] }
   0x3   :  { %v26_v9 = vunpack.c.l.bf16 %v20_v2 }
   0x4   :  { %7 = vsyncpa [#allocation3], 0  ;;  %v21_v11 = vld [vmem:[%s177_s0 + $0x18] sm:$0xff]  ;;  %v34_v13 = vunpack.c.l.bf16 %v30_v7  ;;  %v35_v14 = vunpack.c.h.bf16 %v30_v7  ;;  %v36_v15 = vunpack.c.l.bf16 %v31_v8  ;;  %v37_v16 = vunpack.c.h.bf16 %v31_v8 }
   0x5   :  { %v33_v12 = vld [vmem:[%s178_s1 + $0x18] sm:$0xff]  ;;  %v27_v17 = vunpack.c.h.bf16 %v20_v2  ;;  %v38_v18 = vunpack.c.l.bf16 %v32_v10  ;;  %v39_v19 = vunpack.c.h.bf16 %v32_v10  ;;  %v28_v24 = vunpack.c.l.bf16 %v21_v11  ;;  %s123_s1 = smov [#allocation2]  }
   0x6   :  { %v42_v20 = vsub.f32 %v22_v3, %v34_v13  ;;  %v43_v21 = vsub.f32 %v23_v4, %v35_v14  ;;  %v44_v22 = vsub.f32 %v24_v5, %v36_v15  ;;  %v45_v23 = vsub.f32 %v25_v6, %v37_v16  ;;  %s86_s25 = sshll.u32 %s123_s1, 4  ;;  %s87_s25 = int_to_ptr.vmem [resolvable:$true] %s86_s25 }
   0x7   :  { %v40_v25 = vunpack.c.l.bf16 %v33_v12  ;;  %v46_v26 = vsub.f32 %v26_v9, %v38_v18  ;;  %v29_v30 = vunpack.c.h.bf16 %v21_v11  ;;  %v41_v31 = vunpack.c.h.bf16 %v33_v12  ;;  %s98_s26 = scalar_lea.vmem %s87_s25, 16  ;;  %s102_s27 = scalar_lea.vmem %s87_s25, 32 }
   0x8   :  { %v50_v27 = vand.u32 2147483647, %v42_v20  ;;  %v51_v28 = vand.u32 2147483647, %v43_v21  ;;  %v52_v29 = vand.u32 2147483647, %v44_v22  ;;  %v47_v32 = vsub.f32 %v27_v17, %v39_v19  ;;  %p99_p0 = scmp.ne.s32.totalorder %s87_s25, %s98_s26  ;;  %p103_p1 = scmp.lt.s32.totalorder %s87_s25, %s87_s25 }
   0x9   :  { %v53_v33 = vand.u32 2147483647, %v45_v23  ;;  %v48_v35 = vsub.f32 %v28_v24, %v40_v25  ;;  %v54_v36 = vand.u32 2147483647, %v46_v26  ;;  %v49_v38 = vsub.f32 %v29_v30, %v41_v31  ;;  %p104_p2 = scmp.lt.s32.totalorder %s102_s27, %s98_s26 }
   0xa   :  { %v59_v34 = vadd.f32 %v51_v28, %v50_v27  ;;  %v55_v39 = vand.u32 2147483647, %v47_v32  ;;  %vm16_vm0 = vcmask 0   ;;  %v122_v47 = vmov 0.0  }
   0xb   :  { %v56_v41 = vand.u32 2147483647, %v48_v35  ;;  %v57_v43 = vand.u32 2147483647, %v49_v38  ;;  %17 = vst.msk [vmem:[#allocation2] sm:$0x1] %vm16_vm0, %v122_v47  ;;  %p105_p3 = por %p104_p2, %p103_p1 }
   0xc   :  { %v60_v37 = vadd.f32 %v59_v34, %v52_v29 }
   0xd   :  { %p106_p4 = pnand %p105_p3, %p99_p0 }
   0xe   :  { %v61_v40 = vadd.f32 %v60_v37, %v53_v33 }
  0x10   :  { %v62_v42 = vadd.f32 %v61_v40, %v54_v36 }
  0x12   :  { %v63_v44 = vadd.f32 %v62_v42, %v55_v39  ;;  %v58_v55 = vld [vmem:[#allocation2] sm:$0x1] }
  0x14   :  { %v64_v45 = vadd.f32 %v63_v44, %v56_v41 }
  0x16   :  { %v65_v46 = vadd.f32 %v64_v45, %v57_v43 }
  0x18   :  { %66 = vadd.xlane.f32.xlu0 %v65_v46 }
  0xa5   :  { %v67_v48 = vpop.xlane.xlu0 %66 }
  0xa6   :  { %v68_v49 = vrot.slane %v67_v48, 4 }
  0xa8   :  { %v69_v50 = vadd.f32 %v68_v49, %v67_v48 }
  0xaa   :  { %v70_v51 = vrot.slane %v69_v50, 2 }
  0xac   :  { %v71_v52 = vadd.f32 %v70_v51, %v69_v50 }
  0xae   :  { %v72_v53 = vrot.slane %v71_v52, 1 }
  0xb0   :  { %v73_v54 = vadd.f32 %v72_v53, %v71_v52 }
  0xb2   :  { %94 = vpush %v73_v54 }
  0xe3   :  { %s95_s0 = spop %94 }
  0xe4   :  { %v75_v56 = vstv %s95_s0 }
  0xe5   :  { %v76_v57 = vmul.f32 1.5258789e-05, %v75_v56 }
  0xe7   :  { %v77_v58 = vadd.f32 %v76_v57, %v58_v55 }
  0xe9   :  { %79 = vst.msk [vmem:[#allocation2] sm:$0x1] %vm16_vm0, %v77_v58 }
  0xea   :  { %109 = shalt.err (!%p106_p4)
}
  0xeb   :  { %s110_s30 = scalar_lea.hbm %s179_s2, 16 }
  0xec   :  { %p111_p5 = scmp.ne.s32.totalorder %s179_s2, %s110_s30  ;;  %p114_p6 = scmp.lt.u32.totalorder %s110_s30, %s179_s2 }
  0xee   :  { %p116_p7 = pnand %p114_p6, %p111_p5 }
  0xf0   :  { %119 = shalt.err (!%p116_p7)
}
  0xf1   :  { %89 = dma.vmem_to_hbm [thread:$0]  %s87_s25, 16, %s179_s2, [#allocation3]  }
  0xf2   :  { %120 = dma.done.wait [#allocation3], 16  }
  0xf3   :  { %121 = vsyncadd [#allocation3], 4294967280 }
  0xf4   :  { %93 = vsyncpa [#allocation3], 1 }

// kernel: vgg_loss.48
= control target key start
LH: loop header
LB: loop body
LE: loop exit
PB: predicated region body
PF: predicated region fallthrough
CT: control target
= control target key end

     0   :  { %s908_s12 = smov 0   ;;  %s910_s13 = smov 0   ;;  %s1002_s0 = inlined_call_operand.vmem [shape: bf16[9,32,256], index: 0, kind: input, shape index: {}]   ;;  %s1003_s1 = inlined_call_operand.vmem [shape: bf16[9,256,256], index: 1, kind: input, shape index: {}]   ;;  %s1004_s2 = inlined_call_operand.vmem [shape: bf16[1,256], index: 2, kind: input, shape index: {}]   ;;  %s1005_s3 = inlined_call_operand.vmem [shape: bf16[32,256], index: 3, kind: output, shape index: {}]  }
   0x1   :  { %s912_s14 = smov 0  }
   0x2 LB: > { %s22_s15 = sadd.s32 1, %s881_s13  ;;  %p695_p0 = scmp.ge.s32.totalorder %s885_s14, 1  ;;  %s885_s14 = sphi %s912_s14, %s13_s14   ;;  %s881_s13 = sphi %s910_s13, %s1007_s13   ;;  %s877_s12 = sphi %s908_s12, %s1006_s12  }
   0x3   : > { %p23_p1 = scmp.ge.s32.totalorder %s22_s15, 9  ;;  %p167_p2 = scmp.lt.s32.totalorder %s885_s14, 10 }
   0x5   : > { %s1009_s15 = smov (%p23_p1, %s22_s15), 0  ;;  %p168_p3 = pnand %p695_p0, %p167_p2 }
   0x6   : > { %p203_p4 = scmp.lt.s32.totalorder (!%p168_p3), %s877_s12, 8  ;;  %p700_p5 = scmp.ne.s32.totalorder (!%p168_p3), %s877_s12, 0 }
   0x7   : > { %171 = sbr.rel (%p168_p3) target bundleno = 320 (0x140), region = 32 }
   0xe   : > { %s204_s16 = scalar_select %p203_p4, %s877_s12, 8 }
   0xf   : > { %228 = sbr.rel (%p700_p5) target bundleno = 22 (0x16), region = 36  ;;  %v887_v0 = vmov (!%p700_p5), 0.0  }
  0x10   : > { %s746_s17 = sshll.u32 %s204_s16, 5  ;;  %s747_s18 = sshll.u32 %s204_s16, 8  ;;  %229 = vst [vmem:[#allocation2] sm:$0xff] (!%p700_p5), %v887_v0  ;;  %230 = vst [vmem:[#allocation2 + $0x8] sm:$0xff] (!%p700_p5), %v887_v0 }
  0x11   : > { %s933_s21 = scalar_lea.vmem %s1002_s0, %s746_s17  ;;  %s938_s24 = scalar_lea.vmem %s1003_s1, %s747_s18  ;;  %231 = vst [vmem:[#allocation2 + $0x10] sm:$0xff] (!%p700_p5), %v887_v0  ;;  %232 = vst [vmem:[#allocation2 + $0x18] sm:$0xff] (!%p700_p5), %v887_v0 }
  0x12   : > { %233 = vst [vmem:[#allocation2 + $0x20] sm:$0xff] (!%p700_p5), %v887_v0  ;;  %234 = vst [vmem:[#allocation2 + $0x28] sm:$0xff] (!%p700_p5), %v887_v0 }
  0x13   : > { %235 = vst [vmem:[#allocation2 + $0x30] sm:$0xff] (!%p700_p5), %v887_v0  ;;  %236 = vst [vmem:[#allocation2 + $0x38] sm:$0xff] (!%p700_p5), %v887_v0 }
  0x16 PF: > { %v809_v1 = vld [vmem:[%s938_s24 + $0x4] ss:$8 sps:$4 sm:$0xff]   ;;  %v811_v2 = vld [vmem:[%s938_s24] ss:$8 sps:$4 sm:$0xff]   ;;  %v812_v3 = vld [vmem:[%s938_s24 + $0x14] ss:$8 sps:$4 sm:$0xff]  }
  0x17   : > { %461 = vmatprep.subr.bf16.mxu0 %v809_v1  ;;  %752 = vmatprep.subr.bf16.mxu1 %v809_v1  ;;  %v814_v4 = vld [vmem:[%s938_s24 + $0x10] ss:$8 sps:$4 sm:$0xff]   ;;  %v815_v5 = vld [vmem:[%s938_s24 + $0x24] ss:$8 sps:$4 sm:$0xff]   ;;  %v817_v6 = vld [vmem:[%s938_s24 + $0x20] ss:$8 sps:$4 sm:$0xff]  }
  0x18   : > { %462 = vmatpush1.bf16.msra.mxu0 %v811_v2  ;;  %768 = vmatpush1.bf16.msra.mxu1 %v811_v2  ;;  %v818_v7 = vld [vmem:[%s938_s24 + $0x34] ss:$8 sps:$4 sm:$0xff]   ;;  %v820_v8 = vld [vmem:[%s938_s24 + $0x30] ss:$8 sps:$4 sm:$0xff]   ;;  %v821_v9 = vld [vmem:[%s938_s24 + $0x44] ss:$8 sps:$4 sm:$0xff]  }
  0x19   : > { %463 = vmatprep.subr.bf16.mxu0 %v812_v3  ;;  %753 = vmatprep.subr.bf16.mxu1 %v812_v3  ;;  %v823_v10 = vld [vmem:[%s938_s24 + $0x40] ss:$8 sps:$4 sm:$0xff]   ;;  %v824_v11 = vld [vmem:[%s938_s24 + $0x54] ss:$8 sps:$4 sm:$0xff]   ;;  %v826_v12 = vld [vmem:[%s938_s24 + $0x50] ss:$8 sps:$4 sm:$0xff]  }
  0x1a   : > { %v827_v13 = vld [vmem:[%s938_s24 + $0x64] ss:$8 sps:$4 sm:$0xff]   ;;  %v829_v15 = vld [vmem:[%s938_s24 + $0x60] ss:$8 sps:$4 sm:$0xff]   ;;  %v862_v16 = vld [vmem:[%s933_s21 + $0x14] ss:$8 sps:$4 sm:$0xff]  }
  0x1b   : > { %v859_v14 = vld [vmem:[%s933_s21 + $0x4] ss:$8 sps:$4 sm:$0xff]   ;;  %v830_v17 = vld [vmem:[%s938_s24 + $0x74] ss:$8 sps:$4 sm:$0xff]   ;;  %503 = vmatprep.mubr.bf16.mxu1 %v862_v16  ;;  %v832_v18 = vld [vmem:[%s938_s24 + $0x70] ss:$8 sps:$4 sm:$0xff]  }
  0x1c   : > { %464 = vmatpush1.bf16.msra.mxu0 %v814_v4  ;;  %769 = vmatpush1.bf16.msra.mxu1 %v814_v4  ;;  %v833_v19 = vld [vmem:[%s938_s24 + $0x84] ss:$8 sps:$4 sm:$0xff]   ;;  %v835_v20 = vld [vmem:[%s938_s24 + $0x80] ss:$8 sps:$4 sm:$0xff]   ;;  %v836_v21 = vld [vmem:[%s938_s24 + $0x94] ss:$8 sps:$4 sm:$0xff]  }
  0x1d   : > { %465 = vmatprep.subr.bf16.mxu0 %v815_v5  ;;  %754 = vmatprep.subr.bf16.mxu1 %v815_v5  ;;  %v838_v22 = vld [vmem:[%s938_s24 + $0x90] ss:$8 sps:$4 sm:$0xff]   ;;  %v839_v23 = vld [vmem:[%s938_s24 + $0xa4] ss:$8 sps:$4 sm:$0xff]   ;;  %v841_v24 = vld [vmem:[%s938_s24 + $0xa0] ss:$8 sps:$4 sm:$0xff]  }
  0x1e   : > { %493 = vmatprep.mubr.bf16.mxu0 %v859_v14  ;;  %v842_v25 = vld [vmem:[%s938_s24 + $0xb4] ss:$8 sps:$4 sm:$0xff]   ;;  %v844_v26 = vld [vmem:[%s938_s24 + $0xb0] ss:$8 sps:$4 sm:$0xff]   ;;  %v845_v27 = vld [vmem:[%s938_s24 + $0xc4] ss:$8 sps:$4 sm:$0xff]  }
  0x1f   : > { %v847_v28 = vld [vmem:[%s938_s24 + $0xc0] ss:$8 sps:$4 sm:$0xff]   ;;  %v848_v29 = vld [vmem:[%s938_s24 + $0xd4] ss:$8 sps:$4 sm:$0xff]   ;;  %v850_v30 = vld [vmem:[%s938_s24 + $0xd0] ss:$8 sps:$4 sm:$0xff]  }
  0x20   : > { %466 = vmatpush1.bf16.msra.mxu0 %v817_v6  ;;  %770 = vmatpush1.bf16.msra.mxu1 %v817_v6  ;;  %v851_v31 = vld [vmem:[%s938_s24 + $0xe4] ss:$8 sps:$4 sm:$0xff]   ;;  %v853_v32 = vld [vmem:[%s938_s24 + $0xe0] ss:$8 sps:$4 sm:$0xff]   ;;  %v854_v33 = vld [vmem:[%s938_s24 + $0xf4] ss:$8 sps:$4 sm:$0xff]  }
  0x21   : > { %467 = vmatprep.subr.bf16.mxu0 %v818_v7  ;;  %755 = vmatprep.subr.bf16.mxu1 %v818_v7  ;;  %v856_v34 = vld [vmem:[%s938_s24 + $0xf0] ss:$8 sps:$4 sm:$0xff]   ;;  %v857_v35 = vld [vmem:[%s933_s21] ss:$8 sps:$4 sm:$0xff]   ;;  %p737_p6 = scmp.ne.s32.totalorder %s877_s12, 8 }
  0x22   : > { %v860_v36 = vld [vmem:[%s933_s21 + $0x10] ss:$8 sps:$4 sm:$0xff]   ;;  %v237_v37 = vld [vmem:[#allocation2] sm:$0xff]  ;;  %v238_v39 = vld [vmem:[#allocation2 + $0x8] sm:$0xff]  ;;  %v545_v62 = vlaneseq (!%p737_p6) }
  0x23   : > { %v241_v38 = vld [vmem:[#allocation2 + $0x20] sm:$0xff]  ;;  %v242_v40 = vld [vmem:[#allocation2 + $0x28] sm:$0xff]  ;;  %v239_v43 = vld [vmem:[#allocation2 + $0x10] sm:$0xff] }
  0x24   : > { %468 = vmatpush1.bf16.msra.mxu0 %v820_v8  ;;  %771 = vmatpush1.bf16.msra.mxu1 %v820_v8  ;;  %v243_v44 = vld [vmem:[#allocation2 + $0x30] sm:$0xff]  ;;  %v240_v49 = vld [vmem:[#allocation2 + $0x18] sm:$0xff]  ;;  %v542_v61 = vld [vmem:[%s1004_s2] sm:$0x3] (!%p737_p6)  ;;  %v546_v0 = vshrl.u32 (!%p737_p6), %v545_v62, 7 }
  0x25   : > { %469 = vmatprep.subr.bf16.mxu0 %v821_v9  ;;  %756 = vmatprep.subr.bf16.mxu1 %v821_v9  ;;  %v244_v50 = vld [vmem:[#allocation2 + $0x38] sm:$0xff]  ;;  %v543_v63 = vunpack.c.l.bf16 (!%p737_p6), %v542_v61 }
  0x26   : > { %v547_v1 = vsub.s32 (!%p737_p6), 0, %v546_v0  ;;  %v551_v2 = vsub.s32 (!%p737_p6), 2, %v546_v0 }
  0x28   : > { %470 = vmatpush1.bf16.msra.mxu0 %v823_v10  ;;  %772 = vmatpush1.bf16.msra.mxu1 %v823_v10  ;;  %v548_v5 = vrot.slane (!%p737_p6), %v543_v63, %v547_v1  ;;  %v552_v6 = vrot.slane (!%p737_p6), %v543_v63, %v551_v2 }
  0x29   : > { %471 = vmatprep.subr.bf16.mxu0 %v824_v11  ;;  %757 = vmatprep.subr.bf16.mxu1 %v824_v11 }
  0x2a   : > { %v558_v10 = vrot.slane (!%p737_p6), %v548_v5, %v547_v1  ;;  %v562_v11 = vrot.slane (!%p737_p6), %v552_v6, %v547_v1 }
  0x2c   : > { %472 = vmatpush1.bf16.msra.mxu0 %v826_v12  ;;  %773 = vmatpush1.bf16.msra.mxu1 %v826_v12 }
  0x2d   : > { %473 = vmatprep.subr.bf16.mxu0 %v827_v13  ;;  %758 = vmatprep.subr.bf16.mxu1 %v827_v13 }
  0x30   : > { %474 = vmatpush1.bf16.msra.mxu0 %v829_v15  ;;  %774 = vmatpush1.bf16.msra.mxu1 %v829_v15 }
  0x31   : > { %475 = vmatprep.subr.bf16.mxu0 %v830_v17  ;;  %759 = vmatprep.subr.bf16.mxu1 %v830_v17 }
  0x34   : > { %476 = vmatpush1.bf16.msra.mxu0 %v832_v18  ;;  %775 = vmatpush1.bf16.msra.mxu1 %v832_v18 }
  0x35   : > { %477 = vmatprep.subr.bf16.mxu0 %v833_v19  ;;  %760 = vmatprep.subr.bf16.mxu1 %v833_v19 }
  0x38   : > { %478 = vmatpush1.bf16.msra.mxu0 %v835_v20  ;;  %776 = vmatpush1.bf16.msra.mxu1 %v835_v20 }
  0x39   : > { %479 = vmatprep.subr.bf16.mxu0 %v836_v21  ;;  %761 = vmatprep.subr.bf16.mxu1 %v836_v21 }
  0x3c   : > { %480 = vmatpush1.bf16.msra.mxu0 %v838_v22  ;;  %777 = vmatpush1.bf16.msra.mxu1 %v838_v22 }
  0x3d   : > { %481 = vmatprep.subr.bf16.mxu0 %v839_v23  ;;  %762 = vmatprep.subr.bf16.mxu1 %v839_v23 }
  0x40   : > { %482 = vmatpush1.bf16.msra.mxu0 %v841_v24  ;;  %778 = vmatpush1.bf16.msra.mxu1 %v841_v24 }
  0x41   : > { %483 = vmatprep.subr.bf16.mxu0 %v842_v25  ;;  %763 = vmatprep.subr.bf16.mxu1 %v842_v25 }
  0x44   : > { %484 = vmatpush1.bf16.msra.mxu0 %v844_v26  ;;  %779 = vmatpush1.bf16.msra.mxu1 %v844_v26 }
  0x45   : > { %485 = vmatprep.subr.bf16.mxu0 %v845_v27  ;;  %764 = vmatprep.subr.bf16.mxu1 %v845_v27 }
  0x48   : > { %486 = vmatpush1.bf16.msra.mxu0 %v847_v28  ;;  %780 = vmatpush1.bf16.msra.mxu1 %v847_v28 }
  0x49   : > { %487 = vmatprep.subr.bf16.mxu0 %v848_v29  ;;  %765 = vmatprep.subr.bf16.mxu1 %v848_v29 }
  0x4c   : > { %488 = vmatpush1.bf16.msra.mxu0 %v850_v30  ;;  %781 = vmatpush1.bf16.msra.mxu1 %v850_v30 }
  0x4d   : > { %489 = vmatprep.subr.bf16.mxu0 %v851_v31  ;;  %766 = vmatprep.subr.bf16.mxu1 %v851_v31 }
  0x50   : > { %490 = vmatpush1.bf16.msra.mxu0 %v853_v32  ;;  %782 = vmatpush1.bf16.msra.mxu1 %v853_v32 }
  0x51   : > { %491 = vmatprep.subr.bf16.mxu0 %v854_v33  ;;  %767 = vmatprep.subr.bf16.mxu1 %v854_v33 }
  0x54   : > { %492 = vmatpush1.bf16.msra.mxu0 %v856_v34  ;;  %783 = vmatpush1.bf16.msra.mxu1 %v856_v34 }
  0x57   : > { %494 = vmatmul.mubr.bf16.vlgmr.msra.gmra.mrb[0].mxu0 %v857_v35  ;;  %504 = vmatmul.mubr.bf16.vlgmr.msra.gmra.mrb[0].mxu1 %v860_v36 }
 0x12a   : > { %v495_v41 = vpop.f32.mrb[0].mxu0  ;;  %v505_v42 = vpop.f32.mrb[0].mxu1  ;;  %533 = sbr.rel (%p737_p6) target bundleno = 320 (0x140), region = 40 }
 0x12b   : > { %v514_v45 = vadd.f32 %v495_v41, %v237_v37  ;;  %v518_v46 = vadd.f32 %v505_v42, %v241_v38  ;;  %v497_v47 = vpop.f32.mrb[1].mxu0  ;;  %v507_v48 = vpop.f32.mrb[1].mxu1 }
 0x12c   : > { %v515_v51 = vadd.f32 %v497_v47, %v238_v39  ;;  %v519_v52 = vadd.f32 %v507_v48, %v242_v40  ;;  %v499_v53 = vpop.f32.mrb[2].mxu0  ;;  %v509_v54 = vpop.f32.mrb[2].mxu1 }
 0x12d   : > { %522 = vst [vmem:[#allocation2] sm:$0xff] %v514_v45  ;;  %526 = vst [vmem:[#allocation2 + $0x20] sm:$0xff] %v518_v46  ;;  %v516_v55 = vadd.f32 %v499_v53, %v239_v43  ;;  %v520_v56 = vadd.f32 %v509_v54, %v243_v44  ;;  %v501_v57 = vpop.f32.mrb[3].mxu0  ;;  %v511_v58 = vpop.f32.mrb[3].mxu1 }
 0x12e   : > { %523 = vst [vmem:[#allocation2 + $0x8] sm:$0xff] %v515_v51  ;;  %527 = vst [vmem:[#allocation2 + $0x28] sm:$0xff] %v519_v52  ;;  %v517_v59 = vadd.f32 %v501_v57, %v240_v49  ;;  %v521_v60 = vadd.f32 %v511_v58, %v244_v50 }
 0x12f   : > { %524 = vst [vmem:[#allocation2 + $0x10] sm:$0xff] %v516_v55  ;;  %528 = vst [vmem:[#allocation2 + $0x30] sm:$0xff] %v520_v56 }
 0x130   : > { %525 = vst [vmem:[#allocation2 + $0x18] sm:$0xff] %v517_v59  ;;  %529 = vst [vmem:[#allocation2 + $0x38] sm:$0xff] %v521_v60 }
 0x134   : > { %v534_v3 = vld [vmem:[#allocation2] sm:$0xff] }
 0x135   : > { %v535_v4 = vld [vmem:[#allocation2 + $0x8] sm:$0xff]  ;;  %v538_v9 = vld [vmem:[#allocation2 + $0x20] sm:$0xff]  ;;  %v563_v15 = vadd.f32 %v558_v10, %v534_v3 }
 0x136   : > { %v536_v7 = vld [vmem:[#allocation2 + $0x10] sm:$0xff]  ;;  %v539_v12 = vld [vmem:[#allocation2 + $0x28] sm:$0xff]  ;;  %v564_v16 = vadd.f32 %v562_v11, %v535_v4  ;;  %v567_v19 = vadd.f32 %v558_v10, %v538_v9 }
 0x137   : > { %v537_v8 = vld [vmem:[#allocation2 + $0x18] sm:$0xff]  ;;  %v540_v13 = vld [vmem:[#allocation2 + $0x30] sm:$0xff]  ;;  %v565_v17 = vadd.f32 %v558_v10, %v536_v7  ;;  %v568_v20 = vadd.f32 %v562_v11, %v539_v12  ;;  %v571_v23 = vmax.f32 %v563_v15, 0.0 }
 0x138   : > { %v541_v14 = vld [vmem:[#allocation2 + $0x38] sm:$0xff]  ;;  %v566_v18 = vadd.f32 %v562_v11, %v537_v8  ;;  %v569_v21 = vadd.f32 %v558_v10, %v540_v13  ;;  %v572_v24 = vmax.f32 %v564_v16, 0.0  ;;  %v575_v27 = vmax.f32 %v567_v19, 0.0 }
 0x139   : > { %v570_v22 = vadd.f32 %v562_v11, %v541_v14  ;;  %v573_v25 = vmax.f32 %v565_v17, 0.0  ;;  %v576_v28 = vmax.f32 %v568_v20, 0.0 }
 0x13a   : > { %v574_v26 = vmax.f32 %v566_v18, 0.0  ;;  %v577_v29 = vmax.f32 %v569_v21, 0.0  ;;  %v748_v31 = vpack.c.bf16 %v572_v24, %v571_v23 }
 0x13b   : > { %v578_v30 = vmax.f32 %v570_v22, 0.0  ;;  %v750_v33 = vpack.c.bf16 %v576_v28, %v575_v27 }
 0x13c   : > { %v749_v32 = vpack.c.bf16 %v574_v26, %v573_v25  ;;  %603 = vst [vmem:[%s1005_s3] sm:$0xff] %v748_v31 }
 0x13d   : > { %v751_v34 = vpack.c.bf16 %v578_v30, %v577_v29  ;;  %605 = vst [vmem:[%s1005_s3 + $0x10] sm:$0xff] %v750_v33 }
 0x13e   : > { %604 = vst [vmem:[%s1005_s3 + $0x8] sm:$0xff] %v749_v32 }
 0x13f   : > { %606 = vst [vmem:[%s1005_s3 + $0x18] sm:$0xff] %v751_v34 }
 0x140 PF: > { %s13_s14 = sadd.s32 1, %s885_s14   ;;  %s1006_s12 = smov %s881_s13 }
 0x141   : > { %p10_p7 = scmp.ge.s32.totalorder %s13_s14, 11   ;;  %s1007_s13 = smov %s1009_s15 }
 0x143   :  { %12 = sbr.rel (!%p10_p7) target bundleno = 2 (0x2), region = 73 }

// kernel: vgg_loss.51
= control target key start
LH: loop header
LB: loop body
LE: loop exit
PB: predicated region body
PF: predicated region fallthrough
CT: control target
= control target key end

     0   :  { %s69_s0 = inlined_call_operand.vmem [shape: bf16[8,256], index: 0, kind: input, shape index: {}]   ;;  %s70_s1 = inlined_call_operand.vmem [shape: bf16[8,256], index: 1, kind: input, shape index: {}]   ;;  %s71_s2 = inlined_call_operand.vmem [shape: bf16[8,256], index: 2, kind: input, shape index: {}]   ;;  %s72_s3 = inlined_call_operand.vmem [shape: bf16[8,256], index: 3, kind: input, shape index: {}]   ;;  %s73_s4 = inlined_call_operand.vmem [shape: bf16[8,256], index: 4, kind: output, shape index: {}]  }
   0x1   :  { %v17_v0 = vld [vmem:[%s69_s0] sm:$0xff] }
   0x2   :  { %v18_v1 = vld [vmem:[%s70_s1] sm:$0xff] }
   0x3   :  { %v20_v2 = vld [vmem:[%s71_s2] sm:$0xff]  ;;  %v19_v3 = vmax.bf16 %v18_v1, %v17_v0 }
   0x4   :  { %v21_v4 = vld [vmem:[%s72_s3] sm:$0xff] }
   0x5   :  { %v22_v5 = vmax.bf16 %v21_v4, %v20_v2 }
   0x7   :  { %v23_v6 = vmax.bf16 %v22_v5, %v19_v3 }
   0x9   :  { %24 = vst [vmem:[%s73_s4] sm:$0xff] %v23_v6 }

// kernel: vgg_loss.76
= control target key start
LH: loop header
LB: loop body
LE: loop exit
PB: predicated region body
PF: predicated region fallthrough
CT: control target
= control target key end

     0   :  { %s141_s0 = inlined_call_operand.vmem [shape: bf16[8,512], index: 0, kind: input, shape index: {}]   ;;  %s142_s1 = inlined_call_operand.vmem [shape: bf16[8,512], index: 1, kind: input, shape index: {}]   ;;  %s143_s2 = inlined_call_operand.hbm [shape: f32[1,1], index: 2, kind: output, shape index: {}]  }
   0x1   :  { %v18_v0 = vld [vmem:[%s141_s0] sm:$0xff]  ;;  %v19_v1 = vld [vmem:[%s141_s0 + $0x8] sm:$0xff] }
   0x2   :  { %v24_v2 = vld [vmem:[%s142_s1] sm:$0xff]  ;;  %v20_v3 = vunpack.c.l.bf16 %v18_v0  ;;  %v21_v4 = vunpack.c.h.bf16 %v18_v0  ;;  %v22_v5 = vunpack.c.l.bf16 %v19_v1  ;;  %v23_v6 = vunpack.c.h.bf16 %v19_v1  ;;  %v25_v7 = vld [vmem:[%s142_s1 + $0x8] sm:$0xff] }
   0x3   :  { %7 = vsyncpa [#allocation3], 0  ;;  %v26_v8 = vunpack.c.l.bf16 %v24_v2  ;;  %v27_v9 = vunpack.c.h.bf16 %v24_v2  ;;  %v28_v10 = vunpack.c.l.bf16 %v25_v7  ;;  %v29_v11 = vunpack.c.h.bf16 %v25_v7  ;;  %s99_s1 = smov [#allocation2]  }
   0x4   :  { %vm16_vm0 = vcmask 0   ;;  %v98_v23 = vmov 0.0   ;;  %s62_s17 = sshll.u32 %s99_s1, 4  ;;  %s63_s17 = int_to_ptr.vmem [resolvable:$true] %s62_s17 }
   0x5   :  { %v30_v12 = vsub.f32 %v20_v3, %v26_v8  ;;  %v31_v13 = vsub.f32 %v21_v4, %v27_v9  ;;  %v32_v14 = vsub.f32 %v22_v5, %v28_v10  ;;  %v33_v15 = vsub.f32 %v23_v6, %v29_v11  ;;  %17 = vst.msk [vmem:[#allocation2] sm:$0x1] %vm16_vm0, %v98_v23  ;;  %s74_s18 = scalar_lea.vmem %s63_s17, 16  ;;  %s78_s19 = scalar_lea.vmem %s63_s17, 32 }
   0x6   :  { %p75_p0 = scmp.ne.s32.totalorder %s63_s17, %s74_s18  ;;  %p79_p1 = scmp.lt.s32.totalorder %s63_s17, %s63_s17 }
   0x7   :  { %v34_v16 = vand.u32 2147483647, %v30_v12  ;;  %v35_v17 = vand.u32 2147483647, %v31_v13  ;;  %v36_v18 = vand.u32 2147483647, %v32_v14  ;;  %p80_p2 = scmp.lt.s32.totalorder %s78_s19, %s74_s18 }
   0x8   :  { %v37_v19 = vand.u32 2147483647, %v33_v15 }
   0x9   :  { %v39_v20 = vadd.f32 %v35_v17, %v34_v16  ;;  %p81_p3 = por %p80_p2, %p79_p1 }
   0xb   :  { %v40_v21 = vadd.f32 %v39_v20, %v36_v18  ;;  %p82_p4 = pnand %p81_p3, %p75_p0 }
   0xc   :  { %v38_v31 = vld [vmem:[#allocation2] sm:$0x1] }
   0xd   :  { %v41_v22 = vadd.f32 %v40_v21, %v37_v19 }
   0xf   :  { %42 = vadd.xlane.f32.xlu0 %v41_v22 }
  0x9c   :  { %v43_v24 = vpop.xlane.xlu0 %42 }
  0x9d   :  { %v44_v25 = vrot.slane %v43_v24, 4 }
  0x9f   :  { %v45_v26 = vadd.f32 %v44_v25, %v43_v24 }
  0xa1   :  { %v46_v27 = vrot.slane %v45_v26, 2 }
  0xa3   :  { %v47_v28 = vadd.f32 %v46_v27, %v45_v26 }
  0xa5   :  { %v48_v29 = vrot.slane %v47_v28, 1 }
  0xa7   :  { %v49_v30 = vadd.f32 %v48_v29, %v47_v28 }
  0xa9   :  { %70 = vpush %v49_v30 }
  0xda   :  { %s71_s0 = spop %70 }
  0xdb   :  { %v51_v32 = vstv %s71_s0 }
  0xdc   :  { %v52_v33 = vmul.f32 6.1035156e-05, %v51_v32 }
  0xde   :  { %v53_v34 = vadd.f32 %v52_v33, %v38_v31 }
  0xe0   :  { %55 = vst.msk [vmem:[#allocation2] sm:$0x1] %vm16_vm0, %v53_v34 }
  0xe1   :  { %85 = shalt.err (!%p82_p4)
}
  0xe2   :  { %s86_s22 = scalar_lea.hbm %s143_s2, 16 }
  0xe3   :  { %p87_p5 = scmp.ne.s32.totalorder %s143_s2, %s86_s22  ;;  %p90_p6 = scmp.lt.u32.totalorder %s86_s22, %s143_s2 }
  0xe5   :  { %p92_p7 = pnand %p90_p6, %p87_p5 }
  0xe7   :  { %95 = shalt.err (!%p92_p7)
}
  0xe8   :  { %65 = dma.vmem_to_hbm [thread:$0]  %s63_s17, 16, %s143_s2, [#allocation3]  }
  0xe9   :  { %96 = dma.done.wait [#allocation3], 16  }
  0xea   :  { %97 = vsyncadd [#allocation3], 4294967280 }
  0xeb   :  { %69 = vsyncpa [#allocation3], 1 }

// kernel: vgg_loss.52
= control target key start
LH: loop header
LB: loop body
LE: loop exit
PB: predicated region body
PF: predicated region fallthrough
CT: control target
= control target key end

     0   :  { %s1119_s12 = smov 0   ;;  %s1121_s13 = smov 0   ;;  %s1236_s0 = inlined_call_operand.vmem [shape: bf16[9,8,256], index: 0, kind: input, shape index: {}]   ;;  %s1237_s1 = inlined_call_operand.vmem [shape: bf16[9,256,512], index: 1, kind: input, shape index: {}]   ;;  %s1238_s2 = inlined_call_operand.vmem [shape: bf16[1,512], index: 2, kind: input, shape index: {}]   ;;  %s1239_s3 = inlined_call_operand.vmem [shape: bf16[8,512], index: 3, kind: output, shape index: {}]  }
   0x1   :  { %s1123_s14 = smov 0  }
   0x2 LB: > { %s22_s15 = sadd.s32 1, %s1092_s13  ;;  %p869_p0 = scmp.ge.s32.totalorder %s1096_s14, 1  ;;  %s1096_s14 = sphi %s1123_s14, %s13_s14   ;;  %s1092_s13 = sphi %s1121_s13, %s1241_s13   ;;  %s1088_s12 = sphi %s1119_s12, %s1240_s12  }
   0x3   : > { %p23_p1 = scmp.ge.s32.totalorder %s22_s15, 9  ;;  %p165_p2 = scmp.lt.s32.totalorder %s1096_s14, 10 }
   0x5   : > { %s1243_s15 = smov (%p23_p1, %s22_s15), 0  ;;  %p166_p3 = pnand %p869_p0, %p165_p2 }
   0x6   : > { %p198_p4 = scmp.lt.s32.totalorder (!%p166_p3), %s1088_s12, 8  ;;  %p874_p5 = scmp.ne.s32.totalorder (!%p166_p3), %s1088_s12, 0 }
   0x7   : > { %169 = sbr.rel (%p166_p3) target bundleno = 317 (0x13d), region = 32 }
   0xe   : > { %s199_s16 = scalar_select %p198_p4, %s1088_s12, 8 }
   0xf   : > { %220 = sbr.rel (%p874_p5) target bundleno = 22 (0x16), region = 36  ;;  %v1098_v0 = vmov (!%p874_p5), 0.0  }
  0x10   : > { %s947_s17 = sshll.u32 %s199_s16, 3  ;;  %s948_s18 = sshll.u32 %s199_s16, 9  ;;  %221 = vst [vmem:[#allocation2] sm:$0xff] (!%p874_p5), %v1098_v0  ;;  %222 = vst [vmem:[#allocation2 + $0x8] sm:$0xff] (!%p874_p5), %v1098_v0 }
  0x11   : > { %s1144_s21 = scalar_lea.vmem %s1236_s0, %s947_s17  ;;  %s1149_s24 = scalar_lea.vmem %s1237_s1, %s948_s18  ;;  %223 = vst [vmem:[#allocation2 + $0x10] sm:$0xff] (!%p874_p5), %v1098_v0  ;;  %224 = vst [vmem:[#allocation2 + $0x18] sm:$0xff] (!%p874_p5), %v1098_v0 }
  0x16 PF: > { %v976_v1 = vld [vmem:[%s1149_s24 + $0x4] ss:$16 sps:$4 sm:$0xff]   ;;  %v978_v2 = vld [vmem:[%s1149_s24 + $0xc] ss:$16 sps:$4 sm:$0xff]   ;;  %v980_v3 = vld [vmem:[%s1149_s24] ss:$16 sps:$4 sm:$0xff]  }
  0x17   : > { %621 = vmatprep.subr.bf16.mxu0 %v976_v1  ;;  %v981_v4 = vld [vmem:[%s1149_s24 + $0x8] ss:$16 sps:$4 sm:$0xff]   ;;  %662 = vmatprep.subr.bf16.mxu1 %v978_v2  ;;  %v982_v5 = vld [vmem:[%s1149_s24 + $0x24] ss:$16 sps:$4 sm:$0xff]   ;;  %v984_v6 = vld [vmem:[%s1149_s24 + $0x2c] ss:$16 sps:$4 sm:$0xff]  }
  0x18   : > { %622 = vmatpush1.bf16.msra.mxu0 %v980_v3  ;;  %663 = vmatpush1.bf16.msra.mxu1 %v981_v4  ;;  %v986_v7 = vld [vmem:[%s1149_s24 + $0x20] ss:$16 sps:$4 sm:$0xff]   ;;  %v987_v8 = vld [vmem:[%s1149_s24 + $0x28] ss:$16 sps:$4 sm:$0xff]   ;;  %v988_v9 = vld [vmem:[%s1149_s24 + $0x44] ss:$16 sps:$4 sm:$0xff]  }
  0x19   : > { %623 = vmatprep.subr.bf16.mxu0 %v982_v5  ;;  %664 = vmatprep.subr.bf16.mxu1 %v984_v6  ;;  %v990_v10 = vld [vmem:[%s1149_s24 + $0x4c] ss:$16 sps:$4 sm:$0xff]   ;;  %v992_v11 = vld [vmem:[%s1149_s24 + $0x40] ss:$16 sps:$4 sm:$0xff]   ;;  %v993_v12 = vld [vmem:[%s1149_s24 + $0x48] ss:$16 sps:$4 sm:$0xff]  }
  0x1a   : > { %v994_v13 = vld [vmem:[%s1149_s24 + $0x64] ss:$16 sps:$4 sm:$0xff]   ;;  %v996_v14 = vld [vmem:[%s1149_s24 + $0x6c] ss:$16 sps:$4 sm:$0xff]   ;;  %v998_v15 = vld [vmem:[%s1149_s24 + $0x60] ss:$16 sps:$4 sm:$0xff]  }
  0x1b   : > { %v999_v16 = vld [vmem:[%s1149_s24 + $0x68] ss:$16 sps:$4 sm:$0xff]   ;;  %v1000_v17 = vld [vmem:[%s1149_s24 + $0x84] ss:$16 sps:$4 sm:$0xff]   ;;  %v1002_v18 = vld [vmem:[%s1149_s24 + $0x8c] ss:$16 sps:$4 sm:$0xff]  }
  0x1c   : > { %624 = vmatpush1.bf16.msra.mxu0 %v986_v7  ;;  %665 = vmatpush1.bf16.msra.mxu1 %v987_v8  ;;  %v1004_v19 = vld [vmem:[%s1149_s24 + $0x80] ss:$16 sps:$4 sm:$0xff]   ;;  %v1005_v20 = vld [vmem:[%s1149_s24 + $0x88] ss:$16 sps:$4 sm:$0xff]   ;;  %v1006_v21 = vld [vmem:[%s1149_s24 + $0xa4] ss:$16 sps:$4 sm:$0xff]  }
  0x1d   : > { %625 = vmatprep.subr.bf16.mxu0 %v988_v9  ;;  %666 = vmatprep.subr.bf16.mxu1 %v990_v10  ;;  %v1008_v22 = vld [vmem:[%s1149_s24 + $0xac] ss:$16 sps:$4 sm:$0xff]   ;;  %v1010_v23 = vld [vmem:[%s1149_s24 + $0xa0] ss:$16 sps:$4 sm:$0xff]   ;;  %v1011_v24 = vld [vmem:[%s1149_s24 + $0xa8] ss:$16 sps:$4 sm:$0xff]  }
  0x1e   : > { %v1012_v25 = vld [vmem:[%s1149_s24 + $0xc4] ss:$16 sps:$4 sm:$0xff]   ;;  %v1014_v26 = vld [vmem:[%s1149_s24 + $0xcc] ss:$16 sps:$4 sm:$0xff]   ;;  %v1016_v27 = vld [vmem:[%s1149_s24 + $0xc0] ss:$16 sps:$4 sm:$0xff]  }
  0x1f   : > { %v1017_v28 = vld [vmem:[%s1149_s24 + $0xc8] ss:$16 sps:$4 sm:$0xff]   ;;  %v1018_v29 = vld [vmem:[%s1149_s24 + $0xe4] ss:$16 sps:$4 sm:$0xff]   ;;  %v1020_v30 = vld [vmem:[%s1149_s24 + $0xec] ss:$16 sps:$4 sm:$0xff]  }
  0x20   : > { %626 = vmatpush1.bf16.msra.mxu0 %v992_v11  ;;  %667 = vmatpush1.bf16.msra.mxu1 %v993_v12  ;;  %v1022_v31 = vld [vmem:[%s1149_s24 + $0xe0] ss:$16 sps:$4 sm:$0xff]   ;;  %v1023_v32 = vld [vmem:[%s1149_s24 + $0xe8] ss:$16 sps:$4 sm:$0xff]   ;;  %v1024_v33 = vld [vmem:[%s1149_s24 + $0x104] ss:$16 sps:$4 sm:$0xff]  }
  0x21   : > { %627 = vmatprep.subr.bf16.mxu0 %v994_v13  ;;  %668 = vmatprep.subr.bf16.mxu1 %v996_v14  ;;  %v1026_v34 = vld [vmem:[%s1149_s24 + $0x10c] ss:$16 sps:$4 sm:$0xff]   ;;  %v1028_v35 = vld [vmem:[%s1149_s24 + $0x100] ss:$16 sps:$4 sm:$0xff]   ;;  %v1029_v36 = vld [vmem:[%s1149_s24 + $0x108] ss:$16 sps:$4 sm:$0xff]  }
  0x22   : > { %v1030_v37 = vld [vmem:[%s1149_s24 + $0x124] ss:$16 sps:$4 sm:$0xff]   ;;  %v1032_v38 = vld [vmem:[%s1149_s24 + $0x12c] ss:$16 sps:$4 sm:$0xff]   ;;  %v1034_v39 = vld [vmem:[%s1149_s24 + $0x120] ss:$16 sps:$4 sm:$0xff]  }
  0x23   : > { %v1035_v40 = vld [vmem:[%s1149_s24 + $0x128] ss:$16 sps:$4 sm:$0xff]   ;;  %v1036_v41 = vld [vmem:[%s1149_s24 + $0x144] ss:$16 sps:$4 sm:$0xff]   ;;  %v1038_v42 = vld [vmem:[%s1149_s24 + $0x14c] ss:$16 sps:$4 sm:$0xff]  }
  0x24   : > { %628 = vmatpush1.bf16.msra.mxu0 %v998_v15  ;;  %669 = vmatpush1.bf16.msra.mxu1 %v999_v16  ;;  %v1040_v43 = vld [vmem:[%s1149_s24 + $0x140] ss:$16 sps:$4 sm:$0xff]   ;;  %v1041_v44 = vld [vmem:[%s1149_s24 + $0x148] ss:$16 sps:$4 sm:$0xff]   ;;  %v1042_v45 = vld [vmem:[%s1149_s24 + $0x164] ss:$16 sps:$4 sm:$0xff]  }
  0x25   : > { %629 = vmatprep.subr.bf16.mxu0 %v1000_v17  ;;  %670 = vmatprep.subr.bf16.mxu1 %v1002_v18  ;;  %v1044_v46 = vld [vmem:[%s1149_s24 + $0x16c] ss:$16 sps:$4 sm:$0xff]   ;;  %v229_v47 = vld [vmem:[%s1144_s21] sm:$0xff]  ;;  %v1047_v50 = vld [vmem:[%s1149_s24 + $0x168] ss:$16 sps:$4 sm:$0xff]   ;;  %p941_p6 = scmp.ne.s32.totalorder %s1088_s12, 8 }
  0x26   : > { %v876_v48 = vcombine.high %v229_v47, %v229_v47  ;;  %v1046_v49 = vld [vmem:[%s1149_s24 + $0x160] ss:$16 sps:$4 sm:$0xff]   ;;  %v1048_v51 = vld [vmem:[%s1149_s24 + $0x184] ss:$16 sps:$4 sm:$0xff]   ;;  %v1050_v52 = vld [vmem:[%s1149_s24 + $0x18c] ss:$16 sps:$4 sm:$0xff]   ;;  %v875_v3 = vcombine.low %v229_v47, %v229_v47 }
  0x27   : > { %v1052_v53 = vld [vmem:[%s1149_s24 + $0x180] ss:$16 sps:$4 sm:$0xff]   ;;  %v1053_v54 = vld [vmem:[%s1149_s24 + $0x188] ss:$16 sps:$4 sm:$0xff]   ;;  %v1054_v55 = vld [vmem:[%s1149_s24 + $0x1a4] ss:$16 sps:$4 sm:$0xff]  }
  0x28   : > { %630 = vmatpush1.bf16.msra.mxu0 %v1004_v19  ;;  %671 = vmatpush1.bf16.msra.mxu1 %v1005_v20  ;;  %v1056_v56 = vld [vmem:[%s1149_s24 + $0x1ac] ss:$16 sps:$4 sm:$0xff]   ;;  %v1058_v57 = vld [vmem:[%s1149_s24 + $0x1a0] ss:$16 sps:$4 sm:$0xff]   ;;  %v1059_v58 = vld [vmem:[%s1149_s24 + $0x1a8] ss:$16 sps:$4 sm:$0xff]  }
  0x29   : > { %631 = vmatprep.subr.bf16.mxu0 %v1006_v21  ;;  %672 = vmatprep.subr.bf16.mxu1 %v1008_v22  ;;  %v1060_v59 = vld [vmem:[%s1149_s24 + $0x1c4] ss:$16 sps:$4 sm:$0xff]   ;;  %v1062_v60 = vld [vmem:[%s1149_s24 + $0x1cc] ss:$16 sps:$4 sm:$0xff]   ;;  %v1064_v61 = vld [vmem:[%s1149_s24 + $0x1c0] ss:$16 sps:$4 sm:$0xff]   ;;  %v722_v21 = vlaneseq (!%p941_p6) }
  0x2a   : > { %653 = vmatprep.mubr.bf16.mxu0 %v876_v48  ;;  %694 = vmatprep.mubr.bf16.mxu1 %v876_v48  ;;  %v1065_v62 = vld [vmem:[%s1149_s24 + $0x1c8] ss:$16 sps:$4 sm:$0xff]   ;;  %v1066_v63 = vld [vmem:[%s1149_s24 + $0x1e4] ss:$16 sps:$4 sm:$0xff]   ;;  %v1068_v0 = vld [vmem:[%s1149_s24 + $0x1ec] ss:$16 sps:$4 sm:$0xff]  }
  0x2b   : > { %v1070_v1 = vld [vmem:[%s1149_s24 + $0x1e0] ss:$16 sps:$4 sm:$0xff]   ;;  %v1071_v2 = vld [vmem:[%s1149_s24 + $0x1e8] ss:$16 sps:$4 sm:$0xff]  }
  0x2c   : > { %632 = vmatpush1.bf16.msra.mxu0 %v1010_v23  ;;  %673 = vmatpush1.bf16.msra.mxu1 %v1011_v24  ;;  %v225_v4 = vld [vmem:[#allocation2] sm:$0xff]  ;;  %v227_v5 = vld [vmem:[#allocation2 + $0x10] sm:$0xff]  ;;  %v226_v6 = vld [vmem:[#allocation2 + $0x8] sm:$0xff]  ;;  %v723_v23 = vshrl.u32 (!%p941_p6), %v722_v21, 7 }
  0x2d   : > { %633 = vmatprep.subr.bf16.mxu0 %v1012_v25  ;;  %674 = vmatprep.subr.bf16.mxu1 %v1014_v26  ;;  %v228_v7 = vld [vmem:[#allocation2 + $0x18] sm:$0xff]  ;;  %v719_v20 = vld [vmem:[%s1238_s2] sm:$0xf] (!%p941_p6) }
  0x2e   : > { %v720_v22 = vunpack.c.l.bf16 (!%p941_p6), %v719_v20  ;;  %v724_v24 = vsub.s32 (!%p941_p6), 0, %v723_v23  ;;  %v728_v25 = vsub.s32 (!%p941_p6), 2, %v723_v23  ;;  %v732_v26 = vsub.s32 (!%p941_p6), 4, %v723_v23 }
  0x30   : > { %634 = vmatpush1.bf16.msra.mxu0 %v1016_v27  ;;  %675 = vmatpush1.bf16.msra.mxu1 %v1017_v28  ;;  %v736_v27 = vsub.s32 (!%p941_p6), 6, %v723_v23 }
  0x31   : > { %635 = vmatprep.subr.bf16.mxu0 %v1018_v29  ;;  %676 = vmatprep.subr.bf16.mxu1 %v1020_v30  ;;  %v725_v29 = vrot.slane (!%p941_p6), %v720_v22, %v724_v24  ;;  %v729_v30 = vrot.slane (!%p941_p6), %v720_v22, %v728_v25 }
  0x34   : > { %636 = vmatpush1.bf16.msra.mxu0 %v1022_v31  ;;  %677 = vmatpush1.bf16.msra.mxu1 %v1023_v32  ;;  %v733_v31 = vrot.slane (!%p941_p6), %v720_v22, %v732_v26  ;;  %v737_v32 = vrot.slane (!%p941_p6), %v720_v22, %v736_v27 }
  0x35   : > { %637 = vmatprep.subr.bf16.mxu0 %v1024_v33  ;;  %678 = vmatprep.subr.bf16.mxu1 %v1026_v34 }
  0x38   : > { %638 = vmatpush1.bf16.msra.mxu0 %v1028_v35  ;;  %679 = vmatpush1.bf16.msra.mxu1 %v1029_v36  ;;  %v745_v36 = vrot.slane (!%p941_p6), %v725_v29, %v724_v24 }
  0x39   : > { %639 = vmatprep.subr.bf16.mxu0 %v1030_v37  ;;  %680 = vmatprep.subr.bf16.mxu1 %v1032_v38  ;;  %v749_v37 = vrot.slane (!%p941_p6), %v729_v30, %v724_v24  ;;  %v753_v38 = vrot.slane (!%p941_p6), %v733_v31, %v724_v24 }
  0x3c   : > { %640 = vmatpush1.bf16.msra.mxu0 %v1034_v39  ;;  %681 = vmatpush1.bf16.msra.mxu1 %v1035_v40  ;;  %v757_v39 = vrot.slane (!%p941_p6), %v737_v32, %v724_v24 }
  0x3d   : > { %641 = vmatprep.subr.bf16.mxu0 %v1036_v41  ;;  %682 = vmatprep.subr.bf16.mxu1 %v1038_v42 }
  0x40   : > { %642 = vmatpush1.bf16.msra.mxu0 %v1040_v43  ;;  %683 = vmatpush1.bf16.msra.mxu1 %v1041_v44 }
  0x41   : > { %643 = vmatprep.subr.bf16.mxu0 %v1042_v45  ;;  %684 = vmatprep.subr.bf16.mxu1 %v1044_v46 }
  0x44   : > { %644 = vmatpush1.bf16.msra.mxu0 %v1046_v49  ;;  %685 = vmatpush1.bf16.msra.mxu1 %v1047_v50 }
  0x45   : > { %645 = vmatprep.subr.bf16.mxu0 %v1048_v51  ;;  %686 = vmatprep.subr.bf16.mxu1 %v1050_v52 }
  0x48   : > { %646 = vmatpush1.bf16.msra.mxu0 %v1052_v53  ;;  %687 = vmatpush1.bf16.msra.mxu1 %v1053_v54 }
  0x49   : > { %647 = vmatprep.subr.bf16.mxu0 %v1054_v55  ;;  %688 = vmatprep.subr.bf16.mxu1 %v1056_v56 }
  0x4c   : > { %648 = vmatpush1.bf16.msra.mxu0 %v1058_v57  ;;  %689 = vmatpush1.bf16.msra.mxu1 %v1059_v58 }
  0x4d   : > { %649 = vmatprep.subr.bf16.mxu0 %v1060_v59  ;;  %690 = vmatprep.subr.bf16.mxu1 %v1062_v60 }
  0x50   : > { %650 = vmatpush1.bf16.msra.mxu0 %v1064_v61  ;;  %691 = vmatpush1.bf16.msra.mxu1 %v1065_v62 }
  0x51   : > { %651 = vmatprep.subr.bf16.mxu0 %v1066_v63  ;;  %692 = vmatprep.subr.bf16.mxu1 %v1068_v0 }
  0x54   : > { %652 = vmatpush1.bf16.msra.mxu0 %v1070_v1  ;;  %693 = vmatpush1.bf16.msra.mxu1 %v1071_v2 }
  0x57   : > { %654 = vmatmul.mubr.bf16.vlgmr.msra.gmra.mrb[0].mxu0 %v875_v3  ;;  %695 = vmatmul.mubr.bf16.vlgmr.msra.gmra.mrb[0].mxu1 %v875_v3 }
 0x128   : > { %714 = sbr.rel (%p941_p6) target bundleno = 317 (0x13d), region = 40 }
 0x12a   : > { %v655_v8 = vpop.f32.mrb[0].mxu0  ;;  %v696_v9 = vpop.f32.mrb[0].mxu1 }
 0x12b   : > { %v703_v10 = vadd.f32 %v655_v8, %v225_v4  ;;  %v705_v11 = vadd.f32 %v696_v9, %v227_v5  ;;  %v657_v12 = vpop.f32.mrb[1].mxu0  ;;  %v698_v13 = vpop.f32.mrb[1].mxu1 }
 0x12c   : > { %v704_v14 = vadd.f32 %v657_v12, %v226_v6  ;;  %v706_v15 = vadd.f32 %v698_v13, %v228_v7  ;;  %v659_v16 = vpop.f32.mrb[2].mxu0  ;;  %v700_v17 = vpop.f32.mrb[2].mxu1 }
 0x12d   : > { %707 = vst [vmem:[#allocation2] sm:$0xff] %v703_v10  ;;  %709 = vst [vmem:[#allocation2 + $0x10] sm:$0xff] %v705_v11  ;;  %v660_v18 = vpop.f32.mrb[3].mxu0  ;;  %v701_v19 = vpop.f32.mrb[3].mxu1 }
 0x12e   : > { %708 = vst [vmem:[#allocation2 + $0x8] sm:$0xff] %v704_v14  ;;  %710 = vst [vmem:[#allocation2 + $0x18] sm:$0xff] %v706_v15 }
 0x134   : > { %v715_v28 = vld [vmem:[#allocation2] sm:$0xff]  ;;  %v717_v34 = vld [vmem:[#allocation2 + $0x10] sm:$0xff] }
 0x135   : > { %v716_v33 = vld [vmem:[#allocation2 + $0x8] sm:$0xff]  ;;  %v718_v35 = vld [vmem:[#allocation2 + $0x18] sm:$0xff]  ;;  %v758_v40 = vadd.f32 %v745_v36, %v715_v28  ;;  %v760_v42 = vadd.f32 %v753_v38, %v717_v34 }
 0x136   : > { %v759_v41 = vadd.f32 %v749_v37, %v716_v33  ;;  %v761_v43 = vadd.f32 %v757_v39, %v718_v35 }
 0x137   : > { %v762_v44 = vmax.f32 %v758_v40, 0.0  ;;  %v764_v46 = vmax.f32 %v760_v42, 0.0 }
 0x138   : > { %v763_v45 = vmax.f32 %v759_v41, 0.0  ;;  %v765_v47 = vmax.f32 %v761_v43, 0.0 }
 0x13a   : > { %v949_v48 = vpack.c.bf16 %v763_v45, %v762_v44  ;;  %v950_v49 = vpack.c.bf16 %v765_v47, %v764_v46 }
 0x13c   : > { %782 = vst [vmem:[%s1239_s3] sm:$0xff] %v949_v48  ;;  %783 = vst [vmem:[%s1239_s3 + $0x8] sm:$0xff] %v950_v49 }
 0x13d PF: > { %s13_s14 = sadd.s32 1, %s1096_s14   ;;  %s1240_s12 = smov %s1092_s13 }
 0x13e   : > { %p10_p7 = scmp.ge.s32.totalorder %s13_s14, 11   ;;  %s1241_s13 = smov %s1243_s15 }
 0x140   :  { %12 = sbr.rel (!%p10_p7) target bundleno = 2 (0x2), region = 73 }

// kernel: vgg_loss.78
= control target key start
LH: loop header
LB: loop body
LE: loop exit
PB: predicated region body
PF: predicated region fallthrough
CT: control target
= control target key end

     0   :  { %s112_s0 = inlined_call_operand.vmem [shape: bf16[9,2,512], index: 0, kind: input, shape index: {}, may-alias: {0,5}]   ;;  %s113_s1 = inlined_call_operand.vmem [shape: bf16[2,512], index: 1, kind: input, shape index: {}]   ;;  %s114_s2 = inlined_call_operand.vmem [shape: bf16[2,512], index: 2, kind: input, shape index: {}]   ;;  %s115_s3 = inlined_call_operand.vmem [shape: bf16[2,512], index: 3, kind: input, shape index: {}]   ;;  %s116_s4 = inlined_call_operand.vmem [shape: bf16[2,512], index: 4, kind: input, shape index: {}]   ;;  %s117_s5 = inlined_call_operand.vmem [shape: bf16[9,2,512], index: 5, kind: output, shape index: {}, may-alias: {0,5}]  }
   0x1   :  { %v19_v0 = vld [vmem:[%s113_s1] sm:$0xf] }
   0x2   :  { %v20_v1 = vld [vmem:[%s114_s2] sm:$0xf] }
   0x3   :  { %v22_v2 = vld [vmem:[%s115_s3] sm:$0xf]  ;;  %v21_v3 = vmax.bf16 %v20_v1, %v19_v0 }
   0x4   :  { %v23_v4 = vld [vmem:[%s116_s4] sm:$0xf] }
   0x5   :  { %v24_v5 = vmax.bf16 %v23_v4, %v22_v2 }
   0x7   :  { %v25_v6 = vmax.bf16 %v24_v5, %v21_v3 }
   0x9   :  { %26 = vst [vmem:[#allocation2] sm:$0xf] %v25_v6 }
  0x10   :  { %v44_v7 = vld [vmem:[#allocation2] sm:$0xf] }
  0x11   :  { %66 = vst [vmem:[%s117_s5 + $0x10] sm:$0xf] %v44_v7 }

// kernel: vgg_loss.53
= control target key start
LH: loop header
LB: loop body
LE: loop exit
PB: predicated region body
PF: predicated region fallthrough
CT: control target
= control target key end

     0   :  { %s1757_s12 = smov 0   ;;  %s1759_s13 = smov 0   ;;  %s1951_s0 = inlined_call_operand.vmem [shape: bf16[9,8,512], index: 0, kind: input, shape index: {}]   ;;  %s1952_s1 = inlined_call_operand.vmem [shape: bf16[9,512,512], index: 1, kind: input, shape index: {}]   ;;  %s1953_s2 = inlined_call_operand.vmem [shape: bf16[1,512], index: 2, kind: input, shape index: {}]   ;;  %s1954_s3 = inlined_call_operand.vmem [shape: bf16[8,512], index: 3, kind: output, shape index: {}]  }
   0x1   :  { %s1761_s14 = smov 0  }
   0x2 LB: > { %s22_s15 = sadd.s32 1, %s1730_s13  ;;  %p1343_p0 = scmp.ge.s32.totalorder %s1734_s14, 1  ;;  %s1734_s14 = sphi %s1761_s14, %s13_s14   ;;  %s1730_s13 = sphi %s1759_s13, %s1956_s13   ;;  %s1726_s12 = sphi %s1757_s12, %s1955_s12  }
   0x3   : > { %p23_p1 = scmp.ge.s32.totalorder %s22_s15, 9  ;;  %p165_p2 = scmp.lt.s32.totalorder %s1734_s14, 10 }
   0x5   : > { %s1958_s15 = smov (%p23_p1, %s22_s15), 0  ;;  %p166_p3 = pnand %p1343_p0, %p165_p2 }
   0x6   : > { %p198_p4 = scmp.lt.s32.totalorder (!%p166_p3), %s1726_s12, 8  ;;  %p1348_p5 = scmp.ne.s32.totalorder (!%p166_p3), %s1726_s12, 0 }
   0x7   : > { %169 = sbr.rel (%p166_p3) target bundleno = 384 (0x180), region = 32 }
   0xe   : > { %s199_s16 = scalar_select %p198_p4, %s1726_s12, 8 }
   0xf   : > { %220 = sbr.rel (%p1348_p5) target bundleno = 22 (0x16), region = 36  ;;  %v1736_v0 = vmov (!%p1348_p5), 0.0  }
  0x10   : > { %s1487_s17 = sshll.u32 %s199_s16, 4  ;;  %s1488_s18 = sshll.u32 %s199_s16, 10  ;;  %221 = vst [vmem:[#allocation2] sm:$0xff] (!%p1348_p5), %v1736_v0  ;;  %222 = vst [vmem:[#allocation2 + $0x8] sm:$0xff] (!%p1348_p5), %v1736_v0 }
  0x11   : > { %s1782_s21 = scalar_lea.vmem %s1951_s0, %s1487_s17  ;;  %s1787_s24 = scalar_lea.vmem %s1952_s1, %s1488_s18  ;;  %223 = vst [vmem:[#allocation2 + $0x10] sm:$0xff] (!%p1348_p5), %v1736_v0  ;;  %224 = vst [vmem:[#allocation2 + $0x18] sm:$0xff] (!%p1348_p5), %v1736_v0 }
  0x16 PF: > { %v1516_v1 = vld [vmem:[%s1787_s24 + $0x4] ss:$16 sps:$4 sm:$0xff]   ;;  %v1520_v3 = vld [vmem:[%s1787_s24] ss:$16 sps:$4 sm:$0xff]   ;;  %v230_v49 = vld [vmem:[%s1782_s21 + $0x8] sm:$0xff]  ;;  %p1481_p6 = scmp.ne.s32.totalorder %s1726_s12, 8 }
  0x17   : > { %v1518_v2 = vld [vmem:[%s1787_s24 + $0x204] ss:$16 sps:$4 sm:$0xff]   ;;  %1013 = vmatprep.subr.bf16.mxu0 %v1516_v1  ;;  %v1521_v4 = vld [vmem:[%s1787_s24 + $0x200] ss:$16 sps:$4 sm:$0xff]   ;;  %v1352_v52 = vcombine.high %v230_v49, %v230_v49 }
  0x18   : > { %1054 = vmatprep.subr.bf16.mxu1 %v1518_v2  ;;  %v1522_v5 = vld [vmem:[%s1787_s24 + $0x24] ss:$16 sps:$4 sm:$0xff]   ;;  %1014 = vmatpush1.bf16.msra.mxu0 %v1520_v3  ;;  %v1526_v7 = vld [vmem:[%s1787_s24 + $0x20] ss:$16 sps:$4 sm:$0xff]  }
  0x19   : > { %1055 = vmatpush1.bf16.msra.mxu1 %v1521_v4  ;;  %v1524_v6 = vld [vmem:[%s1787_s24 + $0x224] ss:$16 sps:$4 sm:$0xff]   ;;  %1015 = vmatprep.subr.bf16.mxu0 %v1522_v5  ;;  %v1527_v8 = vld [vmem:[%s1787_s24 + $0x220] ss:$16 sps:$4 sm:$0xff]   ;;  %v1618_v5 = vld [vmem:[%s1787_s24 + $0xc] ss:$16 sps:$4 sm:$0xff]  }
  0x1a   : > { %1056 = vmatprep.subr.bf16.mxu1 %v1524_v6  ;;  %v1528_v9 = vld [vmem:[%s1787_s24 + $0x44] ss:$16 sps:$4 sm:$0xff]   ;;  %v1532_v11 = vld [vmem:[%s1787_s24 + $0x40] ss:$16 sps:$4 sm:$0xff]   ;;  %1086 = vmatprep.mubr.bf16.mxu1 %v1352_v52  ;;  %v1621_v6 = vld [vmem:[%s1787_s24 + $0x20c] ss:$16 sps:$4 sm:$0xff]  }
  0x1b   : > { %v1530_v10 = vld [vmem:[%s1787_s24 + $0x244] ss:$16 sps:$4 sm:$0xff]   ;;  %v1533_v12 = vld [vmem:[%s1787_s24 + $0x240] ss:$16 sps:$4 sm:$0xff]  }
  0x1c   : > { %1016 = vmatpush1.bf16.msra.mxu0 %v1526_v7  ;;  %v1534_v13 = vld [vmem:[%s1787_s24 + $0x64] ss:$16 sps:$4 sm:$0xff]   ;;  %v1538_v15 = vld [vmem:[%s1787_s24 + $0x60] ss:$16 sps:$4 sm:$0xff]  }
  0x1d   : > { %1057 = vmatpush1.bf16.msra.mxu1 %v1527_v8  ;;  %1017 = vmatprep.subr.bf16.mxu0 %v1528_v9  ;;  %v1536_v14 = vld [vmem:[%s1787_s24 + $0x264] ss:$16 sps:$4 sm:$0xff]   ;;  %v1539_v16 = vld [vmem:[%s1787_s24 + $0x260] ss:$16 sps:$4 sm:$0xff]   ;;  %v1863_v8 = vcombine.low %v230_v49, %v230_v49  ;;  %v1616_v9 = vld [vmem:[%s1787_s24 + $0x8] ss:$16 sps:$4 sm:$0xff]  }
  0x1e   : > { %1058 = vmatprep.subr.bf16.mxu1 %v1530_v10  ;;  %v1540_v17 = vld [vmem:[%s1787_s24 + $0x84] ss:$16 sps:$4 sm:$0xff]   ;;  %v1544_v19 = vld [vmem:[%s1787_s24 + $0x80] ss:$16 sps:$4 sm:$0xff]   ;;  %v1619_v10 = vld [vmem:[%s1787_s24 + $0x208] ss:$16 sps:$4 sm:$0xff]  }
  0x1f   : > { %v1542_v18 = vld [vmem:[%s1787_s24 + $0x284] ss:$16 sps:$4 sm:$0xff]   ;;  %v1545_v20 = vld [vmem:[%s1787_s24 + $0x280] ss:$16 sps:$4 sm:$0xff]   ;;  %v1676_v49 = vld [vmem:[%s1787_s24 + $0x148] ss:$16 sps:$4 sm:$0xff]  }
  0x20   : > { %1018 = vmatpush1.bf16.msra.mxu0 %v1532_v11  ;;  %v1546_v21 = vld [vmem:[%s1787_s24 + $0xa4] ss:$16 sps:$4 sm:$0xff]   ;;  %v1550_v23 = vld [vmem:[%s1787_s24 + $0xa0] ss:$16 sps:$4 sm:$0xff]   ;;  %v1624_v11 = vld [vmem:[%s1787_s24 + $0x2c] ss:$16 sps:$4 sm:$0xff]  }
  0x21   : > { %1059 = vmatpush1.bf16.msra.mxu1 %v1533_v12  ;;  %1019 = vmatprep.subr.bf16.mxu0 %v1534_v13  ;;  %v1548_v22 = vld [vmem:[%s1787_s24 + $0x2a4] ss:$16 sps:$4 sm:$0xff]   ;;  %v1551_v24 = vld [vmem:[%s1787_s24 + $0x2a0] ss:$16 sps:$4 sm:$0xff]   ;;  %v1627_v12 = vld [vmem:[%s1787_s24 + $0x22c] ss:$16 sps:$4 sm:$0xff]  }
  0x22   : > { %1060 = vmatprep.subr.bf16.mxu1 %v1536_v14  ;;  %v1552_v25 = vld [vmem:[%s1787_s24 + $0xc4] ss:$16 sps:$4 sm:$0xff]   ;;  %v1556_v27 = vld [vmem:[%s1787_s24 + $0xc0] ss:$16 sps:$4 sm:$0xff]   ;;  %v1622_v13 = vld [vmem:[%s1787_s24 + $0x28] ss:$16 sps:$4 sm:$0xff]  }
  0x23   : > { %v1554_v26 = vld [vmem:[%s1787_s24 + $0x2c4] ss:$16 sps:$4 sm:$0xff]   ;;  %v1557_v28 = vld [vmem:[%s1787_s24 + $0x2c0] ss:$16 sps:$4 sm:$0xff]   ;;  %v1625_v14 = vld [vmem:[%s1787_s24 + $0x228] ss:$16 sps:$4 sm:$0xff]  }
  0x24   : > { %1020 = vmatpush1.bf16.msra.mxu0 %v1538_v15  ;;  %v1558_v29 = vld [vmem:[%s1787_s24 + $0xe4] ss:$16 sps:$4 sm:$0xff]   ;;  %v1562_v31 = vld [vmem:[%s1787_s24 + $0xe0] ss:$16 sps:$4 sm:$0xff]   ;;  %v1630_v15 = vld [vmem:[%s1787_s24 + $0x4c] ss:$16 sps:$4 sm:$0xff]  }
  0x25   : > { %1061 = vmatpush1.bf16.msra.mxu1 %v1539_v16  ;;  %1021 = vmatprep.subr.bf16.mxu0 %v1540_v17  ;;  %v1560_v30 = vld [vmem:[%s1787_s24 + $0x2e4] ss:$16 sps:$4 sm:$0xff]   ;;  %v1563_v32 = vld [vmem:[%s1787_s24 + $0x2e0] ss:$16 sps:$4 sm:$0xff]   ;;  %v1633_v16 = vld [vmem:[%s1787_s24 + $0x24c] ss:$16 sps:$4 sm:$0xff]  }
  0x26   : > { %1062 = vmatprep.subr.bf16.mxu1 %v1542_v18  ;;  %v1564_v33 = vld [vmem:[%s1787_s24 + $0x104] ss:$16 sps:$4 sm:$0xff]   ;;  %v1568_v35 = vld [vmem:[%s1787_s24 + $0x100] ss:$16 sps:$4 sm:$0xff]   ;;  %v1628_v17 = vld [vmem:[%s1787_s24 + $0x48] ss:$16 sps:$4 sm:$0xff]  }
  0x27   : > { %v1566_v34 = vld [vmem:[%s1787_s24 + $0x304] ss:$16 sps:$4 sm:$0xff]   ;;  %v1569_v36 = vld [vmem:[%s1787_s24 + $0x300] ss:$16 sps:$4 sm:$0xff]   ;;  %v1631_v18 = vld [vmem:[%s1787_s24 + $0x248] ss:$16 sps:$4 sm:$0xff]  }
  0x28   : > { %1022 = vmatpush1.bf16.msra.mxu0 %v1544_v19  ;;  %v1570_v37 = vld [vmem:[%s1787_s24 + $0x124] ss:$16 sps:$4 sm:$0xff]   ;;  %v1574_v39 = vld [vmem:[%s1787_s24 + $0x120] ss:$16 sps:$4 sm:$0xff]   ;;  %v1636_v19 = vld [vmem:[%s1787_s24 + $0x6c] ss:$16 sps:$4 sm:$0xff]  }
  0x29   : > { %1063 = vmatpush1.bf16.msra.mxu1 %v1545_v20  ;;  %1023 = vmatprep.subr.bf16.mxu0 %v1546_v21  ;;  %v1572_v38 = vld [vmem:[%s1787_s24 + $0x324] ss:$16 sps:$4 sm:$0xff]   ;;  %v1575_v40 = vld [vmem:[%s1787_s24 + $0x320] ss:$16 sps:$4 sm:$0xff]   ;;  %v1639_v20 = vld [vmem:[%s1787_s24 + $0x26c] ss:$16 sps:$4 sm:$0xff]  }
  0x2a   : > { %1064 = vmatprep.subr.bf16.mxu1 %v1548_v22  ;;  %v1576_v41 = vld [vmem:[%s1787_s24 + $0x144] ss:$16 sps:$4 sm:$0xff]   ;;  %v1580_v43 = vld [vmem:[%s1787_s24 + $0x140] ss:$16 sps:$4 sm:$0xff]   ;;  %v1634_v21 = vld [vmem:[%s1787_s24 + $0x68] ss:$16 sps:$4 sm:$0xff]  }
  0x2b   : > { %v1578_v42 = vld [vmem:[%s1787_s24 + $0x344] ss:$16 sps:$4 sm:$0xff]   ;;  %v1581_v44 = vld [vmem:[%s1787_s24 + $0x340] ss:$16 sps:$4 sm:$0xff]   ;;  %v1637_v22 = vld [vmem:[%s1787_s24 + $0x268] ss:$16 sps:$4 sm:$0xff]  }
  0x2c   : > { %1024 = vmatpush1.bf16.msra.mxu0 %v1550_v23  ;;  %v1582_v45 = vld [vmem:[%s1787_s24 + $0x164] ss:$16 sps:$4 sm:$0xff]   ;;  %v1586_v50 = vld [vmem:[%s1787_s24 + $0x160] ss:$16 sps:$4 sm:$0xff]   ;;  %v1642_v23 = vld [vmem:[%s1787_s24 + $0x8c] ss:$16 sps:$4 sm:$0xff]  }
  0x2d   : > { %1065 = vmatpush1.bf16.msra.mxu1 %v1551_v24  ;;  %1025 = vmatprep.subr.bf16.mxu0 %v1552_v25  ;;  %v1584_v46 = vld [vmem:[%s1787_s24 + $0x364] ss:$16 sps:$4 sm:$0xff]   ;;  %v1587_v51 = vld [vmem:[%s1787_s24 + $0x360] ss:$16 sps:$4 sm:$0xff]   ;;  %v1645_v24 = vld [vmem:[%s1787_s24 + $0x28c] ss:$16 sps:$4 sm:$0xff]  }
  0x2e   : > { %1066 = vmatprep.subr.bf16.mxu1 %v1554_v26  ;;  %v229_v47 = vld [vmem:[%s1782_s21] sm:$0xff]  ;;  %v1640_v25 = vld [vmem:[%s1787_s24 + $0x88] ss:$16 sps:$4 sm:$0xff]  }
  0x2f   : > { %v1837_v48 = vcombine.high %v229_v47, %v229_v47  ;;  %v1588_v53 = vld [vmem:[%s1787_s24 + $0x184] ss:$16 sps:$4 sm:$0xff]   ;;  %v1592_v55 = vld [vmem:[%s1787_s24 + $0x180] ss:$16 sps:$4 sm:$0xff]   ;;  %v1861_v7 = vcombine.low %v229_v47, %v229_v47  ;;  %v1643_v26 = vld [vmem:[%s1787_s24 + $0x288] ss:$16 sps:$4 sm:$0xff]  }
  0x30   : > { %1026 = vmatpush1.bf16.msra.mxu0 %v1556_v27  ;;  %v1590_v54 = vld [vmem:[%s1787_s24 + $0x384] ss:$16 sps:$4 sm:$0xff]   ;;  %v1593_v56 = vld [vmem:[%s1787_s24 + $0x380] ss:$16 sps:$4 sm:$0xff]   ;;  %v1648_v27 = vld [vmem:[%s1787_s24 + $0xac] ss:$16 sps:$4 sm:$0xff]  }
  0x31   : > { %1067 = vmatpush1.bf16.msra.mxu1 %v1557_v28  ;;  %1027 = vmatprep.subr.bf16.mxu0 %v1558_v29  ;;  %v1594_v57 = vld [vmem:[%s1787_s24 + $0x1a4] ss:$16 sps:$4 sm:$0xff]   ;;  %v1598_v59 = vld [vmem:[%s1787_s24 + $0x1a0] ss:$16 sps:$4 sm:$0xff]   ;;  %v1651_v28 = vld [vmem:[%s1787_s24 + $0x2ac] ss:$16 sps:$4 sm:$0xff]  }
  0x32   : > { %1068 = vmatprep.subr.bf16.mxu1 %v1560_v30  ;;  %1045 = vmatprep.mubr.bf16.mxu0 %v1837_v48  ;;  %v1596_v58 = vld [vmem:[%s1787_s24 + $0x3a4] ss:$16 sps:$4 sm:$0xff]   ;;  %v1599_v60 = vld [vmem:[%s1787_s24 + $0x3a0] ss:$16 sps:$4 sm:$0xff]   ;;  %v1646_v29 = vld [vmem:[%s1787_s24 + $0xa8] ss:$16 sps:$4 sm:$0xff]  }
  0x33   : > { %v1600_v61 = vld [vmem:[%s1787_s24 + $0x1c4] ss:$16 sps:$4 sm:$0xff]   ;;  %v1604_v63 = vld [vmem:[%s1787_s24 + $0x1c0] ss:$16 sps:$4 sm:$0xff]   ;;  %v1649_v30 = vld [vmem:[%s1787_s24 + $0x2a8] ss:$16 sps:$4 sm:$0xff]  }
  0x34   : > { %1028 = vmatpush1.bf16.msra.mxu0 %v1562_v31  ;;  %v1602_v62 = vld [vmem:[%s1787_s24 + $0x3c4] ss:$16 sps:$4 sm:$0xff]   ;;  %v1605_v0 = vld [vmem:[%s1787_s24 + $0x3c0] ss:$16 sps:$4 sm:$0xff]   ;;  %v1654_v31 = vld [vmem:[%s1787_s24 + $0xcc] ss:$16 sps:$4 sm:$0xff]  }
  0x35   : > { %1069 = vmatpush1.bf16.msra.mxu1 %v1563_v32  ;;  %1029 = vmatprep.subr.bf16.mxu0 %v1564_v33  ;;  %v1606_v1 = vld [vmem:[%s1787_s24 + $0x1e4] ss:$16 sps:$4 sm:$0xff]   ;;  %v1610_v3 = vld [vmem:[%s1787_s24 + $0x1e0] ss:$16 sps:$4 sm:$0xff]   ;;  %v1657_v32 = vld [vmem:[%s1787_s24 + $0x2cc] ss:$16 sps:$4 sm:$0xff]  }
  0x36   : > { %1070 = vmatprep.subr.bf16.mxu1 %v1566_v34  ;;  %v1608_v2 = vld [vmem:[%s1787_s24 + $0x3e4] ss:$16 sps:$4 sm:$0xff]   ;;  %v1611_v4 = vld [vmem:[%s1787_s24 + $0x3e0] ss:$16 sps:$4 sm:$0xff]   ;;  %v1652_v33 = vld [vmem:[%s1787_s24 + $0xc8] ss:$16 sps:$4 sm:$0xff]  }
  0x37   : > { %v1655_v34 = vld [vmem:[%s1787_s24 + $0x2c8] ss:$16 sps:$4 sm:$0xff]   ;;  %v1678_v47 = vld [vmem:[%s1787_s24 + $0x14c] ss:$16 sps:$4 sm:$0xff]  }
  0x38   : > { %1030 = vmatpush1.bf16.msra.mxu0 %v1568_v35  ;;  %v1660_v35 = vld [vmem:[%s1787_s24 + $0xec] ss:$16 sps:$4 sm:$0xff]  }
  0x39   : > { %1071 = vmatpush1.bf16.msra.mxu1 %v1569_v36  ;;  %1031 = vmatprep.subr.bf16.mxu0 %v1570_v37  ;;  %v1663_v36 = vld [vmem:[%s1787_s24 + $0x2ec] ss:$16 sps:$4 sm:$0xff]   ;;  %v1658_v37 = vld [vmem:[%s1787_s24 + $0xe8] ss:$16 sps:$4 sm:$0xff]  }
  0x3a   : > { %1072 = vmatprep.subr.bf16.mxu1 %v1572_v38  ;;  %v1661_v38 = vld [vmem:[%s1787_s24 + $0x2e8] ss:$16 sps:$4 sm:$0xff]  }
  0x3c   : > { %1032 = vmatpush1.bf16.msra.mxu0 %v1574_v39  ;;  %v1666_v39 = vld [vmem:[%s1787_s24 + $0x10c] ss:$16 sps:$4 sm:$0xff]  }
  0x3d   : > { %1073 = vmatpush1.bf16.msra.mxu1 %v1575_v40  ;;  %1033 = vmatprep.subr.bf16.mxu0 %v1576_v41  ;;  %v1669_v40 = vld [vmem:[%s1787_s24 + $0x30c] ss:$16 sps:$4 sm:$0xff]   ;;  %v1664_v41 = vld [vmem:[%s1787_s24 + $0x108] ss:$16 sps:$4 sm:$0xff]  }
  0x3e   : > { %1074 = vmatprep.subr.bf16.mxu1 %v1578_v42  ;;  %v1667_v42 = vld [vmem:[%s1787_s24 + $0x308] ss:$16 sps:$4 sm:$0xff]  }
  0x40   : > { %1034 = vmatpush1.bf16.msra.mxu0 %v1580_v43  ;;  %v1672_v43 = vld [vmem:[%s1787_s24 + $0x12c] ss:$16 sps:$4 sm:$0xff]  }
  0x41   : > { %1075 = vmatpush1.bf16.msra.mxu1 %v1581_v44  ;;  %1035 = vmatprep.subr.bf16.mxu0 %v1582_v45  ;;  %v1675_v44 = vld [vmem:[%s1787_s24 + $0x32c] ss:$16 sps:$4 sm:$0xff]   ;;  %v1670_v45 = vld [vmem:[%s1787_s24 + $0x128] ss:$16 sps:$4 sm:$0xff]  }
  0x42   : > { %1076 = vmatprep.subr.bf16.mxu1 %v1584_v46  ;;  %v1673_v46 = vld [vmem:[%s1787_s24 + $0x328] ss:$16 sps:$4 sm:$0xff]  }
  0x44   : > { %1036 = vmatpush1.bf16.msra.mxu0 %v1586_v50  ;;  %v1679_v50 = vld [vmem:[%s1787_s24 + $0x348] ss:$16 sps:$4 sm:$0xff]  }
  0x45   : > { %1077 = vmatpush1.bf16.msra.mxu1 %v1587_v51  ;;  %1037 = vmatprep.subr.bf16.mxu0 %v1588_v53  ;;  %v1684_v51 = vld [vmem:[%s1787_s24 + $0x16c] ss:$16 sps:$4 sm:$0xff]   ;;  %v1682_v53 = vld [vmem:[%s1787_s24 + $0x168] ss:$16 sps:$4 sm:$0xff]  }
  0x46   : > { %1078 = vmatprep.subr.bf16.mxu1 %v1590_v54  ;;  %v1685_v54 = vld [vmem:[%s1787_s24 + $0x368] ss:$16 sps:$4 sm:$0xff]  }
  0x48   : > { %1038 = vmatpush1.bf16.msra.mxu0 %v1592_v55  ;;  %v1690_v55 = vld [vmem:[%s1787_s24 + $0x18c] ss:$16 sps:$4 sm:$0xff]  }
  0x49   : > { %1079 = vmatpush1.bf16.msra.mxu1 %v1593_v56  ;;  %1039 = vmatprep.subr.bf16.mxu0 %v1594_v57  ;;  %v1693_v56 = vld [vmem:[%s1787_s24 + $0x38c] ss:$16 sps:$4 sm:$0xff]   ;;  %v1688_v57 = vld [vmem:[%s1787_s24 + $0x188] ss:$16 sps:$4 sm:$0xff]  }
  0x4a   : > { %1080 = vmatprep.subr.bf16.mxu1 %v1596_v58  ;;  %v1691_v58 = vld [vmem:[%s1787_s24 + $0x388] ss:$16 sps:$4 sm:$0xff]  }
  0x4c   : > { %1040 = vmatpush1.bf16.msra.mxu0 %v1598_v59  ;;  %v1696_v59 = vld [vmem:[%s1787_s24 + $0x1ac] ss:$16 sps:$4 sm:$0xff]  }
  0x4d   : > { %1081 = vmatpush1.bf16.msra.mxu1 %v1599_v60  ;;  %1041 = vmatprep.subr.bf16.mxu0 %v1600_v61  ;;  %v1699_v60 = vld [vmem:[%s1787_s24 + $0x3ac] ss:$16 sps:$4 sm:$0xff]   ;;  %v1694_v61 = vld [vmem:[%s1787_s24 + $0x1a8] ss:$16 sps:$4 sm:$0xff]  }
  0x4e   : > { %1082 = vmatprep.subr.bf16.mxu1 %v1602_v62  ;;  %v1697_v62 = vld [vmem:[%s1787_s24 + $0x3a8] ss:$16 sps:$4 sm:$0xff]  }
  0x50   : > { %1042 = vmatpush1.bf16.msra.mxu0 %v1604_v63  ;;  %v1702_v63 = vld [vmem:[%s1787_s24 + $0x1cc] ss:$16 sps:$4 sm:$0xff]  }
  0x51   : > { %1083 = vmatpush1.bf16.msra.mxu1 %v1605_v0  ;;  %1043 = vmatprep.subr.bf16.mxu0 %v1606_v1  ;;  %v1705_v0 = vld [vmem:[%s1787_s24 + $0x3cc] ss:$16 sps:$4 sm:$0xff]   ;;  %v1700_v1 = vld [vmem:[%s1787_s24 + $0x1c8] ss:$16 sps:$4 sm:$0xff]  }
  0x52   : > { %1084 = vmatprep.subr.bf16.mxu1 %v1608_v2  ;;  %v1703_v2 = vld [vmem:[%s1787_s24 + $0x3c8] ss:$16 sps:$4 sm:$0xff]  }
  0x54   : > { %1044 = vmatpush1.bf16.msra.mxu0 %v1610_v3  ;;  %v1708_v3 = vld [vmem:[%s1787_s24 + $0x1ec] ss:$16 sps:$4 sm:$0xff]  }
  0x55   : > { %1085 = vmatpush1.bf16.msra.mxu1 %v1611_v4  ;;  %1095 = vmatprep.subr.bf16.mxu0 %v1618_v5  ;;  %v1711_v4 = vld [vmem:[%s1787_s24 + $0x3ec] ss:$16 sps:$4 sm:$0xff]   ;;  %v1706_v5 = vld [vmem:[%s1787_s24 + $0x1e8] ss:$16 sps:$4 sm:$0xff]  }
  0x56   : > { %1136 = vmatprep.subr.bf16.mxu1 %v1621_v6  ;;  %v1709_v6 = vld [vmem:[%s1787_s24 + $0x3e8] ss:$16 sps:$4 sm:$0xff]  }
  0x57   : > { %1046 = vmatmul.mubr.bf16.vlgmr.msra.gmra.mrb[0].mxu0 %v1861_v7 }
  0x58   : > { %1087 = vmatmul.mubr.bf16.vlgmr.msra.gmra.mrb[0].mxu1 %v1863_v8  ;;  %1096 = vmatpush1.bf16.msra.mxu0 %v1616_v9 }
  0x59   : > { %1137 = vmatpush1.bf16.msra.mxu1 %v1619_v10  ;;  %1097 = vmatprep.subr.bf16.mxu0 %v1624_v11  ;;  %v225_v10 = vld [vmem:[#allocation2] sm:$0xff] }
  0x5a   : > { %1138 = vmatprep.subr.bf16.mxu1 %v1627_v12  ;;  %1127 = vmatprep.mubr.bf16.mxu0 %v1837_v48  ;;  %v1681_v48 = vld [vmem:[%s1787_s24 + $0x34c] ss:$16 sps:$4 sm:$0xff]  }
  0x5b   : > { %1168 = vmatprep.mubr.bf16.mxu1 %v1352_v52  ;;  %v1687_v52 = vld [vmem:[%s1787_s24 + $0x36c] ss:$16 sps:$4 sm:$0xff]  }
  0x5c   : > { %1098 = vmatpush1.bf16.msra.mxu0 %v1622_v13 }
  0x5d   : > { %1139 = vmatpush1.bf16.msra.mxu1 %v1625_v14  ;;  %1099 = vmatprep.subr.bf16.mxu0 %v1630_v15  ;;  %v226_v14 = vld [vmem:[#allocation2 + $0x8] sm:$0xff] }
  0x5e   : > { %1140 = vmatprep.subr.bf16.mxu1 %v1633_v16 }
  0x60   : > { %1100 = vmatpush1.bf16.msra.mxu0 %v1628_v17 }
  0x61   : > { %1141 = vmatpush1.bf16.msra.mxu1 %v1631_v18  ;;  %1101 = vmatprep.subr.bf16.mxu0 %v1636_v19 }
  0x62   : > { %1142 = vmatprep.subr.bf16.mxu1 %v1639_v20 }
  0x64   : > { %1102 = vmatpush1.bf16.msra.mxu0 %v1634_v21 }
  0x65   : > { %1143 = vmatpush1.bf16.msra.mxu1 %v1637_v22  ;;  %1103 = vmatprep.subr.bf16.mxu0 %v1642_v23 }
  0x66   : > { %1144 = vmatprep.subr.bf16.mxu1 %v1645_v24 }
  0x68   : > { %1104 = vmatpush1.bf16.msra.mxu0 %v1640_v25 }
  0x69   : > { %1145 = vmatpush1.bf16.msra.mxu1 %v1643_v26  ;;  %1105 = vmatprep.subr.bf16.mxu0 %v1648_v27  ;;  %v228_v26 = vld [vmem:[#allocation2 + $0x18] sm:$0xff] }
  0x6a   : > { %1146 = vmatprep.subr.bf16.mxu1 %v1651_v28 }
  0x6c   : > { %1106 = vmatpush1.bf16.msra.mxu0 %v1646_v29 }
  0x6d   : > { %1147 = vmatpush1.bf16.msra.mxu1 %v1649_v30  ;;  %1107 = vmatprep.subr.bf16.mxu0 %v1654_v31 }
  0x6e   : > { %1148 = vmatprep.subr.bf16.mxu1 %v1657_v32 }
  0x70   : > { %1108 = vmatpush1.bf16.msra.mxu0 %v1652_v33 }
  0x71   : > { %1149 = vmatpush1.bf16.msra.mxu1 %v1655_v34  ;;  %1109 = vmatprep.subr.bf16.mxu0 %v1660_v35  ;;  %v1193_v35 = vld [vmem:[%s1953_s2] sm:$0xf] (!%p1481_p6) }
  0x72   : > { %1150 = vmatprep.subr.bf16.mxu1 %v1663_v36  ;;  %v1196_v36 = vlaneseq (!%p1481_p6) }
  0x74   : > { %1110 = vmatpush1.bf16.msra.mxu0 %v1658_v37  ;;  %v1194_v37 = vunpack.c.l.bf16 (!%p1481_p6), %v1193_v35 }
  0x75   : > { %1151 = vmatpush1.bf16.msra.mxu1 %v1661_v38  ;;  %1111 = vmatprep.subr.bf16.mxu0 %v1666_v39  ;;  %v1197_v38 = vshrl.u32 (!%p1481_p6), %v1196_v36, 7 }
  0x76   : > { %1152 = vmatprep.subr.bf16.mxu1 %v1669_v40 }
  0x77   : > { %v1198_v39 = vsub.s32 (!%p1481_p6), 0, %v1197_v38  ;;  %v1202_v40 = vsub.s32 (!%p1481_p6), 2, %v1197_v38 }
  0x78   : > { %1112 = vmatpush1.bf16.msra.mxu0 %v1664_v41  ;;  %v1206_v41 = vsub.s32 (!%p1481_p6), 4, %v1197_v38 }
  0x79   : > { %1153 = vmatpush1.bf16.msra.mxu1 %v1667_v42  ;;  %1113 = vmatprep.subr.bf16.mxu0 %v1672_v43  ;;  %v1210_v42 = vsub.s32 (!%p1481_p6), 6, %v1197_v38 }
  0x7a   : > { %1154 = vmatprep.subr.bf16.mxu1 %v1675_v44  ;;  %v1199_v44 = vrot.slane (!%p1481_p6), %v1194_v37, %v1198_v39 }
  0x7c   : > { %1114 = vmatpush1.bf16.msra.mxu0 %v1670_v45  ;;  %v1203_v45 = vrot.slane (!%p1481_p6), %v1194_v37, %v1202_v40 }
  0x7d   : > { %1155 = vmatpush1.bf16.msra.mxu1 %v1673_v46  ;;  %1115 = vmatprep.subr.bf16.mxu0 %v1678_v47  ;;  %v1207_v46 = vrot.slane (!%p1481_p6), %v1194_v37, %v1206_v41  ;;  %v1211_v47 = vrot.slane (!%p1481_p6), %v1194_v37, %v1210_v42 }
  0x7e   : > { %1156 = vmatprep.subr.bf16.mxu1 %v1681_v48 }
  0x80   : > { %1116 = vmatpush1.bf16.msra.mxu0 %v1676_v49 }
  0x81   : > { %1157 = vmatpush1.bf16.msra.mxu1 %v1679_v50  ;;  %1117 = vmatprep.subr.bf16.mxu0 %v1684_v51  ;;  %v1219_v51 = vrot.slane (!%p1481_p6), %v1199_v44, %v1198_v39 }
  0x82   : > { %1158 = vmatprep.subr.bf16.mxu1 %v1687_v52  ;;  %v1223_v52 = vrot.slane (!%p1481_p6), %v1203_v45, %v1198_v39 }
  0x84   : > { %1118 = vmatpush1.bf16.msra.mxu0 %v1682_v53  ;;  %v1227_v53 = vrot.slane (!%p1481_p6), %v1207_v46, %v1198_v39 }
  0x85   : > { %1159 = vmatpush1.bf16.msra.mxu1 %v1685_v54  ;;  %1119 = vmatprep.subr.bf16.mxu0 %v1690_v55  ;;  %v1231_v54 = vrot.slane (!%p1481_p6), %v1211_v47, %v1198_v39 }
  0x86   : > { %1160 = vmatprep.subr.bf16.mxu1 %v1693_v56 }
  0x88   : > { %1120 = vmatpush1.bf16.msra.mxu0 %v1688_v57 }
  0x89   : > { %1161 = vmatpush1.bf16.msra.mxu1 %v1691_v58  ;;  %1121 = vmatprep.subr.bf16.mxu0 %v1696_v59 }
  0x8a   : > { %1162 = vmatprep.subr.bf16.mxu1 %v1699_v60 }
  0x8c   : > { %1122 = vmatpush1.bf16.msra.mxu0 %v1694_v61 }
  0x8d   : > { %1163 = vmatpush1.bf16.msra.mxu1 %v1697_v62  ;;  %1123 = vmatprep.subr.bf16.mxu0 %v1702_v63 }
  0x8e   : > { %1164 = vmatprep.subr.bf16.mxu1 %v1705_v0 }
  0x90   : > { %1124 = vmatpush1.bf16.msra.mxu0 %v1700_v1 }
  0x91   : > { %1165 = vmatpush1.bf16.msra.mxu1 %v1703_v2  ;;  %1125 = vmatprep.subr.bf16.mxu0 %v1708_v3 }
  0x92   : > { %1166 = vmatprep.subr.bf16.mxu1 %v1711_v4 }
  0x94   : > { %1126 = vmatpush1.bf16.msra.mxu0 %v1706_v5 }
  0x95   : > { %1167 = vmatpush1.bf16.msra.mxu1 %v1709_v6 }
  0x97   : > { %1128 = vmatmul.mubr.bf16.vlgmr.msra.gmra.mrb[4].mxu0 %v1861_v7  ;;  %v227_v7 = vld [vmem:[#allocation2 + $0x10] sm:$0xff] }
  0x98   : > { %1169 = vmatmul.mubr.bf16.vlgmr.msra.gmra.mrb[4].mxu1 %v1863_v8 }
 0x12a   : > { %v1047_v9 = vpop.f32.mrb[0].mxu0 }
 0x12b   : > { %v1088_v11 = vpop.f32.mrb[0].mxu1  ;;  %v1049_v13 = vpop.f32.mrb[1].mxu0 }
 0x12c   : > { %v1089_v12 = vadd.f32 %v1088_v11, %v1047_v9  ;;  %v1090_v15 = vpop.f32.mrb[1].mxu1  ;;  %v1051_v17 = vpop.f32.mrb[2].mxu0 }
 0x12d   : > { %v1091_v16 = vadd.f32 %v1090_v15, %v1049_v13  ;;  %v1092_v18 = vpop.f32.mrb[2].mxu1  ;;  %v1052_v20 = vpop.f32.mrb[3].mxu0 }
 0x12e   : > { %v1177_v19 = vadd.f32 %v1089_v12, %v225_v10  ;;  %v1093_v21 = vpop.f32.mrb[3].mxu1 }
 0x12f   : > { %v1178_v22 = vadd.f32 %v1091_v16, %v226_v14 }
 0x130   : > { %1181 = vst [vmem:[#allocation2] sm:$0xff] %v1177_v19 }
 0x131   : > { %1182 = vst [vmem:[#allocation2 + $0x8] sm:$0xff] %v1178_v22 }
 0x137   : > { %v1189_v43 = vld [vmem:[#allocation2] sm:$0xff] (!%p1481_p6) }
 0x138   : > { %v1190_v48 = vld [vmem:[#allocation2 + $0x8] sm:$0xff] (!%p1481_p6)  ;;  %v1232_v55 = vadd.f32 (!%p1481_p6), %v1219_v51, %v1189_v43 }
 0x139   : > { %v1233_v56 = vadd.f32 (!%p1481_p6), %v1223_v52, %v1190_v48 }
 0x13a   : > { %v1236_v59 = vmax.f32 (!%p1481_p6), %v1232_v55, 0.0 }
 0x13b   : > { %v1237_v60 = vmax.f32 (!%p1481_p6), %v1233_v56, 0.0 }
 0x13d   : > { %v1489_v63 = vpack.c.bf16 (!%p1481_p6), %v1237_v60, %v1236_v59 }
 0x13f   : > { %1256 = vst [vmem:[%s1954_s3] sm:$0xff] (!%p1481_p6), %v1489_v63 }
 0x16a   : > { %v1129_v23 = vpop.f32.mrb[4].mxu0 }
 0x16b   : > { %v1170_v24 = vpop.f32.mrb[4].mxu1  ;;  %v1131_v25 = vpop.f32.mrb[5].mxu0  ;;  %1188 = sbr.rel (%p1481_p6) target bundleno = 384 (0x180), region = 40 }
 0x16c   : > { %v1171_v8 = vadd.f32 %v1170_v24, %v1129_v23  ;;  %v1172_v27 = vpop.f32.mrb[5].mxu1  ;;  %v1133_v29 = vpop.f32.mrb[6].mxu0 }
 0x16d   : > { %v1173_v28 = vadd.f32 %v1172_v27, %v1131_v25  ;;  %v1174_v30 = vpop.f32.mrb[6].mxu1  ;;  %v1134_v32 = vpop.f32.mrb[7].mxu0 }
 0x16e   : > { %v1179_v31 = vadd.f32 %v1171_v8, %v227_v7  ;;  %v1175_v33 = vpop.f32.mrb[7].mxu1 }
 0x16f   : > { %v1180_v34 = vadd.f32 %v1173_v28, %v228_v26 }
 0x170   : > { %1183 = vst [vmem:[#allocation2 + $0x10] sm:$0xff] %v1179_v31 }
 0x171   : > { %1184 = vst [vmem:[#allocation2 + $0x18] sm:$0xff] %v1180_v34 }
 0x177   : > { %v1191_v49 = vld [vmem:[#allocation2 + $0x10] sm:$0xff] }
 0x178   : > { %v1192_v50 = vld [vmem:[#allocation2 + $0x18] sm:$0xff]  ;;  %v1234_v57 = vadd.f32 %v1227_v53, %v1191_v49 }
 0x179   : > { %v1235_v58 = vadd.f32 %v1231_v54, %v1192_v50 }
 0x17a   : > { %v1238_v61 = vmax.f32 %v1234_v57, 0.0 }
 0x17b   : > { %v1239_v62 = vmax.f32 %v1235_v58, 0.0 }
 0x17d   : > { %v1490_v0 = vpack.c.bf16 %v1239_v62, %v1238_v61 }
 0x17f   : > { %1257 = vst [vmem:[%s1954_s3 + $0x8] sm:$0xff] %v1490_v0 }
 0x180 PF: > { %s13_s14 = sadd.s32 1, %s1734_s14   ;;  %s1955_s12 = smov %s1730_s13 }
 0x181   : > { %p10_p7 = scmp.ge.s32.totalorder %s13_s14, 11   ;;  %s1956_s13 = smov %s1958_s15 }
 0x183   :  { %12 = sbr.rel (!%p10_p7) target bundleno = 2 (0x2), region = 73 }

// kernel: vgg_loss.77
= control target key start
LH: loop header
LB: loop body
LE: loop exit
PB: predicated region body
PF: predicated region fallthrough
CT: control target
= control target key end

     0   :  { %v30_v2 = vlaneseq  ;;  %v112_v5 = vmov 1983009808   ;;  %s150_s0 = inlined_call_operand.vmem [shape: bf16[2,512], index: 0, kind: input, shape index: {}]   ;;  %s151_s1 = inlined_call_operand.vmem [shape: bf16[2,512], index: 1, kind: input, shape index: {}]   ;;  %s152_s2 = inlined_call_operand.hbm [shape: f32[1,1], index: 2, kind: output, shape index: {}]  }
   0x1   :  { %v18_v0 = vld [vmem:[%s150_s0] sm:$0xf]  ;;  %v28_v6 = vunpack.c.l.s4 %v112_v5 }
   0x2   :  { %v20_v1 = vld [vmem:[%s151_s1] sm:$0xf]  ;;  %v19_v3 = vunpack.c.l.bf16 %v18_v0 }
   0x3   :  { %v21_v4 = vunpack.c.l.bf16 %v20_v1 }
   0x4   :  { %7 = vsyncpa [#allocation3], 0  ;;  %v31_v7 = vshrl.u32 %v30_v2, 7  ;;  %v29_v9 = vunpack.c.0.s8 %v28_v6  ;;  %vm47_vm0 = vcmask 1041408   ;;  %vm16_vm1 = vcmask 0   ;;  %s114_s1 = smov [#allocation2]  }
   0x5   :  { %v22_v8 = vsub.f32 %v19_v3, %v21_v4  ;;  %v113_v24 = vmov 0.0   ;;  %s75_s13 = sshll.u32 %s114_s1, 4  ;;  %s76_s13 = int_to_ptr.vmem [resolvable:$true] %s75_s13 }
   0x6   :  { %v32_v11 = vsub.s32 %v29_v9, %v31_v7  ;;  %17 = vst.msk [vmem:[#allocation2] sm:$0x1] %vm16_vm1, %v113_v24  ;;  %s88_s14 = scalar_lea.vmem %s76_s13, 16  ;;  %s92_s15 = scalar_lea.vmem %s76_s13, 32 }
   0x7   :  { %v23_v10 = vand.u32 2147483647, %v22_v8  ;;  %p89_p0 = scmp.ne.s32.totalorder %s76_s13, %s88_s14  ;;  %p93_p1 = scmp.lt.s32.totalorder %s76_s13, %s76_s13 }
   0x8   :  { %p94_p2 = scmp.lt.s32.totalorder %s92_s15, %s88_s14 }
   0x9   :  { %v26_v12 = vcombine.high %v23_v10, %v23_v10  ;;  %v33_v13 = vrot.slane %v23_v10, %v32_v11 }
   0xa   :  { %p95_p3 = por %p94_p2, %p93_p1 }
   0xb   :  { %v40_v14 = vrot.slane %v26_v12, %v32_v11  ;;  %v41_v15 = vcombine.high %v33_v13, %v33_v13  ;;  %v48_v16 = vsel %vm47_vm0, %v33_v13, 0.0 }
   0xc   :  { %p96_p4 = pnand %p95_p3, %p89_p0 }
   0xd   :  { %v42_v17 = vcombine.high %v40_v14, %v40_v14  ;;  %v49_v18 = vsel %vm47_vm0, %v41_v15, 0.0  ;;  %v51_v19 = vsel %vm47_vm0, %v40_v14, 0.0  ;;  %v24_v32 = vld [vmem:[#allocation2] sm:$0x1] }
   0xe   :  { %v50_v20 = vadd.f32 %v49_v18, %v48_v16 }
   0xf   :  { %v53_v21 = vsel %vm47_vm0, %v42_v17, 0.0 }
  0x10   :  { %v52_v22 = vadd.f32 %v51_v19, %v50_v20 }
  0x12   :  { %v54_v23 = vadd.f32 %v53_v21, %v52_v22 }
  0x14   :  { %55 = vadd.xlane.f32.xlu0 %v54_v23 }
  0xa1   :  { %v56_v25 = vpop.xlane.xlu0 %55 }
  0xa2   :  { %v57_v26 = vrot.slane %v56_v25, 4 }
  0xa4   :  { %v58_v27 = vadd.f32 %v57_v26, %v56_v25 }
  0xa6   :  { %v59_v28 = vrot.slane %v58_v27, 2 }
  0xa8   :  { %v60_v29 = vadd.f32 %v59_v28, %v58_v27 }
  0xaa   :  { %v61_v30 = vrot.slane %v60_v29, 1 }
  0xac   :  { %v62_v31 = vadd.f32 %v61_v30, %v60_v29 }
  0xae   :  { %83 = vpush %v62_v31 }
  0xdf   :  { %s84_s0 = spop %83 }
  0xe0   :  { %v64_v33 = vstv %s84_s0 }
  0xe1   :  { %v65_v34 = vmul.f32 0.0009765625, %v64_v33 }
  0xe3   :  { %v66_v35 = vadd.f32 %v65_v34, %v24_v32 }
  0xe5   :  { %68 = vst.msk [vmem:[#allocation2] sm:$0x1] %vm16_vm1, %v66_v35 }
  0xe6   :  { %99 = shalt.err (!%p96_p4)
}
  0xe7   :  { %s100_s18 = scalar_lea.hbm %s152_s2, 16 }
  0xe8   :  { %p101_p5 = scmp.ne.s32.totalorder %s152_s2, %s100_s18  ;;  %p104_p6 = scmp.lt.u32.totalorder %s100_s18, %s152_s2 }
  0xea   :  { %p106_p7 = pnand %p104_p6, %p101_p5 }
  0xec   :  { %109 = shalt.err (!%p106_p7)
}
  0xed   :  { %78 = dma.vmem_to_hbm [thread:$0]  %s76_s13, 16, %s152_s2, [#allocation3]  }
  0xee   :  { %110 = dma.done.wait [#allocation3], 16  }
  0xef   :  { %111 = vsyncadd [#allocation3], 4294967280 }
  0xf0   :  { %82 = vsyncpa [#allocation3], 1 }

// kernel: vgg_loss.56
= control target key start
LH: loop header
LB: loop body
LE: loop exit
PB: predicated region body
PF: predicated region fallthrough
CT: control target
= control target key end

     0   :  { %s1824_s12 = smov 0   ;;  %s1826_s13 = smov 0   ;;  %s2022_s0 = inlined_call_operand.vmem [shape: bf16[9,2,512], index: 0, kind: input, shape index: {}]   ;;  %s2023_s1 = inlined_call_operand.vmem [shape: bf16[9,512,512], index: 1, kind: input, shape index: {}]   ;;  %s2024_s2 = inlined_call_operand.vmem [shape: bf16[1,512], index: 2, kind: input, shape index: {}]   ;;  %s2025_s3 = inlined_call_operand.vmem [shape: bf16[2,512], index: 3, kind: output, shape index: {}]  }
   0x1   :  { %s1828_s14 = smov 0  }
   0x2 LB: > { %s22_s15 = sadd.s32 1, %s1795_s13  ;;  %p1408_p0 = scmp.ge.s32.totalorder %s1799_s14, 1  ;;  %s1799_s14 = sphi %s1828_s14, %s13_s14   ;;  %s1795_s13 = sphi %s1826_s13, %s2027_s13   ;;  %s1791_s12 = sphi %s1824_s12, %s2026_s12  }
   0x3   : > { %p23_p1 = scmp.ge.s32.totalorder %s22_s15, 9  ;;  %p164_p2 = scmp.lt.s32.totalorder %s1799_s14, 10 }
   0x5   : > { %s2029_s15 = smov (%p23_p1, %s22_s15), 0  ;;  %p165_p3 = pnand %p1408_p0, %p164_p2 }
   0x6   : > { %p195_p4 = scmp.lt.s32.totalorder (!%p165_p3), %s1791_s12, 8  ;;  %p1412_p5 = scmp.ne.s32.totalorder (!%p165_p3), %s1791_s12, 0 }
   0x7   : > { %168 = sbr.rel (%p165_p3) target bundleno = 397 (0x18d), region = 32 }
   0xe   : > { %s196_s16 = scalar_select %p195_p4, %s1791_s12, 8 }
   0xf   : > { %215 = sbr.rel (%p1412_p5) target bundleno = 22 (0x16), region = 36  ;;  %v1801_v0 = vmov (!%p1412_p5), 0.0  }
  0x10   : > { %s1409_s17 = sshll.u32 %s196_s16, 2  ;;  %s1549_s18 = sshll.u32 %s196_s16, 10  ;;  %216 = vst [vmem:[#allocation2] sm:$0xff] (!%p1412_p5), %v1801_v0 }
  0x11   : > { %s1849_s21 = scalar_lea.vmem %s2022_s0, %s1409_s17  ;;  %s1854_s24 = scalar_lea.vmem %s2023_s1, %s1549_s18 }
  0x16 PF: > { %v1585_v1 = vld [vmem:[%s1854_s24 + $0x4] ss:$16 sps:$4 sm:$0xff]   ;;  %v1587_v2 = vld [vmem:[%s1854_s24 + $0xc] ss:$16 sps:$4 sm:$0xff]   ;;  %v1589_v3 = vld [vmem:[%s1854_s24] ss:$16 sps:$4 sm:$0xff]   ;;  %v359_v41 = vlaneseq }
  0x17   : > { %1016 = vmatprep.subr.bf16.mxu0 %v1585_v1  ;;  %v1590_v4 = vld [vmem:[%s1854_s24 + $0x8] ss:$16 sps:$4 sm:$0xff]   ;;  %1098 = vmatprep.subr.bf16.mxu1 %v1587_v2  ;;  %v1591_v5 = vld [vmem:[%s1854_s24 + $0x24] ss:$16 sps:$4 sm:$0xff]   ;;  %v1593_v6 = vld [vmem:[%s1854_s24 + $0x2c] ss:$16 sps:$4 sm:$0xff]  }
  0x18   : > { %1017 = vmatpush1.bf16.msra.mxu0 %v1589_v3  ;;  %1099 = vmatpush1.bf16.msra.mxu1 %v1590_v4  ;;  %v1595_v7 = vld [vmem:[%s1854_s24 + $0x20] ss:$16 sps:$4 sm:$0xff]   ;;  %v1596_v8 = vld [vmem:[%s1854_s24 + $0x28] ss:$16 sps:$4 sm:$0xff]   ;;  %v1597_v9 = vld [vmem:[%s1854_s24 + $0x44] ss:$16 sps:$4 sm:$0xff]  }
  0x19   : > { %1018 = vmatprep.subr.bf16.mxu0 %v1591_v5  ;;  %1100 = vmatprep.subr.bf16.mxu1 %v1593_v6  ;;  %v1599_v10 = vld [vmem:[%s1854_s24 + $0x4c] ss:$16 sps:$4 sm:$0xff]   ;;  %v1601_v11 = vld [vmem:[%s1854_s24 + $0x40] ss:$16 sps:$4 sm:$0xff]   ;;  %v1602_v12 = vld [vmem:[%s1854_s24 + $0x48] ss:$16 sps:$4 sm:$0xff]  }
  0x1a   : > { %v1603_v13 = vld [vmem:[%s1854_s24 + $0x64] ss:$16 sps:$4 sm:$0xff]   ;;  %v1605_v14 = vld [vmem:[%s1854_s24 + $0x6c] ss:$16 sps:$4 sm:$0xff]   ;;  %v1607_v15 = vld [vmem:[%s1854_s24 + $0x60] ss:$16 sps:$4 sm:$0xff]  }
  0x1b   : > { %v1608_v16 = vld [vmem:[%s1854_s24 + $0x68] ss:$16 sps:$4 sm:$0xff]   ;;  %v1609_v17 = vld [vmem:[%s1854_s24 + $0x84] ss:$16 sps:$4 sm:$0xff]   ;;  %v1611_v18 = vld [vmem:[%s1854_s24 + $0x8c] ss:$16 sps:$4 sm:$0xff]  }
  0x1c   : > { %1019 = vmatpush1.bf16.msra.mxu0 %v1595_v7  ;;  %1101 = vmatpush1.bf16.msra.mxu1 %v1596_v8  ;;  %v1613_v19 = vld [vmem:[%s1854_s24 + $0x80] ss:$16 sps:$4 sm:$0xff]   ;;  %v1614_v20 = vld [vmem:[%s1854_s24 + $0x88] ss:$16 sps:$4 sm:$0xff]   ;;  %v1615_v21 = vld [vmem:[%s1854_s24 + $0xa4] ss:$16 sps:$4 sm:$0xff]  }
  0x1d   : > { %1020 = vmatprep.subr.bf16.mxu0 %v1597_v9  ;;  %1102 = vmatprep.subr.bf16.mxu1 %v1599_v10  ;;  %v1617_v22 = vld [vmem:[%s1854_s24 + $0xac] ss:$16 sps:$4 sm:$0xff]   ;;  %v1619_v23 = vld [vmem:[%s1854_s24 + $0xa0] ss:$16 sps:$4 sm:$0xff]   ;;  %v1620_v24 = vld [vmem:[%s1854_s24 + $0xa8] ss:$16 sps:$4 sm:$0xff]  }
  0x1e   : > { %v1621_v25 = vld [vmem:[%s1854_s24 + $0xc4] ss:$16 sps:$4 sm:$0xff]   ;;  %v1623_v26 = vld [vmem:[%s1854_s24 + $0xcc] ss:$16 sps:$4 sm:$0xff]   ;;  %v1625_v27 = vld [vmem:[%s1854_s24 + $0xc0] ss:$16 sps:$4 sm:$0xff]  }
  0x1f   : > { %v1626_v28 = vld [vmem:[%s1854_s24 + $0xc8] ss:$16 sps:$4 sm:$0xff]   ;;  %v1627_v29 = vld [vmem:[%s1854_s24 + $0xe4] ss:$16 sps:$4 sm:$0xff]   ;;  %v1629_v30 = vld [vmem:[%s1854_s24 + $0xec] ss:$16 sps:$4 sm:$0xff]  }
  0x20   : > { %1021 = vmatpush1.bf16.msra.mxu0 %v1601_v11  ;;  %1103 = vmatpush1.bf16.msra.mxu1 %v1602_v12  ;;  %v1631_v31 = vld [vmem:[%s1854_s24 + $0xe0] ss:$16 sps:$4 sm:$0xff]   ;;  %v1632_v32 = vld [vmem:[%s1854_s24 + $0xe8] ss:$16 sps:$4 sm:$0xff]   ;;  %v1633_v33 = vld [vmem:[%s1854_s24 + $0x104] ss:$16 sps:$4 sm:$0xff]  }
  0x21   : > { %1022 = vmatprep.subr.bf16.mxu0 %v1603_v13  ;;  %1104 = vmatprep.subr.bf16.mxu1 %v1605_v14  ;;  %v1635_v34 = vld [vmem:[%s1854_s24 + $0x10c] ss:$16 sps:$4 sm:$0xff]   ;;  %v1637_v35 = vld [vmem:[%s1854_s24 + $0x100] ss:$16 sps:$4 sm:$0xff]   ;;  %v1638_v36 = vld [vmem:[%s1854_s24 + $0x108] ss:$16 sps:$4 sm:$0xff]  }
  0x22   : > { %v1639_v37 = vld [vmem:[%s1854_s24 + $0x124] ss:$16 sps:$4 sm:$0xff]   ;;  %v1641_v38 = vld [vmem:[%s1854_s24 + $0x12c] ss:$16 sps:$4 sm:$0xff]   ;;  %v1802_v39 = vmov 1966171168  }
  0x23   : > { %v357_v40 = vunpack.c.l.s4 %v1802_v39  ;;  %v1643_v42 = vld [vmem:[%s1854_s24 + $0x120] ss:$16 sps:$4 sm:$0xff]   ;;  %v1644_v43 = vld [vmem:[%s1854_s24 + $0x128] ss:$16 sps:$4 sm:$0xff]   ;;  %v1645_v44 = vld [vmem:[%s1854_s24 + $0x144] ss:$16 sps:$4 sm:$0xff]  }
  0x24   : > { %1023 = vmatpush1.bf16.msra.mxu0 %v1607_v15  ;;  %1105 = vmatpush1.bf16.msra.mxu1 %v1608_v16  ;;  %v1647_v45 = vld [vmem:[%s1854_s24 + $0x14c] ss:$16 sps:$4 sm:$0xff]   ;;  %v1899_v47 = vshrl.u32 %v359_v41, 7  ;;  %v1649_v48 = vld [vmem:[%s1854_s24 + $0x140] ss:$16 sps:$4 sm:$0xff]   ;;  %p1542_p6 = scmp.ne.s32.totalorder %s1791_s12, 8 }
  0x25   : > { %1024 = vmatprep.subr.bf16.mxu0 %v1609_v17  ;;  %1106 = vmatprep.subr.bf16.mxu1 %v1611_v18  ;;  %v358_v46 = vunpack.c.0.s8 %v357_v40  ;;  %v1650_v49 = vld [vmem:[%s1854_s24 + $0x148] ss:$16 sps:$4 sm:$0xff]   ;;  %v1651_v50 = vld [vmem:[%s1854_s24 + $0x164] ss:$16 sps:$4 sm:$0xff]   ;;  %v1653_v51 = vld [vmem:[%s1854_s24 + $0x16c] ss:$16 sps:$4 sm:$0xff]  }
  0x26   : > { %v1413_v53 = vld.sshfl [vmem:[%s1849_s21] sm:$0x33 pattern:$0x75316420]  ;;  %v1656_v55 = vld [vmem:[%s1854_s24 + $0x168] ss:$16 sps:$4 sm:$0xff]  }
  0x27   : > { %v1906_v52 = vsub.s32 %v358_v46, %v1899_v47  ;;  %v1655_v54 = vld [vmem:[%s1854_s24 + $0x160] ss:$16 sps:$4 sm:$0xff]   ;;  %v355_v56 = vcombine.high %v1413_v53, %v1413_v53  ;;  %v1657_v57 = vld [vmem:[%s1854_s24 + $0x184] ss:$16 sps:$4 sm:$0xff]   ;;  %v1659_v58 = vld [vmem:[%s1854_s24 + $0x18c] ss:$16 sps:$4 sm:$0xff]  }
  0x28   : > { %1025 = vmatpush1.bf16.msra.mxu0 %v1613_v19  ;;  %1107 = vmatpush1.bf16.msra.mxu1 %v1614_v20  ;;  %v1661_v60 = vld [vmem:[%s1854_s24 + $0x180] ss:$16 sps:$4 sm:$0xff]   ;;  %v1662_v61 = vld [vmem:[%s1854_s24 + $0x188] ss:$16 sps:$4 sm:$0xff]   ;;  %v1663_v62 = vld [vmem:[%s1854_s24 + $0x1a4] ss:$16 sps:$4 sm:$0xff]  }
  0x29   : > { %1026 = vmatprep.subr.bf16.mxu0 %v1615_v21  ;;  %1108 = vmatprep.subr.bf16.mxu1 %v1617_v22  ;;  %v369_v59 = vrot.slane %v355_v56, %v1906_v52  ;;  %v1665_v63 = vld [vmem:[%s1854_s24 + $0x1ac] ss:$16 sps:$4 sm:$0xff]   ;;  %v1667_v0 = vld [vmem:[%s1854_s24 + $0x1a0] ss:$16 sps:$4 sm:$0xff]   ;;  %v1668_v1 = vld [vmem:[%s1854_s24 + $0x1a8] ss:$16 sps:$4 sm:$0xff]   ;;  %v1932_v13 = vrot.slane %v1413_v53, %v1906_v52 }
  0x2a   : > { %v1669_v2 = vld [vmem:[%s1854_s24 + $0x1c4] ss:$16 sps:$4 sm:$0xff]   ;;  %v1671_v3 = vld [vmem:[%s1854_s24 + $0x1cc] ss:$16 sps:$4 sm:$0xff]   ;;  %v1673_v4 = vld [vmem:[%s1854_s24 + $0x1c0] ss:$16 sps:$4 sm:$0xff]  }
  0x2b   : > { %1048 = vmatprep.mubr.bf16.mxu0 %v369_v59  ;;  %1130 = vmatprep.mubr.bf16.mxu1 %v369_v59  ;;  %v1674_v5 = vld [vmem:[%s1854_s24 + $0x1c8] ss:$16 sps:$4 sm:$0xff]   ;;  %v1675_v6 = vld [vmem:[%s1854_s24 + $0x1e4] ss:$16 sps:$4 sm:$0xff]   ;;  %v1677_v7 = vld [vmem:[%s1854_s24 + $0x1ec] ss:$16 sps:$4 sm:$0xff]   ;;  %v371_v17 = vcombine.high %v369_v59, %v369_v59 }
  0x2c   : > { %1027 = vmatpush1.bf16.msra.mxu0 %v1619_v23  ;;  %1109 = vmatpush1.bf16.msra.mxu1 %v1620_v24  ;;  %v1679_v8 = vld [vmem:[%s1854_s24 + $0x1e0] ss:$16 sps:$4 sm:$0xff]   ;;  %v1680_v9 = vld [vmem:[%s1854_s24 + $0x1e8] ss:$16 sps:$4 sm:$0xff]   ;;  %v1683_v10 = vld [vmem:[%s1854_s24 + $0x204] ss:$16 sps:$4 sm:$0xff]  }
  0x2d   : > { %1028 = vmatprep.subr.bf16.mxu0 %v1621_v25  ;;  %1110 = vmatprep.subr.bf16.mxu1 %v1623_v26  ;;  %v1686_v11 = vld [vmem:[%s1854_s24 + $0x20c] ss:$16 sps:$4 sm:$0xff]   ;;  %v1681_v12 = vld [vmem:[%s1854_s24 + $0x200] ss:$16 sps:$4 sm:$0xff]   ;;  %v1684_v14 = vld [vmem:[%s1854_s24 + $0x208] ss:$16 sps:$4 sm:$0xff]  }
  0x2e   : > { %v1689_v15 = vld [vmem:[%s1854_s24 + $0x224] ss:$16 sps:$4 sm:$0xff]   ;;  %v1692_v16 = vld [vmem:[%s1854_s24 + $0x22c] ss:$16 sps:$4 sm:$0xff]   ;;  %v1687_v18 = vld [vmem:[%s1854_s24 + $0x220] ss:$16 sps:$4 sm:$0xff]  }
  0x2f   : > { %v1690_v19 = vld [vmem:[%s1854_s24 + $0x228] ss:$16 sps:$4 sm:$0xff]   ;;  %v1695_v20 = vld [vmem:[%s1854_s24 + $0x244] ss:$16 sps:$4 sm:$0xff]   ;;  %v1698_v21 = vld [vmem:[%s1854_s24 + $0x24c] ss:$16 sps:$4 sm:$0xff]  }
  0x30   : > { %1029 = vmatpush1.bf16.msra.mxu0 %v1625_v27  ;;  %1111 = vmatpush1.bf16.msra.mxu1 %v1626_v28  ;;  %v1693_v22 = vld [vmem:[%s1854_s24 + $0x240] ss:$16 sps:$4 sm:$0xff]   ;;  %v1696_v23 = vld [vmem:[%s1854_s24 + $0x248] ss:$16 sps:$4 sm:$0xff]   ;;  %v1701_v24 = vld [vmem:[%s1854_s24 + $0x264] ss:$16 sps:$4 sm:$0xff]  }
  0x31   : > { %1030 = vmatprep.subr.bf16.mxu0 %v1627_v29  ;;  %1112 = vmatprep.subr.bf16.mxu1 %v1629_v30  ;;  %v1704_v25 = vld [vmem:[%s1854_s24 + $0x26c] ss:$16 sps:$4 sm:$0xff]   ;;  %v1699_v26 = vld [vmem:[%s1854_s24 + $0x260] ss:$16 sps:$4 sm:$0xff]   ;;  %v1702_v27 = vld [vmem:[%s1854_s24 + $0x268] ss:$16 sps:$4 sm:$0xff]  }
  0x32   : > { %v1707_v28 = vld [vmem:[%s1854_s24 + $0x284] ss:$16 sps:$4 sm:$0xff]   ;;  %v1710_v29 = vld [vmem:[%s1854_s24 + $0x28c] ss:$16 sps:$4 sm:$0xff]   ;;  %v1705_v30 = vld [vmem:[%s1854_s24 + $0x280] ss:$16 sps:$4 sm:$0xff]  }
  0x33   : > { %v1720_v39 = vld [vmem:[%s1854_s24 + $0x2c8] ss:$16 sps:$4 sm:$0xff]   ;;  %v1725_v40 = vld [vmem:[%s1854_s24 + $0x2e4] ss:$16 sps:$4 sm:$0xff]   ;;  %v1728_v41 = vld [vmem:[%s1854_s24 + $0x2ec] ss:$16 sps:$4 sm:$0xff]  }
  0x34   : > { %1031 = vmatpush1.bf16.msra.mxu0 %v1631_v31  ;;  %1113 = vmatpush1.bf16.msra.mxu1 %v1632_v32  ;;  %v1708_v31 = vld [vmem:[%s1854_s24 + $0x288] ss:$16 sps:$4 sm:$0xff]   ;;  %v1713_v32 = vld [vmem:[%s1854_s24 + $0x2a4] ss:$16 sps:$4 sm:$0xff]   ;;  %v1729_v46 = vld [vmem:[%s1854_s24 + $0x300] ss:$16 sps:$4 sm:$0xff]  }
  0x35   : > { %1032 = vmatprep.subr.bf16.mxu0 %v1633_v33  ;;  %1114 = vmatprep.subr.bf16.mxu1 %v1635_v34  ;;  %v1716_v33 = vld [vmem:[%s1854_s24 + $0x2ac] ss:$16 sps:$4 sm:$0xff]   ;;  %v1711_v34 = vld [vmem:[%s1854_s24 + $0x2a0] ss:$16 sps:$4 sm:$0xff]   ;;  %v1738_v53 = vld [vmem:[%s1854_s24 + $0x328] ss:$16 sps:$4 sm:$0xff]  }
  0x36   : > { %v1741_v56 = vld [vmem:[%s1854_s24 + $0x340] ss:$16 sps:$4 sm:$0xff]   ;;  %v1752_v59 = vld [vmem:[%s1854_s24 + $0x36c] ss:$16 sps:$4 sm:$0xff]  }
  0x38   : > { %1033 = vmatpush1.bf16.msra.mxu0 %v1637_v35  ;;  %1115 = vmatpush1.bf16.msra.mxu1 %v1638_v36  ;;  %v1714_v35 = vld [vmem:[%s1854_s24 + $0x2a8] ss:$16 sps:$4 sm:$0xff]   ;;  %v1719_v36 = vld [vmem:[%s1854_s24 + $0x2c4] ss:$16 sps:$4 sm:$0xff]  }
  0x39   : > { %1034 = vmatprep.subr.bf16.mxu0 %v1639_v37  ;;  %1116 = vmatprep.subr.bf16.mxu1 %v1641_v38  ;;  %v1722_v37 = vld [vmem:[%s1854_s24 + $0x2cc] ss:$16 sps:$4 sm:$0xff]   ;;  %v1717_v38 = vld [vmem:[%s1854_s24 + $0x2c0] ss:$16 sps:$4 sm:$0xff]  }
  0x3c   : > { %1035 = vmatpush1.bf16.msra.mxu0 %v1643_v42  ;;  %1117 = vmatpush1.bf16.msra.mxu1 %v1644_v43  ;;  %v1723_v42 = vld [vmem:[%s1854_s24 + $0x2e0] ss:$16 sps:$4 sm:$0xff]   ;;  %v1726_v43 = vld [vmem:[%s1854_s24 + $0x2e8] ss:$16 sps:$4 sm:$0xff]  }
  0x3d   : > { %1036 = vmatprep.subr.bf16.mxu0 %v1645_v44  ;;  %1118 = vmatprep.subr.bf16.mxu1 %v1647_v45  ;;  %v1731_v44 = vld [vmem:[%s1854_s24 + $0x304] ss:$16 sps:$4 sm:$0xff]   ;;  %v1734_v45 = vld [vmem:[%s1854_s24 + $0x30c] ss:$16 sps:$4 sm:$0xff]  }
  0x40   : > { %1037 = vmatpush1.bf16.msra.mxu0 %v1649_v48  ;;  %1119 = vmatpush1.bf16.msra.mxu1 %v1650_v49  ;;  %v1732_v48 = vld [vmem:[%s1854_s24 + $0x308] ss:$16 sps:$4 sm:$0xff]   ;;  %v1737_v49 = vld [vmem:[%s1854_s24 + $0x324] ss:$16 sps:$4 sm:$0xff]  }
  0x41   : > { %1038 = vmatprep.subr.bf16.mxu0 %v1651_v50  ;;  %1120 = vmatprep.subr.bf16.mxu1 %v1653_v51  ;;  %v1740_v50 = vld [vmem:[%s1854_s24 + $0x32c] ss:$16 sps:$4 sm:$0xff]   ;;  %v1735_v51 = vld [vmem:[%s1854_s24 + $0x320] ss:$16 sps:$4 sm:$0xff]  }
  0x44   : > { %1039 = vmatpush1.bf16.msra.mxu0 %v1655_v54  ;;  %1121 = vmatpush1.bf16.msra.mxu1 %v1656_v55  ;;  %v1743_v54 = vld [vmem:[%s1854_s24 + $0x344] ss:$16 sps:$4 sm:$0xff]   ;;  %v1746_v55 = vld [vmem:[%s1854_s24 + $0x34c] ss:$16 sps:$4 sm:$0xff]  }
  0x45   : > { %1040 = vmatprep.subr.bf16.mxu0 %v1657_v57  ;;  %1122 = vmatprep.subr.bf16.mxu1 %v1659_v58  ;;  %v1744_v57 = vld [vmem:[%s1854_s24 + $0x348] ss:$16 sps:$4 sm:$0xff]   ;;  %v1749_v58 = vld [vmem:[%s1854_s24 + $0x364] ss:$16 sps:$4 sm:$0xff]  }
  0x48   : > { %1041 = vmatpush1.bf16.msra.mxu0 %v1661_v60  ;;  %1123 = vmatpush1.bf16.msra.mxu1 %v1662_v61  ;;  %v1747_v60 = vld [vmem:[%s1854_s24 + $0x360] ss:$16 sps:$4 sm:$0xff]   ;;  %v1750_v61 = vld [vmem:[%s1854_s24 + $0x368] ss:$16 sps:$4 sm:$0xff]  }
  0x49   : > { %1042 = vmatprep.subr.bf16.mxu0 %v1663_v62  ;;  %1124 = vmatprep.subr.bf16.mxu1 %v1665_v63  ;;  %v1755_v62 = vld [vmem:[%s1854_s24 + $0x384] ss:$16 sps:$4 sm:$0xff]   ;;  %v1758_v63 = vld [vmem:[%s1854_s24 + $0x38c] ss:$16 sps:$4 sm:$0xff]  }
  0x4c   : > { %1043 = vmatpush1.bf16.msra.mxu0 %v1667_v0  ;;  %1125 = vmatpush1.bf16.msra.mxu1 %v1668_v1  ;;  %v1753_v0 = vld [vmem:[%s1854_s24 + $0x380] ss:$16 sps:$4 sm:$0xff]   ;;  %v1756_v1 = vld [vmem:[%s1854_s24 + $0x388] ss:$16 sps:$4 sm:$0xff]  }
  0x4d   : > { %1044 = vmatprep.subr.bf16.mxu0 %v1669_v2  ;;  %1126 = vmatprep.subr.bf16.mxu1 %v1671_v3  ;;  %v1761_v2 = vld [vmem:[%s1854_s24 + $0x3a4] ss:$16 sps:$4 sm:$0xff]   ;;  %v1764_v3 = vld [vmem:[%s1854_s24 + $0x3ac] ss:$16 sps:$4 sm:$0xff]  }
  0x50   : > { %1045 = vmatpush1.bf16.msra.mxu0 %v1673_v4  ;;  %1127 = vmatpush1.bf16.msra.mxu1 %v1674_v5  ;;  %v1759_v4 = vld [vmem:[%s1854_s24 + $0x3a0] ss:$16 sps:$4 sm:$0xff]   ;;  %v1762_v5 = vld [vmem:[%s1854_s24 + $0x3a8] ss:$16 sps:$4 sm:$0xff]  }
  0x51   : > { %1046 = vmatprep.subr.bf16.mxu0 %v1675_v6  ;;  %1128 = vmatprep.subr.bf16.mxu1 %v1677_v7  ;;  %v1767_v6 = vld [vmem:[%s1854_s24 + $0x3c4] ss:$16 sps:$4 sm:$0xff]   ;;  %v1770_v7 = vld [vmem:[%s1854_s24 + $0x3cc] ss:$16 sps:$4 sm:$0xff]  }
  0x54   : > { %1047 = vmatpush1.bf16.msra.mxu0 %v1679_v8  ;;  %1129 = vmatpush1.bf16.msra.mxu1 %v1680_v9  ;;  %v1765_v8 = vld [vmem:[%s1854_s24 + $0x3c0] ss:$16 sps:$4 sm:$0xff]   ;;  %v1768_v9 = vld [vmem:[%s1854_s24 + $0x3c8] ss:$16 sps:$4 sm:$0xff]  }
  0x55   : > { %1057 = vmatprep.subr.bf16.mxu0 %v1683_v10  ;;  %1139 = vmatprep.subr.bf16.mxu1 %v1686_v11  ;;  %v1773_v10 = vld [vmem:[%s1854_s24 + $0x3e4] ss:$16 sps:$4 sm:$0xff]   ;;  %v1776_v11 = vld [vmem:[%s1854_s24 + $0x3ec] ss:$16 sps:$4 sm:$0xff]  }
  0x57   : > { %1049 = vmatmul.mubr.bf16.vlgmr.msra.gmra.mrb[0].mxu0 %v1932_v13  ;;  %1131 = vmatmul.mubr.bf16.vlgmr.msra.gmra.mrb[0].mxu1 %v1932_v13 }
  0x58   : > { %1058 = vmatpush1.bf16.msra.mxu0 %v1681_v12  ;;  %1140 = vmatpush1.bf16.msra.mxu1 %v1684_v14  ;;  %v1771_v12 = vld [vmem:[%s1854_s24 + $0x3e0] ss:$16 sps:$4 sm:$0xff]   ;;  %v1774_v14 = vld [vmem:[%s1854_s24 + $0x3e8] ss:$16 sps:$4 sm:$0xff]  }
  0x59   : > { %1059 = vmatprep.subr.bf16.mxu0 %v1689_v15  ;;  %1141 = vmatprep.subr.bf16.mxu1 %v1692_v16  ;;  %v370_v15 = vcombine.high %v1932_v13, %v1932_v13  ;;  %v1803_v16 = vmov 1983009808  }
  0x5a   : > { %1089 = vmatprep.mubr.bf16.mxu0 %v371_v17  ;;  %1171 = vmatprep.mubr.bf16.mxu1 %v371_v17  ;;  %v1187_v17 = vunpack.c.l.s4 %v1803_v16 }
  0x5c   : > { %1060 = vmatpush1.bf16.msra.mxu0 %v1687_v18  ;;  %1142 = vmatpush1.bf16.msra.mxu1 %v1690_v19  ;;  %v1188_v18 = vunpack.c.0.s8 %v1187_v17 }
  0x5d   : > { %1061 = vmatprep.subr.bf16.mxu0 %v1695_v20  ;;  %1143 = vmatprep.subr.bf16.mxu1 %v1698_v21 }
  0x5e   : > { %v1191_v21 = vsub.s32 %v1188_v18, %v1899_v47 }
  0x60   : > { %1062 = vmatpush1.bf16.msra.mxu0 %v1693_v22  ;;  %1144 = vmatpush1.bf16.msra.mxu1 %v1696_v23 }
  0x61   : > { %1063 = vmatprep.subr.bf16.mxu0 %v1701_v24  ;;  %1145 = vmatprep.subr.bf16.mxu1 %v1704_v25 }
  0x64   : > { %1064 = vmatpush1.bf16.msra.mxu0 %v1699_v26  ;;  %1146 = vmatpush1.bf16.msra.mxu1 %v1702_v27 }
  0x65   : > { %1065 = vmatprep.subr.bf16.mxu0 %v1707_v28  ;;  %1147 = vmatprep.subr.bf16.mxu1 %v1710_v29 }
  0x68   : > { %1066 = vmatpush1.bf16.msra.mxu0 %v1705_v30  ;;  %1148 = vmatpush1.bf16.msra.mxu1 %v1708_v31  ;;  %v217_v31 = vld [vmem:[#allocation2] sm:$0xff] }
  0x69   : > { %1067 = vmatprep.subr.bf16.mxu0 %v1713_v32  ;;  %1149 = vmatprep.subr.bf16.mxu1 %v1716_v33 }
  0x6c   : > { %1068 = vmatpush1.bf16.msra.mxu0 %v1711_v34  ;;  %1150 = vmatpush1.bf16.msra.mxu1 %v1714_v35  ;;  %v1209_v34 = vld [vmem:[%s2024_s2] sm:$0xf] (!%p1542_p6)  ;;  %v1214_v35 = vsub.s32 (!%p1542_p6), 0, %v1899_v47 }
  0x6d   : > { %1069 = vmatprep.subr.bf16.mxu0 %v1719_v36  ;;  %1151 = vmatprep.subr.bf16.mxu1 %v1722_v37  ;;  %v1218_v36 = vsub.s32 (!%p1542_p6), 2, %v1899_v47  ;;  %v1222_v37 = vsub.s32 (!%p1542_p6), 4, %v1899_v47 }
  0x70   : > { %1070 = vmatpush1.bf16.msra.mxu0 %v1717_v38  ;;  %1152 = vmatpush1.bf16.msra.mxu1 %v1720_v39  ;;  %v1210_v38 = vunpack.c.l.bf16 (!%p1542_p6), %v1209_v34  ;;  %v1226_v39 = vsub.s32 (!%p1542_p6), 6, %v1899_v47 }
  0x71   : > { %1071 = vmatprep.subr.bf16.mxu0 %v1725_v40  ;;  %1153 = vmatprep.subr.bf16.mxu1 %v1728_v41 }
  0x72   : > { %v1215_v40 = vrot.slane (!%p1542_p6), %v1210_v38, %v1214_v35  ;;  %v1219_v41 = vrot.slane (!%p1542_p6), %v1210_v38, %v1218_v36 }
  0x74   : > { %1072 = vmatpush1.bf16.msra.mxu0 %v1723_v42  ;;  %1154 = vmatpush1.bf16.msra.mxu1 %v1726_v43  ;;  %v1223_v42 = vrot.slane (!%p1542_p6), %v1210_v38, %v1222_v37  ;;  %v1227_v43 = vrot.slane (!%p1542_p6), %v1210_v38, %v1226_v39 }
  0x75   : > { %1073 = vmatprep.subr.bf16.mxu0 %v1731_v44  ;;  %1155 = vmatprep.subr.bf16.mxu1 %v1734_v45  ;;  %v1235_v44 = vrot.slane (!%p1542_p6), %v1215_v40, %v1214_v35  ;;  %v1239_v45 = vrot.slane (!%p1542_p6), %v1219_v41, %v1214_v35 }
  0x78   : > { %1074 = vmatpush1.bf16.msra.mxu0 %v1729_v46  ;;  %1156 = vmatpush1.bf16.msra.mxu1 %v1732_v48  ;;  %v1243_v46 = vrot.slane (!%p1542_p6), %v1223_v42, %v1214_v35  ;;  %v1247_v48 = vrot.slane (!%p1542_p6), %v1227_v43, %v1214_v35 }
  0x79   : > { %1075 = vmatprep.subr.bf16.mxu0 %v1737_v49  ;;  %1157 = vmatprep.subr.bf16.mxu1 %v1740_v50  ;;  %v1252_v49 = vcombine.low (!%p1542_p6), %v1235_v44, %v1239_v45 }
  0x7a   : > { %v1253_v50 = vcombine.low (!%p1542_p6), %v1243_v46, %v1247_v48 }
  0x7c   : > { %1076 = vmatpush1.bf16.msra.mxu0 %v1735_v51  ;;  %1158 = vmatpush1.bf16.msra.mxu1 %v1738_v53  ;;  %v1260_v51 = vrot.slane (!%p1542_p6), %v1252_v49, %v1191_v21  ;;  %v1267_v53 = vrot.slane (!%p1542_p6), %v1253_v50, %v1191_v21 }
  0x7d   : > { %1077 = vmatprep.subr.bf16.mxu0 %v1743_v54  ;;  %1159 = vmatprep.subr.bf16.mxu1 %v1746_v55 }
  0x7e   : > { %v1268_v55 = vcombine.low (!%p1542_p6), %v1260_v51, %v1267_v53 }
  0x80   : > { %1078 = vmatpush1.bf16.msra.mxu0 %v1741_v56  ;;  %1160 = vmatpush1.bf16.msra.mxu1 %v1744_v57 }
  0x81   : > { %1079 = vmatprep.subr.bf16.mxu0 %v1749_v58  ;;  %1161 = vmatprep.subr.bf16.mxu1 %v1752_v59 }
  0x84   : > { %1080 = vmatpush1.bf16.msra.mxu0 %v1747_v60  ;;  %1162 = vmatpush1.bf16.msra.mxu1 %v1750_v61 }
  0x85   : > { %1081 = vmatprep.subr.bf16.mxu0 %v1755_v62  ;;  %1163 = vmatprep.subr.bf16.mxu1 %v1758_v63 }
  0x88   : > { %1082 = vmatpush1.bf16.msra.mxu0 %v1753_v0  ;;  %1164 = vmatpush1.bf16.msra.mxu1 %v1756_v1 }
  0x89   : > { %1083 = vmatprep.subr.bf16.mxu0 %v1761_v2  ;;  %1165 = vmatprep.subr.bf16.mxu1 %v1764_v3 }
  0x8c   : > { %1084 = vmatpush1.bf16.msra.mxu0 %v1759_v4  ;;  %1166 = vmatpush1.bf16.msra.mxu1 %v1762_v5 }
  0x8d   : > { %1085 = vmatprep.subr.bf16.mxu0 %v1767_v6  ;;  %1167 = vmatprep.subr.bf16.mxu1 %v1770_v7 }
  0x90   : > { %1086 = vmatpush1.bf16.msra.mxu0 %v1765_v8  ;;  %1168 = vmatpush1.bf16.msra.mxu1 %v1768_v9 }
  0x91   : > { %1087 = vmatprep.subr.bf16.mxu0 %v1773_v10  ;;  %1169 = vmatprep.subr.bf16.mxu1 %v1776_v11 }
  0x94   : > { %1088 = vmatpush1.bf16.msra.mxu0 %v1771_v12  ;;  %1170 = vmatpush1.bf16.msra.mxu1 %v1774_v14 }
  0x97   : > { %1090 = vmatmul.mubr.bf16.vlgmr.msra.gmra.mrb[0].mxu0 %v370_v15  ;;  %1172 = vmatmul.mubr.bf16.vlgmr.msra.gmra.mrb[0].mxu1 %v370_v15 }
 0x16a   : > { %v1091_v19 = vpop.f32.mrb[0].mxu0  ;;  %v1173_v20 = vpop.f32.mrb[0].mxu1 }
 0x16b   : > { %v1093_v22 = vpop.f32.mrb[1].mxu0  ;;  %v1175_v23 = vpop.f32.mrb[1].mxu1 }
 0x16c   : > { %v1184_v24 = vcombine.low %v1091_v19, %v1093_v22  ;;  %v1185_v25 = vcombine.low %v1173_v20, %v1175_v23  ;;  %v1095_v26 = vpop.f32.mrb[2].mxu0  ;;  %v1177_v27 = vpop.f32.mrb[2].mxu1 }
 0x16d   : > { %v1096_v28 = vpop.f32.mrb[3].mxu0  ;;  %v1178_v29 = vpop.f32.mrb[3].mxu1 }
 0x16e   : > { %v1192_v13 = vrot.slane %v1184_v24, %v1191_v21  ;;  %v1199_v30 = vrot.slane %v1185_v25, %v1191_v21  ;;  %1207 = sbr.rel (%p1542_p6) target bundleno = 397 (0x18d), region = 40 }
 0x170   : > { %v1200_v32 = vcombine.low %v1192_v13, %v1199_v30 }
 0x172   : > { %v1202_v33 = vadd.f32 %v1200_v32, %v217_v31 }
 0x174   : > { %1203 = vst [vmem:[#allocation2] sm:$0xff] %v1202_v33 }
 0x17b   : > { %v1208_v54 = vld [vmem:[#allocation2] sm:$0xff] }
 0x17c   : > { %v1270_v56 = vadd.f32 %v1268_v55, %v1208_v54 }
 0x17e   : > { %v1271_v57 = vmax.f32 %v1270_v56, 0.0 }
 0x180   : > { %v1273_v58 = vcombine.high %v1271_v57, %v1271_v57  ;;  %v1280_v59 = vrot.slane %v1271_v57, %v1191_v21 }
 0x182   : > { %v1287_v60 = vrot.slane %v1273_v58, %v1191_v21  ;;  %v1288_v47 = vcombine.high %v1280_v59, %v1280_v59 }
 0x184   : > { %v1289_v61 = vcombine.high %v1287_v60, %v1287_v60  ;;  %v1543_v62 = vpack.c.bf16 %v1288_v47, %v1280_v59 }
 0x186   : > { %v1544_v63 = vpack.c.bf16 %v1289_v61, %v1287_v60  ;;  %v1310_v0 = vrot.slane %v1543_v62, %v1906_v52 }
 0x188   : > { %v1317_v1 = vrot.slane %v1544_v63, %v1906_v52 }
 0x18a   : > { %v1318_v2 = vcombine.low %v1310_v0, %v1317_v1 }
 0x18c   : > { %1545 = vst.sshfl [vmem:[%s2025_s3] sm:$0x55 pattern:$0x73625140] %v1318_v2 }
 0x18d PF: > { %s13_s14 = sadd.s32 1, %s1799_s14   ;;  %s2026_s12 = smov %s1795_s13 }
 0x18e   : > { %p10_p7 = scmp.ge.s32.totalorder %s13_s14, 11   ;;  %s2027_s13 = smov %s2029_s15 }
 0x190   :  { %12 = sbr.rel (!%p10_p7) target bundleno = 2 (0x2), region = 73 }

</bundles_post_ra>
